<compile_context>
chip_gen: v7x
topology: tpu7x:2x2x1
jax: 0.10.0
libtpu: 0.0.40
codegen_flags: <defaults>
</compile_context>

<pallas_src>
import functools

import jax
import jax.numpy as jnp
from jax.experimental import pallas as pl
from jax.experimental.pallas import tpu as pltpu

NET_W = 512
ACTION_COUNT = 3          # car-racing: steer / gas / brake
FEAT_C = 1280             # EfficientNet-B0 feature width fed into the classifier
STEM_C = 32               # stem conv output channels
KPAD = 32                 # im2col K (3*3*3 = 27) zero-padded to 32
HEAD_NPAD = 128           # fc3 output padded to a full lane width

_VMEM = pl.BlockSpec(memory_space=pltpu.MemorySpace.VMEM)


def _round_up(x, m):
    return (x + m - 1) // m * m


# --------------------------------------------------------------------------
# Fused backbone kernel: stem matmul -> SiLU -> 1x1 proj -> SiLU -> pooled sum
# --------------------------------------------------------------------------
def _backbone_kernel(p_ref, sw_ref, sb_ref, pw_ref, pb_ref,
                     pooled_ref, acc_ref, *, hw, tm):
    t = pl.program_id(1)

    @pl.when(t == 0)
    def _():
        acc_ref[...] = jnp.zeros_like(acc_ref)

    # stem conv (im2col patches @ stem_w) + bias, SiLU in f32
    h = jnp.dot(p_ref[...], sw_ref[...], preferred_element_type=jnp.float32)
    h = h + sb_ref[...]
    h = h * jax.nn.sigmoid(h)

    # 1x1 projection to FEAT_C + bias, SiLU in f32  (bf16 MXU operands, f32 acc)
    f = jnp.dot(h.astype(jnp.bfloat16), pw_ref[...],
                preferred_element_type=jnp.float32)
    f = f + pb_ref[...]
    f = f * jax.nn.sigmoid(f)

    # mask rows that are only spatial padding, then accumulate the pooled sum
    row = t * tm + jax.lax.broadcasted_iota(jnp.int32, (tm, 1), 0)
    f = jnp.where(row < hw, f, 0.0)
    acc_ref[...] += jnp.sum(f, axis=0, keepdims=True)

    @pl.when(t == pl.num_programs(1) - 1)
    def _():
        pooled_ref[...] = (acc_ref[...] * (1.0 / hw)).astype(pooled_ref.dtype)


def backbone_pool(patches, params, *, hw, tm):
    """patches: [B, HWp, KPAD] bf16 (HWp multiple of tm) -> pooled [B, FEAT_C] f32."""
    B, HWp, _ = patches.shape
    T = HWp // tm

    flops = 2 * B * HWp * (KPAD * STEM_C + STEM_C * FEAT_C)
    transcendentals = B * HWp * (STEM_C + FEAT_C)
    bytes_accessed = (patches.size * 2
                      + params["stem_w"].size * 2 + params["proj_w"].size * 2
                      + (STEM_C + FEAT_C) * 4
                      + B * FEAT_C * 4)

    kern = functools.partial(_backbone_kernel, hw=hw, tm=tm)
    pooled = pl.pallas_call(
        kern,
        out_shape=jax.ShapeDtypeStruct((B, 1, FEAT_C), jnp.float32),
        grid_spec=pltpu.PrefetchScalarGridSpec(
            num_scalar_prefetch=0,
            grid=(B, T),
            in_specs=[
                pl.BlockSpec((None, tm, KPAD), lambda b, t: (b, t, 0)),
                pl.BlockSpec((KPAD, STEM_C), lambda b, t: (0, 0)),
                pl.BlockSpec((1, STEM_C), lambda b, t: (0, 0)),
                pl.BlockSpec((STEM_C, FEAT_C), lambda b, t: (0, 0)),
                pl.BlockSpec((1, FEAT_C), lambda b, t: (0, 0)),
            ],
            out_specs=pl.BlockSpec((None, 1, FEAT_C), lambda b, t: (b, 0, 0)),
            scratch_shapes=[pltpu.VMEM((1, FEAT_C), jnp.float32)],
        ),
        compiler_params=pltpu.CompilerParams(
            dimension_semantics=("parallel", "arbitrary")),
        cost_estimate=pl.CostEstimate(
            flops=flops, transcendentals=transcendentals,
            bytes_accessed=bytes_accessed),
    )(
        patches,
        params["stem_w"], params["stem_b"].reshape(1, STEM_C),
        params["proj_w"], params["proj_b"].reshape(1, FEAT_C),
    )
    return pooled.reshape(B, FEAT_C)


# --------------------------------------------------------------------------
# Fused MLP head: classifier -> relu -> fc2 -> relu -> fc3 -> tanh
# --------------------------------------------------------------------------
def _head_kernel(x_ref, wc_ref, bc_ref, w2_ref, b2_ref, w3_ref, b3_ref, o_ref):
    x = x_ref[...].astype(jnp.bfloat16)
    h = jnp.dot(x, wc_ref[...], preferred_element_type=jnp.float32) + bc_ref[...]
    h = jnp.maximum(h, 0.0)                       # relu(bn1(cnn(s))), bn1 = Identity
    h = jnp.dot(h.astype(jnp.bfloat16), w2_ref[...],
                preferred_element_type=jnp.float32) + b2_ref[...]
    h = jnp.maximum(h, 0.0)                       # relu(bn2(fc2(x))), bn2 = Identity
    h = jnp.dot(h.astype(jnp.bfloat16), w3_ref[...],
                preferred_element_type=jnp.float32) + b3_ref[...]
    o_ref[...] = jnp.tanh(h).astype(o_ref.dtype)  # tanh in f32 (EUP)


def policy_head(pooled, params):
    B = pooled.shape[0]
    flops = 2 * B * (FEAT_C * NET_W + NET_W * (NET_W // 2)
                     + (NET_W // 2) * HEAD_NPAD)
    bytes_accessed = (B * FEAT_C * 4
                      + 2 * (FEAT_C * NET_W + NET_W * (NET_W // 2)
                             + (NET_W // 2) * HEAD_NPAD)
                      + B * HEAD_NPAD * 4)
    out = pl.pallas_call(
        _head_kernel,
        out_shape=jax.ShapeDtypeStruct((B, HEAD_NPAD), jnp.float32),
        in_specs=[_VMEM] * 7,
        out_specs=_VMEM,
        cost_estimate=pl.CostEstimate(
            flops=flops, transcendentals=B * HEAD_NPAD,
            bytes_accessed=bytes_accessed),
    )(
        pooled,
        params["wc"], params["bc"].reshape(1, NET_W),
        params["w2"], params["b2"].reshape(1, NET_W // 2),
        params["w3"], params["b3"].reshape(1, HEAD_NPAD),
    )
    return out[:, :ACTION_COUNT]


# --------------------------------------------------------------------------
# Backbone glue (im2col in plain JAX; all matmuls/activations in Pallas)
# --------------------------------------------------------------------------
def _im2col_3x3_s2_p1(x_nhwc):
    """x: [B, H, W, C] -> patches [B, H//2, W//2, 9*C] (kh, kw, cin ordering)."""
    B, H, W, C = x_nhwc.shape
    Ho, Wo = H // 2, W // 2
    xp = jnp.pad(x_nhwc, ((0, 0), (1, 1), (1, 1), (0, 0)))
    cols = []
    for di in range(3):
        for dj in range(3):
            cols.append(xp[:, di:di + 2 * Ho:2, dj:dj + 2 * Wo:2, :])
    return jnp.concatenate(cols, axis=-1)  # [B, Ho, Wo, 9*C]


def policy_forward(s_nchw, params, *, tm=512):
    """s_nchw: [B, 3, H, W] float32 -> actions [B, ACTION_COUNT] in (-1, 1)."""
    B, C, H, W = s_nchw.shape
    x = jnp.transpose(s_nchw, (0, 2, 3, 1))                 # NCHW -> NHWC

    # TODO(synk): im2col is still done XLA-side; an in-kernel patch build from a
    #             VMEM-resident image tile would avoid the 9x patch expansion in HBM.
    patches = _im2col_3x3_s2_p1(x)                          # [B, H/2, W/2, 27]
    Ho, Wo, k = patches.shape[1], patches.shape[2], patches.shape[3]
    hw = Ho * Wo
    tm = min(tm, _round_up(hw, 128))                        # don't over-tile tiny inputs
    hwp = _round_up(hw, tm)

    p = patches.reshape(B, hw, k)
    p = jnp.pad(p, ((0, 0), (0, hwp - hw), (0, KPAD - k))).astype(jnp.bfloat16)

    pooled = backbone_pool(p, params, hw=hw, tm=tm)         # [B, 1280] f32
    return policy_head(pooled, params)                      # [B, ACTION_COUNT]


# --------------------------------------------------------------------------
# Deterministic parameter init (synthetic; shapes from Policy.__init__)
# --------------------------------------------------------------------------
def init_params(key):
    ks = jax.random.split(key, 10)

    def lin(kw, kb, fan_in, fan_out):
        scale = 1.0 / jnp.sqrt(jnp.float32(fan_in))
        w = jax.random.normal(kw, (fan_in, fan_out), jnp.float32) * scale
        b = jax.random.normal(kb, (fan_out,), jnp.float32) * scale
        return w, b

    stem_w, stem_b = lin(ks[0], ks[1], 27, STEM_C)           # 3x3x3 -> 32 stem conv
    proj_w, proj_b = lin(ks[2], ks[3], STEM_C, FEAT_C)       # 1x1 conv -> 1280
    wc, bc = lin(ks[4], ks[5], FEAT_C, NET_W)                # cnn.classifier: 1280 -> 512
    w2, b2 = lin(ks[6], ks[7], NET_W, NET_W // 2)            # fc2: 512 -> 256
    w3, b3 = lin(ks[8], ks[9], NET_W // 2, ACTION_COUNT)     # fc3: 256 -> action_count

    # lane/K padding (zero rows/cols are inert): stem K 27 -> 32, fc3 N 3 -> 128
    stem_w = jnp.pad(stem_w, ((0, KPAD - 27), (0, 0)))
    w3 = jnp.pad(w3, ((0, 0), (0, HEAD_NPAD - ACTION_COUNT)))
    b3 = jnp.pad(b3, (0, HEAD_NPAD - ACTION_COUNT))

    bf = lambda a: a.astype(jnp.bfloat16)   # matmul operands in bf16, biases in f32
    return dict(
        stem_w=bf(stem_w), stem_b=stem_b,
        proj_w=bf(proj_w), proj_b=proj_b,
        wc=bf(wc), bc=bc,
        w2=bf(w2), b2=b2,
        w3=bf(w3), b3=b3,
    )


if __name__ == "__main__":
    key = jax.random.PRNGKey(0)
    k_param, k_in = jax.random.split(key)

    params = init_params(k_param)
    # Small image batch (PyTorch NCHW convention): [B=2, C=3, H=32, W=32]
    s = jax.random.normal(k_in, (2, 3, 32, 32), jnp.float32)

    out = jax.jit(policy_forward)(s, params)
    out = jax.block_until_ready(out)

    assert out.shape == (2, ACTION_COUNT), out.shape
    assert bool(jnp.all(jnp.isfinite(out)))
    assert bool(jnp.all(jnp.abs(out) <= 1.0))   # tanh range
    print("KERNEL_OK")
</pallas_src>

<mosaic_0001>
module attributes {stable_mosaic.version = 11 : i64} {
  func.func @_backbone_kernel(%arg0: i32, %arg1: i32, %arg2: memref<1x256x32xbf16, #tpu.memory_space<vmem>>, %arg3: memref<32x32xbf16, #tpu.memory_space<vmem>>, %arg4: memref<1x32xf32, #tpu.memory_space<vmem>>, %arg5: memref<32x1280xbf16, #tpu.memory_space<vmem>>, %arg6: memref<1x1280xf32, #tpu.memory_space<vmem>>, %arg7: memref<1x1x1280xf32, #tpu.memory_space<vmem>>, %arg8: memref<1x1280xf32, #tpu.memory_space<vmem>>) attributes {dimension_semantics = [#tpu.dimension_semantics<parallel>, #tpu.dimension_semantics<arbitrary>], iteration_bounds = array<i64: 2, 1>, scalar_prefetch = 0 : i64, scratch_operands = 1 : i64, tpu.core_type = #tpu.core_type<tc>, window_params = [{transform_indices = @transform_0, window_bounds = array<i64: 1, 256, 32>}, {pipeline_mode = #tpu.pipeline_mode<synchronous>, transform_indices = @transform_1, window_bounds = array<i64: 32, 32>}, {pipeline_mode = #tpu.pipeline_mode<synchronous>, transform_indices = @transform_2, window_bounds = array<i64: 1, 32>}, {pipeline_mode = #tpu.pipeline_mode<synchronous>, transform_indices = @transform_3, window_bounds = array<i64: 32, 1280>}, {pipeline_mode = #tpu.pipeline_mode<synchronous>, transform_indices = @transform_4, window_bounds = array<i64: 1, 1280>}, {transform_indices = @transform_5, window_bounds = array<i64: 1, 1, 1280>}]} {
    %c0_i32 = arith.constant 0 : i32
    %0 = arith.cmpi eq, %arg1, %c0_i32 : i32
    %1 = arith.extui %0 : i1 to i32
    %c0_i32_0 = arith.constant 0 : i32
    %2 = arith.cmpi ne, %1, %c0_i32_0 : i32
    scf.if %2 {
      %cst_23 = arith.constant 0.000000e+00 : f32
      %46 = vector.broadcast %cst_23 : f32 to vector<1x1280xf32>
      %c0_24 = arith.constant 0 : index
      %c0_25 = arith.constant 0 : index
      %47 = vector.load %arg8[%c0_24, %c0_25] : memref<1x1280xf32, #tpu.memory_space<vmem>>, vector<1x1280xf32>
      tpu.vector_store %arg8[%c0_24, %c0_25], %46 {strides = array<i32>} : memref<1x1280xf32, #tpu.memory_space<vmem>>, vector<1x1280xf32>,
    } else {
    }
    %c0 = arith.constant 0 : index
    %c0_1 = arith.constant 0 : index
    %c0_2 = arith.constant 0 : index
    %3 = vector.load %arg2[%c0, %c0_1, %c0_2] : memref<1x256x32xbf16, #tpu.memory_space<vmem>>, vector<1x256x32xbf16>
    %4 = vector.shape_cast %3 : vector<1x256x32xbf16> to vector<256x32xbf16>
    %c0_3 = arith.constant 0 : index
    %c0_4 = arith.constant 0 : index
    %5 = vector.load %arg3[%c0_3, %c0_4] : memref<32x32xbf16, #tpu.memory_space<vmem>>, vector<32x32xbf16>
    %cst = arith.constant dense<0.000000e+00> : vector<256x32xf32>
    %6 = tpu.matmul %4, %5, %cst {dimension_numbers = #tpu.dot_dimension_numbers<[1], [0], [0], [1], [0, 0, 1, 1], [], []>} : vector<256x32xbf16>, vector<32x32xbf16>, vector<256x32xf32> -> vector<256x32xf32>
    %c0_5 = arith.constant 0 : index
    %c0_6 = arith.constant 0 : index
    %7 = vector.load %arg4[%c0_5, %c0_6] : memref<1x32xf32, #tpu.memory_space<vmem>>, vector<1x32xf32>
    %8 = vector.broadcast %7 : vector<1x32xf32> to vector<256x32xf32>
    %9 = arith.addf %6, %8 : vector<256x32xf32>
    %10 = arith.negf %9 : vector<256x32xf32>
    %11 = math.exp %10 : vector<256x32xf32>
    %cst_7 = arith.constant 1.000000e+00 : f32
    %12 = vector.broadcast %cst_7 : f32 to vector<256x32xf32>
    %13 = arith.addf %12, %11 : vector<256x32xf32>
    %14 = arith.divf %12, %13 : vector<256x32xf32>
    %15 = arith.mulf %9, %14 : vector<256x32xf32>
    %16 = arith.truncf %15 : vector<256x32xf32> to vector<256x32xbf16>
    %c0_8 = arith.constant 0 : index
    %c0_9 = arith.constant 0 : index
    %17 = vector.load %arg5[%c0_8, %c0_9] : memref<32x1280xbf16, #tpu.memory_space<vmem>>, vector<32x1280xbf16>
    %cst_10 = arith.constant dense<0.000000e+00> : vector<256x1280xf32>
    %18 = tpu.matmul %16, %17, %cst_10 {dimension_numbers = #tpu.dot_dimension_numbers<[1], [0], [0], [1], [0, 0, 1, 1], [], []>} : vector<256x32xbf16>, vector<32x1280xbf16>, vector<256x1280xf32> -> vector<256x1280xf32>
    %c0_11 = arith.constant 0 : index
    %c0_12 = arith.constant 0 : index
    %19 = vector.load %arg6[%c0_11, %c0_12] : memref<1x1280xf32, #tpu.memory_space<vmem>>, vector<1x1280xf32>
    %20 = vector.broadcast %19 : vector<1x1280xf32> to vector<256x1280xf32>
    %21 = arith.addf %18, %20 : vector<256x1280xf32>
    %22 = arith.negf %21 : vector<256x1280xf32>
    %23 = math.exp %22 : vector<256x1280xf32>
    %cst_13 = arith.constant 1.000000e+00 : f32
    %24 = vector.broadcast %cst_13 : f32 to vector<256x1280xf32>
    %25 = arith.addf %24, %23 : vector<256x1280xf32>
    %26 = arith.divf %24, %25 : vector<256x1280xf32>
    %27 = arith.mulf %21, %26 : vector<256x1280xf32>
    %c256_i32 = arith.constant 256 : i32
    %28 = arith.muli %arg1, %c256_i32 : i32
    %29 = tpu.iota {dimensions = array<i32: 0>} : vector<256x1xi32>
    %30 = vector.broadcast %28 : i32 to vector<256x1xi32>
    %31 = arith.addi %30, %29 : vector<256x1xi32>
    %c256_i32_14 = arith.constant 256 : i32
    %32 = vector.broadcast %c256_i32_14 : i32 to vector<256x1xi32>
    %33 = arith.cmpi slt, %31, %32 : vector<256x1xi32>
    %cst_15 = arith.constant 0.000000e+00 : f32
    %34 = vector.shape_cast %33 : vector<256x1xi1> to vector<256x1xi1>
    %35 = vector.broadcast %34 : vector<256x1xi1> to vector<256x1280xi1>
    %36 = vector.broadcast %cst_15 : f32 to vector<256x1280xf32>
    %37 = arith.select %35, %27, %36 : vector<256x1280xi1>, vector<256x1280xf32>
    %c0_16 = arith.constant 0 : index
    %c0_17 = arith.constant 0 : index
    %38 = vector.load %arg8[%c0_16, %c0_17] : memref<1x1280xf32, #tpu.memory_space<vmem>>, vector<1x1280xf32>
    %cst_18 = arith.constant dense<0.000000e+00> : vector<1280xf32>
    %39 = vector.multi_reduction <add>, %37, %cst_18 [0] : vector<256x1280xf32> to vector<1280xf32>
    %40 = vector.shape_cast %39 : vector<1280xf32> to vector<1x1280xf32>
    %41 = arith.addf %38, %40 : vector<1x1280xf32>
    %c0_19 = arith.constant 0 : index
    %c0_20 = arith.constant 0 : index
    %42 = vector.load %arg8[%c0_19, %c0_20] : memref<1x1280xf32, #tpu.memory_space<vmem>>, vector<1x1280xf32>
    tpu.vector_store %arg8[%c0_19, %c0_20], %41 {strides = array<i32>} : memref<1x1280xf32, #tpu.memory_space<vmem>>, vector<1x1280xf32>,
    %c0_i32_21 = arith.constant 0 : i32
    %43 = arith.cmpi eq, %arg1, %c0_i32_21 : i32
    %44 = arith.extui %43 : i1 to i32
    %c0_i32_22 = arith.constant 0 : i32
    %45 = arith.cmpi ne, %44, %c0_i32_22 : i32
    scf.if %45 {
      %c0_23 = arith.constant 0 : index
      %c0_24 = arith.constant 0 : index
      %46 = vector.load %arg8[%c0_23, %c0_24] : memref<1x1280xf32, #tpu.memory_space<vmem>>, vector<1x1280xf32>
      %cst_25 = arith.constant 3.906250e-03 : f32
      %47 = vector.broadcast %cst_25 : f32 to vector<1x1280xf32>
      %48 = arith.mulf %46, %47 : vector<1x1280xf32>
      %c0_26 = arith.constant 0 : index
      %c0_27 = arith.constant 0 : index
      %c0_28 = arith.constant 0 : index
      %49 = vector.load %arg7[%c0_26, %c0_27, %c0_28] : memref<1x1x1280xf32, #tpu.memory_space<vmem>>, vector<1x1x1280xf32>
      %50 = vector.shape_cast %49 : vector<1x1x1280xf32> to vector<1x1280xf32>
      %51 = vector.shape_cast %48 : vector<1x1280xf32> to vector<1x1x1280xf32>
      tpu.vector_store %arg7[%c0_26, %c0_27, %c0_28], %51 {strides = array<i32>} : memref<1x1x1280xf32, #tpu.memory_space<vmem>>, vector<1x1x1280xf32>,
    } else {
    }
    return
  }
  func.func @transform_0(%arg0: i32, %arg1: i32) -> (i32, i32, i32) {
    %c0_i32 = arith.constant 0 : i32
    %c0_i32_0 = arith.constant 0 : i32
    return %arg0, %arg1, %c0_i32 : i32, i32, i32
  }
  func.func @transform_1(%arg0: i32, %arg1: i32) -> (i32, i32) {
    %c0_i32 = arith.constant 0 : i32
    %c0_i32_0 = arith.constant 0 : i32
    %c0_i32_1 = arith.constant 0 : i32
    return %c0_i32, %c0_i32_0 : i32, i32
  }
  func.func @transform_2(%arg0: i32, %arg1: i32) -> (i32, i32) {
    %c0_i32 = arith.constant 0 : i32
    %c0_i32_0 = arith.constant 0 : i32
    %c0_i32_1 = arith.constant 0 : i32
    return %c0_i32, %c0_i32_0 : i32, i32
  }
  func.func @transform_3(%arg0: i32, %arg1: i32) -> (i32, i32) {
    %c0_i32 = arith.constant 0 : i32
    %c0_i32_0 = arith.constant 0 : i32
    %c0_i32_1 = arith.constant 0 : i32
    return %c0_i32, %c0_i32_0 : i32, i32
  }
  func.func @transform_4(%arg0: i32, %arg1: i32) -> (i32, i32) {
    %c0_i32 = arith.constant 0 : i32
    %c0_i32_0 = arith.constant 0 : i32
    %c0_i32_1 = arith.constant 0 : i32
    return %c0_i32, %c0_i32_0 : i32, i32
  }
  func.func @transform_5(%arg0: i32, %arg1: i32) -> (i32, i32, i32) {
    %c0_i32 = arith.constant 0 : i32
    %c0_i32_0 = arith.constant 0 : i32
    %c0_i32_1 = arith.constant 0 : i32
    return %arg0, %c0_i32, %c0_i32_0 : i32, i32, i32
  }
}

module attributes {stable_mosaic.version = 11 : i64} {
  func.func @_head_kernel(%arg0: memref<2x1280xf32, #tpu.memory_space<vmem>>, %arg1: memref<1280x512xbf16, #tpu.memory_space<vmem>>, %arg2: memref<1x512xf32, #tpu.memory_space<vmem>>, %arg3: memref<512x256xbf16, #tpu.memory_space<vmem>>, %arg4: memref<1x256xf32, #tpu.memory_space<vmem>>, %arg5: memref<256x128xbf16, #tpu.memory_space<vmem>>, %arg6: memref<1x128xf32, #tpu.memory_space<vmem>>, %arg7: memref<2x128xf32, #tpu.memory_space<vmem>>) attributes {dimension_semantics = [], scalar_prefetch = 0 : i64, scratch_operands = 0 : i64, tpu.core_type = #tpu.core_type<tc>} {
    %c0 = arith.constant 0 : index
    %c0_0 = arith.constant 0 : index
    %0 = vector.load %arg0[%c0, %c0_0] : memref<2x1280xf32, #tpu.memory_space<vmem>>, vector<2x1280xf32>
    %1 = arith.truncf %0 : vector<2x1280xf32> to vector<2x1280xbf16>
    %c0_1 = arith.constant 0 : index
    %c0_2 = arith.constant 0 : index
    %2 = vector.load %arg1[%c0_1, %c0_2] : memref<1280x512xbf16, #tpu.memory_space<vmem>>, vector<1280x512xbf16>
    %cst = arith.constant dense<0.000000e+00> : vector<2x512xf32>
    %3 = tpu.matmul %1, %2, %cst {dimension_numbers = #tpu.dot_dimension_numbers<[1], [0], [0], [1], [0, 0, 1, 1], [], []>} : vector<2x1280xbf16>, vector<1280x512xbf16>, vector<2x512xf32> -> vector<2x512xf32>
    %c0_3 = arith.constant 0 : index
    %c0_4 = arith.constant 0 : index
    %4 = vector.load %arg2[%c0_3, %c0_4] : memref<1x512xf32, #tpu.memory_space<vmem>>, vector<1x512xf32>
    %5 = vector.broadcast %4 : vector<1x512xf32> to vector<2x512xf32>
    %6 = arith.addf %3, %5 : vector<2x512xf32>
    %cst_5 = arith.constant 0.000000e+00 : f32
    %7 = vector.broadcast %cst_5 : f32 to vector<2x512xf32>
    %8 = arith.maximumf %6, %7 : vector<2x512xf32>
    %9 = arith.truncf %8 : vector<2x512xf32> to vector<2x512xbf16>
    %c0_6 = arith.constant 0 : index
    %c0_7 = arith.constant 0 : index
    %10 = vector.load %arg3[%c0_6, %c0_7] : memref<512x256xbf16, #tpu.memory_space<vmem>>, vector<512x256xbf16>
    %cst_8 = arith.constant dense<0.000000e+00> : vector<2x256xf32>
    %11 = tpu.matmul %9, %10, %cst_8 {dimension_numbers = #tpu.dot_dimension_numbers<[1], [0], [0], [1], [0, 0, 1, 1], [], []>} : vector<2x512xbf16>, vector<512x256xbf16>, vector<2x256xf32> -> vector<2x256xf32>
    %c0_9 = arith.constant 0 : index
    %c0_10 = arith.constant 0 : index
    %12 = vector.load %arg4[%c0_9, %c0_10] : memref<1x256xf32, #tpu.memory_space<vmem>>, vector<1x256xf32>
    %13 = vector.broadcast %12 : vector<1x256xf32> to vector<2x256xf32>
    %14 = arith.addf %11, %13 : vector<2x256xf32>
    %cst_11 = arith.constant 0.000000e+00 : f32
    %15 = vector.broadcast %cst_11 : f32 to vector<2x256xf32>
    %16 = arith.maximumf %14, %15 : vector<2x256xf32>
    %17 = arith.truncf %16 : vector<2x256xf32> to vector<2x256xbf16>
    %c0_12 = arith.constant 0 : index
    %c0_13 = arith.constant 0 : index
    %18 = vector.load %arg5[%c0_12, %c0_13] : memref<256x128xbf16, #tpu.memory_space<vmem>>, vector<256x128xbf16>
    %cst_14 = arith.constant dense<0.000000e+00> : vector<2x128xf32>
    %19 = tpu.matmul %17, %18, %cst_14 {dimension_numbers = #tpu.dot_dimension_numbers<[1], [0], [0], [1], [0, 0, 1, 1], [], []>} : vector<2x256xbf16>, vector<256x128xbf16>, vector<2x128xf32> -> vector<2x128xf32>
    %c0_15 = arith.constant 0 : index
    %c0_16 = arith.constant 0 : index
    %20 = vector.load %arg6[%c0_15, %c0_16] : memref<1x128xf32, #tpu.memory_space<vmem>>, vector<1x128xf32>
    %21 = vector.broadcast %20 : vector<1x128xf32> to vector<2x128xf32>
    %22 = arith.addf %19, %21 : vector<2x128xf32>
    %23 = math.tanh %22 : vector<2x128xf32>
    %c0_17 = arith.constant 0 : index
    %c0_18 = arith.constant 0 : index
    %24 = vector.load %arg7[%c0_17, %c0_18] : memref<2x128xf32, #tpu.memory_space<vmem>>, vector<2x128xf32>
    tpu.vector_store %arg7[%c0_17, %c0_18], %23 {strides = array<i32>} : memref<2x128xf32, #tpu.memory_space<vmem>>, vector<2x128xf32>,
    return
  }
}

</mosaic_0001>

<bundles_post_ra>
// kernel: policy_forward.3
= control target key start
LH: loop header
LB: loop body
LE: loop exit
PB: predicated region body
PF: predicated region fallthrough
CT: control target
= control target key end

     0   :  { %v4215_v36 = vmov 1983009808   ;;  %v38_v38 = vlaneseq  ;;  %s5579_s0 = inlined_call_operand.vmem [shape: f32[2,1280], index: 0, kind: input, shape index: {}]   ;;  %s5580_s1 = inlined_call_operand.vmem [shape: bf16[1280,512], index: 1, kind: input, shape index: {}]   ;;  %s5581_s2 = inlined_call_operand.vmem [shape: f32[1,512], index: 2, kind: input, shape index: {}]   ;;  %s5582_s3 = inlined_call_operand.vmem [shape: bf16[512,256], index: 3, kind: input, shape index: {}]   ;;  %s5583_s4 = inlined_call_operand.vmem [shape: f32[1,256], index: 4, kind: input, shape index: {}]   ;;  %s5584_s5 = inlined_call_operand.vmem [shape: bf16[256,128], index: 5, kind: input, shape index: {}]   ;;  %s5585_s6 = inlined_call_operand.vmem [shape: f32[1,128], index: 6, kind: input, shape index: {}]   ;;  %s5586_s7 = inlined_call_operand.hbm [shape: f32[2,128], index: 7, kind: output, shape index: {}]  }
   0x1   :  { %v3595_v0 = vld [vmem:[%s5580_s1 + $0x4] ss:$16 sps:$4 sm:$0xff]   ;;  %v3599_v2 = vld [vmem:[%s5580_s1] ss:$16 sps:$4 sm:$0xff]   ;;  %v36_v37 = vunpack.c.l.s4 %v4215_v36 }
   0x2   :  { %v3597_v1 = vld [vmem:[%s5580_s1 + $0x204] ss:$16 sps:$4 sm:$0xff]   ;;  %2038 = vmatprep.subr.bf16.mxu1 %v3595_v0  ;;  %v3600_v3 = vld [vmem:[%s5580_s1 + $0x200] ss:$16 sps:$4 sm:$0xff]   ;;  %v4374_v43 = vshrl.u32 %v38_v38, 7 }
   0x3   :  { %2079 = vmatprep.subr.bf16.mxu0 %v3597_v1  ;;  %v3601_v4 = vld [vmem:[%s5580_s1 + $0x24] ss:$16 sps:$4 sm:$0xff]   ;;  %2039 = vmatpush1.bf16.msra.mxu1 %v3599_v2  ;;  %v3605_v6 = vld [vmem:[%s5580_s1 + $0x20] ss:$16 sps:$4 sm:$0xff]   ;;  %v37_v42 = vunpack.c.0.s8 %v36_v37  ;;  %v3727_v37 = vld [vmem:[%s5580_s1 + $0xac] ss:$16 sps:$4 sm:$0xff]  }
   0x4   :  { %2080 = vmatpush1.bf16.msra.mxu0 %v3600_v3  ;;  %v3603_v5 = vld [vmem:[%s5580_s1 + $0x224] ss:$16 sps:$4 sm:$0xff]   ;;  %2040 = vmatprep.subr.bf16.mxu1 %v3601_v4  ;;  %v3606_v7 = vld [vmem:[%s5580_s1 + $0x220] ss:$16 sps:$4 sm:$0xff]  }
   0x5   :  { %2081 = vmatprep.subr.bf16.mxu0 %v3603_v5  ;;  %v3607_v8 = vld [vmem:[%s5580_s1 + $0x44] ss:$16 sps:$4 sm:$0xff]   ;;  %v3611_v10 = vld [vmem:[%s5580_s1 + $0x40] ss:$16 sps:$4 sm:$0xff]   ;;  %v4392_v49 = vsub.s32 %v37_v42, %v4374_v43  ;;  %v4549_v42 = vld [vmem:[%s5579_s0 + $0x8] sm:$0xff] }
   0x6   :  { %v3609_v9 = vld [vmem:[%s5580_s1 + $0x244] ss:$16 sps:$4 sm:$0xff]   ;;  %v3612_v11 = vld [vmem:[%s5580_s1 + $0x240] ss:$16 sps:$4 sm:$0xff]  }
   0x7   :  { %2041 = vmatpush1.bf16.msra.mxu1 %v3605_v6  ;;  %v3613_v12 = vld [vmem:[%s5580_s1 + $0x64] ss:$16 sps:$4 sm:$0xff]   ;;  %v3617_v14 = vld [vmem:[%s5580_s1 + $0x60] ss:$16 sps:$4 sm:$0xff]  }
   0x8   :  { %2082 = vmatpush1.bf16.msra.mxu0 %v3606_v7  ;;  %2042 = vmatprep.subr.bf16.mxu1 %v3607_v8  ;;  %v3615_v13 = vld [vmem:[%s5580_s1 + $0x264] ss:$16 sps:$4 sm:$0xff]   ;;  %v3618_v15 = vld [vmem:[%s5580_s1 + $0x260] ss:$16 sps:$4 sm:$0xff]  }
   0x9   :  { %2083 = vmatprep.subr.bf16.mxu0 %v3609_v9  ;;  %v3619_v16 = vld [vmem:[%s5580_s1 + $0x84] ss:$16 sps:$4 sm:$0xff]   ;;  %v3623_v18 = vld [vmem:[%s5580_s1 + $0x80] ss:$16 sps:$4 sm:$0xff]  }
   0xa   :  { %v3621_v17 = vld [vmem:[%s5580_s1 + $0x284] ss:$16 sps:$4 sm:$0xff]   ;;  %v3624_v19 = vld [vmem:[%s5580_s1 + $0x280] ss:$16 sps:$4 sm:$0xff]  }
   0xb   :  { %2043 = vmatpush1.bf16.msra.mxu1 %v3611_v10  ;;  %v3625_v20 = vld [vmem:[%s5580_s1 + $0xa4] ss:$16 sps:$4 sm:$0xff]   ;;  %v3629_v22 = vld [vmem:[%s5580_s1 + $0xa0] ss:$16 sps:$4 sm:$0xff]  }
   0xc   :  { %2084 = vmatpush1.bf16.msra.mxu0 %v3612_v11  ;;  %2044 = vmatprep.subr.bf16.mxu1 %v3613_v12  ;;  %v3627_v21 = vld [vmem:[%s5580_s1 + $0x2a4] ss:$16 sps:$4 sm:$0xff]   ;;  %v3630_v23 = vld [vmem:[%s5580_s1 + $0x2a0] ss:$16 sps:$4 sm:$0xff]  }
   0xd   :  { %2085 = vmatprep.subr.bf16.mxu0 %v3615_v13  ;;  %v3631_v24 = vld [vmem:[%s5580_s1 + $0xc4] ss:$16 sps:$4 sm:$0xff]   ;;  %v3635_v26 = vld [vmem:[%s5580_s1 + $0xc0] ss:$16 sps:$4 sm:$0xff]  }
   0xe   :  { %v3633_v25 = vld [vmem:[%s5580_s1 + $0x2c4] ss:$16 sps:$4 sm:$0xff]   ;;  %v3636_v27 = vld [vmem:[%s5580_s1 + $0x2c0] ss:$16 sps:$4 sm:$0xff]  }
   0xf   :  { %2045 = vmatpush1.bf16.msra.mxu1 %v3617_v14  ;;  %v3637_v28 = vld [vmem:[%s5580_s1 + $0xe4] ss:$16 sps:$4 sm:$0xff]   ;;  %v3641_v30 = vld [vmem:[%s5580_s1 + $0xe0] ss:$16 sps:$4 sm:$0xff]  }
  0x10   :  { %2086 = vmatpush1.bf16.msra.mxu0 %v3618_v15  ;;  %2046 = vmatprep.subr.bf16.mxu1 %v3619_v16  ;;  %v3639_v29 = vld [vmem:[%s5580_s1 + $0x2e4] ss:$16 sps:$4 sm:$0xff]   ;;  %v3642_v31 = vld [vmem:[%s5580_s1 + $0x2e0] ss:$16 sps:$4 sm:$0xff]   ;;  %v3697_v15 = vld [vmem:[%s5580_s1 + $0xc] ss:$16 sps:$4 sm:$0xff]  }
  0x11   :  { %2087 = vmatprep.subr.bf16.mxu0 %v3621_v17  ;;  %v3643_v32 = vld [vmem:[%s5580_s1 + $0x104] ss:$16 sps:$4 sm:$0xff]   ;;  %v3647_v34 = vld [vmem:[%s5580_s1 + $0x100] ss:$16 sps:$4 sm:$0xff]  }
  0x12   :  { %v3645_v33 = vld [vmem:[%s5580_s1 + $0x304] ss:$16 sps:$4 sm:$0xff]   ;;  %v3648_v35 = vld [vmem:[%s5580_s1 + $0x300] ss:$16 sps:$4 sm:$0xff]  }
  0x13   :  { %2047 = vmatpush1.bf16.msra.mxu1 %v3623_v18  ;;  %v3649_v39 = vld [vmem:[%s5580_s1 + $0x124] ss:$16 sps:$4 sm:$0xff]   ;;  %v3653_v41 = vld [vmem:[%s5580_s1 + $0x120] ss:$16 sps:$4 sm:$0xff]  }
  0x14   :  { %2088 = vmatpush1.bf16.msra.mxu0 %v3624_v19  ;;  %2048 = vmatprep.subr.bf16.mxu1 %v3625_v20  ;;  %v3651_v40 = vld [vmem:[%s5580_s1 + $0x324] ss:$16 sps:$4 sm:$0xff]   ;;  %v3654_v44 = vld [vmem:[%s5580_s1 + $0x320] ss:$16 sps:$4 sm:$0xff]   ;;  %v3695_v19 = vld [vmem:[%s5580_s1 + $0x8] ss:$16 sps:$4 sm:$0xff]  }
  0x15   :  { %2089 = vmatprep.subr.bf16.mxu0 %v3627_v21  ;;  %v3655_v45 = vld [vmem:[%s5580_s1 + $0x144] ss:$16 sps:$4 sm:$0xff]   ;;  %v3659_v47 = vld [vmem:[%s5580_s1 + $0x140] ss:$16 sps:$4 sm:$0xff]   ;;  %v3703_v21 = vld [vmem:[%s5580_s1 + $0x2c] ss:$16 sps:$4 sm:$0xff]  }
  0x16   :  { %v3657_v46 = vld [vmem:[%s5580_s1 + $0x344] ss:$16 sps:$4 sm:$0xff]   ;;  %v3660_v48 = vld [vmem:[%s5580_s1 + $0x340] ss:$16 sps:$4 sm:$0xff]  }
  0x17   :  { %2049 = vmatpush1.bf16.msra.mxu1 %v3629_v22  ;;  %v3661_v50 = vld [vmem:[%s5580_s1 + $0x164] ss:$16 sps:$4 sm:$0xff]   ;;  %v3665_v53 = vld [vmem:[%s5580_s1 + $0x160] ss:$16 sps:$4 sm:$0xff]  }
  0x18   :  { %2090 = vmatpush1.bf16.msra.mxu0 %v3630_v23  ;;  %2050 = vmatprep.subr.bf16.mxu1 %v3631_v24  ;;  %v3663_v51 = vld [vmem:[%s5580_s1 + $0x364] ss:$16 sps:$4 sm:$0xff]   ;;  %v3666_v56 = vld [vmem:[%s5580_s1 + $0x360] ss:$16 sps:$4 sm:$0xff]   ;;  %v3701_v23 = vld [vmem:[%s5580_s1 + $0x28] ss:$16 sps:$4 sm:$0xff]  }
  0x19   :  { %2091 = vmatprep.subr.bf16.mxu0 %v3633_v25  ;;  %v28_v52 = vld [vmem:[%s5579_s0] sm:$0xff]  ;;  %v3709_v25 = vld [vmem:[%s5580_s1 + $0x4c] ss:$16 sps:$4 sm:$0xff]  }
  0x1a   :  { %v41_v54 = vrot.slane %v28_v52, %v4392_v49  ;;  %v34_v55 = vcombine.high %v28_v52, %v28_v52  ;;  %v3667_v57 = vld [vmem:[%s5580_s1 + $0x184] ss:$16 sps:$4 sm:$0xff]   ;;  %v3671_v61 = vld [vmem:[%s5580_s1 + $0x180] ss:$16 sps:$4 sm:$0xff]  }
  0x1b   :  { %2051 = vmatpush1.bf16.msra.mxu1 %v3635_v26  ;;  %v3669_v58 = vld [vmem:[%s5580_s1 + $0x384] ss:$16 sps:$4 sm:$0xff]   ;;  %v3672_v0 = vld [vmem:[%s5580_s1 + $0x380] ss:$16 sps:$4 sm:$0xff]  }
  0x1c   :  { %2092 = vmatpush1.bf16.msra.mxu0 %v3636_v27  ;;  %2052 = vmatprep.subr.bf16.mxu1 %v3637_v28  ;;  %v49_v59 = vcombine.high %v41_v54, %v41_v54  ;;  %v48_v60 = vrot.slane %v34_v55, %v4392_v49  ;;  %v3673_v1 = vld [vmem:[%s5580_s1 + $0x1a4] ss:$16 sps:$4 sm:$0xff]   ;;  %v3677_v4 = vld [vmem:[%s5580_s1 + $0x1a0] ss:$16 sps:$4 sm:$0xff]   ;;  %v4468_v16 = vpack.c.bf16 %v41_v54, %v41_v54  ;;  %v3707_v27 = vld [vmem:[%s5580_s1 + $0x48] ss:$16 sps:$4 sm:$0xff]  }
  0x1d   :  { %2093 = vmatprep.subr.bf16.mxu0 %v3639_v29  ;;  %v3675_v2 = vld [vmem:[%s5580_s1 + $0x3a4] ss:$16 sps:$4 sm:$0xff]   ;;  %v3678_v5 = vld [vmem:[%s5580_s1 + $0x3a0] ss:$16 sps:$4 sm:$0xff]   ;;  %v3715_v29 = vld [vmem:[%s5580_s1 + $0x6c] ss:$16 sps:$4 sm:$0xff]  }
  0x1e   :  { %v87_v62 = vpack.c.bf16 %v49_v59, %v49_v59  ;;  %v50_v63 = vcombine.high %v48_v60, %v48_v60  ;;  %v3679_v6 = vld [vmem:[%s5580_s1 + $0x1c4] ss:$16 sps:$4 sm:$0xff]   ;;  %v3683_v8 = vld [vmem:[%s5580_s1 + $0x1c0] ss:$16 sps:$4 sm:$0xff]   ;;  %v4473_v18 = vpack.c.bf16 %v48_v60, %v48_v60  ;;  %v3745_v55 = vld [vmem:[%s5580_s1 + $0x10c] ss:$16 sps:$4 sm:$0xff]  }
  0x1f   :  { %2053 = vmatpush1.bf16.msra.mxu1 %v3641_v30  ;;  %v3681_v7 = vld [vmem:[%s5580_s1 + $0x3c4] ss:$16 sps:$4 sm:$0xff]   ;;  %v3684_v9 = vld [vmem:[%s5580_s1 + $0x3c0] ss:$16 sps:$4 sm:$0xff]   ;;  %v3751_v59 = vld [vmem:[%s5580_s1 + $0x12c] ss:$16 sps:$4 sm:$0xff]  }
  0x20   :  { %2094 = vmatpush1.bf16.msra.mxu0 %v3642_v31  ;;  %2054 = vmatprep.subr.bf16.mxu1 %v3643_v32  ;;  %v4429_v3 = vpack.c.bf16 %v50_v63, %v50_v63  ;;  %v3685_v10 = vld [vmem:[%s5580_s1 + $0x1e4] ss:$16 sps:$4 sm:$0xff]   ;;  %v3689_v12 = vld [vmem:[%s5580_s1 + $0x1e0] ss:$16 sps:$4 sm:$0xff]   ;;  %v3713_v31 = vld [vmem:[%s5580_s1 + $0x68] ss:$16 sps:$4 sm:$0xff]  }
  0x21   :  { %2095 = vmatprep.subr.bf16.mxu0 %v3645_v33  ;;  %2070 = vmatprep.mubr.bf16.mxu1 %v87_v62  ;;  %v3687_v11 = vld [vmem:[%s5580_s1 + $0x3e4] ss:$16 sps:$4 sm:$0xff]   ;;  %v3690_v13 = vld [vmem:[%s5580_s1 + $0x3e0] ss:$16 sps:$4 sm:$0xff]   ;;  %v3721_v33 = vld [vmem:[%s5580_s1 + $0x8c] ss:$16 sps:$4 sm:$0xff]  }
  0x22   :  { %2111 = vmatprep.mubr.bf16.mxu0 %v4429_v3  ;;  %v3694_v14 = vld [vmem:[%s5580_s1 + $0x404] ss:$16 sps:$4 sm:$0xff]   ;;  %v3692_v17 = vld [vmem:[%s5580_s1 + $0x400] ss:$16 sps:$4 sm:$0xff]   ;;  %v3757_v63 = vld [vmem:[%s5580_s1 + $0x14c] ss:$16 sps:$4 sm:$0xff]  }
  0x23   :  { %2055 = vmatpush1.bf16.msra.mxu1 %v3647_v34  ;;  %v3700_v20 = vld [vmem:[%s5580_s1 + $0x424] ss:$16 sps:$4 sm:$0xff]   ;;  %v3698_v22 = vld [vmem:[%s5580_s1 + $0x420] ss:$16 sps:$4 sm:$0xff]  }
  0x24   :  { %2096 = vmatpush1.bf16.msra.mxu0 %v3648_v35  ;;  %2056 = vmatprep.subr.bf16.mxu1 %v3649_v39  ;;  %v3706_v24 = vld [vmem:[%s5580_s1 + $0x444] ss:$16 sps:$4 sm:$0xff]   ;;  %v3704_v26 = vld [vmem:[%s5580_s1 + $0x440] ss:$16 sps:$4 sm:$0xff]   ;;  %v3719_v35 = vld [vmem:[%s5580_s1 + $0x88] ss:$16 sps:$4 sm:$0xff]  }
  0x25   :  { %2097 = vmatprep.subr.bf16.mxu0 %v3651_v40  ;;  %v3712_v28 = vld [vmem:[%s5580_s1 + $0x464] ss:$16 sps:$4 sm:$0xff]   ;;  %v3710_v30 = vld [vmem:[%s5580_s1 + $0x460] ss:$16 sps:$4 sm:$0xff]   ;;  %v3725_v39 = vld [vmem:[%s5580_s1 + $0xa8] ss:$16 sps:$4 sm:$0xff]  }
  0x26   :  { %v3718_v32 = vld [vmem:[%s5580_s1 + $0x484] ss:$16 sps:$4 sm:$0xff]   ;;  %v3716_v34 = vld [vmem:[%s5580_s1 + $0x480] ss:$16 sps:$4 sm:$0xff]  }
  0x27   :  { %2057 = vmatpush1.bf16.msra.mxu1 %v3653_v41  ;;  %v3724_v36 = vld [vmem:[%s5580_s1 + $0x4a4] ss:$16 sps:$4 sm:$0xff]   ;;  %v3722_v38 = vld [vmem:[%s5580_s1 + $0x4a0] ss:$16 sps:$4 sm:$0xff]   ;;  %v3733_v41 = vld [vmem:[%s5580_s1 + $0xcc] ss:$16 sps:$4 sm:$0xff]  }
  0x28   :  { %2098 = vmatpush1.bf16.msra.mxu0 %v3654_v44  ;;  %2058 = vmatprep.subr.bf16.mxu1 %v3655_v45  ;;  %v3730_v40 = vld [vmem:[%s5580_s1 + $0x4c4] ss:$16 sps:$4 sm:$0xff]   ;;  %v4553_v44 = vrot.slane %v4549_v42, %v4392_v49  ;;  %v3728_v45 = vld [vmem:[%s5580_s1 + $0x4c0] ss:$16 sps:$4 sm:$0xff]  }
  0x29   :  { %2099 = vmatprep.subr.bf16.mxu0 %v3657_v46  ;;  %v3731_v46 = vld [vmem:[%s5580_s1 + $0xc8] ss:$16 sps:$4 sm:$0xff]   ;;  %v3734_v52 = vld [vmem:[%s5580_s1 + $0x4e0] ss:$16 sps:$4 sm:$0xff]   ;;  %v3742_v54 = vld [vmem:[%s5580_s1 + $0x504] ss:$16 sps:$4 sm:$0xff]  }
  0x2a   :  { %v3746_v60 = vld [vmem:[%s5580_s1 + $0x520] ss:$16 sps:$4 sm:$0xff]  }
  0x2b   :  { %2059 = vmatpush1.bf16.msra.mxu1 %v3659_v47  ;;  %v66_v47 = vcombine.high %v4553_v44, %v4553_v44 }
  0x2c   :  { %2100 = vmatpush1.bf16.msra.mxu0 %v3660_v48  ;;  %2060 = vmatprep.subr.bf16.mxu1 %v3661_v50  ;;  %v3736_v48 = vld [vmem:[%s5580_s1 + $0x4e4] ss:$16 sps:$4 sm:$0xff]   ;;  %v3739_v50 = vld [vmem:[%s5580_s1 + $0xec] ss:$16 sps:$4 sm:$0xff]  }
  0x2d   :  { %2101 = vmatprep.subr.bf16.mxu0 %v3663_v51  ;;  %v4569_v51 = vpack.c.bf16 %v66_v47, %v66_v47  ;;  %v3815_v47 = vld [vmem:[%s5580_s1 + $0x288] ss:$16 sps:$4 sm:$0xff]  }
  0x2f   :  { %2061 = vmatpush1.bf16.msra.mxu1 %v3665_v53  ;;  %v3737_v53 = vld [vmem:[%s5580_s1 + $0xe8] ss:$16 sps:$4 sm:$0xff]  }
  0x30   :  { %2102 = vmatpush1.bf16.msra.mxu0 %v3666_v56  ;;  %2062 = vmatprep.subr.bf16.mxu1 %v3667_v57  ;;  %v3740_v56 = vld [vmem:[%s5580_s1 + $0x500] ss:$16 sps:$4 sm:$0xff]   ;;  %v3743_v57 = vld [vmem:[%s5580_s1 + $0x108] ss:$16 sps:$4 sm:$0xff]  }
  0x31   :  { %2103 = vmatprep.subr.bf16.mxu0 %v3669_v58  ;;  %v3748_v58 = vld [vmem:[%s5580_s1 + $0x524] ss:$16 sps:$4 sm:$0xff]  }
  0x33   :  { %2063 = vmatpush1.bf16.msra.mxu1 %v3671_v61  ;;  %v3749_v61 = vld [vmem:[%s5580_s1 + $0x128] ss:$16 sps:$4 sm:$0xff]  }
  0x34   :  { %2104 = vmatpush1.bf16.msra.mxu0 %v3672_v0  ;;  %2064 = vmatprep.subr.bf16.mxu1 %v3673_v1  ;;  %v3752_v0 = vld [vmem:[%s5580_s1 + $0x540] ss:$16 sps:$4 sm:$0xff]   ;;  %v3755_v1 = vld [vmem:[%s5580_s1 + $0x148] ss:$16 sps:$4 sm:$0xff]  }
  0x35   :  { %2105 = vmatprep.subr.bf16.mxu0 %v3675_v2  ;;  %v3760_v2 = vld [vmem:[%s5580_s1 + $0x564] ss:$16 sps:$4 sm:$0xff]  }
  0x37   :  { %2065 = vmatpush1.bf16.msra.mxu1 %v3677_v4  ;;  %v3763_v4 = vld [vmem:[%s5580_s1 + $0x16c] ss:$16 sps:$4 sm:$0xff]  }
  0x38   :  { %2106 = vmatpush1.bf16.msra.mxu0 %v3678_v5  ;;  %2066 = vmatprep.subr.bf16.mxu1 %v3679_v6  ;;  %v3758_v5 = vld [vmem:[%s5580_s1 + $0x560] ss:$16 sps:$4 sm:$0xff]   ;;  %v3761_v6 = vld [vmem:[%s5580_s1 + $0x168] ss:$16 sps:$4 sm:$0xff]  }
  0x39   :  { %2107 = vmatprep.subr.bf16.mxu0 %v3681_v7  ;;  %v3766_v7 = vld [vmem:[%s5580_s1 + $0x584] ss:$16 sps:$4 sm:$0xff]  }
  0x3b   :  { %2067 = vmatpush1.bf16.msra.mxu1 %v3683_v8  ;;  %v3769_v8 = vld [vmem:[%s5580_s1 + $0x18c] ss:$16 sps:$4 sm:$0xff]  }
  0x3c   :  { %2108 = vmatpush1.bf16.msra.mxu0 %v3684_v9  ;;  %2068 = vmatprep.subr.bf16.mxu1 %v3685_v10  ;;  %v3764_v9 = vld [vmem:[%s5580_s1 + $0x580] ss:$16 sps:$4 sm:$0xff]   ;;  %v3767_v10 = vld [vmem:[%s5580_s1 + $0x188] ss:$16 sps:$4 sm:$0xff]  }
  0x3d   :  { %2109 = vmatprep.subr.bf16.mxu0 %v3687_v11  ;;  %v3772_v11 = vld [vmem:[%s5580_s1 + $0x5a4] ss:$16 sps:$4 sm:$0xff]  }
  0x3f   :  { %2069 = vmatpush1.bf16.msra.mxu1 %v3689_v12  ;;  %v3775_v12 = vld [vmem:[%s5580_s1 + $0x1ac] ss:$16 sps:$4 sm:$0xff]  }
  0x40   :  { %2110 = vmatpush1.bf16.msra.mxu0 %v3690_v13  ;;  %2243 = vmatprep.subr.bf16.mxu1 %v3697_v15  ;;  %v3770_v13 = vld [vmem:[%s5580_s1 + $0x5a0] ss:$16 sps:$4 sm:$0xff]   ;;  %v3778_v15 = vld [vmem:[%s5580_s1 + $0x5c4] ss:$16 sps:$4 sm:$0xff]  }
  0x41   :  { %2120 = vmatprep.subr.bf16.mxu0 %v3694_v14  ;;  %v3773_v14 = vld [vmem:[%s5580_s1 + $0x1a8] ss:$16 sps:$4 sm:$0xff]  }
  0x42   :  { %2071 = vmatmul.mubr.bf16.vlgmr.msra.gmra.mrb[0].mxu1 %v4468_v16 }
  0x43   :  { %2112 = vmatmul.mubr.bf16.vlgmr.msra.gmra.mrb[0].mxu0 %v4473_v18  ;;  %2244 = vmatpush1.bf16.msra.mxu1 %v3695_v19  ;;  %v51_v19 = vcombine.high %v4549_v42, %v4549_v42  ;;  %v3809_v42 = vld [vmem:[%s5580_s1 + $0x268] ss:$16 sps:$4 sm:$0xff]  }
  0x44   :  { %2121 = vmatpush1.bf16.msra.mxu0 %v3692_v17  ;;  %2245 = vmatprep.subr.bf16.mxu1 %v3703_v21  ;;  %v3781_v17 = vld [vmem:[%s5580_s1 + $0x1cc] ss:$16 sps:$4 sm:$0xff]   ;;  %v3779_v21 = vld [vmem:[%s5580_s1 + $0x1c8] ss:$16 sps:$4 sm:$0xff]  }
  0x45   :  { %2122 = vmatprep.subr.bf16.mxu0 %v3700_v20  ;;  %2275 = vmatprep.mubr.bf16.mxu1 %v87_v62  ;;  %v3754_v62 = vld [vmem:[%s5580_s1 + $0x544] ss:$16 sps:$4 sm:$0xff]   ;;  %v3776_v20 = vld [vmem:[%s5580_s1 + $0x5c0] ss:$16 sps:$4 sm:$0xff]  }
  0x46   :  { %2152 = vmatprep.mubr.bf16.mxu0 %v4569_v51 }
  0x47   :  { %2246 = vmatpush1.bf16.msra.mxu1 %v3701_v23  ;;  %v3787_v23 = vld [vmem:[%s5580_s1 + $0x1ec] ss:$16 sps:$4 sm:$0xff]  }
  0x48   :  { %2123 = vmatpush1.bf16.msra.mxu0 %v3698_v22  ;;  %2247 = vmatprep.subr.bf16.mxu1 %v3709_v25  ;;  %v3784_v22 = vld [vmem:[%s5580_s1 + $0x5e4] ss:$16 sps:$4 sm:$0xff]   ;;  %v3782_v25 = vld [vmem:[%s5580_s1 + $0x5e0] ss:$16 sps:$4 sm:$0xff]  }
  0x49   :  { %2124 = vmatprep.subr.bf16.mxu0 %v3706_v24  ;;  %v4671_v24 = vrot.slane %v51_v19, %v4392_v49  ;;  %v3793_v49 = vld [vmem:[%s5580_s1 + $0x20c] ss:$16 sps:$4 sm:$0xff]   ;;  %v3860_v19 = vld [vmem:[%s5580_s1 + $0x780] ss:$16 sps:$4 sm:$0xff]  }
  0x4b   :  { %2248 = vmatpush1.bf16.msra.mxu1 %v3707_v27  ;;  %v3790_v27 = vld [vmem:[%s5580_s1 + $0x604] ss:$16 sps:$4 sm:$0xff]  }
  0x4c   :  { %2125 = vmatpush1.bf16.msra.mxu0 %v3704_v26  ;;  %2249 = vmatprep.subr.bf16.mxu1 %v3715_v29  ;;  %v3785_v26 = vld [vmem:[%s5580_s1 + $0x1e8] ss:$16 sps:$4 sm:$0xff]   ;;  %v4689_v29 = vpack.c.bf16 %v4553_v44, %v4553_v44  ;;  %v3814_v44 = vld [vmem:[%s5580_s1 + $0x684] ss:$16 sps:$4 sm:$0xff]  }
  0x4d   :  { %2126 = vmatprep.subr.bf16.mxu0 %v3712_v28  ;;  %v67_v28 = vcombine.high %v4671_v24, %v4671_v24 }
  0x4f   :  { %2250 = vmatpush1.bf16.msra.mxu1 %v3713_v31  ;;  %v3791_v31 = vld [vmem:[%s5580_s1 + $0x208] ss:$16 sps:$4 sm:$0xff]  }
  0x50   :  { %2127 = vmatpush1.bf16.msra.mxu0 %v3710_v30  ;;  %2251 = vmatprep.subr.bf16.mxu1 %v3721_v33  ;;  %v3788_v30 = vld [vmem:[%s5580_s1 + $0x600] ss:$16 sps:$4 sm:$0xff]   ;;  %v3799_v33 = vld [vmem:[%s5580_s1 + $0x22c] ss:$16 sps:$4 sm:$0xff]  }
  0x51   :  { %2128 = vmatprep.subr.bf16.mxu0 %v3718_v32  ;;  %v3796_v32 = vld [vmem:[%s5580_s1 + $0x624] ss:$16 sps:$4 sm:$0xff]  }
  0x53   :  { %2252 = vmatpush1.bf16.msra.mxu1 %v3719_v35  ;;  %v3794_v35 = vld [vmem:[%s5580_s1 + $0x620] ss:$16 sps:$4 sm:$0xff]  }
  0x54   :  { %2129 = vmatpush1.bf16.msra.mxu0 %v3716_v34  ;;  %2253 = vmatprep.subr.bf16.mxu1 %v3727_v37  ;;  %v4703_v34 = vpack.c.bf16 %v67_v28, %v67_v28  ;;  %v3802_v37 = vld [vmem:[%s5580_s1 + $0x644] ss:$16 sps:$4 sm:$0xff]   ;;  %v3875_v28 = vld [vmem:[%s5580_s1 + $0x3c8] ss:$16 sps:$4 sm:$0xff]  }
  0x55   :  { %2130 = vmatprep.subr.bf16.mxu0 %v3724_v36  ;;  %v3797_v36 = vld [vmem:[%s5580_s1 + $0x228] ss:$16 sps:$4 sm:$0xff]  }
  0x57   :  { %2254 = vmatpush1.bf16.msra.mxu1 %v3725_v39  ;;  %v3803_v39 = vld [vmem:[%s5580_s1 + $0x248] ss:$16 sps:$4 sm:$0xff]  }
  0x58   :  { %2131 = vmatpush1.bf16.msra.mxu0 %v3722_v38  ;;  %2255 = vmatprep.subr.bf16.mxu1 %v3733_v41  ;;  %v3800_v38 = vld [vmem:[%s5580_s1 + $0x640] ss:$16 sps:$4 sm:$0xff]  }
  0x59   :  { %2132 = vmatprep.subr.bf16.mxu0 %v3730_v40  ;;  %v3808_v40 = vld [vmem:[%s5580_s1 + $0x664] ss:$16 sps:$4 sm:$0xff]   ;;  %v3806_v41 = vld [vmem:[%s5580_s1 + $0x660] ss:$16 sps:$4 sm:$0xff]  }
  0x5b   :  { %2256 = vmatpush1.bf16.msra.mxu1 %v3731_v46  ;;  %v3812_v46 = vld [vmem:[%s5580_s1 + $0x680] ss:$16 sps:$4 sm:$0xff]  }
  0x5c   :  { %2133 = vmatpush1.bf16.msra.mxu0 %v3728_v45  ;;  %2257 = vmatprep.subr.bf16.mxu1 %v3739_v50  ;;  %v3817_v45 = vld [vmem:[%s5580_s1 + $0x28c] ss:$16 sps:$4 sm:$0xff]  }
  0x5d   :  { %2134 = vmatprep.subr.bf16.mxu0 %v3736_v48  ;;  %v3820_v48 = vld [vmem:[%s5580_s1 + $0x6a4] ss:$16 sps:$4 sm:$0xff]   ;;  %v3823_v50 = vld [vmem:[%s5580_s1 + $0x2ac] ss:$16 sps:$4 sm:$0xff]  }
  0x5f   :  { %2258 = vmatpush1.bf16.msra.mxu1 %v3737_v53  ;;  %v3821_v53 = vld [vmem:[%s5580_s1 + $0x2a8] ss:$16 sps:$4 sm:$0xff]  }
  0x60   :  { %2135 = vmatpush1.bf16.msra.mxu0 %v3734_v52  ;;  %2259 = vmatprep.subr.bf16.mxu1 %v3745_v55  ;;  %v3818_v52 = vld [vmem:[%s5580_s1 + $0x6a0] ss:$16 sps:$4 sm:$0xff]   ;;  %v3829_v55 = vld [vmem:[%s5580_s1 + $0x2cc] ss:$16 sps:$4 sm:$0xff]  }
  0x61   :  { %2136 = vmatprep.subr.bf16.mxu0 %v3742_v54  ;;  %v3826_v54 = vld [vmem:[%s5580_s1 + $0x6c4] ss:$16 sps:$4 sm:$0xff]  }
  0x63   :  { %2260 = vmatpush1.bf16.msra.mxu1 %v3743_v57  ;;  %v3827_v57 = vld [vmem:[%s5580_s1 + $0x2c8] ss:$16 sps:$4 sm:$0xff]  }
  0x64   :  { %2137 = vmatpush1.bf16.msra.mxu0 %v3740_v56  ;;  %2261 = vmatprep.subr.bf16.mxu1 %v3751_v59  ;;  %v3824_v56 = vld [vmem:[%s5580_s1 + $0x6c0] ss:$16 sps:$4 sm:$0xff]   ;;  %v3835_v59 = vld [vmem:[%s5580_s1 + $0x2ec] ss:$16 sps:$4 sm:$0xff]  }
  0x65   :  { %2138 = vmatprep.subr.bf16.mxu0 %v3748_v58  ;;  %v3832_v58 = vld [vmem:[%s5580_s1 + $0x6e4] ss:$16 sps:$4 sm:$0xff]  }
  0x67   :  { %2262 = vmatpush1.bf16.msra.mxu1 %v3749_v61  ;;  %v3833_v61 = vld [vmem:[%s5580_s1 + $0x2e8] ss:$16 sps:$4 sm:$0xff]  }
  0x68   :  { %2139 = vmatpush1.bf16.msra.mxu0 %v3746_v60  ;;  %2263 = vmatprep.subr.bf16.mxu1 %v3757_v63  ;;  %v3830_v60 = vld [vmem:[%s5580_s1 + $0x6e0] ss:$16 sps:$4 sm:$0xff]   ;;  %v3841_v63 = vld [vmem:[%s5580_s1 + $0x30c] ss:$16 sps:$4 sm:$0xff]  }
  0x69   :  { %2140 = vmatprep.subr.bf16.mxu0 %v3754_v62  ;;  %v3838_v62 = vld [vmem:[%s5580_s1 + $0x704] ss:$16 sps:$4 sm:$0xff]  }
  0x6b   :  { %2264 = vmatpush1.bf16.msra.mxu1 %v3755_v1  ;;  %v3839_v1 = vld [vmem:[%s5580_s1 + $0x308] ss:$16 sps:$4 sm:$0xff]  }
  0x6c   :  { %2141 = vmatpush1.bf16.msra.mxu0 %v3752_v0  ;;  %2265 = vmatprep.subr.bf16.mxu1 %v3763_v4  ;;  %v3836_v0 = vld [vmem:[%s5580_s1 + $0x700] ss:$16 sps:$4 sm:$0xff]   ;;  %v3847_v4 = vld [vmem:[%s5580_s1 + $0x32c] ss:$16 sps:$4 sm:$0xff]  }
  0x6d   :  { %2142 = vmatprep.subr.bf16.mxu0 %v3760_v2  ;;  %v3844_v2 = vld [vmem:[%s5580_s1 + $0x724] ss:$16 sps:$4 sm:$0xff]  }
  0x6f   :  { %2266 = vmatpush1.bf16.msra.mxu1 %v3761_v6  ;;  %v3845_v6 = vld [vmem:[%s5580_s1 + $0x328] ss:$16 sps:$4 sm:$0xff]  }
  0x70   :  { %2143 = vmatpush1.bf16.msra.mxu0 %v3758_v5  ;;  %2267 = vmatprep.subr.bf16.mxu1 %v3769_v8  ;;  %v3842_v5 = vld [vmem:[%s5580_s1 + $0x720] ss:$16 sps:$4 sm:$0xff]   ;;  %v3853_v8 = vld [vmem:[%s5580_s1 + $0x34c] ss:$16 sps:$4 sm:$0xff]  }
  0x71   :  { %2144 = vmatprep.subr.bf16.mxu0 %v3766_v7  ;;  %v3850_v7 = vld [vmem:[%s5580_s1 + $0x744] ss:$16 sps:$4 sm:$0xff]  }
  0x73   :  { %2268 = vmatpush1.bf16.msra.mxu1 %v3767_v10  ;;  %v3851_v10 = vld [vmem:[%s5580_s1 + $0x348] ss:$16 sps:$4 sm:$0xff]  }
  0x74   :  { %2145 = vmatpush1.bf16.msra.mxu0 %v3764_v9  ;;  %2269 = vmatprep.subr.bf16.mxu1 %v3775_v12  ;;  %v3848_v9 = vld [vmem:[%s5580_s1 + $0x740] ss:$16 sps:$4 sm:$0xff]   ;;  %v3859_v12 = vld [vmem:[%s5580_s1 + $0x36c] ss:$16 sps:$4 sm:$0xff]  }
  0x75   :  { %2146 = vmatprep.subr.bf16.mxu0 %v3772_v11  ;;  %v3856_v11 = vld [vmem:[%s5580_s1 + $0x764] ss:$16 sps:$4 sm:$0xff]  }
  0x77   :  { %2270 = vmatpush1.bf16.msra.mxu1 %v3773_v14  ;;  %v3857_v14 = vld [vmem:[%s5580_s1 + $0x368] ss:$16 sps:$4 sm:$0xff]  }
  0x78   :  { %2147 = vmatpush1.bf16.msra.mxu0 %v3770_v13  ;;  %2271 = vmatprep.subr.bf16.mxu1 %v3781_v17  ;;  %v3854_v13 = vld [vmem:[%s5580_s1 + $0x760] ss:$16 sps:$4 sm:$0xff]   ;;  %v3865_v17 = vld [vmem:[%s5580_s1 + $0x38c] ss:$16 sps:$4 sm:$0xff]  }
  0x79   :  { %2148 = vmatprep.subr.bf16.mxu0 %v3778_v15  ;;  %v3862_v15 = vld [vmem:[%s5580_s1 + $0x784] ss:$16 sps:$4 sm:$0xff]  }
  0x7b   :  { %2272 = vmatpush1.bf16.msra.mxu1 %v3779_v21  ;;  %v3868_v21 = vld [vmem:[%s5580_s1 + $0x7a4] ss:$16 sps:$4 sm:$0xff]  }
  0x7c   :  { %2149 = vmatpush1.bf16.msra.mxu0 %v3776_v20  ;;  %2273 = vmatprep.subr.bf16.mxu1 %v3787_v23  ;;  %v3863_v20 = vld [vmem:[%s5580_s1 + $0x388] ss:$16 sps:$4 sm:$0xff]   ;;  %v3866_v23 = vld [vmem:[%s5580_s1 + $0x7a0] ss:$16 sps:$4 sm:$0xff]  }
  0x7d   :  { %2150 = vmatprep.subr.bf16.mxu0 %v3784_v22  ;;  %v3871_v22 = vld [vmem:[%s5580_s1 + $0x3ac] ss:$16 sps:$4 sm:$0xff]  }
  0x7f   :  { %2274 = vmatpush1.bf16.msra.mxu1 %v3785_v26  ;;  %v3874_v26 = vld [vmem:[%s5580_s1 + $0x7c4] ss:$16 sps:$4 sm:$0xff]  }
  0x80   :  { %2151 = vmatpush1.bf16.msra.mxu0 %v3782_v25  ;;  %2284 = vmatprep.subr.bf16.mxu1 %v3793_v49  ;;  %v3869_v25 = vld [vmem:[%s5580_s1 + $0x3a8] ss:$16 sps:$4 sm:$0xff]   ;;  %v3872_v49 = vld [vmem:[%s5580_s1 + $0x7c0] ss:$16 sps:$4 sm:$0xff]  }
  0x81   :  { %2161 = vmatprep.subr.bf16.mxu0 %v3790_v27  ;;  %v3877_v27 = vld [vmem:[%s5580_s1 + $0x3cc] ss:$16 sps:$4 sm:$0xff]  }
  0x82   :  { %2276 = vmatmul.mubr.bf16.vlgmr.msra.gmra.mrb[4].mxu1 %v4468_v16  ;;  %v3805_v16 = vld [vmem:[%s5580_s1 + $0x24c] ss:$16 sps:$4 sm:$0xff]  }
  0x83   :  { %2153 = vmatmul.mubr.bf16.vlgmr.msra.gmra.mrb[0].mxu0 %v4689_v29  ;;  %2285 = vmatpush1.bf16.msra.mxu1 %v3791_v31  ;;  %v3883_v31 = vld [vmem:[%s5580_s1 + $0x3ec] ss:$16 sps:$4 sm:$0xff]  }
  0x84   :  { %2162 = vmatpush1.bf16.msra.mxu0 %v3788_v30  ;;  %2286 = vmatprep.subr.bf16.mxu1 %v3799_v33  ;;  %v3880_v30 = vld [vmem:[%s5580_s1 + $0x7e4] ss:$16 sps:$4 sm:$0xff]   ;;  %v4883_v33 = vld.sshfl [vmem:[%s5579_s0 + $0x10] sm:$0x33 pattern:$0x76325410] }
  0x85   :  { %2163 = vmatprep.subr.bf16.mxu0 %v3796_v32  ;;  %2193 = vmatprep.mubr.bf16.mxu0 %v4703_v34  ;;  %v3878_v32 = vld [vmem:[%s5580_s1 + $0x7e0] ss:$16 sps:$4 sm:$0xff]  }
  0x86   :  { %2316 = vmatprep.mubr.bf16.mxu1 %v4429_v3  ;;  %v3811_v3 = vld [vmem:[%s5580_s1 + $0x26c] ss:$16 sps:$4 sm:$0xff]  }
  0x87   :  { %2287 = vmatpush1.bf16.msra.mxu1 %v3797_v36  ;;  %v3887_v36 = vld [vmem:[%s5580_s1 + $0x804] ss:$16 sps:$4 sm:$0xff]  }
  0x88   :  { %2164 = vmatpush1.bf16.msra.mxu0 %v3794_v35  ;;  %2288 = vmatprep.subr.bf16.mxu1 %v3805_v16  ;;  %v3881_v35 = vld [vmem:[%s5580_s1 + $0x3e8] ss:$16 sps:$4 sm:$0xff]   ;;  %v75_v16 = vcombine.high %v4883_v33, %v4883_v33 }
  0x89   :  { %2165 = vmatprep.subr.bf16.mxu0 %v3802_v37  ;;  %v3890_v37 = vld [vmem:[%s5580_s1 + $0x40c] ss:$16 sps:$4 sm:$0xff]  }
  0x8b   :  { %2289 = vmatpush1.bf16.msra.mxu1 %v3803_v39  ;;  %v4901_v39 = vpack.c.bf16 %v4671_v24, %v4671_v24  ;;  %v3891_v24 = vld [vmem:[%s5580_s1 + $0x820] ss:$16 sps:$4 sm:$0xff]  }
  0x8c   :  { %2166 = vmatpush1.bf16.msra.mxu0 %v3800_v38  ;;  %2290 = vmatprep.subr.bf16.mxu1 %v3811_v3  ;;  %v3885_v38 = vld [vmem:[%s5580_s1 + $0x800] ss:$16 sps:$4 sm:$0xff]   ;;  %v3893_v3 = vld [vmem:[%s5580_s1 + $0x824] ss:$16 sps:$4 sm:$0xff]  }
  0x8d   :  { %2167 = vmatprep.subr.bf16.mxu0 %v3808_v40  ;;  %v3888_v40 = vld [vmem:[%s5580_s1 + $0x408] ss:$16 sps:$4 sm:$0xff]  }
  0x8f   :  { %2291 = vmatpush1.bf16.msra.mxu1 %v3809_v42  ;;  %v3894_v42 = vld [vmem:[%s5580_s1 + $0x428] ss:$16 sps:$4 sm:$0xff]  }
  0x90   :  { %2168 = vmatpush1.bf16.msra.mxu0 %v3806_v41  ;;  %2292 = vmatprep.subr.bf16.mxu1 %v3817_v45  ;;  %v3896_v41 = vld [vmem:[%s5580_s1 + $0x42c] ss:$16 sps:$4 sm:$0xff]   ;;  %v3899_v45 = vld [vmem:[%s5580_s1 + $0x844] ss:$16 sps:$4 sm:$0xff]  }
  0x91   :  { %2169 = vmatprep.subr.bf16.mxu0 %v3814_v44  ;;  %v4918_v44 = vpack.c.bf16 %v75_v16, %v75_v16 }
  0x93   :  { %2293 = vmatpush1.bf16.msra.mxu1 %v3815_v47  ;;  %v3897_v47 = vld [vmem:[%s5580_s1 + $0x840] ss:$16 sps:$4 sm:$0xff]  }
  0x94   :  { %2170 = vmatpush1.bf16.msra.mxu0 %v3812_v46  ;;  %2294 = vmatprep.subr.bf16.mxu1 %v3823_v50  ;;  %v3902_v46 = vld [vmem:[%s5580_s1 + $0x44c] ss:$16 sps:$4 sm:$0xff]  }
  0x95   :  { %2171 = vmatprep.subr.bf16.mxu0 %v3820_v48  ;;  %v3905_v48 = vld [vmem:[%s5580_s1 + $0x864] ss:$16 sps:$4 sm:$0xff]   ;;  %v3908_v50 = vld [vmem:[%s5580_s1 + $0x46c] ss:$16 sps:$4 sm:$0xff]  }
  0x97   :  { %2295 = vmatpush1.bf16.msra.mxu1 %v3821_v53  ;;  %v3911_v53 = vld [vmem:[%s5580_s1 + $0x884] ss:$16 sps:$4 sm:$0xff]  }
  0x98   :  { %2172 = vmatpush1.bf16.msra.mxu0 %v3818_v52  ;;  %2296 = vmatprep.subr.bf16.mxu1 %v3829_v55  ;;  %v3903_v52 = vld [vmem:[%s5580_s1 + $0x860] ss:$16 sps:$4 sm:$0xff]  }
  0x99   :  { %2173 = vmatprep.subr.bf16.mxu0 %v3826_v54  ;;  %v3914_v54 = vld [vmem:[%s5580_s1 + $0x48c] ss:$16 sps:$4 sm:$0xff]   ;;  %v3909_v55 = vld [vmem:[%s5580_s1 + $0x880] ss:$16 sps:$4 sm:$0xff]  }
  0x9b   :  { %2297 = vmatpush1.bf16.msra.mxu1 %v3827_v57  ;;  %v3917_v57 = vld [vmem:[%s5580_s1 + $0x8a4] ss:$16 sps:$4 sm:$0xff]  }
  0x9c   :  { %2174 = vmatpush1.bf16.msra.mxu0 %v3824_v56  ;;  %2298 = vmatprep.subr.bf16.mxu1 %v3835_v59  ;;  %v3912_v56 = vld [vmem:[%s5580_s1 + $0x488] ss:$16 sps:$4 sm:$0xff]   ;;  %v3915_v59 = vld [vmem:[%s5580_s1 + $0x8a0] ss:$16 sps:$4 sm:$0xff]  }
  0x9d   :  { %2175 = vmatprep.subr.bf16.mxu0 %v3832_v58  ;;  %v3920_v58 = vld [vmem:[%s5580_s1 + $0x4ac] ss:$16 sps:$4 sm:$0xff]  }
  0x9f   :  { %2299 = vmatpush1.bf16.msra.mxu1 %v3833_v61  ;;  %v3923_v61 = vld [vmem:[%s5580_s1 + $0x8c4] ss:$16 sps:$4 sm:$0xff]  }
  0xa0   :  { %2176 = vmatpush1.bf16.msra.mxu0 %v3830_v60  ;;  %2300 = vmatprep.subr.bf16.mxu1 %v3841_v63  ;;  %v3918_v60 = vld [vmem:[%s5580_s1 + $0x4a8] ss:$16 sps:$4 sm:$0xff]   ;;  %v3921_v63 = vld [vmem:[%s5580_s1 + $0x8c0] ss:$16 sps:$4 sm:$0xff]  }
  0xa1   :  { %2177 = vmatprep.subr.bf16.mxu0 %v3838_v62  ;;  %v3926_v62 = vld [vmem:[%s5580_s1 + $0x4cc] ss:$16 sps:$4 sm:$0xff]  }
  0xa3   :  { %2301 = vmatpush1.bf16.msra.mxu1 %v3839_v1  ;;  %v3929_v1 = vld [vmem:[%s5580_s1 + $0x8e4] ss:$16 sps:$4 sm:$0xff]  }
  0xa4   :  { %2178 = vmatpush1.bf16.msra.mxu0 %v3836_v0  ;;  %2302 = vmatprep.subr.bf16.mxu1 %v3847_v4  ;;  %v3924_v0 = vld [vmem:[%s5580_s1 + $0x4c8] ss:$16 sps:$4 sm:$0xff]   ;;  %v3927_v4 = vld [vmem:[%s5580_s1 + $0x8e0] ss:$16 sps:$4 sm:$0xff]  }
  0xa5   :  { %2179 = vmatprep.subr.bf16.mxu0 %v3844_v2  ;;  %v3932_v2 = vld [vmem:[%s5580_s1 + $0x4ec] ss:$16 sps:$4 sm:$0xff]  }
  0xa7   :  { %2303 = vmatpush1.bf16.msra.mxu1 %v3845_v6  ;;  %v3935_v6 = vld [vmem:[%s5580_s1 + $0x904] ss:$16 sps:$4 sm:$0xff]  }
  0xa8   :  { %2180 = vmatpush1.bf16.msra.mxu0 %v3842_v5  ;;  %2304 = vmatprep.subr.bf16.mxu1 %v3853_v8  ;;  %v3930_v5 = vld [vmem:[%s5580_s1 + $0x4e8] ss:$16 sps:$4 sm:$0xff]   ;;  %v3933_v8 = vld [vmem:[%s5580_s1 + $0x900] ss:$16 sps:$4 sm:$0xff]  }
  0xa9   :  { %2181 = vmatprep.subr.bf16.mxu0 %v3850_v7  ;;  %v3938_v7 = vld [vmem:[%s5580_s1 + $0x50c] ss:$16 sps:$4 sm:$0xff]  }
  0xab   :  { %2305 = vmatpush1.bf16.msra.mxu1 %v3851_v10  ;;  %v3941_v10 = vld [vmem:[%s5580_s1 + $0x924] ss:$16 sps:$4 sm:$0xff]  }
  0xac   :  { %2182 = vmatpush1.bf16.msra.mxu0 %v3848_v9  ;;  %2306 = vmatprep.subr.bf16.mxu1 %v3859_v12  ;;  %v3936_v9 = vld [vmem:[%s5580_s1 + $0x508] ss:$16 sps:$4 sm:$0xff]   ;;  %v3939_v12 = vld [vmem:[%s5580_s1 + $0x920] ss:$16 sps:$4 sm:$0xff]  }
  0xad   :  { %2183 = vmatprep.subr.bf16.mxu0 %v3856_v11  ;;  %v3944_v11 = vld [vmem:[%s5580_s1 + $0x52c] ss:$16 sps:$4 sm:$0xff]  }
  0xaf   :  { %2307 = vmatpush1.bf16.msra.mxu1 %v3857_v14  ;;  %v3947_v14 = vld [vmem:[%s5580_s1 + $0x944] ss:$16 sps:$4 sm:$0xff]  }
  0xb0   :  { %2184 = vmatpush1.bf16.msra.mxu0 %v3854_v13  ;;  %2308 = vmatprep.subr.bf16.mxu1 %v3865_v17  ;;  %v3942_v13 = vld [vmem:[%s5580_s1 + $0x528] ss:$16 sps:$4 sm:$0xff]   ;;  %v3945_v17 = vld [vmem:[%s5580_s1 + $0x940] ss:$16 sps:$4 sm:$0xff]  }
  0xb1   :  { %2185 = vmatprep.subr.bf16.mxu0 %v3862_v15  ;;  %v3950_v15 = vld [vmem:[%s5580_s1 + $0x54c] ss:$16 sps:$4 sm:$0xff]  }
  0xb3   :  { %2309 = vmatpush1.bf16.msra.mxu1 %v3863_v20  ;;  %v3953_v20 = vld [vmem:[%s5580_s1 + $0x964] ss:$16 sps:$4 sm:$0xff]  }
  0xb4   :  { %2186 = vmatpush1.bf16.msra.mxu0 %v3860_v19  ;;  %2310 = vmatprep.subr.bf16.mxu1 %v3871_v22  ;;  %v3948_v19 = vld [vmem:[%s5580_s1 + $0x548] ss:$16 sps:$4 sm:$0xff]   ;;  %v3951_v22 = vld [vmem:[%s5580_s1 + $0x960] ss:$16 sps:$4 sm:$0xff]  }
  0xb5   :  { %2187 = vmatprep.subr.bf16.mxu0 %v3868_v21  ;;  %v3956_v21 = vld [vmem:[%s5580_s1 + $0x56c] ss:$16 sps:$4 sm:$0xff]  }
  0xb7   :  { %2311 = vmatpush1.bf16.msra.mxu1 %v3869_v25  ;;  %v3959_v25 = vld [vmem:[%s5580_s1 + $0x984] ss:$16 sps:$4 sm:$0xff]  }
  0xb8   :  { %2188 = vmatpush1.bf16.msra.mxu0 %v3866_v23  ;;  %2312 = vmatprep.subr.bf16.mxu1 %v3877_v27  ;;  %v3954_v23 = vld [vmem:[%s5580_s1 + $0x568] ss:$16 sps:$4 sm:$0xff]   ;;  %v3957_v27 = vld [vmem:[%s5580_s1 + $0x980] ss:$16 sps:$4 sm:$0xff]  }
  0xb9   :  { %2189 = vmatprep.subr.bf16.mxu0 %v3874_v26  ;;  %v3962_v26 = vld [vmem:[%s5580_s1 + $0x58c] ss:$16 sps:$4 sm:$0xff]  }
  0xbb   :  { %2313 = vmatpush1.bf16.msra.mxu1 %v3875_v28  ;;  %v3965_v28 = vld [vmem:[%s5580_s1 + $0x9a4] ss:$16 sps:$4 sm:$0xff]  }
  0xbc   :  { %2190 = vmatpush1.bf16.msra.mxu0 %v3872_v49  ;;  %2314 = vmatprep.subr.bf16.mxu1 %v3883_v31  ;;  %v3960_v49 = vld [vmem:[%s5580_s1 + $0x588] ss:$16 sps:$4 sm:$0xff]   ;;  %v3963_v31 = vld [vmem:[%s5580_s1 + $0x9a0] ss:$16 sps:$4 sm:$0xff]  }
  0xbd   :  { %2191 = vmatprep.subr.bf16.mxu0 %v3880_v30  ;;  %v3968_v30 = vld [vmem:[%s5580_s1 + $0x5ac] ss:$16 sps:$4 sm:$0xff]  }
  0xbf   :  { %2315 = vmatpush1.bf16.msra.mxu1 %v3881_v35  ;;  %v3971_v35 = vld [vmem:[%s5580_s1 + $0x9c4] ss:$16 sps:$4 sm:$0xff]  }
  0xc0   :  { %2192 = vmatpush1.bf16.msra.mxu0 %v3878_v32  ;;  %2325 = vmatprep.subr.bf16.mxu1 %v3890_v37  ;;  %v3966_v32 = vld [vmem:[%s5580_s1 + $0x5a8] ss:$16 sps:$4 sm:$0xff]  }
  0xc1   :  { %2202 = vmatprep.subr.bf16.mxu0 %v3887_v36  ;;  %v3974_v36 = vld [vmem:[%s5580_s1 + $0x5cc] ss:$16 sps:$4 sm:$0xff]  }
  0xc2   :  { %2317 = vmatmul.mubr.bf16.vlgmr.msra.gmra.mrb[4].mxu1 %v4473_v18  ;;  %v3900_v18 = vld [vmem:[%s5580_s1 + $0x448] ss:$16 sps:$4 sm:$0xff]  }
  0xc3   :  { %2194 = vmatmul.mubr.bf16.vlgmr.msra.gmra.mrb[0].mxu0 %v4901_v39  ;;  %2326 = vmatpush1.bf16.msra.mxu1 %v3888_v40 }
  0xc4   :  { %2203 = vmatpush1.bf16.msra.mxu0 %v3885_v38  ;;  %2327 = vmatprep.subr.bf16.mxu1 %v3896_v41 }
  0xc5   :  { %2204 = vmatprep.subr.bf16.mxu0 %v3893_v3  ;;  %2234 = vmatprep.mubr.bf16.mxu0 %v4918_v44 }
  0xc6   :  { %2357 = vmatprep.mubr.bf16.mxu1 %v4569_v51  ;;  %v3906_v51 = vld [vmem:[%s5580_s1 + $0x468] ss:$16 sps:$4 sm:$0xff]  }
  0xc7   :  { %2328 = vmatpush1.bf16.msra.mxu1 %v3894_v42 }
  0xc8   :  { %2205 = vmatpush1.bf16.msra.mxu0 %v3891_v24  ;;  %2329 = vmatprep.subr.bf16.mxu1 %v3902_v46 }
  0xc9   :  { %2206 = vmatprep.subr.bf16.mxu0 %v3899_v45 }
  0xcb   :  { %2330 = vmatpush1.bf16.msra.mxu1 %v3900_v18 }
  0xcc   :  { %2207 = vmatpush1.bf16.msra.mxu0 %v3897_v47  ;;  %2331 = vmatprep.subr.bf16.mxu1 %v3908_v50 }
  0xcd   :  { %2208 = vmatprep.subr.bf16.mxu0 %v3905_v48 }
  0xcf   :  { %2332 = vmatpush1.bf16.msra.mxu1 %v3906_v51 }
  0xd0   :  { %2209 = vmatpush1.bf16.msra.mxu0 %v3903_v52  ;;  %2333 = vmatprep.subr.bf16.mxu1 %v3914_v54 }
  0xd1   :  { %2210 = vmatprep.subr.bf16.mxu0 %v3911_v53 }
  0xd3   :  { %2334 = vmatpush1.bf16.msra.mxu1 %v3912_v56 }
  0xd4   :  { %2211 = vmatpush1.bf16.msra.mxu0 %v3909_v55  ;;  %2335 = vmatprep.subr.bf16.mxu1 %v3920_v58 }
  0xd5   :  { %2212 = vmatprep.subr.bf16.mxu0 %v3917_v57 }
  0xd7   :  { %2336 = vmatpush1.bf16.msra.mxu1 %v3918_v60 }
  0xd8   :  { %2213 = vmatpush1.bf16.msra.mxu0 %v3915_v59  ;;  %2337 = vmatprep.subr.bf16.mxu1 %v3926_v62 }
  0xd9   :  { %2214 = vmatprep.subr.bf16.mxu0 %v3923_v61 }
  0xdb   :  { %2338 = vmatpush1.bf16.msra.mxu1 %v3924_v0 }
  0xdc   :  { %2215 = vmatpush1.bf16.msra.mxu0 %v3921_v63  ;;  %2339 = vmatprep.subr.bf16.mxu1 %v3932_v2 }
  0xdd   :  { %2216 = vmatprep.subr.bf16.mxu0 %v3929_v1 }
  0xdf   :  { %2340 = vmatpush1.bf16.msra.mxu1 %v3930_v5 }
  0xe0   :  { %2217 = vmatpush1.bf16.msra.mxu0 %v3927_v4  ;;  %2341 = vmatprep.subr.bf16.mxu1 %v3938_v7 }
  0xe1   :  { %2218 = vmatprep.subr.bf16.mxu0 %v3935_v6 }
  0xe3   :  { %2342 = vmatpush1.bf16.msra.mxu1 %v3936_v9 }
  0xe4   :  { %2219 = vmatpush1.bf16.msra.mxu0 %v3933_v8  ;;  %2343 = vmatprep.subr.bf16.mxu1 %v3944_v11 }
  0xe5   :  { %2220 = vmatprep.subr.bf16.mxu0 %v3941_v10 }
  0xe7   :  { %2344 = vmatpush1.bf16.msra.mxu1 %v3942_v13 }
  0xe8   :  { %2221 = vmatpush1.bf16.msra.mxu0 %v3939_v12  ;;  %2345 = vmatprep.subr.bf16.mxu1 %v3950_v15 }
  0xe9   :  { %2222 = vmatprep.subr.bf16.mxu0 %v3947_v14 }
  0xeb   :  { %2346 = vmatpush1.bf16.msra.mxu1 %v3948_v19 }
  0xec   :  { %2223 = vmatpush1.bf16.msra.mxu0 %v3945_v17  ;;  %2347 = vmatprep.subr.bf16.mxu1 %v3956_v21 }
  0xed   :  { %2224 = vmatprep.subr.bf16.mxu0 %v3953_v20 }
  0xef   :  { %2348 = vmatpush1.bf16.msra.mxu1 %v3954_v23 }
  0xf0   :  { %2225 = vmatpush1.bf16.msra.mxu0 %v3951_v22  ;;  %2349 = vmatprep.subr.bf16.mxu1 %v3962_v26 }
  0xf1   :  { %2226 = vmatprep.subr.bf16.mxu0 %v3959_v25 }
  0xf3   :  { %2350 = vmatpush1.bf16.msra.mxu1 %v3960_v49 }
  0xf4   :  { %2227 = vmatpush1.bf16.msra.mxu0 %v3957_v27  ;;  %2351 = vmatprep.subr.bf16.mxu1 %v3968_v30 }
  0xf5   :  { %2228 = vmatprep.subr.bf16.mxu0 %v3965_v28 }
  0xf6   :  { %12 = vsyncpa [#allocation3], 0  ;;  %v3969_v37 = vld [vmem:[%s5580_s1 + $0x9c0] ss:$16 sps:$4 sm:$0xff]   ;;  %v3972_v16 = vld [vmem:[%s5580_s1 + $0x5c8] ss:$16 sps:$4 sm:$0xff]   ;;  %v5097_v42 = vpack.c.bf16 %v4883_v33, %v4883_v33 }
  0xf7   :  { %2352 = vmatpush1.bf16.msra.mxu1 %v3966_v32  ;;  %v3977_v38 = vld [vmem:[%s5580_s1 + $0x9e4] ss:$16 sps:$4 sm:$0xff]   ;;  %v3980_v40 = vld [vmem:[%s5580_s1 + $0x5ec] ss:$16 sps:$4 sm:$0xff]   ;;  %v3975_v3 = vld [vmem:[%s5580_s1 + $0x9e0] ss:$16 sps:$4 sm:$0xff]  }
  0xf8   :  { %2229 = vmatpush1.bf16.msra.mxu0 %v3963_v31  ;;  %2353 = vmatprep.subr.bf16.mxu1 %v3974_v36  ;;  %v3978_v41 = vld [vmem:[%s5580_s1 + $0x5e8] ss:$16 sps:$4 sm:$0xff]   ;;  %v3983_v24 = vld [vmem:[%s5580_s1 + $0x60c] ss:$16 sps:$4 sm:$0xff]   ;;  %s4216_s26 = smov [#allocation2]  }
  0xf9   :  { %2230 = vmatprep.subr.bf16.mxu0 %v3971_v35  ;;  %v3981_v45 = vld [vmem:[%s5580_s1 + $0x608] ss:$16 sps:$4 sm:$0xff]   ;;  %v3986_v46 = vld [vmem:[%s5580_s1 + $0x62c] ss:$16 sps:$4 sm:$0xff]   ;;  %s3121_s0 = sshll.u32 %s4216_s26, 4  ;;  %s3122_s0 = int_to_ptr.vmem [resolvable:$true] %s3121_s0 }
  0xfa   :  { %v4077_v33 = vld [vmem:[%s5582_s3] ss:$8 sps:$4 sm:$0xff]   ;;  %v4079_v47 = vld [vmem:[%s5582_s3 + $0x4] ss:$8 sps:$4 sm:$0xff]   ;;  %v4082_v48 = vld [vmem:[%s5582_s3 + $0x14] ss:$8 sps:$4 sm:$0xff]   ;;  %p4196_p1 = scmp.lt.s32.totalorder %s3122_s0, %s3122_s0 }
  0xfb   :  { %2354 = vmatpush1.bf16.msra.mxu1 %v3972_v16  ;;  %v3984_v18 = vld [vmem:[%s5580_s1 + $0x628] ss:$16 sps:$4 sm:$0xff]   ;;  %v3992_v51 = vld [vmem:[%s5580_s1 + $0x66c] ss:$16 sps:$4 sm:$0xff]   ;;  %s4191_s27 = scalar_lea.vmem %s3122_s0, 32 }
  0xfc   :  { %2231 = vmatpush1.bf16.msra.mxu0 %v3969_v37  ;;  %2355 = vmatprep.subr.bf16.mxu1 %v3980_v40  ;;  %v4080_v50 = vld [vmem:[%s5582_s3 + $0x10] ss:$8 sps:$4 sm:$0xff]   ;;  %v4083_v53 = vld [vmem:[%s5582_s3 + $0x20] ss:$8 sps:$4 sm:$0xff]   ;;  %v4088_v54 = vld [vmem:[%s5582_s3 + $0x34] ss:$8 sps:$4 sm:$0xff]   ;;  %p4192_p0 = scmp.ne.s32.totalorder %s3122_s0, %s4191_s27  ;;  %p4197_p2 = scmp.lt.s32.totalorder %s4191_s27, %s4191_s27 }
  0xfd   :  { %2232 = vmatprep.subr.bf16.mxu0 %v3977_v38  ;;  %v3987_v52 = vld [vmem:[%s5580_s1 + $0x648] ss:$16 sps:$4 sm:$0xff]   ;;  %v3995_v56 = vld [vmem:[%s5580_s1 + $0x68c] ss:$16 sps:$4 sm:$0xff]  }
  0xfe   :  { %v3990_v55 = vld [vmem:[%s5580_s1 + $0x668] ss:$16 sps:$4 sm:$0xff]   ;;  %v4091_v58 = vld [vmem:[%s5582_s3 + $0x44] ss:$8 sps:$4 sm:$0xff]   ;;  %v4094_v62 = vld [vmem:[%s5582_s3 + $0x54] ss:$8 sps:$4 sm:$0xff]   ;;  %p4198_p3 = por %p4197_p2, %p4196_p1 }
  0xff   :  { %2356 = vmatpush1.bf16.msra.mxu1 %v3978_v41  ;;  %v4086_v57 = vld [vmem:[%s5582_s3 + $0x30] ss:$8 sps:$4 sm:$0xff]   ;;  %v3998_v60 = vld [vmem:[%s5580_s1 + $0x6ac] ss:$16 sps:$4 sm:$0xff]   ;;  %v4089_v61 = vld [vmem:[%s5582_s3 + $0x40] ss:$8 sps:$4 sm:$0xff]  }
 0x100   :  { %2233 = vmatpush1.bf16.msra.mxu0 %v3975_v3  ;;  %2366 = vmatprep.subr.bf16.mxu1 %v3983_v24  ;;  %v3993_v59 = vld [vmem:[%s5580_s1 + $0x688] ss:$16 sps:$4 sm:$0xff]   ;;  %v4001_v0 = vld [vmem:[%s5580_s1 + $0x6cc] ss:$16 sps:$4 sm:$0xff]   ;;  %p4199_p4 = pnand %p4198_p3, %p4192_p0 }
 0x101   :  { %2852 = vmatprep.subr.bf16.mxu0 %v4079_v47  ;;  %v3996_v63 = vld [vmem:[%s5580_s1 + $0x6a8] ss:$16 sps:$4 sm:$0xff]   ;;  %v4097_v5 = vld [vmem:[%s5582_s3 + $0x64] ss:$8 sps:$4 sm:$0xff]   ;;  %v4100_v11 = vld [vmem:[%s5582_s3 + $0x74] ss:$8 sps:$4 sm:$0xff]  }
 0x102   :  { %2358 = vmatmul.mubr.bf16.vlgmr.msra.gmra.mrb[4].mxu1 %v4689_v29  ;;  %v3989_v29 = vld [vmem:[%s5580_s1 + $0x64c] ss:$16 sps:$4 sm:$0xff]   ;;  %v4092_v2 = vld [vmem:[%s5582_s3 + $0x50] ss:$8 sps:$4 sm:$0xff]   ;;  %v4095_v10 = vld [vmem:[%s5582_s3 + $0x60] ss:$8 sps:$4 sm:$0xff]  }
 0x103   :  { %2235 = vmatmul.mubr.bf16.vlgmr.msra.gmra.mrb[0].mxu0 %v5097_v42  ;;  %2367 = vmatpush1.bf16.msra.mxu1 %v3981_v45  ;;  %v3999_v7 = vld [vmem:[%s5580_s1 + $0x6c8] ss:$16 sps:$4 sm:$0xff]   ;;  %v4004_v9 = vld [vmem:[%s5580_s1 + $0x6ec] ss:$16 sps:$4 sm:$0xff]  }
 0x104   :  { %2398 = vmatprep.mubr.bf16.mxu1 %v4703_v34  ;;  %2368 = vmatprep.subr.bf16.mxu1 %v3986_v46  ;;  %v4085_v34 = vld [vmem:[%s5582_s3 + $0x24] ss:$8 sps:$4 sm:$0xff]   ;;  %v4002_v12 = vld [vmem:[%s5580_s1 + $0x6e8] ss:$16 sps:$4 sm:$0xff]   ;;  %v4106_v21 = vld [vmem:[%s5582_s3 + $0x94] ss:$8 sps:$4 sm:$0xff]  }
 0x105   :  { %2853 = vmatpush1.bf16.msra.mxu0 %v4077_v33  ;;  %v4007_v13 = vld [vmem:[%s5580_s1 + $0x70c] ss:$16 sps:$4 sm:$0xff]   ;;  %v4098_v14 = vld [vmem:[%s5582_s3 + $0x70] ss:$8 sps:$4 sm:$0xff]   ;;  %v4101_v20 = vld [vmem:[%s5582_s3 + $0x80] ss:$8 sps:$4 sm:$0xff]  }
 0x106   :  { %2854 = vmatprep.subr.bf16.mxu0 %v4082_v48  ;;  %v4103_v15 = vld [vmem:[%s5582_s3 + $0x84] ss:$8 sps:$4 sm:$0xff]   ;;  %v4005_v17 = vld [vmem:[%s5580_s1 + $0x708] ss:$16 sps:$4 sm:$0xff]   ;;  %v4112_v30 = vld [vmem:[%s5582_s3 + $0xb4] ss:$8 sps:$4 sm:$0xff]  }
 0x107   :  { %2369 = vmatpush1.bf16.msra.mxu1 %v3984_v18  ;;  %v4010_v19 = vld [vmem:[%s5580_s1 + $0x72c] ss:$16 sps:$4 sm:$0xff]   ;;  %v4008_v22 = vld [vmem:[%s5580_s1 + $0x728] ss:$16 sps:$4 sm:$0xff]  }
 0x108   :  { %2370 = vmatprep.subr.bf16.mxu1 %v3989_v29  ;;  %v4013_v23 = vld [vmem:[%s5580_s1 + $0x74c] ss:$16 sps:$4 sm:$0xff]   ;;  %v4104_v25 = vld [vmem:[%s5582_s3 + $0x90] ss:$8 sps:$4 sm:$0xff]   ;;  %v4107_v28 = vld [vmem:[%s5582_s3 + $0xa0] ss:$8 sps:$4 sm:$0xff]  }
 0x109   :  { %2855 = vmatpush1.bf16.msra.mxu0 %v4080_v50  ;;  %v4109_v26 = vld [vmem:[%s5582_s3 + $0xa4] ss:$8 sps:$4 sm:$0xff]   ;;  %v4011_v27 = vld [vmem:[%s5580_s1 + $0x748] ss:$16 sps:$4 sm:$0xff]   ;;  %v4118_v40 = vld [vmem:[%s5582_s3 + $0xd4] ss:$8 sps:$4 sm:$0xff]  }
 0x10a   :  { %2856 = vmatprep.subr.bf16.mxu0 %v4085_v34  ;;  %v4016_v49 = vld [vmem:[%s5580_s1 + $0x76c] ss:$16 sps:$4 sm:$0xff]   ;;  %v4014_v31 = vld [vmem:[%s5580_s1 + $0x768] ss:$16 sps:$4 sm:$0xff]  }
 0x10b   :  { %2371 = vmatpush1.bf16.msra.mxu1 %v3987_v52  ;;  %v4019_v32 = vld [vmem:[%s5580_s1 + $0x78c] ss:$16 sps:$4 sm:$0xff]   ;;  %v4110_v35 = vld [vmem:[%s5582_s3 + $0xb0] ss:$8 sps:$4 sm:$0xff]   ;;  %v4113_v38 = vld [vmem:[%s5582_s3 + $0xc0] ss:$8 sps:$4 sm:$0xff]  }
 0x10c   :  { %2372 = vmatprep.subr.bf16.mxu1 %v3992_v51  ;;  %v4115_v36 = vld [vmem:[%s5582_s3 + $0xc4] ss:$8 sps:$4 sm:$0xff]   ;;  %v4017_v37 = vld [vmem:[%s5580_s1 + $0x788] ss:$16 sps:$4 sm:$0xff]  }
 0x10d   :  { %2857 = vmatpush1.bf16.msra.mxu0 %v4083_v53  ;;  %v4022_v16 = vld [vmem:[%s5580_s1 + $0x7ac] ss:$16 sps:$4 sm:$0xff]   ;;  %v4020_v3 = vld [vmem:[%s5580_s1 + $0x7a8] ss:$16 sps:$4 sm:$0xff]  }
 0x10e   :  { %2858 = vmatprep.subr.bf16.mxu0 %v4088_v54  ;;  %v4025_v41 = vld [vmem:[%s5580_s1 + $0x7cc] ss:$16 sps:$4 sm:$0xff]   ;;  %v4116_v24 = vld [vmem:[%s5582_s3 + $0xd0] ss:$8 sps:$4 sm:$0xff]  }
 0x10f   :  { %2373 = vmatpush1.bf16.msra.mxu1 %v3990_v55  ;;  %v4023_v45 = vld [vmem:[%s5580_s1 + $0x7c8] ss:$16 sps:$4 sm:$0xff]   ;;  %v4028_v46 = vld [vmem:[%s5580_s1 + $0x7ec] ss:$16 sps:$4 sm:$0xff]  }
 0x110   :  { %2374 = vmatprep.subr.bf16.mxu1 %v3995_v56  ;;  %v4026_v33 = vld [vmem:[%s5580_s1 + $0x7e8] ss:$16 sps:$4 sm:$0xff]   ;;  %v4031_v47 = vld [vmem:[%s5580_s1 + $0x80c] ss:$16 sps:$4 sm:$0xff]  }
 0x111   :  { %2859 = vmatpush1.bf16.msra.mxu0 %v4086_v57  ;;  %v4029_v18 = vld [vmem:[%s5580_s1 + $0x808] ss:$16 sps:$4 sm:$0xff]   ;;  %v4034_v48 = vld [vmem:[%s5580_s1 + $0x82c] ss:$16 sps:$4 sm:$0xff]  }
 0x112   :  { %2860 = vmatprep.subr.bf16.mxu0 %v4091_v58  ;;  %v4032_v29 = vld [vmem:[%s5580_s1 + $0x828] ss:$16 sps:$4 sm:$0xff]   ;;  %v4037_v50 = vld [vmem:[%s5580_s1 + $0x84c] ss:$16 sps:$4 sm:$0xff]  }
 0x113   :  { %2375 = vmatpush1.bf16.msra.mxu1 %v3993_v59  ;;  %v4035_v34 = vld [vmem:[%s5580_s1 + $0x848] ss:$16 sps:$4 sm:$0xff]   ;;  %v4043_v52 = vld [vmem:[%s5580_s1 + $0x88c] ss:$16 sps:$4 sm:$0xff]  }
 0x114   :  { %2376 = vmatprep.subr.bf16.mxu1 %v3998_v60  ;;  %v4041_v51 = vld [vmem:[%s5580_s1 + $0x888] ss:$16 sps:$4 sm:$0xff]   ;;  %v4046_v53 = vld [vmem:[%s5580_s1 + $0x8ac] ss:$16 sps:$4 sm:$0xff]  }
 0x115   :  { %v5171_v1 = vpop.f32.mrb[0].mxu1  ;;  %2861 = vmatpush1.bf16.msra.mxu0 %v4089_v61  ;;  %v4044_v54 = vld [vmem:[%s5580_s1 + $0x8a8] ss:$16 sps:$4 sm:$0xff]   ;;  %v4049_v55 = vld [vmem:[%s5580_s1 + $0x8cc] ss:$16 sps:$4 sm:$0xff]  }
 0x116   :  { %v5176_v4 = vpop.f32.mrb[1].mxu1  ;;  %2862 = vmatprep.subr.bf16.mxu0 %v4094_v62  ;;  %v4121_v56 = vld [vmem:[%s5582_s3 + $0xe4] ss:$8 sps:$4 sm:$0xff]   ;;  %v4119_v57 = vld [vmem:[%s5582_s3 + $0xe0] ss:$8 sps:$4 sm:$0xff]  }
 0x117   :  { %v2076_v6 = vpop.f32.mrb[2].mxu1  ;;  %2377 = vmatpush1.bf16.msra.mxu1 %v3996_v63  ;;  %v4047_v58 = vld [vmem:[%s5580_s1 + $0x8c8] ss:$16 sps:$4 sm:$0xff]   ;;  %v4052_v59 = vld [vmem:[%s5580_s1 + $0x8ec] ss:$16 sps:$4 sm:$0xff]  }
 0x118   :  { %v2077_v8 = vpop.f32.mrb[3].mxu1  ;;  %2378 = vmatprep.subr.bf16.mxu1 %v4001_v0  ;;  %v4124_v60 = vld [vmem:[%s5582_s3 + $0xf4] ss:$8 sps:$4 sm:$0xff]   ;;  %v4122_v61 = vld [vmem:[%s5582_s3 + $0xf0] ss:$8 sps:$4 sm:$0xff]  }
 0x119   :  { %2863 = vmatpush1.bf16.msra.mxu0 %v4092_v2  ;;  %v4050_v62 = vld [vmem:[%s5580_s1 + $0x8e8] ss:$16 sps:$4 sm:$0xff]   ;;  %v4055_v63 = vld [vmem:[%s5580_s1 + $0x90c] ss:$16 sps:$4 sm:$0xff]  }
 0x11a   :  { %2864 = vmatprep.subr.bf16.mxu0 %v4097_v5  ;;  %v4127_v0 = vld [vmem:[%s5582_s3 + $0x104] ss:$8 sps:$4 sm:$0xff]   ;;  %v4053_v2 = vld [vmem:[%s5580_s1 + $0x908] ss:$16 sps:$4 sm:$0xff]  }
 0x11b   :  { %2379 = vmatpush1.bf16.msra.mxu1 %v3999_v7  ;;  %v4058_v5 = vld [vmem:[%s5580_s1 + $0x92c] ss:$16 sps:$4 sm:$0xff]   ;;  %v4056_v6 = vld [vmem:[%s5580_s1 + $0x928] ss:$16 sps:$4 sm:$0xff]  }
 0x11c   :  { %2380 = vmatprep.subr.bf16.mxu1 %v4004_v9  ;;  %v4061_v7 = vld [vmem:[%s5580_s1 + $0x94c] ss:$16 sps:$4 sm:$0xff]   ;;  %v4059_v8 = vld [vmem:[%s5580_s1 + $0x948] ss:$16 sps:$4 sm:$0xff]  }
 0x11d   :  { %2865 = vmatpush1.bf16.msra.mxu0 %v4095_v10  ;;  %v4064_v9 = vld [vmem:[%s5580_s1 + $0x96c] ss:$16 sps:$4 sm:$0xff]   ;;  %v4062_v10 = vld [vmem:[%s5580_s1 + $0x968] ss:$16 sps:$4 sm:$0xff]  }
 0x11e   :  { %2866 = vmatprep.subr.bf16.mxu0 %v4100_v11  ;;  %v4067_v11 = vld [vmem:[%s5580_s1 + $0x98c] ss:$16 sps:$4 sm:$0xff]  }
 0x11f   :  { %2381 = vmatpush1.bf16.msra.mxu1 %v4002_v12  ;;  %v4065_v12 = vld [vmem:[%s5580_s1 + $0x988] ss:$16 sps:$4 sm:$0xff]  }
 0x120   :  { %2382 = vmatprep.subr.bf16.mxu1 %v4007_v13  ;;  %v4070_v13 = vld [vmem:[%s5580_s1 + $0x9ac] ss:$16 sps:$4 sm:$0xff]  }
 0x121   :  { %2867 = vmatpush1.bf16.msra.mxu0 %v4098_v14  ;;  %v4068_v14 = vld [vmem:[%s5580_s1 + $0x9a8] ss:$16 sps:$4 sm:$0xff]  }
 0x122   :  { %2868 = vmatprep.subr.bf16.mxu0 %v4103_v15  ;;  %v4073_v15 = vld [vmem:[%s5580_s1 + $0x9cc] ss:$16 sps:$4 sm:$0xff]  }
 0x123   :  { %2383 = vmatpush1.bf16.msra.mxu1 %v4005_v17  ;;  %v4071_v17 = vld [vmem:[%s5580_s1 + $0x9c8] ss:$16 sps:$4 sm:$0xff]  }
 0x124   :  { %2384 = vmatprep.subr.bf16.mxu1 %v4010_v19  ;;  %v4076_v19 = vld [vmem:[%s5580_s1 + $0x9ec] ss:$16 sps:$4 sm:$0xff]  }
 0x125   :  { %2869 = vmatpush1.bf16.msra.mxu0 %v4101_v20  ;;  %v4074_v20 = vld [vmem:[%s5580_s1 + $0x9e8] ss:$16 sps:$4 sm:$0xff]  }
 0x126   :  { %2870 = vmatprep.subr.bf16.mxu0 %v4106_v21  ;;  %v420_v21 = vsub.s32 0, %v4374_v43 }
 0x127   :  { %2385 = vmatpush1.bf16.msra.mxu1 %v4008_v22  ;;  %v5401_v22 = vld [vmem:[%s5581_s2] sm:$0xf] }
 0x128   :  { %2386 = vmatprep.subr.bf16.mxu1 %v4013_v23  ;;  %v424_v23 = vsub.s32 1, %v4374_v43 }
 0x129   :  { %2871 = vmatpush1.bf16.msra.mxu0 %v4104_v25  ;;  %v421_v25 = vrot.slane %v5401_v22, %v420_v21 }
 0x12a   :  { %2872 = vmatprep.subr.bf16.mxu0 %v4109_v26  ;;  %v425_v26 = vrot.slane %v5401_v22, %v424_v23 }
 0x12b   :  { %2387 = vmatpush1.bf16.msra.mxu1 %v4011_v27  ;;  %v2073_v27 = vadd.f32 %v5171_v1, %v421_v25  ;;  %v4130_v1 = vld [vmem:[%s5582_s3 + $0x114] ss:$8 sps:$4 sm:$0xff]  }
 0x12c   :  { %2388 = vmatprep.subr.bf16.mxu1 %v4016_v49 }
 0x12d   :  { %2873 = vmatpush1.bf16.msra.mxu0 %v4107_v28 }
 0x12e   :  { %2874 = vmatprep.subr.bf16.mxu0 %v4112_v30 }
 0x12f   :  { %2389 = vmatpush1.bf16.msra.mxu1 %v4014_v31 }
 0x130   :  { %2390 = vmatprep.subr.bf16.mxu1 %v4019_v32 }
 0x131   :  { %2875 = vmatpush1.bf16.msra.mxu0 %v4110_v35 }
 0x132   :  { %2876 = vmatprep.subr.bf16.mxu0 %v4115_v36 }
 0x133   :  { %2391 = vmatpush1.bf16.msra.mxu1 %v4017_v37 }
 0x134   :  { %2392 = vmatprep.subr.bf16.mxu1 %v4022_v16 }
 0x135   :  { %2877 = vmatpush1.bf16.msra.mxu0 %v4113_v38  ;;  %v4125_v38 = vld [vmem:[%s5582_s3 + $0x100] ss:$8 sps:$4 sm:$0xff]  }
 0x136   :  { %2878 = vmatprep.subr.bf16.mxu0 %v4118_v40 }
 0x137   :  { %2393 = vmatpush1.bf16.msra.mxu1 %v4020_v3  ;;  %v4174_v3 = vld [vmem:[%s5584_s5] sm:$0xff]  }
 0x138   :  { %2394 = vmatprep.subr.bf16.mxu1 %v4025_v41  ;;  %v4175_v41 = vld [vmem:[%s5584_s5 + $0x48] sm:$0xff]  }
 0x139   :  { %2879 = vmatpush1.bf16.msra.mxu0 %v4116_v24  ;;  %v4128_v24 = vld [vmem:[%s5582_s3 + $0x110] ss:$8 sps:$4 sm:$0xff]  }
 0x13a   :  { %2880 = vmatprep.subr.bf16.mxu0 %v4121_v56  ;;  %v4145_v56 = vld [vmem:[%s5582_s3 + $0x164] ss:$8 sps:$4 sm:$0xff]  }
 0x13b   :  { %2395 = vmatpush1.bf16.msra.mxu1 %v4023_v45  ;;  %v4133_v45 = vld [vmem:[%s5582_s3 + $0x124] ss:$8 sps:$4 sm:$0xff]  }
 0x13c   :  { %2396 = vmatprep.subr.bf16.mxu1 %v4028_v46  ;;  %v4176_v46 = vld [vmem:[%s5584_s5 + $0x8] sm:$0xff]  }
 0x13d   :  { %2881 = vmatpush1.bf16.msra.mxu0 %v4119_v57  ;;  %v4184_v57 = vld [vmem:[%s5584_s5 + $0x28] sm:$0xff]  }
 0x13e   :  { %2882 = vmatprep.subr.bf16.mxu0 %v4124_v60  ;;  %v4146_v60 = vld [vmem:[%s5582_s3 + $0x170] ss:$8 sps:$4 sm:$0xff]  }
 0x13f   :  { %2397 = vmatpush1.bf16.msra.mxu1 %v4026_v33  ;;  %v4177_v33 = vld [vmem:[%s5584_s5 + $0x50] sm:$0xff]  }
 0x140   :  { %2407 = vmatprep.subr.bf16.mxu1 %v4031_v47  ;;  %v4131_v47 = vld [vmem:[%s5582_s3 + $0x120] ss:$8 sps:$4 sm:$0xff]  }
 0x141   :  { %2883 = vmatpush1.bf16.msra.mxu0 %v4122_v61  ;;  %v4151_v61 = vld [vmem:[%s5582_s3 + $0x184] ss:$8 sps:$4 sm:$0xff]  }
 0x142   :  { %2399 = vmatmul.mubr.bf16.vlgmr.msra.gmra.mrb[4].mxu1 %v4901_v39  ;;  %v4040_v39 = vld [vmem:[%s5580_s1 + $0x86c] ss:$16 sps:$4 sm:$0xff]   ;;  %2893 = vmatprep.subr.bf16.mxu0 %v4127_v0  ;;  %v4152_v0 = vld [vmem:[%s5582_s3 + $0x190] ss:$8 sps:$4 sm:$0xff]  }
 0x143   :  { %2408 = vmatpush1.bf16.msra.mxu1 %v4029_v18  ;;  %2439 = vmatprep.mubr.bf16.mxu1 %v4918_v44  ;;  %v4038_v44 = vld [vmem:[%s5580_s1 + $0x868] ss:$16 sps:$4 sm:$0xff]   ;;  %v4136_v18 = vld [vmem:[%s5582_s3 + $0x134] ss:$8 sps:$4 sm:$0xff]  }
 0x144   :  { %2409 = vmatprep.subr.bf16.mxu1 %v4034_v48  ;;  %v4178_v48 = vld [vmem:[%s5584_s5 + $0x10] sm:$0xff]  }
 0x147   :  { %2410 = vmatpush1.bf16.msra.mxu1 %v4032_v29  ;;  %v4179_v29 = vld [vmem:[%s5584_s5 + $0x58] sm:$0xff]  }
 0x148   :  { %2411 = vmatprep.subr.bf16.mxu1 %v4037_v50  ;;  %v4134_v50 = vld [vmem:[%s5582_s3 + $0x130] ss:$8 sps:$4 sm:$0xff]  }
 0x14b   :  { %2412 = vmatpush1.bf16.msra.mxu1 %v4035_v34  ;;  %v4139_v34 = vld [vmem:[%s5582_s3 + $0x144] ss:$8 sps:$4 sm:$0xff]  }
 0x14c   :  { %2413 = vmatprep.subr.bf16.mxu1 %v4040_v39  ;;  %v4180_v39 = vld [vmem:[%s5584_s5 + $0x18] sm:$0xff]  }
 0x14f   :  { %2414 = vmatpush1.bf16.msra.mxu1 %v4038_v44  ;;  %v4181_v44 = vld [vmem:[%s5584_s5 + $0x60] sm:$0xff]  }
 0x150   :  { %2415 = vmatprep.subr.bf16.mxu1 %v4043_v52  ;;  %v4137_v52 = vld [vmem:[%s5582_s3 + $0x140] ss:$8 sps:$4 sm:$0xff]  }
 0x153   :  { %2416 = vmatpush1.bf16.msra.mxu1 %v4041_v51  ;;  %v4142_v51 = vld [vmem:[%s5582_s3 + $0x154] ss:$8 sps:$4 sm:$0xff]  }
 0x154   :  { %2417 = vmatprep.subr.bf16.mxu1 %v4046_v53  ;;  %v4182_v53 = vld [vmem:[%s5584_s5 + $0x20] sm:$0xff]  }
 0x157   :  { %2418 = vmatpush1.bf16.msra.mxu1 %v4044_v54  ;;  %v4183_v54 = vld [vmem:[%s5584_s5 + $0x68] sm:$0xff]  }
 0x158   :  { %2419 = vmatprep.subr.bf16.mxu1 %v4049_v55  ;;  %v4140_v55 = vld [vmem:[%s5582_s3 + $0x150] ss:$8 sps:$4 sm:$0xff]  }
 0x15b   :  { %2420 = vmatpush1.bf16.msra.mxu1 %v4047_v58  ;;  %v4143_v58 = vld [vmem:[%s5582_s3 + $0x160] ss:$8 sps:$4 sm:$0xff]  }
 0x15c   :  { %2421 = vmatprep.subr.bf16.mxu1 %v4052_v59  ;;  %v4148_v59 = vld [vmem:[%s5582_s3 + $0x174] ss:$8 sps:$4 sm:$0xff]  }
 0x15f   :  { %2422 = vmatpush1.bf16.msra.mxu1 %v4050_v62  ;;  %v4149_v62 = vld [vmem:[%s5582_s3 + $0x180] ss:$8 sps:$4 sm:$0xff]  }
 0x160   :  { %2423 = vmatprep.subr.bf16.mxu1 %v4055_v63  ;;  %v4154_v63 = vld [vmem:[%s5582_s3 + $0x194] ss:$8 sps:$4 sm:$0xff]  }
 0x163   :  { %2424 = vmatpush1.bf16.msra.mxu1 %v4053_v2  ;;  %v4157_v2 = vld [vmem:[%s5582_s3 + $0x1a4] ss:$8 sps:$4 sm:$0xff]  }
 0x164   :  { %2425 = vmatprep.subr.bf16.mxu1 %v4058_v5  ;;  %v4155_v5 = vld [vmem:[%s5582_s3 + $0x1a0] ss:$8 sps:$4 sm:$0xff]  }
 0x167   :  { %2426 = vmatpush1.bf16.msra.mxu1 %v4056_v6  ;;  %v4160_v6 = vld [vmem:[%s5582_s3 + $0x1b4] ss:$8 sps:$4 sm:$0xff]  }
 0x168   :  { %2427 = vmatprep.subr.bf16.mxu1 %v4061_v7  ;;  %v4158_v7 = vld [vmem:[%s5582_s3 + $0x1b0] ss:$8 sps:$4 sm:$0xff]  }
 0x16b   :  { %2428 = vmatpush1.bf16.msra.mxu1 %v4059_v8  ;;  %v4163_v8 = vld [vmem:[%s5582_s3 + $0x1c4] ss:$8 sps:$4 sm:$0xff]  }
 0x16c   :  { %2429 = vmatprep.subr.bf16.mxu1 %v4064_v9  ;;  %v4161_v9 = vld [vmem:[%s5582_s3 + $0x1c0] ss:$8 sps:$4 sm:$0xff]  }
 0x16f   :  { %2430 = vmatpush1.bf16.msra.mxu1 %v4062_v10  ;;  %v4166_v10 = vld [vmem:[%s5582_s3 + $0x1d4] ss:$8 sps:$4 sm:$0xff]  }
 0x170   :  { %2431 = vmatprep.subr.bf16.mxu1 %v4067_v11  ;;  %v4164_v11 = vld [vmem:[%s5582_s3 + $0x1d0] ss:$8 sps:$4 sm:$0xff]  }
 0x173   :  { %2432 = vmatpush1.bf16.msra.mxu1 %v4065_v12  ;;  %v4169_v12 = vld [vmem:[%s5582_s3 + $0x1e4] ss:$8 sps:$4 sm:$0xff]  }
 0x174   :  { %2433 = vmatprep.subr.bf16.mxu1 %v4070_v13  ;;  %v4167_v13 = vld [vmem:[%s5582_s3 + $0x1e0] ss:$8 sps:$4 sm:$0xff]  }
 0x177   :  { %2434 = vmatpush1.bf16.msra.mxu1 %v4068_v14  ;;  %v4172_v14 = vld [vmem:[%s5582_s3 + $0x1f4] ss:$8 sps:$4 sm:$0xff]  }
 0x178   :  { %2435 = vmatprep.subr.bf16.mxu1 %v4073_v15  ;;  %v4170_v15 = vld [vmem:[%s5582_s3 + $0x1f0] ss:$8 sps:$4 sm:$0xff]  }
 0x17b   :  { %2436 = vmatpush1.bf16.msra.mxu1 %v4071_v17  ;;  %v428_v17 = vsub.s32 2, %v4374_v43 }
 0x17c   :  { %2437 = vmatprep.subr.bf16.mxu1 %v4076_v19  ;;  %v432_v19 = vsub.s32 3, %v4374_v43 }
 0x17e   :  { %v433_v25 = vrot.slane %v5401_v22, %v432_v19 }
 0x17f   :  { %2438 = vmatpush1.bf16.msra.mxu1 %v4074_v20  ;;  %v429_v20 = vrot.slane %v5401_v22, %v428_v17  ;;  %v4186_v22 = vld [vmem:[%s5584_s5 + $0x30] sm:$0xff]  }
 0x182   :  { %2440 = vmatmul.mubr.bf16.vlgmr.msra.gmra.mrb[4].mxu1 %v5097_v42  ;;  %v2075_v42 = vadd.f32 %v5176_v4, %v425_v26  ;;  %v4173_v4 = vld [vmem:[%s5584_s5 + $0x40] sm:$0xff]  }
 0x183   :  { %3531 = vmatprep.subr.bf16.mxu1 %v4173_v4 }
 0x184   :  { %3532 = vmatpush3.bf16.msra.mxu1 %v4174_v3 }
 0x185   :  { %3533 = vmatprep.subr.bf16.mxu1 %v4175_v41 }
 0x188   :  { %3534 = vmatpush3.bf16.msra.mxu1 %v4176_v46 }
 0x189   :  { %3535 = vmatprep.subr.bf16.mxu1 %v4177_v33 }
 0x18c   :  { %3536 = vmatpush3.bf16.msra.mxu1 %v4178_v48 }
 0x18d   :  { %3537 = vmatprep.subr.bf16.mxu1 %v4179_v29 }
 0x190   :  { %3538 = vmatpush3.bf16.msra.mxu1 %v4180_v39 }
 0x191   :  { %3539 = vmatprep.subr.bf16.mxu1 %v4181_v44 }
 0x194   :  { %3540 = vmatpush3.bf16.msra.mxu1 %v4182_v53 }
 0x195   :  { %3541 = vmatprep.subr.bf16.mxu1 %v4183_v54 }
 0x198   :  { %3542 = vmatpush3.bf16.msra.mxu1 %v4184_v57 }
 0x1d6   :  { %v2236_v49 = vpop.f32.mrb[0].mxu0 }
 0x1d7   :  { %v3554_v28 = vadd.f32 %v2236_v49, %v2073_v27  ;;  %v2238_v30 = vpop.f32.mrb[1].mxu0 }
 0x1d8   :  { %v3556_v31 = vadd.f32 %v2238_v30, %v2075_v42  ;;  %v2240_v32 = vpop.f32.mrb[2].mxu0 }
 0x1d9   :  { %v2448_v35 = vmax.f32 %v3554_v28, 0.0  ;;  %v2241_v36 = vpop.f32.mrb[3].mxu0 }
 0x1da   :  { %v2449_v37 = vmax.f32 %v3556_v31, 0.0 }
 0x1db   :  { %v2452_v40 = vpack.c.bf16 %v2448_v35, %v2448_v35 }
 0x1dc   :  { %v2453_v16 = vpack.c.bf16 %v2449_v37, %v2449_v37  ;;  %v4185_v37 = vld [vmem:[%s5584_s5 + $0x70] sm:$0xff]  }
 0x1dd   :  { %3543 = vmatprep.subr.bf16.mxu1 %v4185_v37 }
 0x1de   :  { %2884 = vmatprep.mubr.bf16.mxu0 %v2453_v16  ;;  %3544 = vmatpush3.bf16.msra.mxu1 %v4186_v22  ;;  %v4187_v16 = vld [vmem:[%s5584_s5 + $0x78] sm:$0xff]  }
 0x1df   :  { %2885 = vmatmul.mubr.bf16.vlgmr.msra.gmra.mrb[4].mxu0 %v2452_v40  ;;  %3545 = vmatprep.subr.bf16.mxu1 %v4187_v16  ;;  %v2520_v40 = vld [vmem:[%s5583_s4] sm:$0x3] }
 0x1e0   :  { %2894 = vmatpush1.bf16.msra.mxu0 %v4125_v38  ;;  %v4188_v38 = vld [vmem:[%s5584_s5 + $0x38] sm:$0xff]   ;;  %v2529_v4 = vrot.slane %v2520_v40, %v424_v23 }
 0x1e1   :  { %2895 = vmatprep.subr.bf16.mxu0 %v4130_v1  ;;  %v2525_v1 = vrot.slane %v2520_v40, %v420_v21  ;;  %v3514_v21 = vld [vmem:[%s5585_s6] ss:$0 sm:$0xff] }
 0x1e2   :  { %3546 = vmatpush3.bf16.msra.mxu1 %v4188_v38 }
 0x1e4   :  { %2896 = vmatpush1.bf16.msra.mxu0 %v4128_v24 }
 0x1e5   :  { %2897 = vmatprep.subr.bf16.mxu0 %v4133_v45 }
 0x1e8   :  { %2898 = vmatpush1.bf16.msra.mxu0 %v4131_v47 }
 0x1e9   :  { %2899 = vmatprep.subr.bf16.mxu0 %v4136_v18 }
 0x1ec   :  { %2900 = vmatpush1.bf16.msra.mxu0 %v4134_v50 }
 0x1ed   :  { %2901 = vmatprep.subr.bf16.mxu0 %v4139_v34 }
 0x1f0   :  { %2902 = vmatpush1.bf16.msra.mxu0 %v4137_v52 }
 0x1f1   :  { %2903 = vmatprep.subr.bf16.mxu0 %v4142_v51 }
 0x1f4   :  { %2904 = vmatpush1.bf16.msra.mxu0 %v4140_v55 }
 0x1f5   :  { %2905 = vmatprep.subr.bf16.mxu0 %v4145_v56 }
 0x1f8   :  { %2906 = vmatpush1.bf16.msra.mxu0 %v4143_v58 }
 0x1f9   :  { %2907 = vmatprep.subr.bf16.mxu0 %v4148_v59 }
 0x1fc   :  { %2908 = vmatpush1.bf16.msra.mxu0 %v4146_v60 }
 0x1fd   :  { %2909 = vmatprep.subr.bf16.mxu0 %v4151_v61 }
 0x200   :  { %2910 = vmatpush1.bf16.msra.mxu0 %v4149_v62 }
 0x201   :  { %2911 = vmatprep.subr.bf16.mxu0 %v4154_v63 }
 0x204   :  { %2912 = vmatpush1.bf16.msra.mxu0 %v4152_v0 }
 0x205   :  { %2913 = vmatprep.subr.bf16.mxu0 %v4157_v2 }
 0x208   :  { %2914 = vmatpush1.bf16.msra.mxu0 %v4155_v5 }
 0x209   :  { %2915 = vmatprep.subr.bf16.mxu0 %v4160_v6 }
 0x20c   :  { %2916 = vmatpush1.bf16.msra.mxu0 %v4158_v7 }
 0x20d   :  { %2917 = vmatprep.subr.bf16.mxu0 %v4163_v8 }
 0x210   :  { %2918 = vmatpush1.bf16.msra.mxu0 %v4161_v9 }
 0x211   :  { %2919 = vmatprep.subr.bf16.mxu0 %v4166_v10 }
 0x214   :  { %2920 = vmatpush1.bf16.msra.mxu0 %v4164_v11 }
 0x215   :  { %2921 = vmatprep.subr.bf16.mxu0 %v4169_v12 }
 0x218   :  { %2922 = vmatpush1.bf16.msra.mxu0 %v4167_v13 }
 0x219   :  { %2923 = vmatprep.subr.bf16.mxu0 %v4172_v14 }
 0x21c   :  { %2924 = vmatpush1.bf16.msra.mxu0 %v4170_v15 }
 0x255   :  { %v2441_v26 = vpop.f32.mrb[4].mxu1 }
 0x256   :  { %v3557_v27 = vadd.f32 %v2441_v26, %v429_v20  ;;  %v2443_v42 = vpop.f32.mrb[5].mxu1 }
 0x257   :  { %v3558_v49 = vadd.f32 %v2443_v42, %v433_v25  ;;  %v2445_v28 = vpop.f32.mrb[6].mxu1 }
 0x258   :  { %v2450_v30 = vmax.f32 %v3557_v27, 0.0  ;;  %v2446_v31 = vpop.f32.mrb[7].mxu1 }
 0x259   :  { %v2451_v32 = vmax.f32 %v3558_v49, 0.0 }
 0x25a   :  { %v2454_v36 = vpack.c.bf16 %v2450_v30, %v2450_v30 }
 0x25b   :  { %v2455_v35 = vpack.c.bf16 %v2451_v32, %v2451_v32 }
 0x25d   :  { %2925 = vmatprep.mubr.bf16.mxu0 %v2455_v35 }
 0x25e   :  { %2926 = vmatmul.mubr.bf16.vlgmr.msra.gmra.mrb[4].mxu0 %v2454_v36 }
 0x331   :  { %v2927_v3 = vpop.f32.mrb[4].mxu0 }
 0x332   :  { %v3559_v41 = vadd.f32 %v2927_v3, %v2525_v1  ;;  %v2929_v24 = vpop.f32.mrb[5].mxu0 }
 0x333   :  { %v3560_v45 = vadd.f32 %v2929_v24, %v2529_v4  ;;  %v2931_v46 = vpop.f32.mrb[6].mxu0 }
 0x334   :  { %v2934_v33 = vmax.f32 %v3559_v41, 0.0  ;;  %v2932_v47 = vpop.f32.mrb[7].mxu0 }
 0x335   :  { %v2935_v18 = vmax.f32 %v3560_v45, 0.0 }
 0x336   :  { %v2936_v29 = vpack.c.bf16 %v2934_v33, %v2934_v33 }
 0x337   :  { %v2937_v48 = vpack.c.bf16 %v2935_v18, %v2935_v18 }
 0x339   :  { %3105 = vmatprep.mubr.bf16.mxu1 %v2937_v48 }
 0x33a   :  { %3106 = vmatmul.mubr.bf16.vlgmr.msra.gmra.mrb[8].mxu1 %v2936_v29 }
 0x40d   :  { %v3547_v50 = vpop.f32.mrb[8].mxu1 }
 0x40e   :  { %v3548_v34 = vpop.f32.mrb[9].mxu1 }
 0x40f   :  { %v3549_v43 = vadd.f32 %v3548_v34, %v3547_v50  ;;  %v3550_v23 = vpop.f32.mrb[10].mxu1 }
 0x410   :  { %v3551_v39 = vpop.f32.mrb[11].mxu1 }
 0x411   :  { %v3108_v44 = vadd.f32 %v3549_v43, %v3514_v21 }
 0x413   :  { %4189 = vtanh.f32 %v3108_v44 }
 0x41d   :  { %v4190_v52 = vpop.eup %4189 }
 0x41e   :  { %3114 = vst [vmem:[#allocation2] sm:$0x3] %v4190_v52 }
 0x41f   :  { %4202 = shalt.err (!%p4199_p4)
}
 0x420   :  { %s4203_s29 = scalar_lea.hbm %s5586_s7, 32 }
 0x421   :  { %p4204_p5 = scmp.ne.s32.totalorder %s5586_s7, %s4203_s29  ;;  %p4207_p6 = scmp.lt.u32.totalorder %s4203_s29, %s5586_s7 }
 0x423   :  { %p4209_p7 = pnand %p4207_p6, %p4204_p5 }
 0x425   :  { %4212 = shalt.err (!%p4209_p7)
}
 0x426   :  { %3124 = dma.vmem_to_hbm [thread:$0]  %s3122_s0, 32, %s5586_s7, [#allocation3]  }
 0x427   :  { %4213 = dma.done.wait [#allocation3], 32  }
 0x428   :  { %4214 = vsyncadd [#allocation3], 4294967264 }
 0x429   :  { %3128 = vsyncpa [#allocation3], 1 }

// kernel: policy_forward.2
= control target key start
LH: loop header
LB: loop body
LE: loop exit
PB: predicated region body
PF: predicated region fallthrough
CT: control target
= control target key end

     0   :  { %s7387_s18 = smov 0   ;;  %s7389_s19 = smov 0   ;;  %s10617_s0 = inlined_call_operand.vmem [shape: bf16[2,256,32], index: 0, kind: input, shape index: {}]   ;;  %s10618_s1 = inlined_call_operand.vmem [shape: bf16[32,32], index: 1, kind: input, shape index: {}]   ;;  %s10619_s2 = inlined_call_operand.vmem [shape: f32[1,32], index: 2, kind: input, shape index: {}]   ;;  %s10620_s3 = inlined_call_operand.vmem [shape: bf16[32,1280], index: 3, kind: input, shape index: {}]   ;;  %s10621_s4 = inlined_call_operand.vmem [shape: f32[1,1280], index: 4, kind: input, shape index: {}]   ;;  %s10622_s5 = inlined_call_operand.vmem [shape: f32[2,1,1280], index: 5, kind: output, shape index: {}]  }
   0x1   :  { %s7391_s20 = smov 0  }
   0x2 LB: > { %s27_s21 = sadd.s32 1, %s7348_s19  ;;  %p5293_p0 = scmp.ge.s32.totalorder %s7352_s20, 1  ;;  %s7352_s20 = sphi %s7391_s20, %s15_s20   ;;  %s7348_s19 = sphi %s7389_s19, %s11056_s19   ;;  %s7344_s18 = sphi %s7387_s18, %s11055_s18  }
   0x3   : > { %p29_p1 = scmp.ge.s32.totalorder %s27_s21, 2  ;;  %p206_p2 = scmp.lt.s32.totalorder %s7352_s20, 3 }
   0x5   : > { %s11058_s21 = smov (%p29_p1, %s27_s21), 0  ;;  %p207_p3 = pnand %p5293_p0, %p206_p2 }
   0x7   : > { %210 = sbr.rel (%p207_p3) target bundleno = 1187 (0x4a3), region = 40 }
   0xe   : > { %v5872_v0 = vld [vmem:[%s10618_s1] sm:$0xff]   ;;  %p238_p4 = scmp.lt.s32.totalorder %s7344_s18, 1  ;;  %v5873_v1 = vld [vmem:[%s10618_s1 + $0x8] sm:$0xff]   ;;  %vm397_vm0 = vcmask 261120   ;;  %v5895_v20 = vld [vmem:[%s10620_s3 + $0x54] ss:$40 sps:$4 sm:$0xff]  }
   0xf   : > { %5804 = vmatprep.subr.bf16.mxu0 %v5872_v0  ;;  %v5892_v18 = vld [vmem:[%s10620_s3 + $0x4] ss:$40 sps:$4 sm:$0xff]   ;;  %v5890_v19 = vld [vmem:[%s10620_s3] ss:$40 sps:$4 sm:$0xff]   ;;  %v5893_v21 = vld [vmem:[%s10620_s3 + $0x50] ss:$40 sps:$4 sm:$0xff]  }
  0x10   : > { %s11060_s18 = smov (!%p238_p4, %s7344_s18), 1  ;;  %5805 = vmatpush3.bf16.msra.mxu0 %v5872_v0  ;;  %5840 = vmatprep.subr.bf16.mxu1 %v5892_v18  ;;  %v10627_v22 = vmov 0   ;;  %v5901_v23 = vld [vmem:[%s10620_s3 + $0xc] ss:$40 sps:$4 sm:$0xff]   ;;  %v7474_v25 = vld [vmem:[%s10619_s2] ss:$0 sm:$0xff] }
  0x11   : > { %5806 = vmatprep.subr.bf16.mxu0 %v5873_v1  ;;  %s5785_s26 = sshll.u32 %s11060_s18, 7  ;;  %5842 = vmatpush1.bf16.msra.mxu1 %v5890_v19  ;;  %v5898_v24 = vld [vmem:[%s10620_s3 + $0x14] ss:$40 sps:$4 sm:$0xff]   ;;  %s5844_s13 = smul.u32 10, %s11060_s18 }
  0x12   : > { %s7417_s29 = scalar_lea.vmem %s10617_s0, %s5785_s26  ;;  %5841 = vmatprep.subr.bf16.mxu1 %v5895_v20  ;;  %1141 = vmatprep.mubr.bf16.mxu1 %v10627_v22 }
  0x13   : > { %v5874_v2 = vld [vmem:[%s7417_s29] sm:$0xff]   ;;  %v5875_v3 = vld [vmem:[%s7417_s29 + $0x8] sm:$0xff]   ;;  %v5876_v4 = vld [vmem:[%s7417_s29 + $0x10] sm:$0xff]   ;;  %s10510_s15 = scalar_lea.vmem %s10622_s5, %s5844_s13 }
  0x14   : > { %5807 = vmatpush3.bf16.msra.mxu0 %v5873_v1  ;;  %5808 = vmatprep.mubr.msk.bf16.mxu0 %vm397_vm0, %v5874_v2  ;;  %v5877_v5 = vld [vmem:[%s7417_s29 + $0x18] sm:$0xff]   ;;  %v5878_v6 = vld [vmem:[%s7417_s29 + $0x20] sm:$0xff]   ;;  %v5879_v7 = vld [vmem:[%s7417_s29 + $0x28] sm:$0xff]  }
  0x15   : > { %v5880_v8 = vld [vmem:[%s7417_s29 + $0x30] sm:$0xff]   ;;  %v5881_v9 = vld [vmem:[%s7417_s29 + $0x38] sm:$0xff]   ;;  %v5882_v10 = vld [vmem:[%s7417_s29 + $0x40] sm:$0xff]   ;;  %1069 = vmatprep.subr.bf16.mxu0 %v5892_v18  ;;  %5843 = vmatpush1.bf16.msra.mxu1 %v5893_v21 }
  0x16   : > { %v5883_v11 = vld [vmem:[%s7417_s29 + $0x48] sm:$0xff]   ;;  %v5884_v12 = vld [vmem:[%s7417_s29 + $0x50] sm:$0xff]   ;;  %v5885_v13 = vld [vmem:[%s7417_s29 + $0x58] sm:$0xff]   ;;  %1455 = vmatprep.subr.bf16.mxu1 %v5898_v24 }
  0x17   : > { %5809 = vmatmul.mubr.msk.bf16.vlgmr.msra.gmra.mrb[0].mxu0 %vm397_vm0, %v5875_v3  ;;  %v5886_v14 = vld [vmem:[%s7417_s29 + $0x60] sm:$0xff]   ;;  %v5887_v15 = vld [vmem:[%s7417_s29 + $0x68] sm:$0xff]   ;;  %v5888_v16 = vld [vmem:[%s7417_s29 + $0x70] sm:$0xff]  }
  0x18   : > { %5812 = vmatprep.mubr.msk.bf16.mxu0 %vm397_vm0, %v5876_v4  ;;  %v5889_v17 = vld [vmem:[%s7417_s29 + $0x78] sm:$0xff]   ;;  %1070 = vmatpush1.bf16.msra.mxu0 %v5890_v19 }
  0x19   : > { %1071 = vmatprep.subr.bf16.mxu0 %v5895_v20 }
  0x1c   : > { %1072 = vmatpush1.bf16.msra.mxu0 %v5893_v21 }
  0x1d   : > { %1262 = vmatprep.subr.bf16.mxu0 %v5901_v23 }
  0x1f   : > { %5813 = vmatmul.mubr.msk.bf16.gmra.mrb[4].mxu0 %vm397_vm0, %v5877_v5 }
  0x20   : > { %5816 = vmatprep.mubr.msk.bf16.mxu0 %vm397_vm0, %v5878_v6 }
  0x27   : > { %5817 = vmatmul.mubr.msk.bf16.gmra.mrb[8].mxu0 %vm397_vm0, %v5879_v7 }
  0x28   : > { %5820 = vmatprep.mubr.msk.bf16.mxu0 %vm397_vm0, %v5880_v8 }
  0x2f   : > { %5821 = vmatmul.mubr.msk.bf16.gmra.mrb[12].mxu0 %vm397_vm0, %v5881_v9 }
  0x30   : > { %5824 = vmatprep.mubr.msk.bf16.mxu0 %vm397_vm0, %v5882_v10 }
  0x37   : > { %5825 = vmatmul.mubr.msk.bf16.gmra.mrb[16].mxu0 %vm397_vm0, %v5883_v11 }
  0x38   : > { %5828 = vmatprep.mubr.msk.bf16.mxu0 %vm397_vm0, %v5884_v12 }
  0x3f   : > { %5829 = vmatmul.mubr.msk.bf16.gmra.mrb[20].mxu0 %vm397_vm0, %v5885_v13 }
  0x40   : > { %5832 = vmatprep.mubr.msk.bf16.mxu0 %vm397_vm0, %v5886_v14 }
  0x47   : > { %5833 = vmatmul.mubr.msk.bf16.gmra.mrb[24].mxu0 %vm397_vm0, %v5887_v15 }
  0x48   : > { %5836 = vmatprep.mubr.msk.bf16.mxu0 %vm397_vm0, %v5888_v16 }
  0x4f   : > { %5837 = vmatmul.mubr.msk.bf16.gmra.mrb[28].mxu0 %vm397_vm0, %v5889_v17 }
  0x50   : > { %1101 = vmatprep.mubr.bf16.mxu0 %v10627_v22 }
  0xea   : > { %v5810_v26 = vpop.f32.mrb[0].mxu0 }
  0xeb   : > { %v7477_v27 = vadd.f32 %v5810_v26, %v7474_v25  ;;  %v480_v28 = vpop.f32.mrb[1].mxu0 }
  0xec   : > { %v7480_v29 = vadd.f32 %v7474_v25, %v480_v28  ;;  %v5811_v30 = vpop.f32.mrb[2].mxu0 }
  0xed   : > { %v5333_v31 = vmul.f32 -1.442695, %v7477_v27  ;;  %v7484_v32 = vadd.f32 %v5811_v30, %v7474_v25  ;;  %v483_v33 = vpop.f32.mrb[3].mxu0 }
  0xee   : > { %v5331_v34 = vmul.f32 -1.442695, %v7480_v29  ;;  %v7488_v35 = vadd.f32 %v7474_v25, %v483_v33 }
  0xef   : > { %5920 = vpow2.f32 %v5333_v31  ;;  %v5334_v36 = vmul.f32 -1.442695, %v7484_v32 }
  0xf0   : > { %5922 = vpow2.f32 %v5331_v34  ;;  %v5332_v37 = vmul.f32 -1.442695, %v7488_v35 }
  0xf1   : > { %5924 = vpow2.f32 %v5334_v36 }
  0xf2   : > { %5926 = vpow2.f32 %v5332_v37  ;;  %v5814_v38 = vpop.f32.mrb[4].mxu0 }
  0xf3   : > { %v7493_v39 = vadd.f32 %v5814_v38, %v7474_v25  ;;  %v496_v40 = vpop.f32.mrb[5].mxu0 }
  0xf4   : > { %v7496_v41 = vadd.f32 %v7474_v25, %v496_v40  ;;  %v5815_v42 = vpop.f32.mrb[6].mxu0 }
  0xf5   : > { %v5337_v43 = vmul.f32 -1.442695, %v7493_v39  ;;  %v7500_v44 = vadd.f32 %v5815_v42, %v7474_v25  ;;  %v499_v45 = vpop.f32.mrb[7].mxu0 }
  0xf6   : > { %v5335_v46 = vmul.f32 -1.442695, %v7496_v41  ;;  %v7504_v47 = vadd.f32 %v7474_v25, %v499_v45 }
  0xf7   : > { %5928 = vpow2.f32 %v5337_v43  ;;  %v5338_v48 = vmul.f32 -1.442695, %v7500_v44 }
  0xf8   : > { %5930 = vpow2.f32 %v5335_v46  ;;  %v5336_v49 = vmul.f32 -1.442695, %v7504_v47 }
  0xf9   : > { %v5921_v50 = vpop.eup %5920  ;;  %5932 = vpow2.f32 %v5338_v48 }
  0xfa   : > { %v5923_v51 = vpop.eup %5922  ;;  %v705_v52 = vadd.f32 1.0, %v5921_v50  ;;  %5934 = vpow2.f32 %v5336_v49  ;;  %v5818_v53 = vpop.f32.mrb[8].mxu0 }
  0xfb   : > { %v5925_v54 = vpop.eup %5924  ;;  %v703_v55 = vadd.f32 1.0, %v5923_v51  ;;  %v7509_v56 = vadd.f32 %v5818_v53, %v7474_v25  ;;  %v512_v57 = vpop.f32.mrb[9].mxu0  ;;  %v5904_v53 = vld [vmem:[%s10620_s3 + $0x5c] ss:$40 sps:$4 sm:$0xff]  }
  0xfc   : > { %v5927_v58 = vpop.eup %5926  ;;  %5936 = vrcp.f32 %v705_v52  ;;  %v706_v59 = vadd.f32 1.0, %v5925_v54  ;;  %v7512_v60 = vadd.f32 %v7474_v25, %v512_v57  ;;  %v5819_v61 = vpop.f32.mrb[10].mxu0 }
  0xfd   : > { %5938 = vrcp.f32 %v703_v55  ;;  %v704_v62 = vadd.f32 1.0, %v5927_v58  ;;  %v5341_v63 = vmul.f32 -1.442695, %v7509_v56  ;;  %v7516_v0 = vadd.f32 %v5819_v61, %v7474_v25  ;;  %v515_v1 = vpop.f32.mrb[11].mxu0 }
  0xfe   : > { %5940 = vrcp.f32 %v706_v59  ;;  %v5339_v2 = vmul.f32 -1.442695, %v7512_v60  ;;  %v7520_v3 = vadd.f32 %v7474_v25, %v515_v1 }
  0xff   : > { %5942 = vrcp.f32 %v704_v62  ;;  %v5342_v4 = vmul.f32 -1.442695, %v7516_v0 }
 0x100   : > { %5944 = vpow2.f32 %v5341_v63  ;;  %v5340_v5 = vmul.f32 -1.442695, %v7520_v3 }
 0x101   : > { %v5929_v6 = vpop.eup %5928  ;;  %5946 = vpow2.f32 %v5339_v2 }
 0x102   : > { %v5931_v7 = vpop.eup %5930  ;;  %v709_v8 = vadd.f32 1.0, %v5929_v6  ;;  %5948 = vpow2.f32 %v5342_v4  ;;  %v5822_v9 = vpop.f32.mrb[12].mxu0 }
 0x103   : > { %v5933_v10 = vpop.eup %5932  ;;  %v707_v11 = vadd.f32 1.0, %v5931_v7  ;;  %5950 = vpow2.f32 %v5340_v5  ;;  %v7525_v12 = vadd.f32 %v5822_v9, %v7474_v25  ;;  %v528_v13 = vpop.f32.mrb[13].mxu0  ;;  %v5902_v5 = vld [vmem:[%s10620_s3 + $0x58] ss:$40 sps:$4 sm:$0xff]  }
 0x104   : > { %v5935_v14 = vpop.eup %5934  ;;  %5952 = vrcp.f32 %v709_v8  ;;  %v710_v15 = vadd.f32 1.0, %v5933_v10  ;;  %v7528_v16 = vadd.f32 %v7474_v25, %v528_v13  ;;  %v5823_v17 = vpop.f32.mrb[14].mxu0  ;;  %v5910_v8 = vld [vmem:[%s10620_s3 + $0x1c] ss:$40 sps:$4 sm:$0xff]  }
 0x105   : > { %5954 = vrcp.f32 %v707_v11  ;;  %v708_v18 = vadd.f32 1.0, %v5935_v14  ;;  %v5345_v19 = vmul.f32 -1.442695, %v7525_v12  ;;  %v7532_v20 = vadd.f32 %v5823_v17, %v7474_v25  ;;  %v531_v21 = vpop.f32.mrb[15].mxu0 }
 0x106   : > { %v5937_v23 = vpop.eup %5936  ;;  %5956 = vrcp.f32 %v710_v15  ;;  %v5343_v24 = vmul.f32 -1.442695, %v7528_v16  ;;  %v7536_v26 = vadd.f32 %v7474_v25, %v531_v21 }
 0x107   : > { %v5939_v28 = vpop.eup %5938  ;;  %5958 = vrcp.f32 %v708_v18  ;;  %v5346_v30 = vmul.f32 -1.442695, %v7532_v20  ;;  %v801_v36 = vmul.f32 %v5937_v23, %v7477_v27  ;;  %v5899_v27 = vld [vmem:[%s10620_s3 + $0x8] ss:$40 sps:$4 sm:$0xff]  }
 0x108   : > { %v5941_v31 = vpop.eup %5940  ;;  %5960 = vpow2.f32 %v5345_v19  ;;  %v5344_v33 = vmul.f32 -1.442695, %v7536_v26  ;;  %v799_v40 = vmul.f32 %v5939_v28, %v7480_v29 }
 0x109   : > { %v5943_v34 = vpop.eup %5942  ;;  %v802_v37 = vmul.f32 %v5941_v31, %v7484_v32  ;;  %5962 = vpow2.f32 %v5343_v24 }
 0x10a   : > { %v5945_v38 = vpop.eup %5944  ;;  %v800_v42 = vmul.f32 %v5943_v34, %v7488_v35  ;;  %5964 = vpow2.f32 %v5346_v30  ;;  %v5826_v43 = vpop.f32.mrb[16].mxu0 }
 0x10b   : > { %v5947_v45 = vpop.eup %5946  ;;  %v7544_v46 = vpack.c.bf16 %v802_v37, %v801_v36  ;;  %v713_v48 = vadd.f32 1.0, %v5945_v38  ;;  %5966 = vpow2.f32 %v5344_v33  ;;  %v7547_v49 = vadd.f32 %v5826_v43, %v7474_v25  ;;  %v544_v50 = vpop.f32.mrb[17].mxu0 }
 0x10c   : > { %v5949_v32 = vpop.eup %5948  ;;  %v7552_v51 = vpack.c.bf16 %v800_v42, %v799_v40  ;;  %v711_v29 = vadd.f32 1.0, %v5947_v45  ;;  %v7555_v35 = vadd.f32 %v7474_v25, %v544_v50  ;;  %v5827_v52 = vpop.f32.mrb[18].mxu0 }
 0x10d   : > { %v5951_v54 = vpop.eup %5950  ;;  %5968 = vrcp.f32 %v713_v48  ;;  %v714_v55 = vadd.f32 1.0, %v5949_v32  ;;  %v5349_v57 = vmul.f32 -1.442695, %v7547_v49  ;;  %v7562_v58 = vadd.f32 %v5827_v52, %v7474_v25  ;;  %v547_v59 = vpop.f32.mrb[19].mxu0 }
 0x10e   : > { %v5953_v61 = vpop.eup %5952  ;;  %5970 = vrcp.f32 %v711_v29  ;;  %v712_v62 = vadd.f32 1.0, %v5951_v54  ;;  %v5347_v63 = vmul.f32 -1.442695, %v7555_v35  ;;  %v7566_v1 = vadd.f32 %v7474_v25, %v547_v59  ;;  %5383 = vmatmul.mubr.msk.bf16.vlgmr.msra.gmra.mrb[32].mxu0 %vm397_vm0, %v7552_v51 }
 0x10f   : > { %v5955_v2 = vpop.eup %5954  ;;  %5972 = vrcp.f32 %v714_v55  ;;  %v5350_v4 = vmul.f32 -1.442695, %v7562_v58  ;;  %1111 = vmatprep.mubr.bf16.mxu0 %v10627_v22  ;;  %1263 = vmatpush1.bf16.msra.mxu0 %v5899_v27  ;;  %v805_v10 = vmul.f32 %v5953_v61, %v7493_v39 }
 0x110   : > { %v5957_v6 = vpop.eup %5956  ;;  %5974 = vrcp.f32 %v712_v62  ;;  %v5348_v7 = vmul.f32 -1.442695, %v7566_v1  ;;  %1264 = vmatprep.subr.bf16.mxu0 %v5904_v53  ;;  %v803_v14 = vmul.f32 %v5955_v2, %v7496_v41 }
 0x111   : > { %v5959_v9 = vpop.eup %5958  ;;  %v806_v11 = vmul.f32 %v5957_v6, %v7500_v44  ;;  %5976 = vpow2.f32 %v5349_v57 }
 0x112   : > { %v5961_v13 = vpop.eup %5960  ;;  %v804_v15 = vmul.f32 %v5959_v9, %v7504_v47  ;;  %5978 = vpow2.f32 %v5347_v63  ;;  %v5830_v17 = vpop.f32.mrb[20].mxu0 }
 0x113   : > { %v5963_v18 = vpop.eup %5962  ;;  %v7583_v19 = vpack.c.bf16 %v806_v11, %v805_v10  ;;  %v717_v21 = vadd.f32 1.0, %v5961_v13  ;;  %5980 = vpow2.f32 %v5350_v4  ;;  %v7586_v23 = vadd.f32 %v5830_v17, %v7474_v25  ;;  %v560_v24 = vpop.f32.mrb[21].mxu0  ;;  %1265 = vmatpush1.bf16.msra.mxu0 %v5902_v5 }
 0x114   : > { %v5965_v39 = vpop.eup %5964  ;;  %v7588_v44 = vpack.c.bf16 %v804_v15, %v803_v14  ;;  %v715_v28 = vadd.f32 1.0, %v5963_v18  ;;  %5982 = vpow2.f32 %v5348_v7  ;;  %v7591_v41 = vadd.f32 %v7474_v25, %v560_v24  ;;  %v5831_v47 = vpop.f32.mrb[22].mxu0  ;;  %1648 = vmatprep.subr.bf16.mxu0 %v5910_v8  ;;  %v5907_v7 = vld [vmem:[%s10620_s3 + $0x64] ss:$40 sps:$4 sm:$0xff]  }
 0x115   : > { %v5967_v30 = vpop.eup %5966  ;;  %5984 = vrcp.f32 %v717_v21  ;;  %v718_v31 = vadd.f32 1.0, %v5965_v39  ;;  %v5353_v33 = vmul.f32 -1.442695, %v7586_v23  ;;  %v7595_v34 = vadd.f32 %v5831_v47, %v7474_v25  ;;  %v563_v36 = vpop.f32.mrb[23].mxu0  ;;  %v5905_v21 = vld [vmem:[%s10620_s3 + $0x60] ss:$40 sps:$4 sm:$0xff]  }
 0x116   : > { %5986 = vrcp.f32 %v715_v28  ;;  %v716_v37 = vadd.f32 1.0, %v5967_v30  ;;  %v5351_v38 = vmul.f32 -1.442695, %v7591_v41  ;;  %v7599_v40 = vadd.f32 %v7474_v25, %v563_v36  ;;  %5384 = vmatmul.mubr.msk.bf16.gmra.mrb[36].mxu0 %vm397_vm0, %v7544_v46  ;;  %v5913_v28 = vld [vmem:[%s10620_s3 + $0x24] ss:$40 sps:$4 sm:$0xff]  }
 0x117   : > { %v5969_v42 = vpop.eup %5968  ;;  %5988 = vrcp.f32 %v718_v31  ;;  %v5354_v43 = vmul.f32 -1.442695, %v7595_v34  ;;  %1121 = vmatprep.mubr.bf16.mxu0 %v10627_v22 }
 0x118   : > { %v5971_v45 = vpop.eup %5970  ;;  %5990 = vrcp.f32 %v716_v37  ;;  %v5352_v48 = vmul.f32 -1.442695, %v7599_v40  ;;  %v809_v32 = vmul.f32 %v5969_v42, %v7509_v56  ;;  %v5896_v56 = vld [vmem:[%s10620_s3 + $0x10] ss:$40 sps:$4 sm:$0xff]  }
 0x119   : > { %v5973_v50 = vpop.eup %5972  ;;  %5992 = vpow2.f32 %v5353_v33  ;;  %v807_v54 = vmul.f32 %v5971_v45, %v7512_v60 }
 0x11a   : > { %v5975_v27 = vpop.eup %5974  ;;  %v810_v29 = vmul.f32 %v5973_v50, %v7516_v0  ;;  %5994 = vpow2.f32 %v5351_v38  ;;  %v5834_v52 = vpop.f32.mrb[24].mxu0 }
 0x11b   : > { %v5977_v53 = vpop.eup %5976  ;;  %v808_v55 = vmul.f32 %v5975_v27, %v7520_v3  ;;  %5996 = vpow2.f32 %v5354_v43  ;;  %v7611_v57 = vadd.f32 %v5834_v52, %v7474_v25  ;;  %v576_v59 = vpop.f32.mrb[25].mxu0 }
 0x11c   : > { %v5979_v61 = vpop.eup %5978  ;;  %v7613_v62 = vpack.c.bf16 %v810_v29, %v809_v32  ;;  %v721_v63 = vadd.f32 1.0, %v5977_v53  ;;  %5998 = vpow2.f32 %v5352_v48  ;;  %v7619_v0 = vadd.f32 %v7474_v25, %v576_v59  ;;  %v5835_v60 = vpop.f32.mrb[26].mxu0 }
 0x11d   : > { %v5981_v2 = vpop.eup %5980  ;;  %v7621_v3 = vpack.c.bf16 %v808_v55, %v807_v54  ;;  %v719_v4 = vadd.f32 1.0, %v5979_v61  ;;  %v7624_v5 = vadd.f32 %v5835_v60, %v7474_v25  ;;  %v579_v6 = vpop.f32.mrb[27].mxu0  ;;  %v5357_v10 = vmul.f32 -1.442695, %v7611_v57 }
 0x11e   : > { %v5983_v8 = vpop.eup %5982  ;;  %6000 = vrcp.f32 %v721_v63  ;;  %v722_v9 = vadd.f32 1.0, %v5981_v2  ;;  %5385 = vmatmul.mubr.msk.bf16.gmra.mrb[40].mxu0 %vm397_vm0, %v7588_v44  ;;  %v7633_v11 = vadd.f32 %v7474_v25, %v579_v6  ;;  %v5355_v15 = vmul.f32 -1.442695, %v7619_v0 }
 0x11f   : > { %v5985_v13 = vpop.eup %5984  ;;  %6002 = vrcp.f32 %v719_v4  ;;  %v720_v14 = vadd.f32 1.0, %v5983_v8  ;;  %5387 = vmatmul.mubr.msk.bf16.vlgmr.msra.gmra.mrb[0].mxu1 %vm397_vm0, %v7621_v3  ;;  %1131 = vmatprep.mubr.bf16.mxu0 %v10627_v22  ;;  %v5358_v18 = vmul.f32 -1.442695, %v7624_v5 }
 0x120   : > { %v5987_v17 = vpop.eup %5986  ;;  %6004 = vrcp.f32 %v722_v9  ;;  %1456 = vmatpush1.bf16.msra.mxu1 %v5896_v56  ;;  %1151 = vmatprep.mubr.bf16.mxu1 %v10627_v22  ;;  %v5356_v39 = vmul.f32 -1.442695, %v7633_v11  ;;  %v813_v30 = vmul.f32 %v5985_v13, %v7525_v12  ;;  %v5908_v13 = vld [vmem:[%s10620_s3 + $0x18] ss:$40 sps:$4 sm:$0xff]  }
 0x121   : > { %v5989_v24 = vpop.eup %5988  ;;  %6006 = vrcp.f32 %v720_v14  ;;  %1457 = vmatprep.subr.bf16.mxu1 %v5907_v7  ;;  %v811_v37 = vmul.f32 %v5987_v17, %v7528_v16 }
 0x122   : > { %v5991_v47 = vpop.eup %5990  ;;  %v814_v31 = vmul.f32 %v5989_v24, %v7532_v20  ;;  %6008 = vpow2.f32 %v5357_v10  ;;  %v5838_v33 = vpop.f32.mrb[28].mxu0 }
 0x123   : > { %v5993_v36 = vpop.eup %5992  ;;  %v812_v38 = vmul.f32 %v5991_v47, %v7536_v26  ;;  %6010 = vpow2.f32 %v5355_v15  ;;  %v7653_v42 = vadd.f32 %v5838_v33, %v7474_v25  ;;  %v592_v43 = vpop.f32.mrb[29].mxu0 }
 0x124   : > { %v5995_v45 = vpop.eup %5994  ;;  %v7655_v48 = vpack.c.bf16 %v814_v31, %v813_v30  ;;  %v725_v50 = vadd.f32 1.0, %v5993_v36  ;;  %6012 = vpow2.f32 %v5358_v18  ;;  %v7658_v12 = vadd.f32 %v7474_v25, %v592_v43  ;;  %v5839_v20 = vpop.f32.mrb[30].mxu0  ;;  %1458 = vmatpush1.bf16.msra.mxu1 %v5905_v21 }
 0x125   : > { %v5997_v27 = vpop.eup %5996  ;;  %v7660_v32 = vpack.c.bf16 %v812_v38, %v811_v37  ;;  %v723_v16 = vadd.f32 1.0, %v5995_v45  ;;  %6014 = vpow2.f32 %v5356_v39  ;;  %v595_v26 = vpop.f32.mrb[31].mxu0  ;;  %1841 = vmatprep.subr.bf16.mxu1 %v5913_v28  ;;  %v5361_v53 = vmul.f32 -1.442695, %v7653_v42  ;;  %v5914_v28 = vld [vmem:[%s10620_s3 + $0x68] ss:$40 sps:$4 sm:$0xff]  }
 0x126   : > { %10646 = vst [vmem:[#allocation3_spill] sm:$0xff] %v7655_v48  ;;  %v5999_v29 = vpop.eup %5998  ;;  %6016 = vrcp.f32 %v725_v50  ;;  %v726_v52 = vadd.f32 1.0, %v5997_v27  ;;  %5386 = vmatmul.mubr.msk.bf16.gmra.mrb[44].mxu0 %vm397_vm0, %v7583_v19  ;;  %v7666_v54 = vadd.f32 %v5839_v20, %v7474_v25  ;;  %v5359_v59 = vmul.f32 -1.442695, %v7658_v12 }
 0x127   : > { %6018 = vrcp.f32 %v723_v16  ;;  %v724_v55 = vadd.f32 1.0, %v5999_v29  ;;  %5388 = vmatmul.mubr.msk.bf16.gmra.mrb[4].mxu1 %vm397_vm0, %v7613_v62  ;;  %1294 = vmatprep.mubr.bf16.mxu0 %v10627_v22  ;;  %v7673_v61 = vadd.f32 %v7474_v25, %v595_v26 }
 0x128   : > { %v6001_v63 = vpop.eup %6000  ;;  %6020 = vrcp.f32 %v726_v52  ;;  %1161 = vmatprep.mubr.bf16.mxu1 %v10627_v22  ;;  %v5362_v56 = vmul.f32 -1.442695, %v7666_v54 }
 0x129   : > { %v6003_v60 = vpop.eup %6002  ;;  %6022 = vrcp.f32 %v724_v55  ;;  %v5360_v2 = vmul.f32 -1.442695, %v7673_v61  ;;  %v817_v7 = vmul.f32 %v6001_v63, %v7547_v49  ;;  %v5916_v49 = vld [vmem:[%s10620_s3 + $0x6c] ss:$40 sps:$4 sm:$0xff]  }
 0x12a   : > { %v6005_v4 = vpop.eup %6004  ;;  %6024 = vpow2.f32 %v5361_v53  ;;  %v815_v9 = vmul.f32 %v6003_v60, %v7555_v35 }
 0x12b   : > { %v6007_v6 = vpop.eup %6006  ;;  %v818_v8 = vmul.f32 %v6005_v4, %v7562_v58  ;;  %6026 = vpow2.f32 %v5359_v59 }
 0x12c   : > { %v6009_v25 = vpop.eup %6008  ;;  %v816_v10 = vmul.f32 %v6007_v6, %v7566_v1  ;;  %6028 = vpow2.f32 %v5362_v56 }
 0x12d   : > { %v6011_v14 = vpop.eup %6010  ;;  %v7685_v15 = vpack.c.bf16 %v818_v8, %v817_v7  ;;  %v729_v17 = vadd.f32 1.0, %v6009_v25  ;;  %6030 = vpow2.f32 %v5360_v2 }
 0x12e   : > { %v6013_v58 = vpop.eup %6012  ;;  %v7690_v18 = vpack.c.bf16 %v816_v10, %v815_v9  ;;  %v727_v35 = vadd.f32 1.0, %v6011_v14  ;;  %5399 = vmatmul.mubr.msk.bf16.vlgmr.msra.gmra.mrb[48].mxu0 %vm397_vm0, %v7552_v51  ;;  %v7867_v14 = vld [vmem:[%s10621_s4] sm:$0xff] }
 0x12f   : > { %10647 = vst [vmem:[#allocation4_spill] sm:$0xff] %v7685_v15  ;;  %v6015_v1 = vpop.eup %6014  ;;  %6032 = vrcp.f32 %v729_v17  ;;  %v730_v21 = vadd.f32 1.0, %v6013_v58  ;;  %5389 = vmatmul.mubr.msk.bf16.gmra.mrb[8].mxu1 %vm397_vm0, %v7660_v32  ;;  %1304 = vmatprep.mubr.bf16.mxu0 %v10627_v22 }
 0x130   : > { %10648 = vst [vmem:[#allocation5_spill] sm:$0xff] %v7690_v18  ;;  %v6017_v24 = vpop.eup %6016  ;;  %6034 = vrcp.f32 %v727_v35  ;;  %v728_v39 = vadd.f32 1.0, %v6015_v1  ;;  %1171 = vmatprep.mubr.bf16.mxu1 %v10627_v22  ;;  %1649 = vmatpush1.bf16.msra.mxu0 %v5908_v13 }
 0x131   : > { %v6019_v47 = vpop.eup %6018  ;;  %6036 = vrcp.f32 %v730_v21  ;;  %1650 = vmatprep.subr.bf16.mxu0 %v5916_v49  ;;  %v821_v33 = vmul.f32 %v6017_v24, %v7586_v23 }
 0x132   : > { %v6021_v30 = vpop.eup %6020  ;;  %6038 = vrcp.f32 %v728_v39  ;;  %v819_v38 = vmul.f32 %v6019_v47, %v7591_v41 }
 0x133   : > { %v6023_v31 = vpop.eup %6022  ;;  %v822_v36 = vmul.f32 %v6021_v30, %v7595_v34 }
 0x134   : > { %v6025_v37 = vpop.eup %6024  ;;  %v820_v43 = vmul.f32 %v6023_v31, %v7599_v40  ;;  %1651 = vmatpush1.bf16.msra.mxu0 %v5914_v28 }
 0x135   : > { %v6027_v45 = vpop.eup %6026  ;;  %v7705_v50 = vpack.c.bf16 %v822_v36, %v821_v33  ;;  %v733_v20 = vadd.f32 1.0, %v6025_v37 }
 0x136   : > { %v6029_v27 = vpop.eup %6028  ;;  %v7707_v16 = vpack.c.bf16 %v820_v43, %v819_v38  ;;  %v731_v26 = vadd.f32 1.0, %v6027_v45  ;;  %5400 = vmatmul.mubr.msk.bf16.gmra.mrb[52].mxu0 %vm397_vm0, %v7544_v46 }
 0x137   : > { %10649 = vst [vmem:[#allocation6_spill] sm:$0xff] %v7705_v50  ;;  %v6031_v23 = vpop.eup %6030  ;;  %6040 = vrcp.f32 %v733_v20  ;;  %v734_v34 = vadd.f32 1.0, %v6029_v27  ;;  %5390 = vmatmul.mubr.msk.bf16.gmra.mrb[12].mxu1 %vm397_vm0, %v7655_v48  ;;  %1314 = vmatprep.mubr.bf16.mxu0 %v10627_v22 }
 0x138   : > { %10650 = vst [vmem:[#allocation7_spill] sm:$0xff] %v7707_v16  ;;  %6042 = vrcp.f32 %v731_v26  ;;  %v732_v41 = vadd.f32 1.0, %v6031_v23  ;;  %1181 = vmatprep.mubr.bf16.mxu1 %v10627_v22 }
 0x139   : > { %v6033_v40 = vpop.eup %6032  ;;  %6044 = vrcp.f32 %v734_v34 }
 0x13a   : > { %v6035_v29 = vpop.eup %6034  ;;  %v825_v52 = vmul.f32 %v6033_v40, %v7611_v57  ;;  %6046 = vrcp.f32 %v732_v41 }
 0x13b   : > { %v6037_v53 = vpop.eup %6036  ;;  %v823_v55 = vmul.f32 %v6035_v29, %v7619_v0 }
 0x13c   : > { %v6039_v59 = vpop.eup %6038  ;;  %v826_v63 = vmul.f32 %v6037_v53, %v7624_v5 }
 0x13d   : > { %v824_v56 = vmul.f32 %v6039_v59, %v7633_v11 }
 0x13e   : > { %v7719_v60 = vpack.c.bf16 %v826_v63, %v825_v52  ;;  %5401 = vmatmul.mubr.msk.bf16.gmra.mrb[56].mxu0 %vm397_vm0, %v7588_v44 }
 0x13f   : > { %v7723_v2 = vpack.c.bf16 %v824_v56, %v823_v55  ;;  %5391 = vmatmul.mubr.msk.bf16.gmra.mrb[16].mxu1 %vm397_vm0, %v7690_v18  ;;  %1324 = vmatprep.mubr.bf16.mxu0 %v10627_v22 }
 0x140   : > { %10651 = vst [vmem:[#allocation8_spill] sm:$0xff] %v7719_v60  ;;  %1191 = vmatprep.mubr.bf16.mxu1 %v10627_v22 }
 0x141   : > { %10652 = vst [vmem:[#allocation9_spill] sm:$0xff] %v7723_v2  ;;  %v6041_v57 = vpop.eup %6040 }
 0x142   : > { %v6043_v0 = vpop.eup %6042  ;;  %v829_v5 = vmul.f32 %v6041_v57, %v7653_v42  ;;  %v5911_v42 = vld [vmem:[%s10620_s3 + $0x20] ss:$40 sps:$4 sm:$0xff]  }
 0x143   : > { %v6045_v4 = vpop.eup %6044  ;;  %v827_v11 = vmul.f32 %v6043_v0, %v7658_v12  ;;  %v5919_v12 = vld [vmem:[%s10620_s3 + $0x74] ss:$40 sps:$4 sm:$0xff]  }
 0x144   : > { %v6047_v6 = vpop.eup %6046  ;;  %v830_v7 = vmul.f32 %v6045_v4, %v7666_v54  ;;  %v5917_v54 = vld [vmem:[%s10620_s3 + $0x70] ss:$40 sps:$4 sm:$0xff]  }
 0x145   : > { %v828_v8 = vmul.f32 %v6047_v6, %v7673_v61  ;;  %v10623_v61 = vlaneseq }
 0x146   : > { %v7733_v25 = vpack.c.bf16 %v830_v7, %v829_v5  ;;  %5402 = vmatmul.mubr.msk.bf16.gmra.mrb[60].mxu0 %vm397_vm0, %v7583_v19 }
 0x147   : > { %v7737_v9 = vpack.c.bf16 %v828_v8, %v827_v11  ;;  %5392 = vmatmul.mubr.msk.bf16.gmra.mrb[20].mxu1 %vm397_vm0, %v7685_v15  ;;  %1334 = vmatprep.mubr.bf16.mxu0 %v10627_v22  ;;  %v7857_v10 = vshrl.u32 %v10623_v61, 7 }
 0x148   : > { %10653 = vst [vmem:[#allocation10_spill] sm:$0xff] %v7733_v25  ;;  %1201 = vmatprep.mubr.bf16.mxu1 %v10627_v22 }
 0x149   : > { %10654 = vst [vmem:[#allocation11_spill] sm:$0xff] %v7737_v9  ;;  %10655 = vst [vmem:[#allocation12_spill] sm:$0xff] %v7857_v10  ;;  %v10625_v13 = vsub.s32 0, %v7857_v10  ;;  %v10624_v17 = vsub.s32 1, %v7857_v10 }
 0x14b   : > { %v7875_v49 = vrot.slane %v7867_v14, %v10625_v13  ;;  %v7882_v58 = vrot.slane %v7867_v14, %v10624_v17  ;;  %v885_v17 = vsub.s32 3, %v7857_v10 }
 0x14e   : > { %5403 = vmatmul.mubr.msk.bf16.gmra.mrb[64].mxu0 %vm397_vm0, %v7621_v3 }
 0x14f   : > { %5393 = vmatmul.mubr.msk.bf16.gmra.mrb[24].mxu1 %vm397_vm0, %v7707_v16  ;;  %1344 = vmatprep.mubr.bf16.mxu0 %v10627_v22 }
 0x150   : > { %1211 = vmatprep.mubr.bf16.mxu1 %v10627_v22 }
 0x156   : > { %5404 = vmatmul.mubr.msk.bf16.gmra.mrb[68].mxu0 %vm397_vm0, %v7613_v62 }
 0x157   : > { %5394 = vmatmul.mubr.msk.bf16.gmra.mrb[28].mxu1 %vm397_vm0, %v7705_v50  ;;  %1354 = vmatprep.mubr.bf16.mxu0 %v10627_v22 }
 0x158   : > { %1221 = vmatprep.mubr.bf16.mxu1 %v10627_v22 }
 0x15e   : > { %5405 = vmatmul.mubr.msk.bf16.gmra.mrb[72].mxu0 %vm397_vm0, %v7660_v32 }
 0x15f   : > { %5395 = vmatmul.mubr.msk.bf16.gmra.mrb[32].mxu1 %vm397_vm0, %v7723_v2  ;;  %1364 = vmatprep.mubr.bf16.mxu0 %v10627_v22 }
 0x160   : > { %1231 = vmatprep.mubr.bf16.mxu1 %v10627_v22 }
 0x166   : > { %5406 = vmatmul.mubr.msk.bf16.gmra.mrb[76].mxu0 %vm397_vm0, %v7655_v48 }
 0x167   : > { %5396 = vmatmul.mubr.msk.bf16.gmra.mrb[36].mxu1 %vm397_vm0, %v7719_v60  ;;  %1374 = vmatprep.mubr.bf16.mxu0 %v10627_v22 }
 0x168   : > { %1241 = vmatprep.mubr.bf16.mxu1 %v10627_v22 }
 0x16e   : > { %5407 = vmatmul.mubr.msk.bf16.gmra.mrb[80].mxu0 %vm397_vm0, %v7690_v18 }
 0x16f   : > { %5397 = vmatmul.mubr.msk.bf16.gmra.mrb[40].mxu1 %vm397_vm0, %v7737_v9  ;;  %1384 = vmatprep.mubr.bf16.mxu0 %v10627_v22 }
 0x170   : > { %1251 = vmatprep.mubr.bf16.mxu1 %v10627_v22 }
 0x176   : > { %5408 = vmatmul.mubr.msk.bf16.gmra.mrb[84].mxu0 %vm397_vm0, %v7685_v15 }
 0x177   : > { %5398 = vmatmul.mubr.msk.bf16.gmra.mrb[44].mxu1 %vm397_vm0, %v7733_v25  ;;  %1394 = vmatprep.mubr.bf16.mxu0 %v10627_v22 }
 0x178   : > { %1487 = vmatprep.mubr.bf16.mxu1 %v10627_v22 }
 0x17e   : > { %5409 = vmatmul.mubr.msk.bf16.gmra.mrb[88].mxu0 %vm397_vm0, %v7707_v16 }
 0x17f   : > { %5415 = vmatmul.mubr.msk.bf16.vlgmr.msra.gmra.mrb[48].mxu1 %vm397_vm0, %v7552_v51  ;;  %1404 = vmatprep.mubr.bf16.mxu0 %v10627_v22 }
 0x180   : > { %1842 = vmatpush1.bf16.msra.mxu1 %v5911_v42  ;;  %1497 = vmatprep.mubr.bf16.mxu1 %v10627_v22 }
 0x181   : > { %1843 = vmatprep.subr.bf16.mxu1 %v5919_v12 }
 0x184   : > { %1844 = vmatpush1.bf16.msra.mxu1 %v5917_v54 }
 0x186   : > { %5410 = vmatmul.mubr.msk.bf16.gmra.mrb[92].mxu0 %vm397_vm0, %v7705_v50 }
 0x187   : > { %5416 = vmatmul.mubr.msk.bf16.gmra.mrb[52].mxu1 %vm397_vm0, %v7544_v46  ;;  %1414 = vmatprep.mubr.bf16.mxu0 %v10627_v22 }
 0x188   : > { %1507 = vmatprep.mubr.bf16.mxu1 %v10627_v22 }
 0x18e   : > { %5411 = vmatmul.mubr.msk.bf16.gmra.mrb[96].mxu0 %vm397_vm0, %v7723_v2 }
 0x18f   : > { %5417 = vmatmul.mubr.msk.bf16.gmra.mrb[56].mxu1 %vm397_vm0, %v7588_v44  ;;  %1424 = vmatprep.mubr.bf16.mxu0 %v10627_v22 }
 0x190   : > { %1517 = vmatprep.mubr.bf16.mxu1 %v10627_v22 }
 0x196   : > { %5412 = vmatmul.mubr.msk.bf16.gmra.mrb[100].mxu0 %vm397_vm0, %v7719_v60 }
 0x197   : > { %5418 = vmatmul.mubr.msk.bf16.gmra.mrb[60].mxu1 %vm397_vm0, %v7583_v19  ;;  %1434 = vmatprep.mubr.bf16.mxu0 %v10627_v22 }
 0x198   : > { %1527 = vmatprep.mubr.bf16.mxu1 %v10627_v22 }
 0x19e   : > { %5413 = vmatmul.mubr.msk.bf16.gmra.mrb[104].mxu0 %vm397_vm0, %v7737_v9 }
 0x19f   : > { %5419 = vmatmul.mubr.msk.bf16.gmra.mrb[64].mxu1 %vm397_vm0, %v7621_v3  ;;  %1444 = vmatprep.mubr.bf16.mxu0 %v10627_v22 }
 0x1a0   : > { %1537 = vmatprep.mubr.bf16.mxu1 %v10627_v22 }
 0x1a6   : > { %5414 = vmatmul.mubr.msk.bf16.gmra.mrb[108].mxu0 %vm397_vm0, %v7733_v25 }
 0x1a7   : > { %5420 = vmatmul.mubr.msk.bf16.gmra.mrb[68].mxu1 %vm397_vm0, %v7613_v62  ;;  %1680 = vmatprep.mubr.bf16.mxu0 %v10627_v22 }
 0x1a8   : > { %1547 = vmatprep.mubr.bf16.mxu1 %v10627_v22 }
 0x1ae   : > { %5431 = vmatmul.mubr.msk.bf16.vlgmr.msra.gmra.mrb[112].mxu0 %vm397_vm0, %v7552_v51 }
 0x1af   : > { %5421 = vmatmul.mubr.msk.bf16.gmra.mrb[72].mxu1 %vm397_vm0, %v7660_v32  ;;  %1690 = vmatprep.mubr.bf16.mxu0 %v10627_v22 }
 0x1b0   : > { %1557 = vmatprep.mubr.bf16.mxu1 %v10627_v22 }
 0x1b6   : > { %5432 = vmatmul.mubr.msk.bf16.gmra.mrb[116].mxu0 %vm397_vm0, %v7544_v46 }
 0x1b7   : > { %5422 = vmatmul.mubr.msk.bf16.gmra.mrb[76].mxu1 %vm397_vm0, %v7655_v48  ;;  %1700 = vmatprep.mubr.bf16.mxu0 %v10627_v22 }
 0x1b8   : > { %1567 = vmatprep.mubr.bf16.mxu1 %v10627_v22 }
 0x1be   : > { %5433 = vmatmul.mubr.msk.bf16.gmra.mrb[120].mxu0 %vm397_vm0, %v7588_v44 }
 0x1bf   : > { %5423 = vmatmul.mubr.msk.bf16.gmra.mrb[80].mxu1 %vm397_vm0, %v7690_v18  ;;  %1710 = vmatprep.mubr.bf16.mxu0 %v10627_v22 }
 0x1c0   : > { %1577 = vmatprep.mubr.bf16.mxu1 %v10627_v22 }
 0x1c6   : > { %5434 = vmatmul.mubr.msk.bf16.gmra.mrb[124].mxu0 %vm397_vm0, %v7583_v19 }
 0x1c7   : > { %5424 = vmatmul.mubr.msk.bf16.gmra.mrb[84].mxu1 %vm397_vm0, %v7685_v15  ;;  %1720 = vmatprep.mubr.bf16.mxu0 %v10627_v22 }
 0x1c8   : > { %1587 = vmatprep.mubr.bf16.mxu1 %v10627_v22 }
 0x1ce   : > { %5435 = vmatmul.mubr.msk.bf16.gmra.mrb[128].mxu0 %vm397_vm0, %v7621_v3 }
 0x1cf   : > { %5425 = vmatmul.mubr.msk.bf16.gmra.mrb[88].mxu1 %vm397_vm0, %v7707_v16  ;;  %1730 = vmatprep.mubr.bf16.mxu0 %v10627_v22 }
 0x1d0   : > { %1597 = vmatprep.mubr.bf16.mxu1 %v10627_v22 }
 0x1d6   : > { %5436 = vmatmul.mubr.msk.bf16.gmra.mrb[132].mxu0 %vm397_vm0, %v7613_v62 }
 0x1d7   : > { %5426 = vmatmul.mubr.msk.bf16.gmra.mrb[92].mxu1 %vm397_vm0, %v7705_v50  ;;  %1740 = vmatprep.mubr.bf16.mxu0 %v10627_v22 }
 0x1d8   : > { %1607 = vmatprep.mubr.bf16.mxu1 %v10627_v22 }
 0x1de   : > { %5437 = vmatmul.mubr.msk.bf16.gmra.mrb[136].mxu0 %vm397_vm0, %v7660_v32 }
 0x1df   : > { %5427 = vmatmul.mubr.msk.bf16.gmra.mrb[96].mxu1 %vm397_vm0, %v7723_v2  ;;  %1750 = vmatprep.mubr.bf16.mxu0 %v10627_v22 }
 0x1e0   : > { %1617 = vmatprep.mubr.bf16.mxu1 %v10627_v22 }
 0x1e1   : > { %v1103_v35 = vpop.f32.mrb[32].mxu0 }
 0x1e2   : > { %v7887_v1 = vadd.f32 %v1103_v35, %v7875_v49  ;;  %v1105_v21 = vpop.f32.mrb[33].mxu0 }
 0x1e3   : > { %v7890_v24 = vadd.f32 %v1105_v21, %v7882_v58  ;;  %v1107_v39 = vpop.f32.mrb[34].mxu0 }
 0x1e4   : > { %v5463_v28 = vmul.f32 -1.442695, %v7887_v1  ;;  %v7894_v47 = vadd.f32 %v1107_v39, %v7875_v49  ;;  %v1109_v30 = vpop.f32.mrb[35].mxu0 }
 0x1e5   : > { %v5464_v31 = vmul.f32 -1.442695, %v7890_v24  ;;  %v7898_v33 = vadd.f32 %v1109_v30, %v7882_v58 }
 0x1e6   : > { %6048 = vpow2.f32 %v5463_v28  ;;  %v5473_v36 = vmul.f32 -1.442695, %v7894_v47  ;;  %5438 = vmatmul.mubr.msk.bf16.gmra.mrb[140].mxu0 %vm397_vm0, %v7655_v48 }
 0x1e7   : > { %6050 = vpow2.f32 %v5464_v31  ;;  %v5474_v37 = vmul.f32 -1.442695, %v7898_v33  ;;  %5428 = vmatmul.mubr.msk.bf16.gmra.mrb[100].mxu1 %vm397_vm0, %v7719_v60  ;;  %1760 = vmatprep.mubr.bf16.mxu0 %v10627_v22 }
 0x1e8   : > { %6052 = vpow2.f32 %v5473_v36  ;;  %1627 = vmatprep.mubr.bf16.mxu1 %v10627_v22 }
 0x1e9   : > { %6054 = vpow2.f32 %v5474_v37  ;;  %v1113_v38 = vpop.f32.mrb[36].mxu0 }
 0x1ea   : > { %v7909_v43 = vadd.f32 %v1113_v38, %v7875_v49  ;;  %v1115_v45 = vpop.f32.mrb[37].mxu0 }
 0x1eb   : > { %v7912_v20 = vadd.f32 %v1115_v45, %v7882_v58  ;;  %v1117_v27 = vpop.f32.mrb[38].mxu0 }
 0x1ec   : > { %v5483_v26 = vmul.f32 -1.442695, %v7909_v43  ;;  %v7916_v23 = vadd.f32 %v1117_v27, %v7875_v49  ;;  %v1119_v34 = vpop.f32.mrb[39].mxu0 }
 0x1ed   : > { %v5484_v41 = vmul.f32 -1.442695, %v7912_v20  ;;  %v7920_v40 = vadd.f32 %v1119_v34, %v7882_v58 }
 0x1ee   : > { %6056 = vpow2.f32 %v5483_v26  ;;  %v5493_v29 = vmul.f32 -1.442695, %v7916_v23  ;;  %5439 = vmatmul.mubr.msk.bf16.gmra.mrb[144].mxu0 %vm397_vm0, %v7690_v18 }
 0x1ef   : > { %6058 = vpow2.f32 %v5484_v41  ;;  %v5494_v52 = vmul.f32 -1.442695, %v7920_v40  ;;  %5429 = vmatmul.mubr.msk.bf16.gmra.mrb[104].mxu1 %vm397_vm0, %v7737_v9  ;;  %1770 = vmatprep.mubr.bf16.mxu0 %v10627_v22 }
 0x1f0   : > { %v6049_v53 = vpop.eup %6048  ;;  %6060 = vpow2.f32 %v5493_v29  ;;  %1637 = vmatprep.mubr.bf16.mxu1 %v10627_v22 }
 0x1f1   : > { %v6051_v55 = vpop.eup %6050  ;;  %v2994_v59 = vadd.f32 1.0, %v6049_v53  ;;  %6062 = vpow2.f32 %v5494_v52  ;;  %v1123_v63 = vpop.f32.mrb[40].mxu0 }
 0x1f2   : > { %v6053_v56 = vpop.eup %6052  ;;  %v2995_v57 = vadd.f32 1.0, %v6051_v55  ;;  %v7931_v0 = vadd.f32 %v1123_v63, %v7875_v49  ;;  %v1143_v5 = vpop.f32.mrb[0].mxu1 }
 0x1f3   : > { %v1125_v4 = vpop.f32.mrb[41].mxu0  ;;  %v6055_v11 = vpop.eup %6054  ;;  %6064 = vrcp.f32 %v2994_v59  ;;  %v3004_v6 = vadd.f32 1.0, %v6053_v56  ;;  %v7934_v7 = vadd.f32 %v1143_v5, %v7875_v49 }
 0x1f4   : > { %v7937_v8 = vadd.f32 %v1125_v4, %v7882_v58  ;;  %v1145_v42 = vpop.f32.mrb[1].mxu1  ;;  %v1127_v12 = vpop.f32.mrb[42].mxu0  ;;  %6066 = vrcp.f32 %v2995_v57  ;;  %v3005_v54 = vadd.f32 1.0, %v6055_v11  ;;  %v5503_v35 = vmul.f32 -1.442695, %v7931_v0 }
 0x1f5   : > { %v7941_v21 = vadd.f32 %v1145_v42, %v7882_v58  ;;  %v1147_v39 = vpop.f32.mrb[2].mxu1  ;;  %v1129_v28 = vpop.f32.mrb[43].mxu0  ;;  %6068 = vrcp.f32 %v3004_v6  ;;  %v5543_v30 = vmul.f32 -1.442695, %v7934_v7  ;;  %v7949_v38 = vadd.f32 %v1127_v12, %v7875_v49 }
 0x1f6   : > { %v5504_v31 = vmul.f32 -1.442695, %v7937_v8  ;;  %v1149_v36 = vpop.f32.mrb[3].mxu1  ;;  %6070 = vrcp.f32 %v3005_v54  ;;  %5440 = vmatmul.mubr.msk.bf16.gmra.mrb[148].mxu0 %vm397_vm0, %v7685_v15  ;;  %v7955_v27 = vadd.f32 %v1147_v39, %v7875_v49  ;;  %v7959_v41 = vadd.f32 %v1129_v28, %v7882_v58 }
 0x1f7   : > { %v5544_v37 = vmul.f32 -1.442695, %v7941_v21  ;;  %6072 = vpow2.f32 %v5503_v35  ;;  %5430 = vmatmul.mubr.msk.bf16.gmra.mrb[108].mxu1 %vm397_vm0, %v7733_v25  ;;  %1780 = vmatprep.mubr.bf16.mxu0 %v10627_v22  ;;  %v7962_v55 = vadd.f32 %v1149_v36, %v7882_v58  ;;  %v5513_v5 = vmul.f32 -1.442695, %v7949_v38 }
 0x1f8   : > { %v6057_v45 = vpop.eup %6056  ;;  %6074 = vpow2.f32 %v5543_v30  ;;  %1873 = vmatprep.mubr.bf16.mxu1 %v10627_v22  ;;  %v5553_v12 = vmul.f32 -1.442695, %v7955_v27  ;;  %v5514_v28 = vmul.f32 -1.442695, %v7959_v41 }
 0x1f9   : > { %v6059_v26 = vpop.eup %6058  ;;  %v3014_v34 = vadd.f32 1.0, %v6057_v45  ;;  %6076 = vpow2.f32 %v5504_v31  ;;  %v1133_v29 = vpop.f32.mrb[44].mxu0  ;;  %v5554_v36 = vmul.f32 -1.442695, %v7962_v55 }
 0x1fa   : > { %v6061_v52 = vpop.eup %6060  ;;  %v3015_v53 = vadd.f32 1.0, %v6059_v26  ;;  %6078 = vpow2.f32 %v5544_v37  ;;  %v1153_v59 = vpop.f32.mrb[4].mxu1  ;;  %v7966_v4 = vadd.f32 %v1133_v29, %v7875_v49 }
 0x1fb   : > { %v1135_v63 = vpop.f32.mrb[45].mxu0  ;;  %v6063_v56 = vpop.eup %6062  ;;  %6080 = vrcp.f32 %v3014_v34  ;;  %v3024_v57 = vadd.f32 1.0, %v6061_v52  ;;  %v7986_v52 = vadd.f32 %v1153_v59, %v7875_v49 }
 0x1fc   : > { %v1155_v11 = vpop.f32.mrb[5].mxu1  ;;  %v1137_v6 = vpop.f32.mrb[46].mxu0  ;;  %6082 = vrcp.f32 %v3015_v53  ;;  %v3025_v42 = vadd.f32 1.0, %v6063_v56  ;;  %v5523_v45 = vmul.f32 -1.442695, %v7966_v4 }
 0x1fd   : > { %v7969_v54 = vpop.f32.mrb[6].mxu1  ;;  %v7971_v35 = vpop.f32.mrb[47].mxu0  ;;  %6084 = vrcp.f32 %v3024_v57  ;;  %v7997_v59 = vadd.f32 %v1155_v11, %v7882_v58  ;;  %v5563_v11 = vmul.f32 -1.442695, %v7986_v52 }
 0x1fe   : > { %v6065_v39 = vpop.eup %6064  ;;  %v7974_v30 = vpop.f32.mrb[7].mxu1  ;;  %6086 = vrcp.f32 %v3025_v42  ;;  %5441 = vmatmul.mubr.msk.bf16.gmra.mrb[152].mxu0 %vm397_vm0, %v7707_v16  ;;  %v8032_v13 = vadd.f32 %v7969_v54, %v7875_v49 }
 0x1ff   : > { %v6067_v31 = vpop.eup %6066  ;;  %6088 = vpow2.f32 %v5513_v5  ;;  %5447 = vmatmul.mubr.msk.bf16.vlgmr.msra.gmra.mrb[112].mxu1 %vm397_vm0, %v7552_v51  ;;  %1790 = vmatprep.mubr.bf16.mxu0 %v10627_v22  ;;  %v3954_v34 = vmul.f32 %v6065_v39, %v7887_v1  ;;  %v7992_v51 = vadd.f32 %v1135_v63, %v7882_v58  ;;  %v8046_v54 = vadd.f32 %v7974_v30, %v7882_v58 }
 0x200   : > { %v6069_v37 = vpop.eup %6068  ;;  %6090 = vpow2.f32 %v5553_v12  ;;  %1883 = vmatprep.mubr.bf16.mxu1 %v10627_v22  ;;  %v3955_v56 = vmul.f32 %v6067_v31, %v7890_v24  ;;  %v5573_v30 = vmul.f32 -1.442695, %v8032_v13 }
 0x201   : > { %v6071_v26 = vpop.eup %6070  ;;  %v3964_v29 = vmul.f32 %v6069_v37, %v7894_v47  ;;  %6092 = vpow2.f32 %v5514_v28  ;;  %v7994_v5 = vpop.f32.mrb[48].mxu0 }
 0x202   : > { %v6073_v53 = vpop.eup %6072  ;;  %v3965_v57 = vmul.f32 %v6071_v26, %v7898_v33  ;;  %6094 = vpow2.f32 %v5554_v36  ;;  %v1163_v12 = vpop.f32.mrb[8].mxu1  ;;  %v8002_v33 = vadd.f32 %v1137_v6, %v7875_v49 }
 0x203   : > { %v6075_v1 = vpop.eup %6074  ;;  %v4759_v42 = vadd.f32 %v3964_v29, %v3954_v34  ;;  %v3034_v47 = vadd.f32 1.0, %v6073_v53  ;;  %v7999_v39 = vpop.f32.mrb[49].mxu0  ;;  %6096 = vpow2.f32 %v5523_v45  ;;  %v5524_v45 = vmul.f32 -1.442695, %v7992_v51 }
 0x204   : > { %v6077_v37 = vpop.eup %6076  ;;  %v4796_v24 = vadd.f32 %v3965_v57, %v3955_v56  ;;  %v3074_v31 = vadd.f32 1.0, %v6075_v1  ;;  %v8004_v63 = vpop.f32.mrb[9].mxu1 }
 0x205   : > { %v8006_v28 = vpop.f32.mrb[50].mxu0  ;;  %v6079_v26 = vpop.eup %6078  ;;  %6098 = vrcp.f32 %v3034_v47  ;;  %v3035_v36 = vadd.f32 1.0, %v6077_v37  ;;  %v5564_v47 = vmul.f32 -1.442695, %v7997_v59 }
 0x206   : > { %v8009_v34 = vpop.f32.mrb[10].mxu1  ;;  %v8011_v29 = vpop.f32.mrb[51].mxu0  ;;  %6100 = vrcp.f32 %v3074_v31  ;;  %v3075_v56 = vadd.f32 1.0, %v6079_v26  ;;  %5442 = vmatmul.mubr.msk.bf16.gmra.mrb[156].mxu0 %vm397_vm0, %v7705_v50  ;;  %v5533_v31 = vmul.f32 -1.442695, %v8002_v33  ;;  %v881_v26 = vsub.s32 2, %v7857_v10 }
 0x207   : > { %v6081_v53 = vpop.eup %6080  ;;  %v8014_v6 = vpop.f32.mrb[11].mxu1  ;;  %6102 = vrcp.f32 %v3035_v36  ;;  %5448 = vmatmul.mubr.msk.bf16.gmra.mrb[116].mxu1 %vm397_vm0, %v7544_v46  ;;  %1800 = vmatprep.mubr.bf16.mxu0 %v10627_v22 }
 0x208   : > { %v6083_v57 = vpop.eup %6082  ;;  %v3974_v1 = vmul.f32 %v6081_v53, %v7909_v43  ;;  %6104 = vrcp.f32 %v3075_v56  ;;  %1893 = vmatprep.mubr.bf16.mxu1 %v10627_v22 }
 0x209   : > { %v6085_v37 = vpop.eup %6084  ;;  %v3975_v61 = vmul.f32 %v6083_v57, %v7912_v20  ;;  %6106 = vpow2.f32 %v5563_v11  ;;  %v8034_v46 = vpop.f32.mrb[52].mxu0 }
 0x20a   : > { %v6087_v43 = vpop.eup %6086  ;;  %v4760_v36 = vadd.f32 %v4759_v42, %v3974_v1  ;;  %v3984_v53 = vmul.f32 %v6085_v37, %v7916_v23  ;;  %6108 = vpow2.f32 %v5524_v45  ;;  %v8038_v23 = vadd.f32 %v7971_v35, %v7882_v58  ;;  %v8040_v11 = vpop.f32.mrb[12].mxu1 }
 0x20b   : > { %v6089_v20 = vpop.eup %6088  ;;  %v4797_v56 = vadd.f32 %v4796_v24, %v3975_v61  ;;  %v3985_v57 = vmul.f32 %v6087_v43, %v7920_v40  ;;  %6110 = vpow2.f32 %v5564_v47  ;;  %v8042_v61 = vpop.f32.mrb[53].mxu0 }
 0x20c   : > { %v6091_v50 = vpop.eup %6090  ;;  %v4761_v42 = vadd.f32 %v4760_v36, %v3984_v53  ;;  %v3044_v1 = vadd.f32 1.0, %v6089_v20  ;;  %6112 = vpow2.f32 %v5533_v31  ;;  %v8048_v37 = vpop.f32.mrb[13].mxu1  ;;  %v8053_v36 = vadd.f32 %v1163_v12, %v7875_v49 }
 0x20d   : > { %v6093_v40 = vpop.eup %6092  ;;  %v4798_v24 = vadd.f32 %v4797_v56, %v3985_v57  ;;  %v3084_v45 = vadd.f32 1.0, %v6091_v50  ;;  %v8050_v43 = vpop.f32.mrb[54].mxu0  ;;  %v8061_v56 = vrot.slane %v7867_v14, %v881_v26  ;;  %v5534_v12 = vmul.f32 -1.442695, %v8038_v23 }
 0x20e   : > { %v6095_v47 = vpop.eup %6094  ;;  %6114 = vrcp.f32 %v3044_v1  ;;  %v3045_v35 = vadd.f32 1.0, %v6093_v40  ;;  %v8055_v53 = vpop.f32.mrb[14].mxu1  ;;  %5443 = vmatmul.mubr.msk.bf16.gmra.mrb[160].mxu0 %vm397_vm0, %v7723_v2  ;;  %v8073_v26 = vrot.slane %v7867_v14, %v885_v17  ;;  %v5583_v10 = vmul.f32 -1.442695, %v8053_v36 }
 0x20f   : > { %v8057_v20 = vpop.f32.mrb[55].mxu0  ;;  %v6097_v50 = vpop.eup %6096  ;;  %6116 = vrcp.f32 %v3084_v45  ;;  %v3085_v31 = vadd.f32 1.0, %v6095_v47  ;;  %v5574_v47 = vmul.f32 -1.442695, %v8046_v54  ;;  %5449 = vmatmul.mubr.msk.bf16.gmra.mrb[120].mxu1 %vm397_vm0, %v7588_v44  ;;  %v8085_v14 = vadd.f32 %v7994_v5, %v8061_v56 }
 0x210   : > { %v8063_v57 = vpop.f32.mrb[15].mxu1  ;;  %v6099_v22 = vpop.eup %6098  ;;  %6118 = vrcp.f32 %v3045_v35  ;;  %v3054_v1 = vadd.f32 1.0, %v6097_v50  ;;  %v10656_v35 = vmov 0   ;;  %v8099_v5 = vadd.f32 %v7999_v39, %v8073_v26 }
 0x211   : > { %v8068_v40 = vpop.eup %6100  ;;  %v3994_v45 = vmul.f32 %v6099_v22, %v7931_v0  ;;  %6120 = vrcp.f32 %v3085_v31  ;;  %1810 = vmatprep.mubr.bf16.mxu0 %v10656_v35  ;;  %1903 = vmatprep.mubr.bf16.mxu1 %v10656_v35  ;;  %10657 = vst [vmem:[#allocation13_spill] sm:$0xff] %v8085_v14  ;;  %v8087_v17 = vpop.f32.mrb[56].mxu0  ;;  %v8091_v31 = vadd.f32 %v8004_v63, %v7882_v58  ;;  %v5465_v39 = vmul.f32 -1.442695, %v8085_v14 }
 0x212   : > { %v6103_v50 = vpop.eup %6102  ;;  %6122 = vrcp.f32 %v3054_v1  ;;  %v8093_v1 = vpop.f32.mrb[16].mxu1  ;;  %10658 = vst [vmem:[#allocation14_spill] sm:$0xff] %v8099_v5  ;;  %v8107_v63 = vadd.f32 %v8009_v34, %v7875_v49 }
 0x213   : > { %v8080_v2 = vpop.eup %6104  ;;  %v4762_v22 = vadd.f32 %v4761_v42, %v3994_v45  ;;  %v3995_v0 = vmul.f32 %v6103_v50, %v7937_v8  ;;  %6124 = vpow2.f32 %v5573_v30  ;;  %v8095_v16 = vpop.f32.mrb[57].mxu0  ;;  %v5584_v34 = vmul.f32 -1.442695, %v8091_v31 }
 0x214   : > { %v6107_v44 = vpop.eup %6106  ;;  %6126 = vpow2.f32 %v5534_v12  ;;  %v8101_v30 = vpop.f32.mrb[17].mxu1 }
 0x215   : > { %v6109_v42 = vpop.eup %6108  ;;  %v4799_v45 = vadd.f32 %v4798_v24, %v3995_v0  ;;  %v3094_v8 = vadd.f32 1.0, %v6107_v44  ;;  %6128 = vpow2.f32 %v5574_v47  ;;  %v8103_v50 = vpop.f32.mrb[58].mxu0  ;;  %v8116_v44 = vadd.f32 %v8006_v28, %v8061_v56 }
 0x216   : > { %10659 = vst [vmem:[#allocation15_spill] sm:$0xff] %v8103_v50  ;;  %v6111_v12 = vpop.eup %6110  ;;  %v3055_v15 = vadd.f32 1.0, %v6109_v42  ;;  %6130 = vpow2.f32 %v5583_v10  ;;  %v8109_v18 = vpop.f32.mrb[18].mxu1  ;;  %5444 = vmatmul.mubr.msk.bf16.gmra.mrb[164].mxu0 %vm397_vm0, %v7719_v60 }
 0x217   : > { %v8111_v24 = vpop.f32.mrb[59].mxu0  ;;  %v6113_v47 = vpop.eup %6112  ;;  %6132 = vrcp.f32 %v3094_v8  ;;  %v3095_v0 = vadd.f32 1.0, %v6111_v12  ;;  %v5466_v12 = vmul.f32 -1.442695, %v8099_v5  ;;  %5450 = vmatmul.mubr.msk.bf16.gmra.mrb[124].mxu1 %vm397_vm0, %v7583_v19  ;;  %1820 = vmatprep.mubr.bf16.mxu0 %v10656_v35  ;;  %v8140_v19 = vadd.f32 %v8014_v6, %v7882_v58 }
 0x218   : > { %10660 = vst [vmem:[#allocation16_spill] sm:$0xff] %v8111_v24  ;;  %v8118_v48 = vpop.f32.mrb[19].mxu1  ;;  %v6115_v10 = vpop.eup %6114  ;;  %6134 = vrcp.f32 %v3055_v15  ;;  %v3064_v42 = vadd.f32 1.0, %v6113_v47  ;;  %v5593_v15 = vmul.f32 -1.442695, %v8107_v63  ;;  %1913 = vmatprep.mubr.bf16.mxu1 %v10656_v35 }
 0x219   : > { %10661 = vst [vmem:[#allocation17_spill] sm:$0xff] %v8118_v48  ;;  %v8123_v24 = vpop.eup %6116  ;;  %v4004_v8 = vmul.f32 %v6115_v10, %v7949_v38  ;;  %6136 = vrcp.f32 %v3095_v0  ;;  %v5475_v38 = vmul.f32 -1.442695, %v8116_v44  ;;  %v8136_v0 = vpop.f32.mrb[60].mxu0 }
 0x21a   : > { %v6119_v28 = vpop.eup %6118  ;;  %6138 = vrcp.f32 %v3064_v42  ;;  %v8142_v42 = vpop.f32.mrb[20].mxu1 }
 0x21b   : > { %v8132_v47 = vpop.eup %6120  ;;  %v4763_v60 = vadd.f32 %v4762_v22, %v4004_v8  ;;  %v4005_v48 = vmul.f32 %v6119_v28, %v7959_v41  ;;  %6140 = vpow2.f32 %v5465_v39  ;;  %v8144_v5 = vpop.f32.mrb[61].mxu0  ;;  %v8149_v41 = vadd.f32 %v8011_v29, %v8073_v26 }
 0x21c   : > { %v6123_v10 = vpop.eup %6122  ;;  %6142 = vpow2.f32 %v5584_v34  ;;  %10662 = vst [vmem:[#allocation18_spill] sm:$0xff] %v8144_v5  ;;  %v8151_v39 = vpop.f32.mrb[21].mxu1  ;;  %v8157_v28 = vadd.f32 %v8040_v11, %v7875_v49  ;;  %v8165_v29 = vadd.f32 %v8034_v46, %v8061_v56  ;;  %v5594_v11 = vmul.f32 -1.442695, %v8140_v19 }
 0x21d   : > { %v6125_v50 = vpop.eup %6124  ;;  %v4800_v14 = vadd.f32 %v4799_v45, %v4005_v48  ;;  %v4014_v22 = vmul.f32 %v6123_v10, %v7966_v4  ;;  %6144 = vpow2.f32 %v5466_v12  ;;  %v8153_v34 = vpop.f32.mrb[62].mxu0 }
 0x21e   : > { %10663 = vst [vmem:[#allocation19_spill] sm:$0xff] %v8153_v34  ;;  %v6127_v8 = vpop.eup %6126  ;;  %v3104_v6 = vadd.f32 1.0, %v6125_v50  ;;  %6146 = vpow2.f32 %v5593_v15  ;;  %v8159_v5 = vpop.f32.mrb[22].mxu1  ;;  %5445 = vmatmul.mubr.msk.bf16.gmra.mrb[168].mxu0 %vm397_vm0, %v7737_v9 }
 0x21f   : > { %10664 = vst [vmem:[#allocation20_spill] sm:$0xff] %v8159_v5  ;;  %v8161_v48 = vpop.f32.mrb[63].mxu0  ;;  %v6129_v4 = vpop.eup %6128  ;;  %v4764_v45 = vadd.f32 %v4763_v60, %v4014_v22  ;;  %v3065_v12 = vadd.f32 1.0, %v6127_v8  ;;  %6148 = vpow2.f32 %v5475_v38  ;;  %v5476_v60 = vmul.f32 -1.442695, %v8149_v41  ;;  %5451 = vmatmul.mubr.msk.bf16.gmra.mrb[128].mxu1 %vm397_vm0, %v7621_v3  ;;  %1830 = vmatprep.mubr.bf16.mxu0 %v10656_v35 }
 0x220   : > { %10665 = vst [vmem:[#allocation21_spill] sm:$0xff] %v8161_v48  ;;  %v8167_v10 = vpop.f32.mrb[23].mxu1  ;;  %v6131_v50 = vpop.eup %6130  ;;  %6150 = vrcp.f32 %v3104_v6  ;;  %v3105_v15 = vadd.f32 1.0, %v6129_v4  ;;  %v5603_v38 = vmul.f32 -1.442695, %v8157_v28  ;;  %v8179_v22 = vadd.f32 %v8048_v37, %v7882_v58  ;;  %1923 = vmatprep.mubr.bf16.mxu1 %v10656_v35 }
 0x221   : > { %10666 = vst [vmem:[#allocation22_spill] sm:$0xff] %v8167_v10  ;;  %v6133_v34 = vpop.eup %6132  ;;  %6152 = vrcp.f32 %v3065_v12  ;;  %v3114_v48 = vadd.f32 1.0, %v6131_v50  ;;  %v5485_v4 = vmul.f32 -1.442695, %v8165_v29  ;;  %v8186_v3 = vpop.f32.mrb[64].mxu0  ;;  %v4034_v50 = vmul.f32 %v8068_v40, %v7934_v7 }
 0x222   : > { %v6135_v46 = vpop.eup %6134  ;;  %6154 = vrcp.f32 %v3105_v15  ;;  %10667 = vst [vmem:[#allocation23_spill] sm:$0xff] %v8186_v3  ;;  %v8190_v15 = vpop.f32.mrb[24].mxu1  ;;  %v5604_v40 = vmul.f32 -1.442695, %v8179_v22 }
 0x223   : > { %v8182_v8 = vpop.eup %6136  ;;  %v4015_v6 = vmul.f32 %v6135_v46, %v7992_v51  ;;  %6156 = vrcp.f32 %v3114_v48  ;;  %v8192_v37 = vpop.f32.mrb[65].mxu0  ;;  %v8197_v51 = vadd.f32 %v8042_v61, %v8073_v26  ;;  %v4035_v61 = vmul.f32 %v8080_v2, %v7941_v21 }
 0x224   : > { %v6139_v12 = vpop.eup %6138  ;;  %6158 = vpow2.f32 %v5594_v11  ;;  %v8199_v48 = vpop.f32.mrb[25].mxu1  ;;  %v8206_v11 = vadd.f32 %v8055_v53, %v7875_v49  ;;  %v8218_v53 = vadd.f32 %v8050_v43, %v8061_v56  ;;  %v4044_v21 = vmul.f32 %v8123_v24, %v7955_v27 }
 0x225   : > { %v6141_v9 = vpop.eup %6140  ;;  %v4801_v10 = vadd.f32 %v4800_v14, %v4015_v6  ;;  %v4024_v5 = vmul.f32 %v6139_v12, %v8002_v33  ;;  %6160 = vpow2.f32 %v5476_v60  ;;  %v8201_v46 = vpop.f32.mrb[66].mxu0  ;;  %v4054_v27 = vmul.f32 %v6133_v34, %v7986_v52 }
 0x226   : > { %10668 = vst [vmem:[#allocation24_spill] sm:$0xff] %v8201_v46  ;;  %v6143_v3 = vpop.eup %6142  ;;  %v2996_v7 = vadd.f32 1.0, %v6141_v9  ;;  %6162 = vpow2.f32 %v5603_v38  ;;  %v8208_v14 = vpop.f32.mrb[26].mxu1  ;;  %5446 = vmatmul.mubr.msk.bf16.gmra.mrb[172].mxu0 %vm397_vm0, %v7733_v25 }
 0x227   : > { %10669 = vst [vmem:[#allocation25_spill] sm:$0xff] %v8208_v14  ;;  %v8210_v33 = vpop.f32.mrb[67].mxu0  ;;  %v6145_v60 = vpop.eup %6144  ;;  %v4765_v6 = vadd.f32 %v4764_v45, %v4024_v5  ;;  %v3115_v12 = vadd.f32 1.0, %v6143_v3  ;;  %6164 = vpow2.f32 %v5485_v4  ;;  %v8222_v14 = vadd.f32 %v8063_v57, %v7882_v58  ;;  %5452 = vmatmul.mubr.msk.bf16.gmra.mrb[132].mxu1 %vm397_vm0, %v7613_v62 }
 0x228   : > { %v8214_v46 = vpop.f32.mrb[27].mxu1  ;;  %v6147_v9 = vpop.eup %6146  ;;  %6166 = vrcp.f32 %v2996_v7  ;;  %v2997_v38 = vadd.f32 1.0, %v6145_v60  ;;  %v5486_v3 = vmul.f32 -1.442695, %v8197_v51  ;;  %v8233_v57 = vadd.f32 %v8057_v20, %v8073_v26  ;;  %1933 = vmatprep.mubr.bf16.mxu1 %v10656_v35 }
 0x229   : > { %v6149_v2 = vpop.eup %6148  ;;  %v4766_v5 = vadd.f32 %v4765_v6, %v4034_v50  ;;  %6168 = vrcp.f32 %v3115_v12  ;;  %v3124_v45 = vadd.f32 1.0, %v6147_v9  ;;  %v5613_v50 = vmul.f32 -1.442695, %v8206_v11  ;;  %v8238_v60 = vpop.f32.mrb[68].mxu0 }
 0x22a   : > { %v6151_v4 = vpop.eup %6150  ;;  %6170 = vrcp.f32 %v2997_v38  ;;  %v3006_v43 = vadd.f32 1.0, %v6149_v2  ;;  %v5495_v12 = vmul.f32 -1.442695, %v8218_v53  ;;  %v8244_v20 = vadd.f32 %v8093_v1, %v7875_v49  ;;  %v8246_v9 = vpop.f32.mrb[28].mxu1 }
 0x22b   : > { %v6153_v7 = vpop.eup %6152  ;;  %v4767_v24 = vadd.f32 %v4766_v5, %v4044_v21  ;;  %6172 = vrcp.f32 %v3124_v45  ;;  %v8248_v38 = vpop.f32.mrb[69].mxu0  ;;  %v4064_v34 = vmul.f32 %v6151_v4, %v8032_v13  ;;  %v5614_v21 = vmul.f32 -1.442695, %v8222_v14 }
 0x22c   : > { %v6155_v62 = vpop.eup %6154  ;;  %v4025_v6 = vmul.f32 %v6153_v7, %v8038_v23  ;;  %6174 = vrcp.f32 %v3006_v43  ;;  %10670 = vst [vmem:[#allocation26_spill] sm:$0xff] %v8248_v38  ;;  %v8252_v5 = vpop.f32.mrb[29].mxu1  ;;  %v5496_v1 = vmul.f32 -1.442695, %v8233_v57  ;;  %v8259_v7 = vadd.f32 %v8087_v17, %v8061_v56 }
 0x22d   : > { %v6157_v52 = vpop.eup %6156  ;;  %v4768_v2 = vadd.f32 %v4767_v24, %v4054_v27  ;;  %6176 = vpow2.f32 %v5604_v40  ;;  %10671 = vst [vmem:[#allocation27_spill] sm:$0xff] %v8252_v5  ;;  %v8254_v23 = vpop.f32.mrb[70].mxu0 }
 0x22e   : > { %10672 = vst [vmem:[#allocation28_spill] sm:$0xff] %v8254_v23  ;;  %v6159_v45 = vpop.eup %6158  ;;  %v4802_v43 = vadd.f32 %v4801_v10, %v4025_v6  ;;  %6178 = vpow2.f32 %v5486_v3  ;;  %v8261_v25 = vpop.f32.mrb[30].mxu1  ;;  %v4074_v27 = vmul.f32 %v6157_v52, %v8053_v36  ;;  %v4045_v3 = vmul.f32 %v8132_v47, %v7962_v55 }
 0x22f   : > { %10673 = vst [vmem:[#allocation29_spill] sm:$0xff] %v8261_v25  ;;  %v8263_v13 = vpop.f32.mrb[71].mxu0  ;;  %v6161_v40 = vpop.eup %6160  ;;  %v4769_v4 = vadd.f32 %v4768_v2, %v4064_v34  ;;  %v3125_v24 = vadd.f32 1.0, %v6159_v45  ;;  %6180 = vpow2.f32 %v5613_v50  ;;  %v8272_v34 = vadd.f32 %v8101_v30, %v7882_v58  ;;  %5453 = vmatmul.mubr.msk.bf16.gmra.mrb[136].mxu1 %vm397_vm0, %v7660_v32 }
 0x230   : > { %v8266_v23 = vpop.f32.mrb[31].mxu1  ;;  %v6163_v10 = vpop.eup %6162  ;;  %v4803_v6 = vadd.f32 %v4802_v43, %v4035_v61  ;;  %v3007_v38 = vadd.f32 1.0, %v6161_v40  ;;  %6182 = vpow2.f32 %v5495_v12  ;;  %v4055_v50 = vmul.f32 %v8182_v8, %v7997_v59  ;;  %1943 = vmatprep.mubr.bf16.mxu1 %v10656_v35 }
 0x231   : > { %v6165_v17 = vpop.eup %6164  ;;  %v4770_v5 = vadd.f32 %v4769_v4, %v4074_v27  ;;  %6184 = vrcp.f32 %v3125_v24  ;;  %v3134_v25 = vadd.f32 1.0, %v6163_v10  ;;  %v5623_v61 = vmul.f32 -1.442695, %v8244_v20  ;;  %v8280_v12 = vpop.f32.mrb[72].mxu0 }
 0x232   : > { %v6167_v36 = vpop.eup %6166  ;;  %v4804_v52 = vadd.f32 %v4803_v6, %v4045_v3  ;;  %6186 = vrcp.f32 %v3007_v38  ;;  %v3016_v55 = vadd.f32 1.0, %v6165_v17  ;;  %v4065_v2 = vmul.f32 %v6155_v62, %v8046_v54  ;;  %v8284_v43 = vpop.f32.mrb[32].mxu1  ;;  %v10674_v6 = vld [vmem:[#allocation13_spill] sm:$0xff] }
 0x233   : > { %v6169_v47 = vpop.eup %6168  ;;  %6188 = vrcp.f32 %v3134_v25  ;;  %v5505_v32 = vmul.f32 -1.442695, %v8259_v7  ;;  %v8286_v59 = vpop.f32.mrb[73].mxu0  ;;  %v5624_v38 = vmul.f32 -1.442695, %v8272_v34  ;;  %v8291_v25 = vadd.f32 %v8095_v16, %v8073_v26 }
 0x234   : > { %v6171_v30 = vpop.eup %6170  ;;  %v4805_v45 = vadd.f32 %v4804_v52, %v4055_v50  ;;  %6190 = vrcp.f32 %v3016_v55  ;;  %v8295_v40 = vadd.f32 %v8109_v18, %v7875_v49  ;;  %v8297_v54 = vpop.f32.mrb[33].mxu1  ;;  %v4075_v24 = vmul.f32 %v6169_v47, %v8091_v31  ;;  %v10675_v50 = vld [vmem:[#allocation15_spill] sm:$0xff] }
 0x235   : > { %v6173_v8 = vpop.eup %6172  ;;  %6192 = vpow2.f32 %v5614_v21  ;;  %v8299_v62 = vpop.f32.mrb[74].mxu0  ;;  %v3956_v17 = vmul.f32 %v6167_v36, %v10674_v6  ;;  %v8311_v52 = vadd.f32 %v10675_v50, %v8061_v56  ;;  %v10676_v36 = vld [vmem:[#allocation17_spill] sm:$0xff]  ;;  %v5506_v50 = vmul.f32 -1.442695, %v8291_v25 }
 0x236   : > { %v6175_v4 = vpop.eup %6174  ;;  %v4806_v27 = vadd.f32 %v4805_v45, %v4065_v2  ;;  %v4084_v21 = vmul.f32 %v6173_v8, %v8107_v63  ;;  %6194 = vpow2.f32 %v5496_v1  ;;  %v8303_v10 = vpop.f32.mrb[34].mxu1  ;;  %v8317_v6 = vadd.f32 %v10676_v36, %v7882_v58 }
 0x237   : > { %v8305_v3 = vpop.f32.mrb[75].mxu0  ;;  %v6177_v16 = vpop.eup %6176  ;;  %v3966_v18 = vmul.f32 %v6175_v4, %v8116_v44  ;;  %6196 = vpow2.f32 %v5623_v61  ;;  %v10677_v44 = vld [vmem:[#allocation3_spill] sm:$0xff] }
 0x238   : > { %v8313_v55 = vpop.f32.mrb[35].mxu1  ;;  %v6179_v31 = vpop.eup %6178  ;;  %v4807_v47 = vadd.f32 %v4806_v27, %v4075_v24  ;;  %v4771_v63 = vadd.f32 %v4770_v5, %v4084_v21  ;;  %v3135_v1 = vadd.f32 1.0, %v6177_v16  ;;  %6198 = vpow2.f32 %v5505_v32  ;;  %5454 = vmatmul.mubr.msk.bf16.gmra.mrb[140].mxu1 %vm397_vm0, %v10677_v44 }
 0x239   : > { %v6181_v2 = vpop.eup %6180  ;;  %v4833_v45 = vadd.f32 %v3966_v18, %v3956_v17  ;;  %v3017_v8 = vadd.f32 1.0, %v6179_v31  ;;  %6200 = vpow2.f32 %v5624_v38  ;;  %1953 = vmatprep.mubr.bf16.mxu1 %v10656_v35  ;;  %v5633_v27 = vmul.f32 -1.442695, %v8295_v40  ;;  %v8324_v38 = vpop.f32.mrb[76].mxu0 }
 0x23a   : > { %v6183_v61 = vpop.eup %6182  ;;  %6202 = vrcp.f32 %v3135_v1  ;;  %v3144_v4 = vadd.f32 1.0, %v6181_v2  ;;  %10678 = vst [vmem:[#allocation13_spill] sm:$0xff] %v8324_v38  ;;  %v5515_v16 = vmul.f32 -1.442695, %v8311_v52  ;;  %v8328_v17 = vpop.f32.mrb[36].mxu1  ;;  %v10681_v1 = vld [vmem:[#allocation14_spill] sm:$0xff] }
 0x23b   : > { %v6185_v5 = vpop.eup %6184  ;;  %6204 = vrcp.f32 %v3017_v8  ;;  %v3026_v32 = vadd.f32 1.0, %v6183_v61  ;;  %10679 = vst [vmem:[#allocation15_spill] sm:$0xff] %v8328_v17  ;;  %v8330_v18 = vpop.f32.mrb[77].mxu0  ;;  %v3957_v2 = vmul.f32 %v6171_v30, %v10681_v1  ;;  %v5634_v36 = vmul.f32 -1.442695, %v8317_v6 }
 0x23c   : > { %v6187_v24 = vpop.eup %6186  ;;  %v4085_v21 = vmul.f32 %v6185_v5, %v8140_v19  ;;  %6206 = vrcp.f32 %v3144_v4  ;;  %10680 = vst [vmem:[#allocation17_spill] sm:$0xff] %v8330_v18  ;;  %v8335_v44 = vpop.f32.mrb[37].mxu1 }
 0x23d   : > { %v6189_v31 = vpop.eup %6188  ;;  %v3967_v8 = vmul.f32 %v6187_v24, %v8149_v41  ;;  %6208 = vrcp.f32 %v3026_v32  ;;  %v8337_v61 = vpop.f32.mrb[78].mxu0  ;;  %v10684_v32 = vld [vmem:[#allocation16_spill] sm:$0xff] }
 0x23e   : > { %10682 = vst [vmem:[#allocation3_spill] sm:$0xff] %v8337_v61  ;;  %v6191_v19 = vpop.eup %6190  ;;  %v4808_v4 = vadd.f32 %v4807_v47, %v4085_v21  ;;  %v4094_v5 = vmul.f32 %v6189_v31, %v8157_v28  ;;  %6210 = vpow2.f32 %v5506_v50  ;;  %v8340_v38 = vpop.f32.mrb[38].mxu1  ;;  %v8347_v24 = vadd.f32 %v10684_v32, %v8073_v26 }
 0x23f   : > { %v8342_v18 = vpop.f32.mrb[79].mxu0  ;;  %v6193_v17 = vpop.eup %6192  ;;  %v4870_v30 = vadd.f32 %v3967_v8, %v3957_v2  ;;  %v3976_v41 = vmul.f32 %v6191_v19, %v8165_v29  ;;  %6212 = vpow2.f32 %v5633_v27  ;;  %v8353_v28 = vadd.f32 %v8142_v42, %v7875_v49  ;;  %v10685_v27 = vld [vmem:[#allocation5_spill] sm:$0xff] }
 0x240   : > { %10683 = vst [vmem:[#allocation14_spill] sm:$0xff] %v8342_v18  ;;  %v8349_v1 = vpop.f32.mrb[39].mxu1  ;;  %v6195_v61 = vpop.eup %6194  ;;  %v4772_v47 = vadd.f32 %v4771_v63, %v4094_v5  ;;  %v3145_v21 = vadd.f32 1.0, %v6193_v17  ;;  %6214 = vpow2.f32 %v5515_v16  ;;  %v8357_v29 = vadd.f32 %v8136_v0, %v8061_v56  ;;  %5455 = vmatmul.mubr.msk.bf16.gmra.mrb[144].mxu1 %vm397_vm0, %v10685_v27 }
 0x241   : > { %v6197_v50 = vpop.eup %6196  ;;  %v4834_v31 = vadd.f32 %v4833_v45, %v3976_v41  ;;  %v3027_v2 = vadd.f32 1.0, %v6195_v61  ;;  %6216 = vpow2.f32 %v5634_v36  ;;  %v8363_v16 = vadd.f32 %v8151_v39, %v7882_v58  ;;  %1963 = vmatprep.mubr.bf16.mxu1 %v10656_v35  ;;  %v8367_v36 = vpop.f32.mrb[80].mxu0 }
 0x242   : > { %v6199_v8 = vpop.eup %6198  ;;  %6218 = vrcp.f32 %v3145_v21  ;;  %v3154_v63 = vadd.f32 1.0, %v6197_v50  ;;  %v5516_v17 = vmul.f32 -1.442695, %v8347_v24  ;;  %10686 = vst [vmem:[#allocation16_spill] sm:$0xff] %v8367_v36  ;;  %v5643_v19 = vmul.f32 -1.442695, %v8353_v28 }
 0x243   : > { %v6201_v42 = vpop.eup %6200  ;;  %6220 = vrcp.f32 %v3027_v2  ;;  %v3036_v45 = vadd.f32 1.0, %v6199_v8  ;;  %v8370_v5 = vpop.f32.mrb[40].mxu1  ;;  %v5525_v21 = vmul.f32 -1.442695, %v8357_v29 }
 0x244   : > { %v6203_v0 = vpop.eup %6202  ;;  %6222 = vrcp.f32 %v3154_v63  ;;  %v3155_v61 = vadd.f32 1.0, %v6201_v42  ;;  %10687 = vst [vmem:[#allocation5_spill] sm:$0xff] %v8370_v5  ;;  %v8372_v41 = vpop.f32.mrb[81].mxu0  ;;  %v5644_v63 = vmul.f32 -1.442695, %v8363_v16 }
 0x245   : > { %10688 = vst [vmem:[#allocation30_spill] sm:$0xff] %v8372_v41  ;;  %v6205_v39 = vpop.eup %6204  ;;  %v4095_v32 = vmul.f32 %v6203_v0, %v8179_v22  ;;  %6224 = vrcp.f32 %v3036_v45  ;;  %v8376_v50 = vpop.f32.mrb[41].mxu1  ;;  %v10693_v45 = vld [vmem:[#allocation18_spill] sm:$0xff] }
 0x246   : > { %10689 = vst [vmem:[#allocation31_spill] sm:$0xff] %v8376_v50  ;;  %v8378_v2 = vpop.f32.mrb[82].mxu0  ;;  %v6207_v27 = vpop.eup %6206  ;;  %v3977_v8 = vmul.f32 %v6205_v39, %v8197_v51  ;;  %6226 = vrcp.f32 %v3155_v61  ;;  %v8389_v0 = vadd.f32 %v10693_v45, %v8073_v26  ;;  %v10695_v39 = vld [vmem:[#allocation20_spill] sm:$0xff] }
 0x247   : > { %10690 = vst [vmem:[#allocation32_spill] sm:$0xff] %v8378_v2  ;;  %v8382_v42 = vpop.f32.mrb[42].mxu1  ;;  %v8384_v36 = vpop.f32.mrb[83].mxu0  ;;  %v4809_v5 = vadd.f32 %v4808_v4, %v4095_v32  ;;  %v4104_v22 = vmul.f32 %v6207_v27, %v8206_v11  ;;  %6228 = vpow2.f32 %v5516_v17  ;;  %v10696_v11 = vld [vmem:[#allocation19_spill] sm:$0xff]  ;;  %v10697_v27 = vld [vmem:[#allocation4_spill] sm:$0xff] }
 0x248   : > { %10691 = vst [vmem:[#allocation33_spill] sm:$0xff] %v8382_v42  ;;  %10692 = vst [vmem:[#allocation34_spill] sm:$0xff] %v8384_v36  ;;  %v6209_v41 = vpop.eup %6208  ;;  %v8391_v2 = vpop.f32.mrb[43].mxu1  ;;  %v4871_v51 = vadd.f32 %v4870_v30, %v3977_v8  ;;  %6230 = vpow2.f32 %v5643_v19  ;;  %v8396_v42 = vadd.f32 %v10695_v39, %v7875_v49  ;;  %v8400_v17 = vadd.f32 %v10696_v11, %v8061_v56 }
 0x249   : > { %10694 = vst [vmem:[#allocation18_spill] sm:$0xff] %v8391_v2  ;;  %v6211_v50 = vpop.eup %6210  ;;  %v3986_v61 = vmul.f32 %v6209_v41, %v8218_v53  ;;  %v4773_v4 = vadd.f32 %v4772_v47, %v4104_v22  ;;  %6232 = vpow2.f32 %v5525_v21  ;;  %5456 = vmatmul.mubr.msk.bf16.gmra.mrb[148].mxu1 %vm397_vm0, %v10697_v27  ;;  %v10698_v53 = vld [vmem:[#allocation22_spill] sm:$0xff]  ;;  %v5526_v21 = vmul.f32 -1.442695, %v8389_v0  ;;  %v8414_v39 = vpop.f32.mrb[84].mxu0 }
 0x24a   : > { %v6213_v36 = vpop.eup %6212  ;;  %v3037_v32 = vadd.f32 1.0, %v6211_v50  ;;  %6234 = vpow2.f32 %v5644_v63  ;;  %v8406_v19 = vadd.f32 %v10698_v53, %v7882_v58  ;;  %1973 = vmatprep.mubr.bf16.mxu1 %v10656_v35  ;;  %v10699_v50 = vld [vmem:[#allocation21_spill] sm:$0xff]  ;;  %10700 = vst [vmem:[#allocation20_spill] sm:$0xff] %v8414_v39  ;;  %v5653_v63 = vmul.f32 -1.442695, %v8396_v42  ;;  %v8419_v11 = vpop.f32.mrb[85].mxu0 }
 0x24b   : > { %v6215_v45 = vpop.eup %6214  ;;  %v4835_v30 = vadd.f32 %v4834_v31, %v3986_v61  ;;  %v3164_v8 = vadd.f32 1.0, %v6213_v36  ;;  %v8412_v22 = vadd.f32 %v10699_v50, %v8073_v26  ;;  %v8417_v61 = vpop.f32.mrb[44].mxu1  ;;  %10702 = vst [vmem:[#allocation4_spill] sm:$0xff] %v8419_v11 }
 0x24c   : > { %v6217_v47 = vpop.eup %6216  ;;  %6236 = vrcp.f32 %v3037_v32  ;;  %v3046_v41 = vadd.f32 1.0, %v6215_v45  ;;  %10701 = vst [vmem:[#allocation19_spill] sm:$0xff] %v8417_v61  ;;  %v5535_v45 = vmul.f32 -1.442695, %v8400_v17  ;;  %v8423_v53 = vpop.f32.mrb[45].mxu1 }
 0x24d   : > { %v6219_v31 = vpop.eup %6218  ;;  %6238 = vrcp.f32 %v3164_v8  ;;  %v3165_v36 = vadd.f32 1.0, %v6217_v47  ;;  %10703 = vst [vmem:[#allocation22_spill] sm:$0xff] %v8423_v53  ;;  %v8425_v50 = vpop.f32.mrb[86].mxu0  ;;  %v5654_v47 = vmul.f32 -1.442695, %v8406_v19 }
 0x24e   : > { %v6221_v27 = vpop.eup %6220  ;;  %v4105_v32 = vmul.f32 %v6219_v31, %v8222_v14  ;;  %6240 = vrcp.f32 %v3046_v41  ;;  %10704 = vst [vmem:[#allocation21_spill] sm:$0xff] %v8425_v50  ;;  %v8429_v2 = vpop.f32.mrb[46].mxu1  ;;  %v5536_v41 = vmul.f32 -1.442695, %v8412_v22 }
 0x24f   : > { %v6223_v39 = vpop.eup %6222  ;;  %v3987_v8 = vmul.f32 %v6221_v27, %v8233_v57  ;;  %6242 = vrcp.f32 %v3165_v36  ;;  %v8431_v61 = vpop.f32.mrb[87].mxu0  ;;  %v8440_v36 = vadd.f32 %v8190_v15, %v7875_v49  ;;  %v8451_v15 = vadd.f32 %v8199_v48, %v7882_v58 }
 0x250   : > { %10705 = vst [vmem:[#allocation35_spill] sm:$0xff] %v8431_v61  ;;  %v6225_v11 = vpop.eup %6224  ;;  %v4810_v18 = vadd.f32 %v4809_v5, %v4105_v32  ;;  %v4114_v14 = vmul.f32 %v6223_v39, %v8244_v20  ;;  %6244 = vpow2.f32 %v5526_v21  ;;  %v8435_v31 = vpop.f32.mrb[47].mxu1  ;;  %v10706_v20 = vld [vmem:[#allocation23_spill] sm:$0xff] }
 0x251   : > { %v6227_v50 = vpop.eup %6226  ;;  %v4872_v53 = vadd.f32 %v4871_v51, %v3987_v8  ;;  %v3996_v57 = vmul.f32 %v6225_v11, %v8259_v7  ;;  %6246 = vpow2.f32 %v5653_v63  ;;  %v8445_v21 = vadd.f32 %v10706_v20, %v8061_v56  ;;  %v10707_v39 = vld [vmem:[#allocation7_spill] sm:$0xff] }
 0x252   : > { %v6229_v27 = vpop.eup %6228  ;;  %v4774_v61 = vadd.f32 %v4773_v4, %v4114_v14  ;;  %v4115_v5 = vmul.f32 %v6227_v50, %v8272_v34  ;;  %6248 = vpow2.f32 %v5535_v45  ;;  %5457 = vmatmul.mubr.msk.bf16.gmra.mrb[152].mxu1 %vm397_vm0, %v10707_v39  ;;  %v8456_v11 = vadd.f32 %v8192_v37, %v8073_v26  ;;  %v8458_v45 = vpop.f32.mrb[88].mxu0 }
 0x253   : > { %v6231_v51 = vpop.eup %6230  ;;  %v4836_v32 = vadd.f32 %v4835_v30, %v3996_v57  ;;  %v3047_v7 = vadd.f32 1.0, %v6229_v27  ;;  %6250 = vpow2.f32 %v5654_v47  ;;  %1983 = vmatprep.mubr.bf16.mxu1 %v10656_v35  ;;  %v5663_v8 = vmul.f32 -1.442695, %v8440_v36  ;;  %v8461_v47 = vpop.f32.mrb[48].mxu1 }
 0x254   : > { %v6233_v4 = vpop.eup %6232  ;;  %v4811_v34 = vadd.f32 %v4810_v18, %v4115_v5  ;;  %v3174_v63 = vadd.f32 1.0, %v6231_v51  ;;  %6252 = vpow2.f32 %v5536_v41  ;;  %v8463_v48 = vpop.f32.mrb[89].mxu0  ;;  %v5545_v41 = vmul.f32 -1.442695, %v8445_v21 }
 0x255   : > { %v6235_v50 = vpop.eup %6234  ;;  %6254 = vrcp.f32 %v3047_v7  ;;  %v3056_v30 = vadd.f32 1.0, %v6233_v4  ;;  %10708 = vst [vmem:[#allocation23_spill] sm:$0xff] %v8463_v48  ;;  %v8466_v57 = vpop.f32.mrb[49].mxu1  ;;  %v5664_v20 = vmul.f32 -1.442695, %v8451_v15 }
 0x256   : > { %v6237_v14 = vpop.eup %6236  ;;  %6256 = vrcp.f32 %v3174_v63  ;;  %v3175_v18 = vadd.f32 1.0, %v6235_v50  ;;  %10709 = vst [vmem:[#allocation7_spill] sm:$0xff] %v8466_v57  ;;  %v8468_v37 = vpop.f32.mrb[90].mxu0  ;;  %v5546_v63 = vmul.f32 -1.442695, %v8456_v11 }
 0x257   : > { %10710 = vst [vmem:[#allocation36_spill] sm:$0xff] %v8468_v37  ;;  %v6239_v27 = vpop.eup %6238  ;;  %v3997_v5 = vmul.f32 %v6237_v14, %v8291_v25  ;;  %6258 = vrcp.f32 %v3056_v30  ;;  %v8472_v39 = vpop.f32.mrb[50].mxu1 }
 0x258   : > { %10711 = vst [vmem:[#allocation37_spill] sm:$0xff] %v8472_v39  ;;  %v8474_v51 = vpop.f32.mrb[91].mxu0  ;;  %v6241_v7 = vpop.eup %6240  ;;  %v4124_v4 = vmul.f32 %v6239_v27, %v8295_v40  ;;  %6260 = vrcp.f32 %v3175_v18  ;;  %v10715_v40 = vld [vmem:[#allocation6_spill] sm:$0xff] }
 0x259   : > { %10712 = vst [vmem:[#allocation38_spill] sm:$0xff] %v8474_v51  ;;  %v8478_v50 = vpop.f32.mrb[51].mxu1  ;;  %v6243_v57 = vpop.eup %6242  ;;  %v4873_v37 = vadd.f32 %v4872_v53, %v3997_v5  ;;  %v4006_v48 = vmul.f32 %v6241_v7, %v8311_v52  ;;  %6262 = vpow2.f32 %v5663_v8  ;;  %v10714_v51 = vld [vmem:[#allocation25_spill] sm:$0xff]  ;;  %v10716_v53 = vld [vmem:[#allocation24_spill] sm:$0xff] }
 0x25a   : > { %10713 = vst [vmem:[#allocation39_spill] sm:$0xff] %v8478_v50  ;;  %v6245_v25 = vpop.eup %6244  ;;  %v4775_v30 = vadd.f32 %v4774_v61, %v4124_v4  ;;  %v4125_v14 = vmul.f32 %v6243_v57, %v8317_v6  ;;  %6264 = vpow2.f32 %v5545_v41  ;;  %v8484_v39 = vadd.f32 %v10714_v51, %v7875_v49  ;;  %5458 = vmatmul.mubr.msk.bf16.gmra.mrb[156].mxu1 %vm397_vm0, %v10715_v40  ;;  %v8497_v57 = vpop.f32.mrb[92].mxu0 }
 0x25b   : > { %v6247_v18 = vpop.eup %6246  ;;  %v4837_v27 = vadd.f32 %v4836_v32, %v4006_v48  ;;  %v3057_v50 = vadd.f32 1.0, %v6245_v25  ;;  %6266 = vpow2.f32 %v5664_v20  ;;  %v8490_v52 = vadd.f32 %v10716_v53, %v8061_v56  ;;  %1993 = vmatprep.mubr.bf16.mxu1 %v10656_v35  ;;  %v8503_v20 = vpop.f32.mrb[52].mxu1 }
 0x25c   : > { %v6249_v61 = vpop.eup %6248  ;;  %v4812_v6 = vadd.f32 %v4811_v34, %v4125_v14  ;;  %v3184_v8 = vadd.f32 1.0, %v6247_v18  ;;  %6268 = vpow2.f32 %v5546_v63  ;;  %v8495_v41 = vadd.f32 %v8214_v46, %v7882_v58  ;;  %v8505_v51 = vpop.f32.mrb[93].mxu0 }
 0x25d   : > { %v6251_v5 = vpop.eup %6250  ;;  %6270 = vrcp.f32 %v3057_v50  ;;  %v3066_v32 = vadd.f32 1.0, %v6249_v61  ;;  %v8501_v48 = vadd.f32 %v8210_v33, %v8073_v26  ;;  %v5673_v4 = vmul.f32 -1.442695, %v8484_v39  ;;  %v8508_v46 = vpop.f32.mrb[53].mxu1 }
 0x25e   : > { %v6253_v34 = vpop.eup %6252  ;;  %6272 = vrcp.f32 %v3184_v8  ;;  %v3185_v7 = vadd.f32 1.0, %v6251_v5  ;;  %10717 = vst [vmem:[#allocation25_spill] sm:$0xff] %v8508_v46  ;;  %v8510_v63 = vpop.f32.mrb[94].mxu0  ;;  %v5555_v14 = vmul.f32 -1.442695, %v8490_v52 }
 0x25f   : > { %10718 = vst [vmem:[#allocation6_spill] sm:$0xff] %v8510_v63  ;;  %v6255_v25 = vpop.eup %6254  ;;  %6274 = vrcp.f32 %v3066_v32  ;;  %v3067_v50 = vadd.f32 1.0, %v6253_v34  ;;  %v8513_v33 = vpop.f32.mrb[54].mxu1  ;;  %v5674_v61 = vmul.f32 -1.442695, %v8495_v41 }
 0x260   : > { %10719 = vst [vmem:[#allocation24_spill] sm:$0xff] %v8513_v33  ;;  %v8515_v40 = vpop.f32.mrb[95].mxu0  ;;  %v6257_v18 = vpop.eup %6256  ;;  %v4007_v53 = vmul.f32 %v6255_v25, %v8347_v24  ;;  %6276 = vrcp.f32 %v3185_v7  ;;  %v5556_v32 = vmul.f32 -1.442695, %v8501_v48  ;;  %v10722_v24 = vld [vmem:[#allocation9_spill] sm:$0xff] }
 0x261   : > { %10720 = vst [vmem:[#allocation40_spill] sm:$0xff] %v8515_v40  ;;  %v8519_v8 = vpop.f32.mrb[55].mxu1  ;;  %v6259_v5 = vpop.eup %6258  ;;  %v4134_v63 = vmul.f32 %v6257_v18, %v8353_v28  ;;  %6278 = vrcp.f32 %v3067_v50  ;;  %v8526_v40 = vadd.f32 %v8246_v9, %v7875_v49  ;;  %v8533_v28 = vadd.f32 %v8238_v60, %v8061_v56  ;;  %v10723_v9 = vld [vmem:[#allocation27_spill] sm:$0xff] }
 0x262   : > { %10721 = vst [vmem:[#allocation41_spill] sm:$0xff] %v8519_v8  ;;  %v6261_v34 = vpop.eup %6260  ;;  %v4874_v46 = vadd.f32 %v4873_v37, %v4007_v53  ;;  %v4016_v33 = vmul.f32 %v6259_v5, %v8357_v29  ;;  %6280 = vpow2.f32 %v5673_v4  ;;  %5459 = vmatmul.mubr.msk.bf16.gmra.mrb[160].mxu1 %vm397_vm0, %v10722_v24  ;;  %v8538_v50 = vadd.f32 %v10723_v9, %v7882_v58  ;;  %v8540_v18 = vpop.f32.mrb[96].mxu0 }
 0x263   : > { %v6263_v7 = vpop.eup %6262  ;;  %v4776_v25 = vadd.f32 %v4775_v30, %v4134_v63  ;;  %v4135_v8 = vmul.f32 %v6261_v34, %v8363_v16  ;;  %6282 = vpow2.f32 %v5555_v14  ;;  %2003 = vmatprep.mubr.bf16.mxu1 %v10656_v35  ;;  %10724 = vst [vmem:[#allocation9_spill] sm:$0xff] %v8540_v18  ;;  %v10725_v14 = vld [vmem:[#allocation26_spill] sm:$0xff]  ;;  %v8546_v53 = vpop.f32.mrb[56].mxu1  ;;  %v10728_v34 = vld [vmem:[#allocation29_spill] sm:$0xff]  ;;  %v10733_v18 = vld [vmem:[#allocation8_spill] sm:$0xff] }
 0x264   : > { %v6265_v29 = vpop.eup %6264  ;;  %v4838_v37 = vadd.f32 %v4837_v27, %v4016_v33  ;;  %v3194_v4 = vadd.f32 1.0, %v6263_v7  ;;  %6284 = vpow2.f32 %v5674_v61  ;;  %v8544_v60 = vadd.f32 %v10725_v14, %v8073_v26  ;;  %10726 = vst [vmem:[#allocation27_spill] sm:$0xff] %v8546_v53  ;;  %v8548_v5 = vpop.f32.mrb[97].mxu0 }
 0x265   : > { %v6267_v30 = vpop.eup %6266  ;;  %v4813_v63 = vadd.f32 %v4812_v6, %v4135_v8  ;;  %v3076_v16 = vadd.f32 1.0, %v6265_v29  ;;  %6286 = vpow2.f32 %v5556_v32  ;;  %10727 = vst [vmem:[#allocation26_spill] sm:$0xff] %v8548_v5  ;;  %v5683_v61 = vmul.f32 -1.442695, %v8526_v40  ;;  %v8555_v6 = vpop.f32.mrb[57].mxu1 }
 0x266   : > { %v6269_v27 = vpop.eup %6268  ;;  %6288 = vrcp.f32 %v3194_v4  ;;  %v3195_v33 = vadd.f32 1.0, %v6267_v30  ;;  %v8553_v24 = vadd.f32 %v10728_v34, %v7875_v49  ;;  %10729 = vst [vmem:[#allocation29_spill] sm:$0xff] %v8555_v6  ;;  %v8557_v8 = vpop.f32.mrb[98].mxu0  ;;  %v5565_v29 = vmul.f32 -1.442695, %v8533_v28 }
 0x267   : > { %10730 = vst [vmem:[#allocation42_spill] sm:$0xff] %v8557_v8  ;;  %v6271_v32 = vpop.eup %6270  ;;  %6290 = vrcp.f32 %v3076_v16  ;;  %v3077_v7 = vadd.f32 1.0, %v6269_v27  ;;  %v8560_v9 = vpop.f32.mrb[58].mxu1  ;;  %v5684_v34 = vmul.f32 -1.442695, %v8538_v50 }
 0x268   : > { %10731 = vst [vmem:[#allocation43_spill] sm:$0xff] %v8560_v9  ;;  %v8562_v14 = vpop.f32.mrb[99].mxu0  ;;  %v6273_v4 = vpop.eup %6272  ;;  %v4017_v30 = vmul.f32 %v6271_v32, %v8389_v0  ;;  %6292 = vrcp.f32 %v3195_v33  ;;  %v5566_v16 = vmul.f32 -1.442695, %v8544_v60 }
 0x269   : > { %10732 = vst [vmem:[#allocation44_spill] sm:$0xff] %v8562_v14  ;;  %v8566_v5 = vpop.f32.mrb[59].mxu1  ;;  %v6275_v6 = vpop.eup %6274  ;;  %v4144_v8 = vmul.f32 %v6273_v4, %v8396_v42  ;;  %6294 = vrcp.f32 %v3077_v7  ;;  %v5693_v14 = vmul.f32 -1.442695, %v8553_v24  ;;  %v10734_v42 = vld [vmem:[#allocation28_spill] sm:$0xff] }
 0x26a   : > { %v6277_v27 = vpop.eup %6276  ;;  %v4875_v53 = vadd.f32 %v4874_v46, %v4017_v30  ;;  %v4026_v9 = vmul.f32 %v6275_v6, %v8400_v17  ;;  %6296 = vpow2.f32 %v5683_v61  ;;  %5460 = vmatmul.mubr.msk.bf16.gmra.mrb[164].mxu1 %vm397_vm0, %v10733_v18  ;;  %v8577_v7 = vadd.f32 %v10734_v42, %v8061_v56  ;;  %v8585_v18 = vpop.f32.mrb[100].mxu0 }
 0x26b   : > { %v6279_v0 = vpop.eup %6278  ;;  %v4777_v33 = vadd.f32 %v4776_v25, %v4144_v8  ;;  %v4145_v32 = vmul.f32 %v6277_v27, %v8406_v19  ;;  %6298 = vpow2.f32 %v5565_v29  ;;  %2013 = vmatprep.mubr.bf16.mxu1 %v10656_v35  ;;  %v8583_v61 = vadd.f32 %v8266_v23, %v7882_v58  ;;  %v8591_v29 = vpop.f32.mrb[60].mxu1 }
 0x26c   : > { %v6281_v46 = vpop.eup %6280  ;;  %v4839_v4 = vadd.f32 %v4838_v37, %v4026_v9  ;;  %v4027_v17 = vmul.f32 %v6279_v0, %v8412_v22  ;;  %6300 = vpow2.f32 %v5684_v34  ;;  %v8589_v8 = vadd.f32 %v8263_v13, %v8073_v26  ;;  %v8593_v37 = vpop.f32.mrb[101].mxu0 }
 0x26d   : > { %v6283_v25 = vpop.eup %6282  ;;  %v4814_v19 = vadd.f32 %v4813_v63, %v4145_v32  ;;  %v3204_v6 = vadd.f32 1.0, %v6281_v46  ;;  %6302 = vpow2.f32 %v5566_v16  ;;  %v8597_v23 = vadd.f32 %v8284_v43, %v7875_v49  ;;  %v8599_v34 = vpop.f32.mrb[61].mxu1 }
 0x26e   : > { %v6285_v22 = vpop.eup %6284  ;;  %v4876_v9 = vadd.f32 %v4875_v53, %v4027_v17  ;;  %v3086_v30 = vadd.f32 1.0, %v6283_v25  ;;  %6304 = vpow2.f32 %v5693_v14  ;;  %v8601_v63 = vpop.f32.mrb[102].mxu0  ;;  %v5575_v27 = vmul.f32 -1.442695, %v8577_v7 }
 0x26f   : > { %10735 = vst [vmem:[#allocation8_spill] sm:$0xff] %v8601_v63  ;;  %v6287_v16 = vpop.eup %6286  ;;  %6306 = vrcp.f32 %v3204_v6  ;;  %v3205_v13 = vadd.f32 1.0, %v6285_v22  ;;  %v5694_v53 = vmul.f32 -1.442695, %v8583_v61  ;;  %v8605_v42 = vpop.f32.mrb[62].mxu1 }
 0x270   : > { %v6289_v0 = vpop.eup %6288  ;;  %6308 = vrcp.f32 %v3086_v30  ;;  %v3087_v32 = vadd.f32 1.0, %v6287_v16  ;;  %10736 = vst [vmem:[#allocation28_spill] sm:$0xff] %v8605_v42  ;;  %v5576_v46 = vmul.f32 -1.442695, %v8589_v8  ;;  %v5703_v6 = vmul.f32 -1.442695, %v8597_v23 }
 0x271   : > { %v6291_v14 = vpop.eup %6290  ;;  %v4154_v43 = vmul.f32 %v6289_v0, %v8440_v36  ;;  %6310 = vrcp.f32 %v3205_v13  ;;  %v8611_v22 = vpop.f32.mrb[103].mxu0  ;;  %v10739_v16 = vld [vmem:[#allocation11_spill] sm:$0xff] }
 0x272   : > { %v6293_v17 = vpop.eup %6292  ;;  %v4036_v25 = vmul.f32 %v6291_v14, %v8445_v21  ;;  %6312 = vrcp.f32 %v3087_v32  ;;  %10737 = vst [vmem:[#allocation45_spill] sm:$0xff] %v8611_v22  ;;  %v8613_v30 = vpop.f32.mrb[63].mxu1  ;;  %5461 = vmatmul.mubr.msk.bf16.gmra.mrb[168].mxu1 %vm397_vm0, %v10739_v16  ;;  %v8622_v32 = vadd.f32 %v8280_v12, %v8061_v56 }
 0x273   : > { %10738 = vst [vmem:[#allocation46_spill] sm:$0xff] %v8613_v30  ;;  %v6295_v42 = vpop.eup %6294  ;;  %v4778_v63 = vadd.f32 %v4777_v33, %v4154_v43  ;;  %v4155_v36 = vmul.f32 %v6293_v17, %v8451_v15  ;;  %6314 = vpow2.f32 %v5575_v27  ;;  %2023 = vmatprep.mubr.bf16.mxu1 %v10656_v35  ;;  %v8626_v33 = vadd.f32 %v8297_v54, %v7882_v58  ;;  %v8637_v43 = vpop.f32.mrb[104].mxu0 }
 0x274   : > { %v6297_v13 = vpop.eup %6296  ;;  %v4840_v0 = vadd.f32 %v4839_v4, %v4036_v25  ;;  %v4037_v21 = vmul.f32 %v6295_v42, %v8456_v11  ;;  %6316 = vpow2.f32 %v5694_v53  ;;  %v8630_v11 = vadd.f32 %v8286_v59, %v8073_v26  ;;  %v8642_v25 = vpop.f32.mrb[105].mxu0 }
 0x275   : > { %v6299_v14 = vpop.eup %6298  ;;  %v4815_v30 = vadd.f32 %v4814_v19, %v4155_v36  ;;  %v3214_v22 = vadd.f32 1.0, %v6297_v13  ;;  %6318 = vpow2.f32 %v5576_v46  ;;  %v8634_v19 = vadd.f32 %v8303_v10, %v7875_v49  ;;  %v10740_v36 = vld [vmem:[#allocation10_spill] sm:$0xff] }
 0x276   : > { %v6301_v15 = vpop.eup %6300  ;;  %v4877_v27 = vadd.f32 %v4876_v9, %v4037_v21  ;;  %v3096_v35 = vadd.f32 1.0, %v6299_v14  ;;  %6320 = vpow2.f32 %v5703_v6  ;;  %v5585_v54 = vmul.f32 -1.442695, %v8622_v32  ;;  %v8639_v9 = vpop.f32.mrb[64].mxu1 }
 0x277   : > { %v6303_v4 = vpop.eup %6302  ;;  %6322 = vrcp.f32 %v3214_v22  ;;  %v3215_v12 = vadd.f32 1.0, %v6301_v15  ;;  %v5704_v17 = vmul.f32 -1.442695, %v8626_v33  ;;  %v8644_v6 = vpop.f32.mrb[65].mxu1  ;;  %v5586_v16 = vmul.f32 -1.442695, %v8630_v11 }
 0x278   : > { %v6305_v53 = vpop.eup %6304  ;;  %6324 = vrcp.f32 %v3096_v35  ;;  %v3097_v42 = vadd.f32 1.0, %v6303_v4  ;;  %v5713_v14 = vmul.f32 -1.442695, %v8634_v19  ;;  %v8652_v15 = vpop.f32.mrb[106].mxu0 }
 0x279   : > { %v6307_v46 = vpop.eup %6306  ;;  %6326 = vrcp.f32 %v3215_v12  ;;  %v3224_v59 = vadd.f32 1.0, %v6305_v53  ;;  %v8654_v35 = vpop.f32.mrb[66].mxu1  ;;  %v8659_v53 = vadd.f32 %v8299_v62, %v8061_v56 }
 0x27a   : > { %v6309_v10 = vpop.eup %6308  ;;  %v4164_v22 = vmul.f32 %v6307_v46, %v8484_v39  ;;  %6328 = vrcp.f32 %v3097_v42  ;;  %5462 = vmatmul.mubr.msk.bf16.gmra.mrb[172].mxu1 %vm397_vm0, %v10740_v36 }
 0x27b   : > { %v6311_v13 = vpop.eup %6310  ;;  %v4046_v21 = vmul.f32 %v6309_v10, %v8490_v52  ;;  %6330 = vrcp.f32 %v3224_v59  ;;  %v8664_v59 = vadd.f32 %v8313_v55, %v7882_v58  ;;  %v8666_v10 = vpop.f32.mrb[107].mxu0 }
 0x27c   : > { %v6313_v4 = vpop.eup %6312  ;;  %v4779_v12 = vadd.f32 %v4778_v63, %v4164_v22  ;;  %v4165_v39 = vmul.f32 %v6311_v13, %v8495_v41  ;;  %6332 = vpow2.f32 %v5585_v54  ;;  %10741 = vst [vmem:[#allocation11_spill] sm:$0xff] %v8666_v10  ;;  %v8670_v41 = vadd.f32 %v8305_v3, %v8073_v26 }
 0x27d   : > { %v6315_v42 = vpop.eup %6314  ;;  %v4841_v46 = vadd.f32 %v4840_v0, %v4046_v21  ;;  %v4047_v52 = vmul.f32 %v6313_v4, %v8501_v48  ;;  %6334 = vpow2.f32 %v5704_v17  ;;  %v10742_v48 = vld [vmem:[#allocation15_spill] sm:$0xff]  ;;  %v5595_v21 = vmul.f32 -1.442695, %v8659_v53 }
 0x27e   : > { %v6317_v36 = vpop.eup %6316  ;;  %v4816_v63 = vadd.f32 %v4815_v30, %v4165_v39  ;;  %v3106_v22 = vadd.f32 1.0, %v6315_v42  ;;  %6336 = vpow2.f32 %v5586_v16  ;;  %v8674_v17 = vadd.f32 %v10742_v48, %v7875_v49  ;;  %v10743_v30 = vld [vmem:[#allocation13_spill] sm:$0xff]  ;;  %v8682_v39 = vpop.f32.mrb[67].mxu1 }
 0x27f   : > { %v6319_v62 = vpop.eup %6318  ;;  %v4878_v54 = vadd.f32 %v4877_v27, %v4047_v52  ;;  %v3225_v0 = vadd.f32 1.0, %v6317_v36  ;;  %6338 = vpow2.f32 %v5713_v14  ;;  %v8679_v16 = vadd.f32 %v10743_v30, %v8061_v56  ;;  %10744 = vst [vmem:[#allocation10_spill] sm:$0xff] %v8682_v39 }
 0x280   : > { %v6321_v55 = vpop.eup %6320  ;;  %6340 = vrcp.f32 %v3106_v22  ;;  %v3107_v13 = vadd.f32 1.0, %v6319_v62  ;;  %v5714_v27 = vmul.f32 -1.442695, %v8664_v59  ;;  %v5596_v52 = vmul.f32 -1.442695, %v8670_v41 }
 0x281   : > { %v6323_v4 = vpop.eup %6322  ;;  %6342 = vrcp.f32 %v3225_v0  ;;  %v3234_v3 = vadd.f32 1.0, %v6321_v55  ;;  %v5723_v62 = vmul.f32 -1.442695, %v8674_v17  ;;  %v5605_v55 = vmul.f32 -1.442695, %v8679_v16 }
 0x282   : > { %v6325_v14 = vpop.eup %6324  ;;  %v4174_v42 = vmul.f32 %v6323_v4, %v8526_v40  ;;  %6344 = vrcp.f32 %v3107_v13  ;;  %v8693_v13 = vadd.f32 %v8335_v44, %v7882_v58 }
 0x283   : > { %v6327_v36 = vpop.eup %6326  ;;  %v4056_v22 = vmul.f32 %v6325_v14, %v8533_v28  ;;  %6346 = vrcp.f32 %v3234_v3 }
 0x284   : > { %v6329_v48 = vpop.eup %6328  ;;  %v4780_v30 = vadd.f32 %v4779_v12, %v4174_v42  ;;  %v4175_v0 = vmul.f32 %v6327_v36, %v8538_v50  ;;  %6348 = vpow2.f32 %v5595_v21  ;;  %v10745_v12 = vld [vmem:[#allocation17_spill] sm:$0xff] }
 0x285   : > { %v6331_v39 = vpop.eup %6330  ;;  %v4842_v10 = vadd.f32 %v4841_v46, %v4056_v22  ;;  %v4057_v40 = vmul.f32 %v6329_v48, %v8544_v60  ;;  %6350 = vpow2.f32 %v5714_v27  ;;  %v8698_v50 = vadd.f32 %v10745_v12, %v8073_v26 }
 0x286   : > { %v6333_v28 = vpop.eup %6332  ;;  %v4817_v4 = vadd.f32 %v4816_v63, %v4175_v0  ;;  %v4184_v3 = vmul.f32 %v6331_v39, %v8553_v24  ;;  %6352 = vpow2.f32 %v5596_v52  ;;  %v8702_v60 = vadd.f32 %v8340_v38, %v7875_v49  ;;  %v10746_v63 = vld [vmem:[#allocation3_spill] sm:$0xff]  ;;  %v8708_v39 = vpop.f32.mrb[108].mxu0 }
 0x287   : > { %v6335_v21 = vpop.eup %6334  ;;  %v4879_v14 = vadd.f32 %v4878_v54, %v4057_v40  ;;  %v3116_v42 = vadd.f32 1.0, %v6333_v28  ;;  %6354 = vpow2.f32 %v5723_v62  ;;  %v8706_v24 = vadd.f32 %v10746_v63, %v8061_v56  ;;  %v8710_v52 = vpop.f32.mrb[68].mxu1 }
 0x288   : > { %v6337_v46 = vpop.eup %6336  ;;  %v4781_v44 = vadd.f32 %v4780_v30, %v4184_v3  ;;  %v3235_v27 = vadd.f32 1.0, %v6335_v21  ;;  %6356 = vpow2.f32 %v5605_v55  ;;  %v5724_v22 = vmul.f32 -1.442695, %v8693_v13  ;;  %v8716_v40 = vpop.f32.mrb[109].mxu0 }
 0x289   : > { %v6339_v36 = vpop.eup %6338  ;;  %6358 = vrcp.f32 %v3116_v42  ;;  %v3117_v54 = vadd.f32 1.0, %v6337_v46  ;;  %v5606_v48 = vmul.f32 -1.442695, %v8698_v50  ;;  %v5733_v55 = vmul.f32 -1.442695, %v8702_v60  ;;  %v8718_v28 = vpop.f32.mrb[69].mxu1 }
 0x28a   : > { %v6341_v62 = vpop.eup %6340  ;;  %6360 = vrcp.f32 %v3235_v27  ;;  %v3244_v38 = vadd.f32 1.0, %v6339_v36  ;;  %10747 = vst [vmem:[#allocation15_spill] sm:$0xff] %v8718_v28  ;;  %v5615_v21 = vmul.f32 -1.442695, %v8706_v24  ;;  %v8723_v63 = vpop.f32.mrb[110].mxu0 }
 0x28b   : > { %v6343_v30 = vpop.eup %6342  ;;  %v4066_v0 = vmul.f32 %v6341_v62, %v8577_v7  ;;  %6362 = vrcp.f32 %v3117_v54  ;;  %10748 = vst [vmem:[#allocation13_spill] sm:$0xff] %v8723_v63  ;;  %v8725_v7 = vpop.f32.mrb[70].mxu1 }
 0x28c   : > { %v6345_v3 = vpop.eup %6344  ;;  %v4185_v12 = vmul.f32 %v6343_v30, %v8583_v61  ;;  %6364 = vrcp.f32 %v3244_v38  ;;  %10749 = vst [vmem:[#allocation17_spill] sm:$0xff] %v8725_v7  ;;  %v8730_v61 = vadd.f32 %v8349_v1, %v7882_v58 }
 0x28d   : > { %v6347_v42 = vpop.eup %6346  ;;  %v4843_v46 = vadd.f32 %v4842_v10, %v4066_v0  ;;  %v4067_v27 = vmul.f32 %v6345_v3, %v8589_v8  ;;  %6366 = vpow2.f32 %v5724_v22  ;;  %v10750_v8 = vld [vmem:[#allocation14_spill] sm:$0xff] }
 0x28e   : > { %v6349_v36 = vpop.eup %6348  ;;  %v4818_v54 = vadd.f32 %v4817_v4, %v4185_v12  ;;  %v4194_v62 = vmul.f32 %v6347_v42, %v8597_v23  ;;  %6368 = vpow2.f32 %v5606_v48  ;;  %v8734_v10 = vadd.f32 %v10750_v8, %v8073_v26  ;;  %v10751_v4 = vld [vmem:[#allocation5_spill] sm:$0xff]  ;;  %v8740_v48 = vpop.f32.mrb[111].mxu0 }
 0x28f   : > { %v6351_v38 = vpop.eup %6350  ;;  %v4880_v30 = vadd.f32 %v4879_v14, %v4067_v27  ;;  %v3126_v28 = vadd.f32 1.0, %v6349_v36  ;;  %6370 = vpow2.f32 %v5733_v55  ;;  %v8738_v23 = vadd.f32 %v10751_v4, %v7875_v49  ;;  %10752 = vst [vmem:[#allocation3_spill] sm:$0xff] %v8740_v48  ;;  %v10753_v14 = vld [vmem:[#allocation16_spill] sm:$0xff]  ;;  %v8746_v42 = vpop.f32.mrb[71].mxu1 }
 0x290   : > { %v6353_v22 = vpop.eup %6352  ;;  %v4782_v0 = vadd.f32 %v4781_v44, %v4194_v62  ;;  %v3245_v3 = vadd.f32 1.0, %v6351_v38  ;;  %6372 = vpow2.f32 %v5615_v21  ;;  %v8744_v55 = vadd.f32 %v10753_v14, %v8061_v56  ;;  %10754 = vst [vmem:[#allocation14_spill] sm:$0xff] %v8746_v42 }
 0x291   : > { %v6355_v1 = vpop.eup %6354  ;;  %6374 = vrcp.f32 %v3126_v28  ;;  %v3127_v12 = vadd.f32 1.0, %v6353_v22  ;;  %v5734_v21 = vmul.f32 -1.442695, %v8730_v61  ;;  %v5616_v38 = vmul.f32 -1.442695, %v8734_v10 }
 0x292   : > { %v6357_v27 = vpop.eup %6356  ;;  %6376 = vrcp.f32 %v3245_v3  ;;  %v3254_v44 = vadd.f32 1.0, %v6355_v1  ;;  %v5743_v22 = vmul.f32 -1.442695, %v8738_v23  ;;  %v5625_v3 = vmul.f32 -1.442695, %v8744_v55 }
 0x293   : > { %v6359_v36 = vpop.eup %6358  ;;  %6378 = vrcp.f32 %v3127_v12  ;;  %v3136_v62 = vadd.f32 1.0, %v6357_v27  ;;  %v10755_v12 = vld [vmem:[#allocation31_spill] sm:$0xff] }
 0x294   : > { %v6361_v8 = vpop.eup %6360  ;;  %v4076_v28 = vmul.f32 %v6359_v36, %v8622_v32  ;;  %6380 = vrcp.f32 %v3254_v44  ;;  %v8757_v27 = vadd.f32 %v10755_v12, %v7882_v58  ;;  %v10756_v36 = vld [vmem:[#allocation30_spill] sm:$0xff] }
 0x295   : > { %v6363_v4 = vpop.eup %6362  ;;  %v4195_v14 = vmul.f32 %v6361_v8, %v8626_v33  ;;  %6382 = vrcp.f32 %v3136_v62  ;;  %v8762_v33 = vadd.f32 %v10756_v36, %v8073_v26  ;;  %v10763_v12 = vld [vmem:[#allocation18_spill] sm:$0xff] }
 0x296   : > { %v6365_v1 = vpop.eup %6364  ;;  %v4844_v42 = vadd.f32 %v4843_v46, %v4076_v28  ;;  %v4077_v48 = vmul.f32 %v6363_v4, %v8630_v11  ;;  %6384 = vpow2.f32 %v5734_v21  ;;  %v10757_v11 = vld [vmem:[#allocation33_spill] sm:$0xff]  ;;  %v8768_v21 = vpop.f32.mrb[72].mxu1  ;;  %v8783_v36 = vadd.f32 %v10763_v12, %v7882_v58 }
 0x297   : > { %v6367_v7 = vpop.eup %6366  ;;  %v4819_v32 = vadd.f32 %v4818_v54, %v4195_v14  ;;  %v4204_v44 = vmul.f32 %v6365_v1, %v8634_v19  ;;  %6386 = vpow2.f32 %v5616_v38  ;;  %v8766_v46 = vadd.f32 %v10757_v11, %v7875_v49  ;;  %10758 = vst [vmem:[#allocation5_spill] sm:$0xff] %v8768_v21  ;;  %v8770_v28 = vpop.f32.mrb[112].mxu0  ;;  %v10760_v38 = vld [vmem:[#allocation32_spill] sm:$0xff] }
 0x298   : > { %v6369_v62 = vpop.eup %6368  ;;  %v4881_v8 = vadd.f32 %v4880_v30, %v4077_v48  ;;  %v3255_v63 = vadd.f32 1.0, %v6367_v7  ;;  %6388 = vpow2.f32 %v5743_v22  ;;  %10759 = vst [vmem:[#allocation16_spill] sm:$0xff] %v8770_v28  ;;  %v8774_v14 = vadd.f32 %v10760_v38, %v8061_v56  ;;  %v8776_v1 = vpop.f32.mrb[73].mxu1 }
 0x299   : > { %v6371_v54 = vpop.eup %6370  ;;  %v4783_v4 = vadd.f32 %v4782_v0, %v4204_v44  ;;  %v3137_v19 = vadd.f32 1.0, %v6369_v62  ;;  %6390 = vpow2.f32 %v5625_v3  ;;  %10761 = vst [vmem:[#allocation31_spill] sm:$0xff] %v8776_v1  ;;  %v8778_v7 = vpop.f32.mrb[113].mxu0  ;;  %v5744_v22 = vmul.f32 -1.442695, %v8757_v27 }
 0x29a   : > { %10762 = vst [vmem:[#allocation30_spill] sm:$0xff] %v8778_v7  ;;  %v6373_v30 = vpop.eup %6372  ;;  %6392 = vrcp.f32 %v3255_v63  ;;  %v3264_v48 = vadd.f32 1.0, %v6371_v54  ;;  %v5626_v44 = vmul.f32 -1.442695, %v8762_v33  ;;  %v5753_v38 = vmul.f32 -1.442695, %v8766_v46 }
 0x29b   : > { %v6375_v0 = vpop.eup %6374  ;;  %6394 = vrcp.f32 %v3137_v19  ;;  %v3146_v3 = vadd.f32 1.0, %v6373_v30  ;;  %v8788_v7 = vpop.f32.mrb[74].mxu1  ;;  %v5635_v12 = vmul.f32 -1.442695, %v8774_v14 }
 0x29c   : > { %v6377_v62 = vpop.eup %6376  ;;  %v4086_v11 = vmul.f32 %v6375_v0, %v8659_v53  ;;  %6396 = vrcp.f32 %v3264_v48  ;;  %10764 = vst [vmem:[#allocation33_spill] sm:$0xff] %v8788_v7  ;;  %v8792_v1 = vpop.f32.mrb[114].mxu0  ;;  %v5754_v53 = vmul.f32 -1.442695, %v8783_v36  ;;  %v10766_v7 = vld [vmem:[#allocation34_spill] sm:$0xff] }
 0x29d   : > { %v6379_v63 = vpop.eup %6378  ;;  %v4205_v54 = vmul.f32 %v6377_v62, %v8664_v59  ;;  %6398 = vrcp.f32 %v3146_v3  ;;  %10765 = vst [vmem:[#allocation32_spill] sm:$0xff] %v8792_v1  ;;  %v8799_v59 = vadd.f32 %v10766_v7, %v8073_v26 }
 0x29e   : > { %v6381_v19 = vpop.eup %6380  ;;  %v4845_v30 = vadd.f32 %v4844_v42, %v4086_v11  ;;  %v4087_v28 = vmul.f32 %v6379_v63, %v8670_v41  ;;  %6400 = vpow2.f32 %v5744_v22  ;;  %v10767_v42 = vld [vmem:[#allocation19_spill] sm:$0xff]  ;;  %v8806_v22 = vpop.f32.mrb[75].mxu1 }
 0x29f   : > { %v6383_v48 = vpop.eup %6382  ;;  %v4820_v0 = vadd.f32 %v4819_v32, %v4205_v54  ;;  %v4214_v21 = vmul.f32 %v6381_v19, %v8674_v17  ;;  %6402 = vpow2.f32 %v5626_v44  ;;  %v8804_v41 = vadd.f32 %v10767_v42, %v7875_v49  ;;  %10768 = vst [vmem:[#allocation18_spill] sm:$0xff] %v8806_v22  ;;  %v10769_v17 = vld [vmem:[#allocation20_spill] sm:$0xff] }
 0x2a0   : > { %v6385_v3 = vpop.eup %6384  ;;  %v4882_v62 = vadd.f32 %v4881_v8, %v4087_v28  ;;  %v4096_v1 = vmul.f32 %v6383_v48, %v8679_v16  ;;  %6404 = vpow2.f32 %v5753_v38  ;;  %v8810_v44 = vadd.f32 %v10769_v17, %v8061_v56  ;;  %v10770_v16 = vld [vmem:[#allocation22_spill] sm:$0xff] }
 0x2a1   : > { %v6387_v11 = vpop.eup %6386  ;;  %v4784_v32 = vadd.f32 %v4783_v4, %v4214_v21  ;;  %v3265_v63 = vadd.f32 1.0, %v6385_v3  ;;  %6406 = vpow2.f32 %v5635_v12  ;;  %v8814_v28 = vadd.f32 %v10770_v16, %v7882_v58  ;;  %v8818_v3 = vpop.f32.mrb[115].mxu0  ;;  %v10772_v16 = vld [vmem:[#allocation4_spill] sm:$0xff] }
 0x2a2   : > { %v6389_v7 = vpop.eup %6388  ;;  %v4846_v54 = vadd.f32 %v4845_v30, %v4096_v1  ;;  %v3147_v8 = vadd.f32 1.0, %v6387_v11  ;;  %6408 = vpow2.f32 %v5754_v53  ;;  %v5636_v48 = vmul.f32 -1.442695, %v8799_v59  ;;  %10771 = vst [vmem:[#allocation34_spill] sm:$0xff] %v8818_v3 }
 0x2a3   : > { %v6391_v38 = vpop.eup %6390  ;;  %6410 = vrcp.f32 %v3265_v63  ;;  %v3274_v19 = vadd.f32 1.0, %v6389_v7  ;;  %v5763_v12 = vmul.f32 -1.442695, %v8804_v41  ;;  %v5645_v30 = vmul.f32 -1.442695, %v8810_v44 }
 0x2a4   : > { %v6393_v21 = vpop.eup %6392  ;;  %6412 = vrcp.f32 %v3147_v8  ;;  %v3156_v4 = vadd.f32 1.0, %v6391_v38  ;;  %v5764_v63 = vmul.f32 -1.442695, %v8814_v28  ;;  %v8827_v38 = vadd.f32 %v10772_v16, %v8073_v26 }
 0x2a5   : > { %v6395_v42 = vpop.eup %6394  ;;  %v4215_v1 = vmul.f32 %v6393_v21, %v8693_v13  ;;  %6414 = vrcp.f32 %v3274_v19 }
 0x2a6   : > { %v6397_v53 = vpop.eup %6396  ;;  %v4097_v11 = vmul.f32 %v6395_v42, %v8698_v50  ;;  %6416 = vrcp.f32 %v3156_v4  ;;  %v8832_v50 = vadd.f32 %v8429_v2, %v7875_v49 }
 0x2a7   : > { %v6399_v17 = vpop.eup %6398  ;;  %v4821_v7 = vadd.f32 %v4820_v0, %v4215_v1  ;;  %v4224_v8 = vmul.f32 %v6397_v53, %v8702_v60  ;;  %6418 = vpow2.f32 %v5636_v48  ;;  %v10773_v60 = vld [vmem:[#allocation21_spill] sm:$0xff] }
 0x2a8   : > { %v6401_v3 = vpop.eup %6400  ;;  %v4883_v13 = vadd.f32 %v4882_v62, %v4097_v11  ;;  %v4106_v19 = vmul.f32 %v6399_v17, %v8706_v24  ;;  %6420 = vpow2.f32 %v5763_v12  ;;  %v8836_v0 = vadd.f32 %v10773_v60, %v8061_v56  ;;  %v10774_v62 = vld [vmem:[#allocation12_spill] sm:$0xff]  ;;  %v8839_v24 = vpop.f32.mrb[76].mxu1 }
 0x2a9   : > { %v6403_v21 = vpop.eup %6402  ;;  %v4785_v4 = vadd.f32 %v4784_v32, %v4224_v8  ;;  %v3275_v42 = vadd.f32 1.0, %v6401_v3  ;;  %6422 = vpow2.f32 %v5645_v30  ;;  %v889_v11 = vsub.s32 4, %v10774_v62  ;;  %10775 = vst [vmem:[#allocation19_spill] sm:$0xff] %v8839_v24  ;;  %v8841_v12 = vpop.f32.mrb[116].mxu0 }
 0x2aa   : > { %v6405_v48 = vpop.eup %6404  ;;  %v4847_v1 = vadd.f32 %v4846_v54, %v4106_v19  ;;  %v3157_v53 = vadd.f32 1.0, %v6403_v21  ;;  %6424 = vpow2.f32 %v5764_v63  ;;  %10776 = vst [vmem:[#allocation20_spill] sm:$0xff] %v8841_v12  ;;  %v8845_v32 = vadd.f32 %v8435_v31, %v7882_v58  ;;  %v8847_v3 = vpop.f32.mrb[77].mxu1 }
 0x2ab   : > { %v6407_v49 = vpop.eup %6406  ;;  %6426 = vrcp.f32 %v3275_v42  ;;  %v3284_v2 = vadd.f32 1.0, %v6405_v48  ;;  %10777 = vst [vmem:[#allocation22_spill] sm:$0xff] %v8847_v3  ;;  %v8849_v30 = vpop.f32.mrb[117].mxu0  ;;  %v5646_v17 = vmul.f32 -1.442695, %v8827_v38  ;;  %v893_v8 = vsub.s32 5, %v10774_v62 }
 0x2ac   : > { %10778 = vst [vmem:[#allocation4_spill] sm:$0xff] %v8849_v30  ;;  %v6409_v54 = vpop.eup %6408  ;;  %6428 = vrcp.f32 %v3157_v53  ;;  %v3166_v63 = vadd.f32 1.0, %v6407_v49  ;;  %v8853_v16 = vpop.f32.mrb[78].mxu1  ;;  %v5773_v42 = vmul.f32 -1.442695, %v8832_v50  ;;  %v8861_v48 = vld [vmem:[%s10621_s4] sm:$0xff] }
 0x2ad   : > { %10779 = vst [vmem:[#allocation21_spill] sm:$0xff] %v8853_v16  ;;  %v6411_v19 = vpop.eup %6410  ;;  %6430 = vrcp.f32 %v3284_v2  ;;  %v3285_v21 = vadd.f32 1.0, %v6409_v54  ;;  %v5655_v60 = vmul.f32 -1.442695, %v8836_v0  ;;  %v8864_v53 = vrot.slane %v8861_v48, %v889_v11  ;;  %v8866_v49 = vpop.f32.mrb[118].mxu0 }
 0x2ae   : > { %v6413_v58 = vpop.eup %6412  ;;  %v4225_v31 = vmul.f32 %v6411_v19, %v8730_v61  ;;  %6432 = vrcp.f32 %v3166_v63  ;;  %10780 = vst [vmem:[#allocation47_spill] sm:$0xff] %v8866_v49  ;;  %v5774_v16 = vmul.f32 -1.442695, %v8845_v32  ;;  %v10781_v61 = vld [vmem:[#allocation35_spill] sm:$0xff]  ;;  %v8876_v11 = vrot.slane %v8861_v48, %v893_v8  ;;  %v8878_v12 = vpop.f32.mrb[79].mxu1 }
 0x2af   : > { %v6415_v2 = vpop.eup %6414  ;;  %v4107_v54 = vmul.f32 %v6413_v58, %v8734_v10  ;;  %6434 = vrcp.f32 %v3285_v21  ;;  %v8872_v63 = vadd.f32 %v10781_v61, %v8073_v26  ;;  %10782 = vst [vmem:[#allocation35_spill] sm:$0xff] %v8878_v12  ;;  %v8880_v49 = vpop.f32.mrb[119].mxu0  ;;  %v8885_v61 = vadd.f32 %v8458_v45, %v8061_v56 }
 0x2b0   : > { %v6417_v19 = vpop.eup %6416  ;;  %v4822_v30 = vadd.f32 %v4821_v7, %v4225_v31  ;;  %v4234_v3 = vmul.f32 %v6415_v2, %v8738_v23  ;;  %6436 = vpow2.f32 %v5646_v17  ;;  %10783 = vst [vmem:[#allocation48_spill] sm:$0xff] %v8880_v49  ;;  %v8889_v17 = vadd.f32 %v8461_v47, %v8864_v53 }
 0x2b1   : > { %v6419_v10 = vpop.eup %6418  ;;  %v4884_v21 = vadd.f32 %v4883_v13, %v4107_v54  ;;  %v4116_v58 = vmul.f32 %v6417_v19, %v8744_v55  ;;  %6438 = vpow2.f32 %v5773_v42  ;;  %v10784_v13 = vld [vmem:[#allocation23_spill] sm:$0xff]  ;;  %v5656_v54 = vmul.f32 -1.442695, %v8872_v63 }
 0x2b2   : > { %v6421_v7 = vpop.eup %6420  ;;  %v4786_v31 = vadd.f32 %v4785_v4, %v4234_v3  ;;  %v3167_v23 = vadd.f32 1.0, %v6419_v10  ;;  %6440 = vpow2.f32 %v5655_v60  ;;  %v8893_v55 = vadd.f32 %v10784_v13, %v8073_v26  ;;  %v10785_v4 = vld [vmem:[#allocation7_spill] sm:$0xff] }
 0x2b3   : > { %v6423_v8 = vpop.eup %6422  ;;  %v4848_v2 = vadd.f32 %v4847_v1, %v4116_v58  ;;  %v3294_v49 = vadd.f32 1.0, %v6421_v7  ;;  %6442 = vpow2.f32 %v5774_v16  ;;  %v8898_v3 = vadd.f32 %v10785_v4, %v8876_v11 }
 0x2b4   : > { %v6425_v42 = vpop.eup %6424  ;;  %6444 = vrcp.f32 %v3167_v23  ;;  %v3176_v45 = vadd.f32 1.0, %v6423_v8  ;;  %v5665_v1 = vmul.f32 -1.442695, %v8885_v61  ;;  %v5467_v10 = vmul.f32 -1.442695, %v8889_v17 }
 0x2b5   : > { %v6427_v60 = vpop.eup %6426  ;;  %6446 = vrcp.f32 %v3294_v49  ;;  %v3295_v47 = vadd.f32 1.0, %v6425_v42  ;;  %v5666_v23 = vmul.f32 -1.442695, %v8893_v55  ;;  %v5468_v49 = vmul.f32 -1.442695, %v8898_v3 }
 0x2b6   : > { %v6429_v19 = vpop.eup %6428  ;;  %v4235_v16 = vmul.f32 %v6427_v60, %v8757_v27  ;;  %6448 = vrcp.f32 %v3176_v45  ;;  %v10786_v45 = vld [vmem:[#allocation36_spill] sm:$0xff] }
 0x2b7   : > { %v6431_v58 = vpop.eup %6430  ;;  %v4117_v7 = vmul.f32 %v6429_v19, %v8762_v33  ;;  %6450 = vrcp.f32 %v3295_v47  ;;  %v8910_v60 = vadd.f32 %v10786_v45, %v8061_v56 }
 0x2b8   : > { %v6433_v8 = vpop.eup %6432  ;;  %v4823_v13 = vadd.f32 %v4822_v30, %v4235_v16  ;;  %v4244_v4 = vmul.f32 %v6431_v58, %v8766_v46  ;;  %6452 = vpow2.f32 %v5656_v54  ;;  %v10787_v30 = vld [vmem:[#allocation37_spill] sm:$0xff]  ;;  %v8917_v54 = vpop.f32.mrb[80].mxu1  ;;  %v10790_v58 = vld [vmem:[#allocation38_spill] sm:$0xff] }
 0x2b9   : > { %v6435_v42 = vpop.eup %6434  ;;  %v4885_v12 = vadd.f32 %v4884_v21, %v4117_v7  ;;  %v4126_v27 = vmul.f32 %v6433_v8, %v8774_v14  ;;  %6454 = vpow2.f32 %v5665_v1  ;;  %v8915_v46 = vadd.f32 %v10787_v30, %v8864_v53  ;;  %10788 = vst [vmem:[#allocation23_spill] sm:$0xff] %v8917_v54  ;;  %v8919_v16 = vpop.f32.mrb[120].mxu0 }
 0x2ba   : > { %v6437_v33 = vpop.eup %6436  ;;  %v4787_v47 = vadd.f32 %v4786_v31, %v4244_v4  ;;  %v4245_v19 = vmul.f32 %v6435_v42, %v8783_v36  ;;  %6456 = vpow2.f32 %v5467_v10  ;;  %10789 = vst [vmem:[#allocation7_spill] sm:$0xff] %v8919_v16  ;;  %v8923_v7 = vadd.f32 %v10790_v58, %v8073_v26  ;;  %v8925_v31 = vpop.f32.mrb[81].mxu1  ;;  %v10793_v42 = vld [vmem:[#allocation39_spill] sm:$0xff] }
 0x2bb   : > { %v6439_v21 = vpop.eup %6438  ;;  %v4849_v14 = vadd.f32 %v4848_v2, %v4126_v27  ;;  %v3177_v1 = vadd.f32 1.0, %v6437_v33  ;;  %6458 = vpow2.f32 %v5666_v23  ;;  %10791 = vst [vmem:[#allocation36_spill] sm:$0xff] %v8925_v31  ;;  %v8927_v36 = vpop.f32.mrb[121].mxu0  ;;  %v8931_v45 = vadd.f32 %v10793_v42, %v8876_v11 }
 0x2bc   : > { %10792 = vst [vmem:[#allocation37_spill] sm:$0xff] %v8927_v36  ;;  %v6441_v10 = vpop.eup %6440  ;;  %v4824_v8 = vadd.f32 %v4823_v13, %v4245_v19  ;;  %v3304_v4 = vadd.f32 1.0, %v6439_v21  ;;  %6460 = vpow2.f32 %v5468_v49  ;;  %v5675_v23 = vmul.f32 -1.442695, %v8910_v60  ;;  %v8937_v49 = vpop.f32.mrb[82].mxu1 }
 0x2bd   : > { %v6443_v30 = vpop.eup %6442  ;;  %6462 = vrcp.f32 %v3177_v1  ;;  %v3186_v2 = vadd.f32 1.0, %v6441_v10  ;;  %v5477_v58 = vmul.f32 -1.442695, %v8915_v46  ;;  %v5676_v13 = vmul.f32 -1.442695, %v8923_v7  ;;  %10794 = vst [vmem:[#allocation38_spill] sm:$0xff] %v8937_v49 }
 0x2be   : > { %v6445_v27 = vpop.eup %6444  ;;  %6464 = vrcp.f32 %v3304_v4  ;;  %v3305_v33 = vadd.f32 1.0, %v6443_v30  ;;  %v8939_v19 = vpop.f32.mrb[122].mxu0  ;;  %v5478_v10 = vmul.f32 -1.442695, %v8931_v45 }
 0x2bf   : > { %v6447_v31 = vpop.eup %6446  ;;  %v4127_v36 = vmul.f32 %v6445_v27, %v8799_v59  ;;  %6466 = vrcp.f32 %v3186_v2  ;;  %10795 = vst [vmem:[#allocation39_spill] sm:$0xff] %v8939_v19  ;;  %v8944_v16 = vpop.f32.mrb[83].mxu1 }
 0x2c0   : > { %v6449_v21 = vpop.eup %6448  ;;  %v4254_v1 = vmul.f32 %v6447_v31, %v8804_v41  ;;  %6468 = vrcp.f32 %v3305_v33  ;;  %10796 = vst [vmem:[#allocation49_spill] sm:$0xff] %v8944_v16  ;;  %v8946_v59 = vpop.f32.mrb[123].mxu0  ;;  %v8951_v41 = vadd.f32 %v8497_v57, %v8061_v56 }
 0x2c1   : > { %v6451_v4 = vpop.eup %6450  ;;  %v4886_v42 = vadd.f32 %v4885_v12, %v4127_v36  ;;  %v4136_v30 = vmul.f32 %v6449_v21, %v8810_v44  ;;  %6470 = vpow2.f32 %v5675_v23  ;;  %10797 = vst [vmem:[#allocation50_spill] sm:$0xff] %v8946_v59  ;;  %v8955_v44 = vadd.f32 %v8503_v20, %v8864_v53 }
 0x2c2   : > { %v6453_v2 = vpop.eup %6452  ;;  %v4788_v27 = vadd.f32 %v4787_v47, %v4254_v1  ;;  %v4255_v49 = vmul.f32 %v6451_v4, %v8814_v28  ;;  %6472 = vpow2.f32 %v5477_v58  ;;  %v8959_v28 = vadd.f32 %v8505_v51, %v8073_v26  ;;  %v10798_v58 = vld [vmem:[#allocation25_spill] sm:$0xff]  ;;  %v8969_v4 = vpop.f32.mrb[84].mxu1 }
 0x2c3   : > { %v6455_v31 = vpop.eup %6454  ;;  %v4850_v33 = vadd.f32 %v4849_v14, %v4136_v30  ;;  %v3187_v19 = vadd.f32 1.0, %v6453_v2  ;;  %6474 = vpow2.f32 %v5676_v13  ;;  %v8963_v14 = vadd.f32 %v10798_v58, %v8876_v11  ;;  %10799 = vst [vmem:[#allocation25_spill] sm:$0xff] %v8969_v4  ;;  %v8971_v30 = vpop.f32.mrb[124].mxu0 }
 0x2c4   : > { %v6457_v12 = vpop.eup %6456  ;;  %v4825_v36 = vadd.f32 %v4824_v8, %v4255_v49  ;;  %v3196_v23 = vadd.f32 1.0, %v6455_v31  ;;  %6476 = vpow2.f32 %v5478_v10  ;;  %v5685_v20 = vmul.f32 -1.442695, %v8951_v41  ;;  %10800 = vst [vmem:[#allocation51_spill] sm:$0xff] %v8971_v30 }
 0x2c5   : > { %v6459_v47 = vpop.eup %6458  ;;  %6478 = vrcp.f32 %v3187_v19  ;;  %v2998_v57 = vadd.f32 1.0, %v6457_v12  ;;  %v5487_v49 = vmul.f32 -1.442695, %v8955_v44  ;;  %v5686_v19 = vmul.f32 -1.442695, %v8959_v28 }
 0x2c6   : > { %v6461_v13 = vpop.eup %6460  ;;  %6480 = vrcp.f32 %v3196_v23  ;;  %v3197_v21 = vadd.f32 1.0, %v6459_v47  ;;  %v5488_v12 = vmul.f32 -1.442695, %v8963_v14  ;;  %v10801_v23 = vld [vmem:[#allocation6_spill] sm:$0xff] }
 0x2c7   : > { %v6463_v1 = vpop.eup %6462  ;;  %6482 = vrcp.f32 %v2998_v57  ;;  %v2999_v8 = vadd.f32 1.0, %v6461_v13  ;;  %v8977_v47 = vadd.f32 %v10801_v23, %v8061_v56  ;;  %v8979_v57 = vpop.f32.mrb[85].mxu1 }
 0x2c8   : > { %v6465_v10 = vpop.eup %6464  ;;  %v4137_v51 = vmul.f32 %v6463_v1, %v8827_v38  ;;  %6484 = vrcp.f32 %v3197_v21  ;;  %10802 = vst [vmem:[#allocation6_spill] sm:$0xff] %v8979_v57  ;;  %v8981_v38 = vpop.f32.mrb[125].mxu0  ;;  %v10804_v1 = vld [vmem:[#allocation24_spill] sm:$0xff] }
 0x2c9   : > { %v6467_v2 = vpop.eup %6466  ;;  %v4264_v31 = vmul.f32 %v6465_v10, %v8832_v50  ;;  %6486 = vrcp.f32 %v2999_v8  ;;  %10803 = vst [vmem:[#allocation52_spill] sm:$0xff] %v8981_v38  ;;  %v8986_v30 = vadd.f32 %v10804_v1, %v8864_v53  ;;  %v8989_v23 = vpop.f32.mrb[86].mxu1 }
 0x2ca   : > { %v6469_v58 = vpop.eup %6468  ;;  %v4887_v13 = vadd.f32 %v4886_v42, %v4137_v51  ;;  %v4146_v21 = vmul.f32 %v6467_v2, %v8836_v0  ;;  %6488 = vpow2.f32 %v5685_v20  ;;  %10805 = vst [vmem:[#allocation24_spill] sm:$0xff] %v8989_v23  ;;  %v10806_v42 = vld [vmem:[#allocation40_spill] sm:$0xff] }
 0x2cb   : > { %v6471_v50 = vpop.eup %6470  ;;  %v4789_v8 = vadd.f32 %v4788_v27, %v4264_v31  ;;  %v4265_v10 = vmul.f32 %v6469_v58, %v8845_v32  ;;  %6490 = vpow2.f32 %v5487_v49  ;;  %v8993_v51 = vadd.f32 %v10806_v42, %v8073_v26 }
 0x2cc   : > { %v6473_v4 = vpop.eup %6472  ;;  %v4851_v57 = vadd.f32 %v4850_v33, %v4146_v21  ;;  %v3206_v59 = vadd.f32 1.0, %v6471_v50  ;;  %6492 = vpow2.f32 %v5686_v19  ;;  %v5695_v32 = vmul.f32 -1.442695, %v8977_v47  ;;  %v8997_v21 = vpop.f32.mrb[126].mxu0 }
 0x2cd   : > { %v6475_v0 = vpop.eup %6474  ;;  %v4790_v20 = vrot.slane %v4789_v8, 4  ;;  %v4826_v2 = vadd.f32 %v4825_v36, %v4265_v10  ;;  %v3008_v1 = vadd.f32 1.0, %v6473_v4  ;;  %6494 = vpow2.f32 %v5488_v12  ;;  %10807 = vst [vmem:[#allocation40_spill] sm:$0xff] %v8997_v21 }
 0x2ce   : > { %v6477_v38 = vpop.eup %6476  ;;  %6496 = vrcp.f32 %v3206_v59  ;;  %v3207_v27 = vadd.f32 1.0, %v6475_v0  ;;  %v5497_v49 = vmul.f32 -1.442695, %v8986_v30  ;;  %v5696_v36 = vmul.f32 -1.442695, %v8993_v51  ;;  %v10808_v59 = vld [vmem:[#allocation41_spill] sm:$0xff] }
 0x2cf   : > { %v6479_v31 = vpop.eup %6478  ;;  %v4791_v33 = vadd.f32 %v4790_v20, %v4789_v8  ;;  %v4827_v58 = vrot.slane %v4826_v2, 4  ;;  %6498 = vrcp.f32 %v3008_v1  ;;  %v3009_v19 = vadd.f32 1.0, %v6477_v38  ;;  %v10809_v1 = vld [vmem:[#allocation9_spill] sm:$0xff] }
 0x2d0   : > { %v6481_v50 = vpop.eup %6480  ;;  %v4147_v42 = vmul.f32 %v6479_v31, %v8872_v63  ;;  %6500 = vrcp.f32 %v3207_v27  ;;  %v9003_v4 = vadd.f32 %v10808_v59, %v8876_v11  ;;  %v9008_v21 = vadd.f32 %v10809_v1, %v8061_v56  ;;  %v10810_v63 = vld [vmem:[#allocation27_spill] sm:$0xff]  ;;  %v9014_v31 = vpop.f32.mrb[87].mxu1 }
 0x2d1   : > { %v6483_v12 = vpop.eup %6482  ;;  %v4792_v10 = vrot.slane %v4791_v33, 2  ;;  %v4828_v0 = vadd.f32 %v4827_v58, %v4826_v2  ;;  %v4156_v8 = vmul.f32 %v6481_v50, %v8885_v61  ;;  %6502 = vrcp.f32 %v3009_v19  ;;  %10811 = vst [vmem:[#allocation41_spill] sm:$0xff] %v9014_v31  ;;  %v9017_v58 = vpop.f32.mrb[127].mxu0  ;;  %v10813_v19 = vld [vmem:[#allocation26_spill] sm:$0xff] }
 0x2d2   : > { %v6485_v20 = vpop.eup %6484  ;;  %v4888_v38 = vadd.f32 %v4887_v13, %v4147_v42  ;;  %6504 = vpow2.f32 %v5695_v32  ;;  %v9012_v27 = vadd.f32 %v10810_v63, %v8864_v53  ;;  %10812 = vst [vmem:[#allocation9_spill] sm:$0xff] %v9017_v58  ;;  %v5498_v32 = vmul.f32 -1.442695, %v9003_v4  ;;  %v10814_v42 = vld [vmem:[#allocation29_spill] sm:$0xff] }
 0x2d3   : > { %v6487_v59 = vpop.eup %6486  ;;  %v4793_v23 = vadd.f32 %v4792_v10, %v4791_v33  ;;  %v4829_v16 = vrot.slane %v4828_v0, 2  ;;  %v4852_v2 = vadd.f32 %v4851_v57, %v4156_v8  ;;  %v4157_v61 = vmul.f32 %v6485_v20, %v8893_v55 }
 0x2d4   : > { %v6489_v13 = vpop.eup %6488  ;;  %6506 = vpow2.f32 %v5497_v49  ;;  %v9022_v50 = vadd.f32 %v10813_v19, %v8073_v26  ;;  %v9026_v1 = vadd.f32 %v10814_v42, %v8876_v11  ;;  %v5705_v49 = vmul.f32 -1.442695, %v9008_v21 }
 0x2d5   : > { %v6491_v63 = vpop.eup %6490  ;;  %v4794_v33 = vrot.slane %v4793_v23, 1  ;;  %v4830_v10 = vadd.f32 %v4829_v16, %v4828_v0  ;;  %v4889_v57 = vadd.f32 %v4888_v38, %v4157_v61  ;;  %v3216_v8 = vadd.f32 1.0, %v6489_v13  ;;  %v10815_v13 = vld [vmem:[#allocation42_spill] sm:$0xff] }
 0x2d6   : > { %v6493_v55 = vpop.eup %6492  ;;  %v3018_v20 = vadd.f32 1.0, %v6491_v63  ;;  %6508 = vpow2.f32 %v5696_v36  ;;  %v5507_v58 = vmul.f32 -1.442695, %v9012_v27  ;;  %v5706_v16 = vmul.f32 -1.442695, %v9022_v50  ;;  %v9041_v63 = vpop.f32.mrb[88].mxu1 }
 0x2d7   : > { %v6495_v31 = vpop.eup %6494  ;;  %v9030_v54 = vadd.f32 %v4794_v33, %v4793_v23  ;;  %v4831_v19 = vrot.slane %v4830_v10, 1  ;;  %6510 = vrcp.f32 %v3216_v8  ;;  %v3217_v24 = vadd.f32 1.0, %v6493_v55  ;;  %10816 = vst [vmem:[#allocation27_spill] sm:$0xff] %v9041_v63  ;;  %v9043_v33 = vpop.f32.mrb[128].mxu0 }
 0x2d8   : > { %v6497_v42 = vpop.eup %6496  ;;  %6512 = vrcp.f32 %v3018_v20  ;;  %v3019_v22 = vadd.f32 1.0, %v6495_v31  ;;  %v5508_v0 = vmul.f32 -1.442695, %v9026_v1  ;;  %v9039_v23 = vadd.f32 %v10815_v13, %v8061_v56  ;;  %10817 = vst [vmem:[#allocation26_spill] sm:$0xff] %v9043_v33 }
 0x2d9   : > { %v6499_v38 = vpop.eup %6498  ;;  %v9034_v61 = vadd.f32 %v4831_v19, %v4830_v10  ;;  %v4166_v36 = vmul.f32 %v6497_v42, %v8910_v60  ;;  %6514 = vrcp.f32 %v3217_v24  ;;  %v3958_v31 = vmul.f32 %v6483_v12, %v8889_v17  ;;  %v10818_v10 = vld [vmem:[#allocation43_spill] sm:$0xff]  ;;  %v9051_v60 = vpop.f32.mrb[89].mxu1 }
 0x2da   : > { %v6501_v8 = vpop.eup %6500  ;;  %v3968_v55 = vmul.f32 %v6499_v38, %v8915_v46  ;;  %6516 = vrcp.f32 %v3019_v22  ;;  %v9049_v20 = vadd.f32 %v10818_v10, %v8864_v53  ;;  %10819 = vst [vmem:[#allocation29_spill] sm:$0xff] %v9051_v60  ;;  %v9053_v24 = vpop.f32.mrb[129].mxu0  ;;  %v3959_v46 = vmul.f32 %v6487_v59, %v8898_v3 }
 0x2db   : > { %10820 = vst [vmem:[#allocation42_spill] sm:$0xff] %v9053_v24  ;;  %v6503_v19 = vpop.eup %6502  ;;  %v4853_v13 = vadd.f32 %v4852_v2, %v4166_v36  ;;  %v4167_v33 = vmul.f32 %v6501_v8, %v8923_v7  ;;  %6518 = vpow2.f32 %v5498_v32  ;;  %v9060_v38 = vpop.f32.mrb[90].mxu1  ;;  %v10821_v24 = vld [vmem:[#allocation44_spill] sm:$0xff]  ;;  %v5715_v3 = vmul.f32 -1.442695, %v9039_v23 }
 0x2dc   : > { %v6505_v17 = vpop.eup %6504  ;;  %v4907_v22 = vadd.f32 %v3968_v55, %v3958_v31  ;;  %v3969_v12 = vmul.f32 %v6503_v19, %v8931_v45  ;;  %6520 = vpow2.f32 %v5705_v49  ;;  %v9064_v63 = vadd.f32 %v10821_v24, %v8073_v26  ;;  %v9066_v2 = vpop.f32.mrb[130].mxu0 }
 0x2dd   : > { %v4890_v10 = vadd.f32 %v4889_v57, %v4167_v33  ;;  %v3226_v60 = vadd.f32 1.0, %v6505_v17  ;;  %6522 = vpow2.f32 %v5507_v58  ;;  %v9071_v45 = vadd.f32 %v8566_v5, %v8876_v11  ;;  %v9078_v36 = vpop.f32.mrb[91].mxu1 }
 0x2de   : > { %v6507_v7 = vpop.eup %6506  ;;  %v4944_v32 = vadd.f32 %v3969_v12, %v3959_v46  ;;  %6524 = vpow2.f32 %v5706_v16  ;;  %v9075_v58 = vadd.f32 %v8585_v18, %v8061_v56  ;;  %v5517_v49 = vmul.f32 -1.442695, %v9049_v20 }
 0x2df   : > { %6526 = vrcp.f32 %v3226_v60  ;;  %v3028_v59 = vadd.f32 1.0, %v6507_v7  ;;  %v5716_v8 = vmul.f32 -1.442695, %v9064_v63  ;;  %v5518_v55 = vmul.f32 -1.442695, %v9071_v45  ;;  %v9083_v60 = vpop.f32.mrb[131].mxu0 }
 0x2e0   : > { %v6509_v57 = vpop.eup %6508  ;;  %6528 = vpow2.f32 %v5508_v0  ;;  %v5725_v24 = vmul.f32 -1.442695, %v9075_v58  ;;  %v9090_v12 = vadd.f32 %v8591_v29, %v8864_v53 }
 0x2e1   : > { %v6511_v33 = vpop.eup %6510  ;;  %6530 = vrcp.f32 %v3028_v59  ;;  %v3227_v16 = vadd.f32 1.0, %v6509_v57 }
 0x2e2   : > { %v6513_v31 = vpop.eup %6512  ;;  %v4176_v5 = vmul.f32 %v6511_v33, %v8951_v41  ;;  %6532 = vpow2.f32 %v5715_v3  ;;  %v9095_v33 = vadd.f32 %v8593_v37, %v8073_v26 }
 0x2e3   : > { %v6515_v18 = vpop.eup %6514  ;;  %v3978_v0 = vmul.f32 %v6513_v31, %v8955_v44  ;;  %6534 = vrcp.f32 %v3227_v16 }
 0x2e4   : > { %v6517_v19 = vpop.eup %6516  ;;  %v4854_v17 = vadd.f32 %v4853_v13, %v4176_v5  ;;  %v4177_v46 = vmul.f32 %v6515_v18, %v8959_v28  ;;  %6536 = vpow2.f32 %v5517_v49 }
 0x2e5   : > { %v6519_v41 = vpop.eup %6518  ;;  %v4908_v7 = vadd.f32 %v4907_v22, %v3978_v0  ;;  %v3979_v3 = vmul.f32 %v6517_v19, %v8963_v14  ;;  %6538 = vpow2.f32 %v5716_v8  ;;  %v5527_v22 = vmul.f32 -1.442695, %v9090_v12  ;;  %v9106_v8 = vpop.f32.mrb[132].mxu0 }
 0x2e6   : > { %v6521_v59 = vpop.eup %6520  ;;  %v4891_v57 = vadd.f32 %v4890_v10, %v4177_v46  ;;  %v3029_v44 = vadd.f32 1.0, %v6519_v41  ;;  %6540 = vpow2.f32 %v5518_v55  ;;  %v9102_v14 = vadd.f32 %v8599_v34, %v8876_v11  ;;  %v9104_v10 = vpop.f32.mrb[92].mxu1 }
 0x2e7   : > { %v6523_v13 = vpop.eup %6522  ;;  %v9097_v28 = vadd.f32 %v4944_v32, %v3979_v3  ;;  %v3236_v49 = vadd.f32 1.0, %v6521_v59  ;;  %6542 = vpow2.f32 %v5725_v24  ;;  %v5726_v55 = vmul.f32 -1.442695, %v9095_v33  ;;  %v9110_v18 = vpop.f32.mrb[93].mxu1 }
 0x2e8   : > { %v6525_v29 = vpop.eup %6524  ;;  %6544 = vrcp.f32 %v3029_v44  ;;  %v3038_v16 = vadd.f32 1.0, %v6523_v13  ;;  %v9112_v34 = vpop.f32.mrb[133].mxu0  ;;  %v5528_v3 = vmul.f32 -1.442695, %v9102_v14  ;;  %v10822_v44 = vld [vmem:[#allocation8_spill] sm:$0xff] }
 0x2e9   : > { %v6527_v37 = vpop.eup %6526  ;;  %6546 = vrcp.f32 %v3236_v49  ;;  %v3237_v31 = vadd.f32 1.0, %v6525_v29  ;;  %v9118_v13 = vadd.f32 %v10822_v44, %v8061_v56 }
 0x2ea   : > { %v6529_v32 = vpop.eup %6528  ;;  %v4186_v5 = vmul.f32 %v6527_v37, %v8977_v47  ;;  %6548 = vrcp.f32 %v3038_v16  ;;  %v10823_v37 = vld [vmem:[#allocation28_spill] sm:$0xff] }
 0x2eb   : > { %v6531_v0 = vpop.eup %6530  ;;  %6550 = vrcp.f32 %v3237_v31  ;;  %v3039_v24 = vadd.f32 1.0, %v6529_v32  ;;  %v5735_v44 = vmul.f32 -1.442695, %v9118_v13 }
 0x2ec   : > { %v6533_v19 = vpop.eup %6532  ;;  %v4855_v46 = vadd.f32 %v4854_v17, %v4186_v5  ;;  %v3988_v41 = vmul.f32 %v6531_v0, %v8986_v30  ;;  %6552 = vpow2.f32 %v5527_v22  ;;  %v9123_v17 = vadd.f32 %v10823_v37, %v8864_v53  ;;  %v9125_v30 = vpop.f32.mrb[94].mxu1  ;;  %v10825_v5 = vld [vmem:[#allocation45_spill] sm:$0xff] }
 0x2ed   : > { %v6535_v59 = vpop.eup %6534  ;;  %6554 = vrcp.f32 %v3039_v24  ;;  %v3246_v47 = vadd.f32 1.0, %v6533_v19  ;;  %v9127_v22 = vpop.f32.mrb[134].mxu0  ;;  %v9131_v0 = vadd.f32 %v10825_v5, %v8073_v26 }
 0x2ee   : > { %v6537_v49 = vpop.eup %6536  ;;  %v4909_v29 = vadd.f32 %v4908_v7, %v3988_v41  ;;  %v4187_v16 = vmul.f32 %v6535_v59, %v8993_v51  ;;  %6556 = vpow2.f32 %v5726_v55  ;;  %10824 = vst [vmem:[#allocation43_spill] sm:$0xff] %v9127_v22  ;;  %v10826_v7 = vld [vmem:[#allocation46_spill] sm:$0xff]  ;;  %v9139_v41 = vadd.f32 %v8637_v43, %v8061_v56 }
 0x2ef   : > { %v6539_v31 = vpop.eup %6538  ;;  %6558 = vrcp.f32 %v3246_v47  ;;  %v3048_v32 = vadd.f32 1.0, %v6537_v49  ;;  %v9135_v24 = vadd.f32 %v10826_v7, %v8876_v11  ;;  %v5537_v5 = vmul.f32 -1.442695, %v9123_v17 }
 0x2f0   : > { %v6541_v51 = vpop.eup %6540  ;;  %v4892_v55 = vadd.f32 %v4891_v57, %v4187_v16  ;;  %v3247_v19 = vadd.f32 1.0, %v6539_v31  ;;  %6560 = vpow2.f32 %v5528_v3  ;;  %v9145_v7 = vadd.f32 %v8639_v9, %v8864_v53  ;;  %v9149_v16 = vpop.f32.mrb[95].mxu1 }
 0x2f1   : > { %v6543_v59 = vpop.eup %6542  ;;  %6562 = vrcp.f32 %v3048_v32  ;;  %v3049_v47 = vadd.f32 1.0, %v6541_v51  ;;  %v5736_v43 = vmul.f32 -1.442695, %v9131_v0  ;;  %10827 = vst [vmem:[#allocation44_spill] sm:$0xff] %v9149_v16  ;;  %v9151_v31 = vpop.f32.mrb[135].mxu0 }
 0x2f2   : > { %v6545_v49 = vpop.eup %6544  ;;  %6564 = vrcp.f32 %v3247_v19  ;;  %v3256_v37 = vadd.f32 1.0, %v6543_v59  ;;  %10828 = vst [vmem:[#allocation8_spill] sm:$0xff] %v9151_v31  ;;  %v5538_v19 = vmul.f32 -1.442695, %v9135_v24  ;;  %v5745_v59 = vmul.f32 -1.442695, %v9139_v41 }
 0x2f3   : > { %v6547_v57 = vpop.eup %6546  ;;  %v3989_v3 = vmul.f32 %v6545_v49, %v9003_v4  ;;  %6566 = vrcp.f32 %v3049_v47  ;;  %v9160_v47 = vadd.f32 %v8642_v25, %v8073_v26 }
 0x2f4   : > { %v6549_v32 = vpop.eup %6548  ;;  %v4196_v51 = vmul.f32 %v6547_v57, %v9008_v21  ;;  %6568 = vrcp.f32 %v3256_v37  ;;  %v5547_v21 = vmul.f32 -1.442695, %v9145_v7 }
 0x2f5   : > { %v6551_v9 = vpop.eup %6550  ;;  %v4946_v42 = vadd.f32 %v9097_v28, %v3989_v3  ;;  %v3998_v4 = vmul.f32 %v6549_v32, %v9012_v27  ;;  %6570 = vpow2.f32 %v5735_v44  ;;  %v9166_v28 = vadd.f32 %v8644_v6, %v8876_v11  ;;  %v9177_v3 = vpop.f32.mrb[96].mxu1 }
 0x2f6   : > { %v6553_v49 = vpop.eup %6552  ;;  %v4856_v31 = vadd.f32 %v4855_v46, %v4196_v51  ;;  %v4197_v16 = vmul.f32 %v6551_v9, %v9022_v50  ;;  %6572 = vpow2.f32 %v5537_v5  ;;  %v9171_v46 = vadd.f32 %v8652_v15, %v8061_v56  ;;  %v9179_v6 = vpop.f32.mrb[136].mxu0 }
 0x2f7   : > { %v6555_v37 = vpop.eup %6554  ;;  %v4910_v57 = vadd.f32 %v4909_v29, %v3998_v4  ;;  %v3058_v22 = vadd.f32 1.0, %v6553_v49  ;;  %6574 = vpow2.f32 %v5736_v43  ;;  %v9175_v29 = vadd.f32 %v8654_v35, %v8864_v53  ;;  %v9183_v15 = vpop.f32.mrb[97].mxu1 }
 0x2f8   : > { %v6557_v27 = vpop.eup %6556  ;;  %v4893_v44 = vadd.f32 %v4892_v55, %v4197_v16  ;;  %v3999_v25 = vmul.f32 %v6555_v37, %v9026_v1  ;;  %6576 = vpow2.f32 %v5538_v19  ;;  %v5746_v16 = vmul.f32 -1.442695, %v9160_v47  ;;  %v9185_v32 = vpop.f32.mrb[137].mxu0 }
 0x2f9   : > { %v6559_v50 = vpop.eup %6558  ;;  %6578 = vrcp.f32 %v3058_v22  ;;  %v3257_v5 = vadd.f32 1.0, %v6557_v27  ;;  %10829 = vst [vmem:[#allocation28_spill] sm:$0xff] %v9185_v32  ;;  %v5548_v35 = vmul.f32 -1.442695, %v9166_v28  ;;  %v5557_v49 = vmul.f32 -1.442695, %v9175_v29 }
 0x2fa   : > { %v6561_v43 = vpop.eup %6560  ;;  %v4947_v55 = vadd.f32 %v4946_v42, %v3999_v25  ;;  %v4206_v1 = vmul.f32 %v6559_v50, %v9039_v23  ;;  %6580 = vpow2.f32 %v5745_v59  ;;  %v5755_v42 = vmul.f32 -1.442695, %v9171_v46  ;;  %v9192_v37 = vpop.f32.mrb[98].mxu1 }
 0x2fb   : > { %v6563_v22 = vpop.eup %6562  ;;  %6582 = vrcp.f32 %v3257_v5  ;;  %v3059_v51 = vadd.f32 1.0, %v6561_v43  ;;  %10830 = vst [vmem:[#allocation45_spill] sm:$0xff] %v9192_v37  ;;  %v9194_v27 = vpop.f32.mrb[138].mxu0  ;;  %v10871_v37 = vld [vmem:[#allocation35_spill] sm:$0xff] }
 0x2fc   : > { %v6565_v19 = vpop.eup %6564  ;;  %v4857_v9 = vadd.f32 %v4856_v31, %v4206_v1  ;;  %v4008_v4 = vmul.f32 %v6563_v22, %v9049_v20  ;;  %6584 = vpow2.f32 %v5547_v21  ;;  %10831 = vst [vmem:[#allocation46_spill] sm:$0xff] %v9194_v27  ;;  %v10832_v20 = vld [vmem:[#allocation11_spill] sm:$0xff]  ;;  %v9202_v1 = vpop.f32.mrb[99].mxu1  ;;  %v9393_v32 = vadd.f32 %v10871_v37, %v8876_v11 }
 0x2fd   : > { %v6567_v23 = vpop.eup %6566  ;;  %v4207_v59 = vmul.f32 %v6565_v19, %v9064_v63  ;;  %6586 = vrcp.f32 %v3059_v51  ;;  %v9199_v31 = vadd.f32 %v10832_v20, %v8073_v26  ;;  %10833 = vst [vmem:[#allocation11_spill] sm:$0xff] %v9202_v1 }
 0x2fe   : > { %v6569_v25 = vpop.eup %6568  ;;  %v4911_v50 = vadd.f32 %v4910_v57, %v4008_v4  ;;  %v4009_v5 = vmul.f32 %v6567_v23, %v9071_v45  ;;  %6588 = vpow2.f32 %v5746_v16  ;;  %v10834_v57 = vld [vmem:[#allocation10_spill] sm:$0xff] }
 0x2ff   : > { %v6571_v21 = vpop.eup %6570  ;;  %v4894_v43 = vadd.f32 %v4893_v44, %v4207_v59  ;;  %v4216_v63 = vmul.f32 %v6569_v25, %v9075_v58  ;;  %6590 = vpow2.f32 %v5548_v35  ;;  %v9206_v4 = vadd.f32 %v10834_v57, %v8876_v11  ;;  %v9215_v25 = vpop.f32.mrb[139].mxu0 }
 0x300   : > { %v6573_v22 = vpop.eup %6572  ;;  %v4948_v51 = vadd.f32 %v4947_v55, %v4009_v5  ;;  %v3266_v19 = vadd.f32 1.0, %v6571_v21  ;;  %6592 = vpow2.f32 %v5755_v42  ;;  %v9212_v44 = vadd.f32 %v8708_v39, %v8061_v56  ;;  %10835 = vst [vmem:[#allocation10_spill] sm:$0xff] %v9215_v25 }
 0x301   : > { %v6575_v45 = vpop.eup %6574  ;;  %v9208_v16 = vadd.f32 %v4857_v9, %v4216_v63  ;;  %v3068_v23 = vadd.f32 1.0, %v6573_v22  ;;  %6594 = vpow2.f32 %v5557_v49  ;;  %v5756_v55 = vmul.f32 -1.442695, %v9199_v31 }
 0x302   : > { %v6577_v58 = vpop.eup %6576  ;;  %6596 = vrcp.f32 %v3266_v19  ;;  %v3267_v35 = vadd.f32 1.0, %v6575_v45  ;;  %v5558_v49 = vmul.f32 -1.442695, %v9206_v4  ;;  %v5765_v21 = vmul.f32 -1.442695, %v9212_v44 }
 0x303   : > { %v6579_v59 = vpop.eup %6578  ;;  %6598 = vrcp.f32 %v3068_v23  ;;  %v3069_v42 = vadd.f32 1.0, %v6577_v58  ;;  %v9223_v57 = vadd.f32 %v8710_v52, %v8864_v53  ;;  %v9227_v23 = vadd.f32 %v8716_v40, %v8073_v26  ;;  %v10836_v58 = vld [vmem:[#allocation15_spill] sm:$0xff] }
 0x304   : > { %v6581_v5 = vpop.eup %6580  ;;  %v4018_v9 = vmul.f32 %v6579_v59, %v9090_v12  ;;  %6600 = vrcp.f32 %v3267_v35  ;;  %v9231_v35 = vadd.f32 %v10836_v58, %v8876_v11 }
 0x305   : > { %v6583_v20 = vpop.eup %6582  ;;  %6602 = vrcp.f32 %v3069_v42  ;;  %v3276_v39 = vadd.f32 1.0, %v6581_v5  ;;  %v5567_v58 = vmul.f32 -1.442695, %v9223_v57 }
 0x306   : > { %v6585_v63 = vpop.eup %6584  ;;  %v4912_v22 = vadd.f32 %v4911_v50, %v4018_v9  ;;  %v4217_v19 = vmul.f32 %v6583_v20, %v9095_v33  ;;  %6604 = vpow2.f32 %v5756_v55  ;;  %v10837_v55 = vld [vmem:[#allocation13_spill] sm:$0xff]  ;;  %v10839_v20 = vld [vmem:[#allocation3_spill] sm:$0xff] }
 0x307   : > { %v6587_v45 = vpop.eup %6586  ;;  %6606 = vrcp.f32 %v3276_v39  ;;  %v3078_v12 = vadd.f32 1.0, %v6585_v63  ;;  %v9236_v52 = vadd.f32 %v10837_v55, %v8061_v56  ;;  %v10838_v9 = vld [vmem:[#allocation17_spill] sm:$0xff]  ;;  %v9244_v39 = vadd.f32 %v10839_v20, %v8073_v26  ;;  %v9249_v56 = vpop.f32.mrb[140].mxu0 }
 0x308   : > { %v6589_v59 = vpop.eup %6588  ;;  %v4895_v50 = vadd.f32 %v4894_v43, %v4217_v19  ;;  %v4019_v33 = vmul.f32 %v6587_v45, %v9102_v14  ;;  %6608 = vpow2.f32 %v5558_v49  ;;  %v9240_v40 = vadd.f32 %v10838_v9, %v8864_v53  ;;  %v9247_v49 = vpop.f32.mrb[100].mxu1  ;;  %10841 = vst [vmem:[#allocation13_spill] sm:$0xff] %v9249_v56 }
 0x309   : > { %v6591_v42 = vpop.eup %6590  ;;  %6610 = vrcp.f32 %v3078_v12  ;;  %v3277_v5 = vadd.f32 1.0, %v6589_v59  ;;  %v897_v14 = vsub.s32 6, %v10774_v62  ;;  %10840 = vst [vmem:[#allocation15_spill] sm:$0xff] %v9247_v49  ;;  %v9252_v59 = vpop.f32.mrb[101].mxu1 }
 0x30a   : > { %v6593_v63 = vpop.eup %6592  ;;  %v4949_v43 = vadd.f32 %v4948_v51, %v4019_v33  ;;  %v3079_v19 = vadd.f32 1.0, %v6591_v42  ;;  %6612 = vpow2.f32 %v5765_v21  ;;  %10842 = vst [vmem:[#allocation17_spill] sm:$0xff] %v9252_v59  ;;  %v5766_v51 = vmul.f32 -1.442695, %v9227_v23  ;;  %v9256_v33 = vpop.f32.mrb[141].mxu0 }
 0x30b   : > { %v6595_v45 = vpop.eup %6594  ;;  %6614 = vrcp.f32 %v3277_v5  ;;  %v3286_v12 = vadd.f32 1.0, %v6593_v63  ;;  %v5568_v21 = vmul.f32 -1.442695, %v9231_v35  ;;  %10843 = vst [vmem:[#allocation3_spill] sm:$0xff] %v9256_v33  ;;  %v5775_v5 = vmul.f32 -1.442695, %v9236_v52 }
 0x30c   : > { %v6597_v55 = vpop.eup %6596  ;;  %6616 = vrcp.f32 %v3079_v19  ;;  %v3088_v26 = vadd.f32 1.0, %v6595_v45  ;;  %v5577_v20 = vmul.f32 -1.442695, %v9240_v40  ;;  %v5776_v19 = vmul.f32 -1.442695, %v9244_v39  ;;  %v9266_v56 = vpop.f32.mrb[102].mxu1 }
 0x30d   : > { %v6599_v42 = vpop.eup %6598  ;;  %v4226_v9 = vmul.f32 %v6597_v55, %v9118_v13  ;;  %6618 = vrcp.f32 %v3286_v12  ;;  %v9264_v45 = vrot.slane %v8861_v48, %v897_v14  ;;  %10844 = vst [vmem:[#allocation53_spill] sm:$0xff] %v9266_v56  ;;  %v9268_v33 = vpop.f32.mrb[142].mxu0  ;;  %v10846_v55 = vld [vmem:[#allocation14_spill] sm:$0xff]  ;;  %v901_v48 = vsub.s32 7, %v10774_v62 }
 0x30e   : > { %v6601_v63 = vpop.eup %6600  ;;  %v4028_v59 = vmul.f32 %v6599_v42, %v9123_v17  ;;  %6620 = vrcp.f32 %v3088_v26  ;;  %10845 = vst [vmem:[#allocation54_spill] sm:$0xff] %v9268_v33  ;;  %v9274_v25 = vadd.f32 %v10846_v55, %v8876_v11  ;;  %v9278_v14 = vpop.f32.mrb[103].mxu1 }
 0x30f   : > { %v6603_v49 = vpop.eup %6602  ;;  %v4859_v13 = vadd.f32 %v9208_v16, %v4226_v9  ;;  %v4227_v12 = vmul.f32 %v6601_v63, %v9131_v0  ;;  %6622 = vpow2.f32 %v5567_v58  ;;  %10847 = vst [vmem:[#allocation14_spill] sm:$0xff] %v9278_v14  ;;  %v10848_v0 = vld [vmem:[#allocation5_spill] sm:$0xff]  ;;  %v9284_v58 = vpop.f32.mrb[143].mxu0 }
 0x310   : > { %v6605_v17 = vpop.eup %6604  ;;  %v4913_v26 = vadd.f32 %v4912_v22, %v4028_v59  ;;  %v4029_v42 = vmul.f32 %v6603_v49, %v9135_v24  ;;  %6624 = vpow2.f32 %v5766_v51  ;;  %v9282_v16 = vadd.f32 %v10848_v0, %v8864_v53  ;;  %10849 = vst [vmem:[#allocation5_spill] sm:$0xff] %v9284_v58  ;;  %v10850_v24 = vld [vmem:[#allocation16_spill] sm:$0xff] }
 0x311   : > { %v6607_v33 = vpop.eup %6606  ;;  %v4896_v56 = vadd.f32 %v4895_v50, %v4227_v12  ;;  %v3287_v1 = vadd.f32 1.0, %v6605_v17  ;;  %6626 = vpow2.f32 %v5568_v21  ;;  %v9289_v49 = vadd.f32 %v10850_v24, %v9264_v45  ;;  %v10851_v21 = vld [vmem:[#allocation31_spill] sm:$0xff] }
 0x312   : > { %v6609_v9 = vpop.eup %6608  ;;  %v4950_v63 = vadd.f32 %v4949_v43, %v4029_v42  ;;  %v4236_v22 = vmul.f32 %v6607_v33, %v9139_v41  ;;  %6628 = vpow2.f32 %v5775_v5  ;;  %v5578_v51 = vmul.f32 -1.442695, %v9274_v25  ;;  %v7329_v41 = vld [vmem:[%s10621_s4] sm:$0xff] }
 0x313   : > { %v6611_v59 = vpop.eup %6610  ;;  %6630 = vrcp.f32 %v3287_v1  ;;  %v3089_v50 = vadd.f32 1.0, %v6609_v9  ;;  %v9294_v12 = vadd.f32 %v10851_v21, %v8876_v11  ;;  %v9300_v33 = vrot.slane %v7329_v41, %v901_v48  ;;  %v10852_v21 = vld [vmem:[#allocation30_spill] sm:$0xff] }
 0x314   : > { %v6613_v55 = vpop.eup %6612  ;;  %v4860_v17 = vadd.f32 %v4859_v13, %v4236_v22  ;;  %v4038_v43 = vmul.f32 %v6611_v59, %v9145_v7  ;;  %6632 = vpow2.f32 %v5577_v20  ;;  %v5587_v42 = vmul.f32 -1.442695, %v9282_v16 }
 0x315   : > { %v6615_v5 = vpop.eup %6614  ;;  %6634 = vrcp.f32 %v3089_v50  ;;  %v3296_v1 = vadd.f32 1.0, %v6613_v55  ;;  %v5469_v13 = vmul.f32 -1.442695, %v9289_v49  ;;  %v5588_v22 = vmul.f32 -1.442695, %v9294_v12 }
 0x316   : > { %v6617_v0 = vpop.eup %6616  ;;  %v4914_v9 = vadd.f32 %v4913_v26, %v4038_v43  ;;  %v4237_v24 = vmul.f32 %v6615_v5, %v9160_v47  ;;  %6636 = vpow2.f32 %v5776_v19  ;;  %v9310_v55 = vadd.f32 %v10852_v21, %v9300_v33  ;;  %v9312_v26 = vpop.f32.mrb[104].mxu1 }
 0x317   : > { %v6619_v7 = vpop.eup %6618  ;;  %v4039_v20 = vmul.f32 %v6617_v0, %v9166_v28  ;;  %6638 = vrcp.f32 %v3296_v1  ;;  %10853 = vst [vmem:[#allocation16_spill] sm:$0xff] %v9312_v26  ;;  %v9314_v47 = vpop.f32.mrb[144].mxu0  ;;  %v10857_v1 = vld [vmem:[#allocation33_spill] sm:$0xff] }
 0x318   : > { %v6621_v48 = vpop.eup %6620  ;;  %v4897_v59 = vadd.f32 %v4896_v56, %v4237_v24  ;;  %v4246_v50 = vmul.f32 %v6619_v7, %v9171_v46  ;;  %6640 = vpow2.f32 %v5578_v51  ;;  %10854 = vst [vmem:[#allocation31_spill] sm:$0xff] %v9314_v47  ;;  %v9317_v41 = vpop.f32.mrb[105].mxu1  ;;  %v9323_v0 = vadd.f32 %v10857_v1, %v8864_v53 }
 0x319   : > { %v6623_v19 = vpop.eup %6622  ;;  %v4951_v43 = vadd.f32 %v4950_v63, %v4039_v20  ;;  %v4048_v28 = vmul.f32 %v6621_v48, %v9175_v29  ;;  %6642 = vpow2.f32 %v5587_v42  ;;  %10855 = vst [vmem:[#allocation30_spill] sm:$0xff] %v9317_v41  ;;  %v9319_v5 = vpop.f32.mrb[145].mxu0  ;;  %v5470_v42 = vmul.f32 -1.442695, %v9310_v55  ;;  %v10858_v20 = vld [vmem:[#allocation32_spill] sm:$0xff] }
 0x31a   : > { %10856 = vst [vmem:[#allocation55_spill] sm:$0xff] %v9319_v5  ;;  %v6625_v56 = vpop.eup %6624  ;;  %v4861_v46 = vadd.f32 %v4860_v17, %v4246_v50  ;;  %v3098_v51 = vadd.f32 1.0, %v6623_v19  ;;  %6644 = vpow2.f32 %v5469_v13  ;;  %v9330_v48 = vadd.f32 %v10858_v20, %v9264_v45 }
 0x31b   : > { %v6627_v24 = vpop.eup %6626  ;;  %v9325_v7 = vadd.f32 %v4914_v9, %v4048_v28  ;;  %v3297_v21 = vadd.f32 1.0, %v6625_v56  ;;  %6646 = vpow2.f32 %v5588_v22  ;;  %v5597_v9 = vmul.f32 -1.442695, %v9323_v0  ;;  %v9334_v28 = vpop.f32.mrb[106].mxu1 }
 0x31c   : > { %v6629_v63 = vpop.eup %6628  ;;  %6648 = vrcp.f32 %v3098_v51  ;;  %v3099_v29 = vadd.f32 1.0, %v6627_v24  ;;  %10859 = vst [vmem:[#allocation33_spill] sm:$0xff] %v9334_v28  ;;  %v9336_v51 = vpop.f32.mrb[146].mxu0  ;;  %v7355_v5 = vmov 1966171168  }
 0x31d   : > { %v6631_v17 = vpop.eup %6630  ;;  %6650 = vrcp.f32 %v3297_v21  ;;  %v3306_v13 = vadd.f32 1.0, %v6629_v63  ;;  %10860 = vst [vmem:[#allocation32_spill] sm:$0xff] %v9336_v51  ;;  %v5479_v21 = vmul.f32 -1.442695, %v9330_v48 }
 0x31e   : > { %v6633_v50 = vpop.eup %6632  ;;  %v4247_v19 = vmul.f32 %v6631_v17, %v9199_v31  ;;  %6652 = vrcp.f32 %v3099_v29  ;;  %v9340_v31 = vunpack.c.l.s4 %v7355_v5  ;;  %v10861_v17 = vld [vmem:[#allocation18_spill] sm:$0xff] }
 0x31f   : > { %v6635_v22 = vpop.eup %6634  ;;  %6654 = vrcp.f32 %v3306_v13  ;;  %v3108_v56 = vadd.f32 1.0, %v6633_v50  ;;  %v9344_v28 = vadd.f32 %v10861_v17, %v8876_v11 }
 0x320   : > { %v6637_v1 = vpop.eup %6636  ;;  %v4898_v24 = vadd.f32 %v4897_v59, %v4247_v19  ;;  %v4049_v20 = vmul.f32 %v6635_v22, %v9206_v4  ;;  %6656 = vpow2.f32 %v5470_v42  ;;  %v10862_v4 = vld [vmem:[#allocation34_spill] sm:$0xff]  ;;  %v9351_v42 = vpop.f32.mrb[107].mxu1 }
 0x321   : > { %v6639_v63 = vpop.eup %6638  ;;  %6658 = vrcp.f32 %v3108_v56  ;;  %v3307_v29 = vadd.f32 1.0, %v6637_v1  ;;  %v9349_v59 = vadd.f32 %v10862_v4, %v9300_v33  ;;  %10863 = vst [vmem:[#allocation18_spill] sm:$0xff] %v9351_v42  ;;  %v9353_v19 = vpop.f32.mrb[147].mxu0  ;;  %v10865_v56 = vld [vmem:[#allocation19_spill] sm:$0xff]  ;;  %v10867_v42 = vld [vmem:[#allocation22_spill] sm:$0xff] }
 0x322   : > { %v6641_v13 = vpop.eup %6640  ;;  %v4952_v50 = vadd.f32 %v4951_v43, %v4049_v20  ;;  %v4256_v51 = vmul.f32 %v6639_v63, %v9212_v44  ;;  %6660 = vpow2.f32 %v5597_v9  ;;  %10864 = vst [vmem:[#allocation34_spill] sm:$0xff] %v9353_v19  ;;  %v9357_v1 = vadd.f32 %v10865_v56, %v8864_v53  ;;  %v10866_v43 = vld [vmem:[#allocation20_spill] sm:$0xff] }
 0x323   : > { %v6643_v5 = vpop.eup %6642  ;;  %6662 = vrcp.f32 %v3307_v29  ;;  %v3109_v22 = vadd.f32 1.0, %v6641_v13  ;;  %v9361_v20 = vadd.f32 %v10866_v43, %v9264_v45  ;;  %v5598_v19 = vmul.f32 -1.442695, %v9344_v28 }
 0x324   : > { %v6645_v44 = vpop.eup %6644  ;;  %v4862_v9 = vadd.f32 %v4861_v46, %v4256_v51  ;;  %v3118_v63 = vadd.f32 1.0, %v6643_v5  ;;  %6664 = vpow2.f32 %v5479_v21  ;;  %v5480_v56 = vmul.f32 -1.442695, %v9349_v59  ;;  %v10868_v5 = vld [vmem:[#allocation4_spill] sm:$0xff] }
 0x325   : > { %v6647_v17 = vpop.eup %6646  ;;  %6666 = vrcp.f32 %v3109_v22  ;;  %v9368_v41 = vadd.f32 %v10867_v42, %v8876_v11  ;;  %v5607_v51 = vmul.f32 -1.442695, %v9357_v1  ;;  %v5489_v21 = vmul.f32 -1.442695, %v9361_v20  ;;  %v10870_v42 = vld [vmem:[#allocation47_spill] sm:$0xff] }
 0x326   : > { %v6649_v29 = vpop.eup %6648  ;;  %6668 = vrcp.f32 %v3118_v63  ;;  %v3119_v13 = vadd.f32 1.0, %v6647_v17  ;;  %v9375_v22 = vadd.f32 %v10868_v5, %v9300_v33  ;;  %v10869_v17 = vld [vmem:[#allocation21_spill] sm:$0xff]  ;;  %v9384_v26 = vadd.f32 %v10870_v42, %v9264_v45 }
 0x327   : > { %v6651_v43 = vpop.eup %6650  ;;  %v4058_v46 = vmul.f32 %v6649_v29, %v9223_v57  ;;  %v9380_v47 = vadd.f32 %v10869_v17, %v8864_v53  ;;  %v3000_v14 = vadd.f32 1.0, %v6645_v44 }
 0x328   : > { %v6653_v4 = vpop.eup %6652  ;;  %v4257_v63 = vmul.f32 %v6651_v43, %v9227_v23  ;;  %6670 = vrcp.f32 %v3119_v13  ;;  %v5608_v13 = vmul.f32 -1.442695, %v9368_v41  ;;  %v5490_v42 = vmul.f32 -1.442695, %v9375_v22 }
 0x329   : > { %v6655_v57 = vpop.eup %6654  ;;  %v4916_v29 = vadd.f32 %v9325_v7, %v4058_v46  ;;  %v4059_v58 = vmul.f32 %v6653_v4, %v9231_v35  ;;  %6672 = vpow2.f32 %v5598_v19  ;;  %v9395_v7 = vpop.f32.mrb[108].mxu1  ;;  %v5617_v44 = vmul.f32 -1.442695, %v9380_v47 }
 0x32a   : > { %v6657_v5 = vpop.eup %6656  ;;  %v4899_v27 = vadd.f32 %v4898_v24, %v4257_v63  ;;  %v4266_v23 = vmul.f32 %v6655_v57, %v9236_v52  ;;  %6674 = vpow2.f32 %v5480_v56  ;;  %v9397_v35 = vpop.f32.mrb[148].mxu0  ;;  %v5499_v46 = vmul.f32 -1.442695, %v9384_v26 }
 0x32b   : > { %v6659_v43 = vpop.eup %6658  ;;  %v4953_v17 = vadd.f32 %v4952_v50, %v4059_v58  ;;  %6676 = vpow2.f32 %v5607_v51  ;;  %10872 = vst [vmem:[#allocation19_spill] sm:$0xff] %v9397_v35  ;;  %v9401_v4 = vpop.f32.mrb[109].mxu1  ;;  %v3001_v56 = vadd.f32 1.0, %v6657_v5 }
 0x32c   : > { %v6661_v19 = vpop.eup %6660  ;;  %v4863_v24 = vadd.f32 %v4862_v9, %v4266_v23  ;;  %v4068_v52 = vmul.f32 %v6659_v43, %v9240_v40  ;;  %6678 = vpow2.f32 %v5489_v21  ;;  %10873 = vst [vmem:[#allocation20_spill] sm:$0xff] %v9401_v4  ;;  %v9403_v58 = vpop.f32.mrb[149].mxu0 }
 0x32d   : > { %10874 = vst [vmem:[#allocation22_spill] sm:$0xff] %v9403_v58  ;;  %v6663_v50 = vpop.eup %6662  ;;  %6680 = vrcp.f32 %v3000_v14  ;;  %v3128_v37 = vadd.f32 1.0, %v6661_v19  ;;  %v9406_v51 = vpop.f32.mrb[110].mxu1  ;;  %v5618_v58 = vmul.f32 -1.442695, %v9393_v32  ;;  %v10877_v14 = vld [vmem:[#allocation48_spill] sm:$0xff] }
 0x32e   : > { %10875 = vst [vmem:[#allocation4_spill] sm:$0xff] %v9406_v51  ;;  %v9408_v63 = vpop.f32.mrb[150].mxu0  ;;  %v6665_v9 = vpop.eup %6664  ;;  %v4864_v57 = vrot.slane %v4863_v24, 4  ;;  %v4917_v40 = vadd.f32 %v4916_v29, %v4068_v52  ;;  %v4267_v21 = vmul.f32 %v6663_v50, %v9244_v39  ;;  %6682 = vpow2.f32 %v5608_v13  ;;  %v10878_v39 = vld [vmem:[#allocation23_spill] sm:$0xff] }
 0x32f   : > { %10876 = vst [vmem:[#allocation21_spill] sm:$0xff] %v9408_v63  ;;  %v6667_v23 = vpop.eup %6666  ;;  %6684 = vrcp.f32 %v3128_v37  ;;  %v3010_v43 = vadd.f32 1.0, %v6665_v9  ;;  %v9414_v5 = vadd.f32 %v10877_v14, %v9300_v33  ;;  %v9420_v13 = vadd.f32 %v10878_v39, %v8864_v53  ;;  %v10879_v52 = vld [vmem:[#allocation7_spill] sm:$0xff]  ;;  %v9426_v37 = vpop.f32.mrb[111].mxu1 }
 0x330   : > { %v6669_v19 = vpop.eup %6668  ;;  %v4865_v4 = vadd.f32 %v4864_v57, %v4863_v24  ;;  %v4900_v51 = vadd.f32 %v4899_v27, %v4267_v21  ;;  %v4069_v63 = vmul.f32 %v6667_v23, %v9274_v25  ;;  %6686 = vpow2.f32 %v5490_v42  ;;  %10880 = vst [vmem:[#allocation47_spill] sm:$0xff] %v9426_v37  ;;  %v9428_v9 = vpop.f32.mrb[151].mxu0  ;;  %v10882_v23 = vld [vmem:[#allocation36_spill] sm:$0xff] }
 0x331   : > { %v4078_v29 = vmul.f32 %v6669_v19, %v9282_v16  ;;  %6688 = vrcp.f32 %v3010_v43  ;;  %v9424_v50 = vadd.f32 %v10879_v52, %v9264_v45  ;;  %10881 = vst [vmem:[#allocation35_spill] sm:$0xff] %v9428_v9  ;;  %v9433_v43 = vadd.f32 %v10882_v23, %v8876_v11  ;;  %v10888_v23 = vld [vmem:[#allocation38_spill] sm:$0xff] }
 0x332   : > { %v6671_v24 = vpop.eup %6670  ;;  %v4866_v27 = vrot.slane %v4865_v4, 2  ;;  %v4901_v57 = vrot.slane %v4900_v51, 4  ;;  %v4954_v25 = vadd.f32 %v4953_v17, %v4069_v63  ;;  %6690 = vrcp.f32 %v3001_v56 }
 0x333   : > { %v6673_v42 = vpop.eup %6672  ;;  %v4918_v16 = vadd.f32 %v4917_v40, %v4078_v29  ;;  %v4079_v21 = vmul.f32 %v6671_v24, %v9294_v12  ;;  %6692 = vpow2.f32 %v5617_v44  ;;  %v5500_v17 = vmul.f32 -1.442695, %v9414_v5  ;;  %v9444_v24 = vpop.f32.mrb[152].mxu0 }
 0x334   : > { %v6675_v14 = vpop.eup %6674  ;;  %v4867_v19 = vadd.f32 %v4866_v27, %v4865_v4  ;;  %v4902_v39 = vadd.f32 %v4901_v57, %v4900_v51  ;;  %v3129_v52 = vadd.f32 1.0, %v6673_v42  ;;  %6694 = vpow2.f32 %v5499_v46  ;;  %10885 = vst [vmem:[#allocation23_spill] sm:$0xff] %v9444_v24 }
 0x335   : > { %v6677_v9 = vpop.eup %6676  ;;  %v9435_v37 = vadd.f32 %v4954_v25, %v4079_v21  ;;  %v3011_v35 = vadd.f32 1.0, %v6675_v14  ;;  %6696 = vpow2.f32 %v5618_v58  ;;  %v10883_v29 = vunpack.c.0.s8 %v9340_v31  ;;  %v9446_v58 = vpop.f32.mrb[112].mxu1  ;;  %v10887_v21 = vld [vmem:[#allocation37_spill] sm:$0xff] }
 0x336   : > { %v6679_v56 = vpop.eup %6678  ;;  %v4868_v63 = vrot.slane %v4867_v19, 1  ;;  %v4903_v12 = vrot.slane %v4902_v39, 2  ;;  %6698 = vrcp.f32 %v3129_v52  ;;  %v3138_v44 = vadd.f32 1.0, %v6677_v9  ;;  %10886 = vst [vmem:[#allocation7_spill] sm:$0xff] %v9446_v58  ;;  %v9466_v24 = vpop.f32.mrb[113].mxu1 }
 0x337   : > { %v6681_v40 = vpop.eup %6680  ;;  %v9441_v4 = vsub.s32 %v10883_v29, %v10774_v62  ;;  %6700 = vrcp.f32 %v3011_v35  ;;  %v3020_v46 = vadd.f32 1.0, %v6679_v56  ;;  %v5627_v51 = vmul.f32 -1.442695, %v9420_v13  ;;  %10890 = vst [vmem:[#allocation36_spill] sm:$0xff] %v9466_v24 }
 0x338   : > { %v6683_v27 = vpop.eup %6682  ;;  %v4904_v57 = vadd.f32 %v4903_v12, %v4902_v39  ;;  %6702 = vrcp.f32 %v3138_v44  ;;  %v5509_v25 = vmul.f32 -1.442695, %v9424_v50  ;;  %v5628_v9 = vmul.f32 -1.442695, %v9433_v43  ;;  %v9459_v12 = vpop.f32.mrb[153].mxu0 }
 0x339   : > { %10884 = vst [vmem:[#allocation48_spill] sm:$0xff] %v9441_v4  ;;  %v6685_v42 = vpop.eup %6684  ;;  %6704 = vrcp.f32 %v3020_v46  ;;  %v3139_v31 = vadd.f32 1.0, %v6683_v27  ;;  %v9452_v35 = vadd.f32 %v10887_v21, %v9300_v33  ;;  %v9456_v14 = vadd.f32 %v10888_v23, %v8864_v53  ;;  %v10889_v21 = vld [vmem:[#allocation39_spill] sm:$0xff] }
 0x33a   : > { %v6687_v52 = vpop.eup %6686  ;;  %v4869_v56 = vadd.f32 %v4868_v63, %v4867_v19  ;;  %v4905_v29 = vrot.slane %v4904_v57, 1  ;;  %v4088_v39 = vmul.f32 %v6685_v42, %v9323_v0  ;;  %6706 = vpow2.f32 %v5500_v17 }
 0x33b   : > { %v6689_v44 = vpop.eup %6688  ;;  %v3960_v46 = vmul.f32 %v6681_v40, %v9289_v49  ;;  %6708 = vrcp.f32 %v3139_v31  ;;  %v3021_v27 = vadd.f32 1.0, %v6687_v52  ;;  %v9464_v58 = vadd.f32 %v10889_v21, %v9264_v45  ;;  %v10891_v40 = vld [vmem:[#allocation49_spill] sm:$0xff]  ;;  %v9475_v31 = vpop.f32.mrb[154].mxu0 }
 0x33c   : > { %v6691_v23 = vpop.eup %6690  ;;  %v4906_v62 = vadd.f32 %v4905_v29, %v4904_v57  ;;  %v4919_v19 = vadd.f32 %v4918_v16, %v4088_v39  ;;  %v3970_v63 = vmul.f32 %v6689_v44, %v9330_v48  ;;  %6710 = vpow2.f32 %v5627_v51  ;;  %v10892_v29 = vld [vmem:[#allocation50_spill] sm:$0xff] }
 0x33d   : > { %v6693_v0 = vpop.eup %6692  ;;  %6712 = vrcp.f32 %v3021_v27  ;;  %v5510_v17 = vmul.f32 -1.442695, %v9452_v35  ;;  %v5637_v49 = vmul.f32 -1.442695, %v9456_v14  ;;  %v9473_v42 = vadd.f32 %v10891_v40, %v8876_v11 }
 0x33e   : > { %v6695_v52 = vpop.eup %6694  ;;  %v5140_v21 = vcombine.low %v4869_v56, %v4906_v62  ;;  %v4981_v24 = vadd.f32 %v3970_v63, %v3960_v46  ;;  %v3148_v57 = vadd.f32 1.0, %v6693_v0  ;;  %6714 = vpow2.f32 %v5509_v25  ;;  %v9491_v56 = vpop.f32.mrb[114].mxu1  ;;  %v10896_v0 = vld [vmem:[#allocation25_spill] sm:$0xff] }
 0x33f   : > { %v6697_v16 = vpop.eup %6696  ;;  %v3030_v48 = vadd.f32 1.0, %v6695_v52  ;;  %6716 = vpow2.f32 %v5628_v9  ;;  %v5519_v51 = vmul.f32 -1.442695, %v9464_v58  ;;  %v9480_v39 = vadd.f32 %v10892_v29, %v9300_v33  ;;  %v9505_v29 = vpop.f32.mrb[115].mxu1 }
 0x340   : > { %v6699_v44 = vpop.eup %6698  ;;  %v10893_v27 = vcombine.low %v9030_v54, %v9034_v61  ;;  %v9489_v62 = vrot.slane %v5140_v21, %v9441_v4  ;;  %6718 = vrcp.f32 %v3148_v57  ;;  %v3149_v25 = vadd.f32 1.0, %v6697_v16  ;;  %v9503_v16 = vpop.f32.mrb[155].mxu0 }
 0x341   : > { %v6701_v9 = vpop.eup %6700  ;;  %v4089_v46 = vmul.f32 %v6699_v44, %v9344_v28  ;;  %6720 = vrcp.f32 %v3030_v48  ;;  %v5638_v63 = vmul.f32 -1.442695, %v9473_v42  ;;  %v9497_v52 = vadd.f32 %v10896_v0, %v8864_v53 }
 0x342   : > { %v9486_v40 = vrot.slane %v10893_v27, %v9441_v4  ;;  %10895 = vst [vmem:[#allocation38_spill] sm:$0xff] %v9489_v62  ;;  %v6703_v54 = vpop.eup %6702  ;;  %v3961_v21 = vmul.f32 %v6691_v23, %v9310_v55  ;;  %v3971_v57 = vmul.f32 %v6701_v9, %v9349_v59  ;;  %6722 = vrcp.f32 %v3149_v25  ;;  %v10897_v55 = vld [vmem:[#allocation51_spill] sm:$0xff] }
 0x343   : > { %v6705_v28 = vpop.eup %6704  ;;  %v4956_v48 = vadd.f32 %v9435_v37, %v4089_v46  ;;  %v4098_v44 = vmul.f32 %v6703_v54, %v9357_v1  ;;  %6724 = vpow2.f32 %v5510_v17  ;;  %v5520_v27 = vmul.f32 -1.442695, %v9480_v39  ;;  %v10898_v37 = vld [vmem:[#allocation6_spill] sm:$0xff] }
 0x344   : > { %10894 = vst [vmem:[#allocation37_spill] sm:$0xff] %v9486_v40  ;;  %v6707_v0 = vpop.eup %6706  ;;  %v5018_v4 = vadd.f32 %v3971_v57, %v3961_v21  ;;  %v3980_v61 = vmul.f32 %v6705_v28, %v9361_v20  ;;  %6726 = vpow2.f32 %v5637_v49  ;;  %v9513_v59 = vadd.f32 %v10897_v55, %v9264_v45  ;;  %v10899_v57 = vld [vmem:[#allocation52_spill] sm:$0xff] }
 0x345   : > { %v6709_v23 = vpop.eup %6708  ;;  %v4920_v25 = vadd.f32 %v4919_v19, %v4098_v44  ;;  %v3031_v9 = vadd.f32 1.0, %v6707_v0  ;;  %6728 = vpow2.f32 %v5519_v51  ;;  %v9517_v46 = vadd.f32 %v10898_v37, %v8876_v11  ;;  %v9526_v0 = vpop.f32.mrb[156].mxu0 }
 0x346   : > { %v6711_v1 = vpop.eup %6710  ;;  %v4982_v17 = vadd.f32 %v4981_v24, %v3980_v61  ;;  %v4099_v54 = vmul.f32 %v6709_v23, %v9368_v41  ;;  %6730 = vpow2.f32 %v5638_v63  ;;  %v5647_v20 = vmul.f32 -1.442695, %v9497_v52  ;;  %v9528_v24 = vpop.f32.mrb[116].mxu1 }
 0x347   : > { %v6713_v49 = vpop.eup %6712  ;;  %6732 = vrcp.f32 %v3031_v9  ;;  %v3158_v21 = vadd.f32 1.0, %v6711_v1  ;;  %v9523_v28 = vadd.f32 %v10899_v57, %v9300_v33  ;;  %v5529_v61 = vmul.f32 -1.442695, %v9513_v59  ;;  %v9531_v55 = vpop.f32.mrb[157].mxu0  ;;  %v10900_v57 = vld [vmem:[#allocation24_spill] sm:$0xff] }
 0x348   : > { %v6715_v19 = vpop.eup %6714  ;;  %v4957_v51 = vadd.f32 %v4956_v48, %v4099_v54  ;;  %v3981_v44 = vmul.f32 %v6713_v49, %v9375_v22  ;;  %6734 = vpow2.f32 %v5520_v27  ;;  %v5648_v48 = vmul.f32 -1.442695, %v9517_v46  ;;  %v9534_v1 = vpop.f32.mrb[117].mxu1 }
 0x349   : > { %v6717_v41 = vpop.eup %6716  ;;  %6736 = vrcp.f32 %v3158_v21  ;;  %v3040_v63 = vadd.f32 1.0, %v6715_v19  ;;  %v5530_v54 = vmul.f32 -1.442695, %v9523_v28  ;;  %v9541_v19 = vadd.f32 %v10900_v57, %v8864_v53 }
 0x34a   : > { %v6719_v23 = vpop.eup %6718  ;;  %v5019_v9 = vadd.f32 %v5018_v4, %v3981_v44  ;;  %v3159_v37 = vadd.f32 1.0, %v6717_v41  ;;  %6738 = vpow2.f32 %v5647_v20  ;;  %v9543_v4 = vpop.f32.mrb[158].mxu0 }
 0x34b   : > { %v6721_v22 = vpop.eup %6720  ;;  %v4108_v27 = vmul.f32 %v6719_v23, %v9380_v47  ;;  %6740 = vrcp.f32 %v3040_v63  ;;  %10901 = vst [vmem:[#allocation39_spill] sm:$0xff] %v9543_v4  ;;  %v9545_v20 = vpop.f32.mrb[118].mxu1 }
 0x34c   : > { %v6723_v49 = vpop.eup %6722  ;;  %v3990_v21 = vmul.f32 %v6721_v22, %v9384_v26  ;;  %6742 = vrcp.f32 %v3159_v37  ;;  %10902 = vst [vmem:[#allocation49_spill] sm:$0xff] %v9545_v20  ;;  %v10903_v26 = vld [vmem:[#allocation40_spill] sm:$0xff] }
 0x34d   : > { %v6725_v44 = vpop.eup %6724  ;;  %v4921_v41 = vadd.f32 %v4920_v25, %v4108_v27  ;;  %v4109_v62 = vmul.f32 %v6723_v49, %v9393_v32  ;;  %6744 = vpow2.f32 %v5529_v61  ;;  %v9550_v37 = vadd.f32 %v10903_v26, %v9264_v45  ;;  %v10904_v32 = vld [vmem:[#allocation41_spill] sm:$0xff] }
 0x34e   : > { %v6727_v47 = vpop.eup %6726  ;;  %v4983_v63 = vadd.f32 %v4982_v17, %v3990_v21  ;;  %v3041_v23 = vadd.f32 1.0, %v6725_v44  ;;  %6746 = vpow2.f32 %v5648_v48  ;;  %v5657_v25 = vmul.f32 -1.442695, %v9541_v19  ;;  %v10905_v27 = vld [vmem:[#allocation9_spill] sm:$0xff] }
 0x34f   : > { %v6729_v22 = vpop.eup %6728  ;;  %v4958_v57 = vadd.f32 %v4957_v51, %v4109_v62  ;;  %v3168_v40 = vadd.f32 1.0, %v6727_v47  ;;  %6748 = vpow2.f32 %v5530_v54  ;;  %v9555_v61 = vadd.f32 %v10904_v32, %v8876_v11  ;;  %v10906_v47 = vld [vmem:[#allocation27_spill] sm:$0xff]  ;;  %v9569_v32 = vpop.f32.mrb[159].mxu0 }
 0x350   : > { %v6731_v4 = vpop.eup %6730  ;;  %6750 = vrcp.f32 %v3041_v23  ;;  %v3050_v20 = vadd.f32 1.0, %v6729_v22  ;;  %v9559_v49 = vadd.f32 %v10905_v27, %v9300_v33  ;;  %v5539_v51 = vmul.f32 -1.442695, %v9550_v37  ;;  %10907 = vst [vmem:[#allocation50_spill] sm:$0xff] %v9569_v32 }
 0x351   : > { %v6733_v17 = vpop.eup %6732  ;;  %6752 = vrcp.f32 %v3168_v40  ;;  %v3169_v48 = vadd.f32 1.0, %v6731_v4  ;;  %v9565_v23 = vadd.f32 %v10906_v47, %v8864_v53  ;;  %v5658_v22 = vmul.f32 -1.442695, %v9555_v61 }
 0x352   : > { %v6735_v21 = vpop.eup %6734  ;;  %v3991_v62 = vmul.f32 %v6733_v17, %v9414_v5  ;;  %6754 = vrcp.f32 %v3050_v20  ;;  %v5540_v17 = vmul.f32 -1.442695, %v9559_v49 }
 0x353   : > { %v6737_v54 = vpop.eup %6736  ;;  %6756 = vrcp.f32 %v3169_v48  ;;  %v3051_v44 = vadd.f32 1.0, %v6735_v21  ;;  %v9572_v48 = vpop.f32.mrb[119].mxu1 }
 0x354   : > { %v6739_v26 = vpop.eup %6738  ;;  %v5020_v40 = vadd.f32 %v5019_v9, %v3991_v62  ;;  %v4118_v4 = vmul.f32 %v6737_v54, %v9420_v13  ;;  %6758 = vpow2.f32 %v5657_v25  ;;  %10908 = vst [vmem:[#allocation25_spill] sm:$0xff] %v9572_v48  ;;  %v10909_v9 = vld [vmem:[#allocation26_spill] sm:$0xff]  ;;  %v5667_v54 = vmul.f32 -1.442695, %v9565_v23 }
 0x355   : > { %v6741_v5 = vpop.eup %6740  ;;  %6760 = vrcp.f32 %v3051_v44  ;;  %v3178_v20 = vadd.f32 1.0, %v6739_v26  ;;  %v9577_v13 = vadd.f32 %v10909_v9, %v9264_v45  ;;  %v10910_v44 = vld [vmem:[#allocation29_spill] sm:$0xff] }
 0x356   : > { %v6743_v27 = vpop.eup %6742  ;;  %v4922_v21 = vadd.f32 %v4921_v41, %v4118_v4  ;;  %v4000_v47 = vmul.f32 %v6741_v5, %v9424_v50  ;;  %6762 = vpow2.f32 %v5539_v51  ;;  %v9583_v26 = vadd.f32 %v10910_v44, %v8876_v11  ;;  %v10911_v50 = vld [vmem:[#allocation42_spill] sm:$0xff] }
 0x357   : > { %v6745_v25 = vpop.eup %6744  ;;  %v4119_v62 = vmul.f32 %v6743_v27, %v9433_v43  ;;  %6764 = vrcp.f32 %v3178_v20  ;;  %v9587_v51 = vadd.f32 %v10911_v50, %v9300_v33  ;;  %v9591_v43 = vadd.f32 %v9060_v38, %v8864_v53 }
 0x358   : > { %v6747_v48 = vpop.eup %6746  ;;  %v4984_v32 = vadd.f32 %v4983_v63, %v4000_v47  ;;  %v3060_v41 = vadd.f32 1.0, %v6745_v25  ;;  %6766 = vpow2.f32 %v5658_v22  ;;  %v5549_v44 = vmul.f32 -1.442695, %v9577_v13 }
 0x359   : > { %v6749_v4 = vpop.eup %6748  ;;  %v4959_v5 = vadd.f32 %v4958_v57, %v4119_v62  ;;  %v3179_v9 = vadd.f32 1.0, %v6747_v48  ;;  %6768 = vpow2.f32 %v5540_v17  ;;  %v5668_v47 = vmul.f32 -1.442695, %v9583_v26  ;;  %v9600_v17 = vpop.f32.mrb[160].mxu0 }
 0x35a   : > { %v6751_v20 = vpop.eup %6750  ;;  %6770 = vrcp.f32 %v3060_v41  ;;  %v3061_v27 = vadd.f32 1.0, %v6749_v4  ;;  %v9598_v57 = vadd.f32 %v9066_v2, %v9264_v45  ;;  %10912 = vst [vmem:[#allocation51_spill] sm:$0xff] %v9600_v17  ;;  %v9602_v48 = vpop.f32.mrb[120].mxu1  ;;  %v5550_v62 = vmul.f32 -1.442695, %v9587_v51 }
 0x35b   : > { %v6753_v63 = vpop.eup %6752  ;;  %v4001_v22 = vmul.f32 %v6751_v20, %v9452_v35  ;;  %6772 = vrcp.f32 %v3179_v9  ;;  %10913 = vst [vmem:[#allocation6_spill] sm:$0xff] %v9602_v48  ;;  %v9606_v41 = vpop.f32.mrb[161].mxu0  ;;  %v5677_v2 = vmul.f32 -1.442695, %v9591_v43 }
 0x35c   : > { %v6755_v38 = vpop.eup %6754  ;;  %v4128_v25 = vmul.f32 %v6753_v63, %v9456_v14  ;;  %6774 = vrcp.f32 %v3061_v27  ;;  %v9608_v35 = vpop.f32.mrb[121].mxu1  ;;  %v9615_v14 = vadd.f32 %v9078_v36, %v8876_v11 }
 0x35d   : > { %10914 = vst [vmem:[#allocation52_spill] sm:$0xff] %v9608_v35  ;;  %v6757_v50 = vpop.eup %6756  ;;  %v5021_v4 = vadd.f32 %v5020_v40, %v4001_v22  ;;  %v4010_v9 = vmul.f32 %v6755_v38, %v9464_v58  ;;  %6776 = vpow2.f32 %v5667_v54  ;;  %v9617_v27 = vpop.f32.mrb[162].mxu0  ;;  %v5559_v58 = vmul.f32 -1.442695, %v9598_v57 }
 0x35e   : > { %v6759_v20 = vpop.eup %6758  ;;  %v4923_v17 = vadd.f32 %v4922_v21, %v4128_v25  ;;  %v4129_v48 = vmul.f32 %v6757_v50, %v9473_v42  ;;  %6778 = vpow2.f32 %v5549_v44  ;;  %v9619_v63 = vpop.f32.mrb[122].mxu1  ;;  %v9625_v42 = vadd.f32 %v9083_v60, %v9300_v33 }
 0x35f   : > { %v6761_v35 = vpop.eup %6760  ;;  %v4985_v40 = vadd.f32 %v4984_v32, %v4010_v9  ;;  %v3188_v22 = vadd.f32 1.0, %v6759_v20  ;;  %6780 = vpow2.f32 %v5668_v47  ;;  %v9627_v36 = vpop.f32.mrb[163].mxu0  ;;  %v9631_v32 = vadd.f32 %v9104_v10, %v8864_v53 }
 0x360   : > { %v6763_v54 = vpop.eup %6762  ;;  %v4960_v38 = vadd.f32 %v4959_v5, %v4129_v48  ;;  %v4011_v21 = vmul.f32 %v6761_v35, %v9480_v39  ;;  %6782 = vpow2.f32 %v5550_v62  ;;  %v9633_v47 = vpop.f32.mrb[123].mxu1  ;;  %v5678_v62 = vmul.f32 -1.442695, %v9615_v14 }
 0x361   : > { %v6765_v44 = vpop.eup %6764  ;;  %6784 = vrcp.f32 %v3188_v22  ;;  %v3070_v25 = vadd.f32 1.0, %v6763_v54  ;;  %v5560_v22 = vmul.f32 -1.442695, %v9625_v42 }
 0x362   : > { %v6767_v50 = vpop.eup %6766  ;;  %v5022_v5 = vadd.f32 %v5021_v4, %v4011_v21  ;;  %v4138_v39 = vmul.f32 %v6765_v44, %v9497_v52  ;;  %6786 = vpow2.f32 %v5677_v2  ;;  %v5687_v4 = vmul.f32 -1.442695, %v9631_v32 }
 0x363   : > { %v6769_v48 = vpop.eup %6768  ;;  %6788 = vrcp.f32 %v3070_v25  ;;  %v3189_v60 = vadd.f32 1.0, %v6767_v50  ;;  %v9643_v2 = vadd.f32 %v9106_v8, %v9264_v45  ;;  %v9652_v8 = vpop.f32.mrb[124].mxu1 }
 0x364   : > { %v6771_v35 = vpop.eup %6770  ;;  %v4924_v9 = vadd.f32 %v4923_v17, %v4138_v39  ;;  %v3071_v20 = vadd.f32 1.0, %v6769_v48  ;;  %6790 = vpow2.f32 %v5559_v58 }
 0x365   : > { %v6773_v10 = vpop.eup %6772  ;;  %v4020_v54 = vmul.f32 %v6771_v35, %v9513_v59  ;;  %6792 = vrcp.f32 %v3189_v60  ;;  %v9648_v59 = vadd.f32 %v9110_v18, %v8876_v11  ;;  %v9650_v35 = vpop.f32.mrb[164].mxu0 }
 0x366   : > { %v6775_v21 = vpop.eup %6774  ;;  %v4139_v52 = vmul.f32 %v6773_v10, %v9517_v46  ;;  %6794 = vrcp.f32 %v3071_v20  ;;  %v9659_v20 = vpop.f32.mrb[165].mxu0 }
 0x367   : > { %v6777_v44 = vpop.eup %6776  ;;  %v4986_v17 = vadd.f32 %v4985_v40, %v4020_v54  ;;  %v4021_v58 = vmul.f32 %v6775_v21, %v9523_v28  ;;  %6796 = vpow2.f32 %v5678_v62  ;;  %v5569_v62 = vmul.f32 -1.442695, %v9643_v2 }
 0x368   : > { %v6779_v25 = vpop.eup %6778  ;;  %v4961_v50 = vadd.f32 %v4960_v38, %v4139_v52  ;;  %v3198_v39 = vadd.f32 1.0, %v6777_v44  ;;  %6798 = vpow2.f32 %v5560_v22  ;;  %v9657_v38 = vadd.f32 %v9112_v34, %v9300_v33  ;;  %v10915_v34 = vld [vmem:[#allocation43_spill] sm:$0xff] }
 0x369   : > { %v6781_v48 = vpop.eup %6780  ;;  %v5023_v46 = vadd.f32 %v5022_v5, %v4021_v58  ;;  %v3080_v60 = vadd.f32 1.0, %v6779_v25  ;;  %6800 = vpow2.f32 %v5687_v4  ;;  %v9663_v22 = vadd.f32 %v9125_v30, %v8864_v53  ;;  %v9671_v58 = vpop.f32.mrb[125].mxu1 }
 0x36a   : > { %v6783_v40 = vpop.eup %6782  ;;  %6802 = vrcp.f32 %v3198_v39  ;;  %v3199_v28 = vadd.f32 1.0, %v6781_v48  ;;  %v5688_v4 = vmul.f32 -1.442695, %v9648_v59  ;;  %v9669_v44 = vadd.f32 %v10915_v34, %v9264_v45 }
 0x36b   : > { %v6785_v18 = vpop.eup %6784  ;;  %6804 = vrcp.f32 %v3080_v60  ;;  %v3081_v5 = vadd.f32 1.0, %v6783_v40  ;;  %v5570_v48 = vmul.f32 -1.442695, %v9657_v38  ;;  %v5697_v40 = vmul.f32 -1.442695, %v9663_v22 }
 0x36c   : > { %v6787_v10 = vpop.eup %6786  ;;  %v4148_v54 = vmul.f32 %v6785_v18, %v9541_v19  ;;  %6806 = vrcp.f32 %v3199_v28 }
 0x36d   : > { %v6789_v21 = vpop.eup %6788  ;;  %6808 = vrcp.f32 %v3081_v5  ;;  %v3208_v52 = vadd.f32 1.0, %v6787_v10  ;;  %v10916_v10 = vld [vmem:[#allocation44_spill] sm:$0xff] }
 0x36e   : > { %v6791_v25 = vpop.eup %6790  ;;  %v4925_v39 = vadd.f32 %v4924_v9, %v4148_v54  ;;  %v4030_v30 = vmul.f32 %v6789_v21, %v9550_v37  ;;  %6810 = vpow2.f32 %v5569_v62  ;;  %v9679_v34 = vadd.f32 %v10916_v10, %v8876_v11  ;;  %v9681_v9 = vpop.f32.mrb[166].mxu0 }
 0x36f   : > { %v6793_v19 = vpop.eup %6792  ;;  %6812 = vrcp.f32 %v3208_v52  ;;  %v3090_v60 = vadd.f32 1.0, %v6791_v25  ;;  %10917 = vst [vmem:[#allocation24_spill] sm:$0xff] %v9681_v9  ;;  %v9683_v37 = vpop.f32.mrb[126].mxu1  ;;  %v5579_v21 = vmul.f32 -1.442695, %v9669_v44  ;;  %v10919_v52 = vld [vmem:[#allocation8_spill] sm:$0xff] }
 0x370   : > { %v6795_v28 = vpop.eup %6794  ;;  %v4987_v18 = vadd.f32 %v4986_v17, %v4030_v30  ;;  %v4149_v5 = vmul.f32 %v6793_v19, %v9555_v61  ;;  %6814 = vpow2.f32 %v5688_v4  ;;  %10918 = vst [vmem:[#allocation40_spill] sm:$0xff] %v9683_v37  ;;  %v9689_v17 = vadd.f32 %v10919_v52, %v9300_v33 }
 0x371   : > { %v6797_v62 = vpop.eup %6796  ;;  %v4031_v54 = vmul.f32 %v6795_v28, %v9559_v49  ;;  %6816 = vrcp.f32 %v3090_v60  ;;  %v9693_v30 = vadd.f32 %v9177_v3, %v8864_v53  ;;  %v9697_v49 = vadd.f32 %v9179_v6, %v9264_v45 }
 0x372   : > { %v6799_v61 = vpop.eup %6798  ;;  %v4962_v4 = vadd.f32 %v4961_v50, %v4149_v5  ;;  %v3209_v25 = vadd.f32 1.0, %v6797_v62  ;;  %6818 = vpow2.f32 %v5570_v48  ;;  %v5698_v52 = vmul.f32 -1.442695, %v9679_v34  ;;  %v9708_v5 = vpop.f32.mrb[127].mxu1 }
 0x373   : > { %v6801_v19 = vpop.eup %6800  ;;  %v5024_v10 = vadd.f32 %v5023_v46, %v4031_v54  ;;  %v3091_v37 = vadd.f32 1.0, %v6799_v61  ;;  %6820 = vpow2.f32 %v5697_v40  ;;  %v9702_v50 = vadd.f32 %v9183_v15, %v8876_v11  ;;  %v9706_v40 = vpop.f32.mrb[167].mxu0  ;;  %10921 = vst [vmem:[#allocation9_spill] sm:$0xff] %v9708_v5 }
 0x374   : > { %v6803_v60 = vpop.eup %6802  ;;  %6822 = vrcp.f32 %v3209_v25  ;;  %v3218_v28 = vadd.f32 1.0, %v6801_v19  ;;  %v5580_v46 = vmul.f32 -1.442695, %v9689_v17  ;;  %10920 = vst [vmem:[#allocation41_spill] sm:$0xff] %v9706_v40  ;;  %v5707_v54 = vmul.f32 -1.442695, %v9693_v30 }
 0x375   : > { %v6805_v48 = vpop.eup %6804  ;;  %v4158_v3 = vmul.f32 %v6803_v60, %v9565_v23  ;;  %6824 = vrcp.f32 %v3091_v37  ;;  %v5589_v23 = vmul.f32 -1.442695, %v9697_v49  ;;  %v5708_v5 = vmul.f32 -1.442695, %v9702_v50 }
 0x376   : > { %v6807_v6 = vpop.eup %6806  ;;  %v4040_v62 = vmul.f32 %v6805_v48, %v9577_v13  ;;  %6826 = vrcp.f32 %v3218_v28  ;;  %v10922_v28 = vld [vmem:[#allocation28_spill] sm:$0xff] }
 0x377   : > { %v6809_v61 = vpop.eup %6808  ;;  %v4926_v25 = vadd.f32 %v4925_v39, %v4158_v3  ;;  %v4159_v15 = vmul.f32 %v6807_v6, %v9583_v26  ;;  %6828 = vpow2.f32 %v5579_v21  ;;  %v9718_v48 = vadd.f32 %v10922_v28, %v9300_v33 }
 0x378   : > { %v6811_v37 = vpop.eup %6810  ;;  %v4988_v19 = vadd.f32 %v4987_v18, %v4040_v62  ;;  %v4041_v60 = vmul.f32 %v6809_v61, %v9587_v51  ;;  %6830 = vpow2.f32 %v5698_v52  ;;  %v10923_v18 = vld [vmem:[#allocation45_spill] sm:$0xff]  ;;  %v9731_v62 = vpop.f32.mrb[128].mxu1 }
 0x379   : > { %v6813_v40 = vpop.eup %6812  ;;  %v4963_v9 = vadd.f32 %v4962_v4, %v4159_v15  ;;  %v3100_v13 = vadd.f32 1.0, %v6811_v37  ;;  %6832 = vpow2.f32 %v5580_v46  ;;  %v9723_v3 = vadd.f32 %v10923_v18, %v8864_v53  ;;  %v10924_v4 = vld [vmem:[#allocation46_spill] sm:$0xff]  ;;  %v9729_v46 = vpop.f32.mrb[168].mxu0  ;;  %10926 = vst [vmem:[#allocation26_spill] sm:$0xff] %v9731_v62 }
 0x37a   : > { %v6815_v39 = vpop.eup %6814  ;;  %v5025_v26 = vadd.f32 %v5024_v10, %v4041_v60  ;;  %v4168_v21 = vmul.f32 %v6813_v40, %v9591_v43  ;;  %6834 = vpow2.f32 %v5707_v54  ;;  %v9727_v6 = vadd.f32 %v10924_v4, %v9264_v45  ;;  %10925 = vst [vmem:[#allocation27_spill] sm:$0xff] %v9729_v46  ;;  %v9734_v40 = vpop.f32.mrb[169].mxu0 }
 0x37b   : > { %v6817_v51 = vpop.eup %6816  ;;  %6836 = vrcp.f32 %v3100_v13  ;;  %v3219_v52 = vadd.f32 1.0, %v6815_v39  ;;  %10927 = vst [vmem:[#allocation29_spill] sm:$0xff] %v9734_v40  ;;  %v9736_v54 = vpop.f32.mrb[129].mxu1  ;;  %v5590_v60 = vmul.f32 -1.442695, %v9718_v48 }
 0x37c   : > { %v6819_v61 = vpop.eup %6818  ;;  %v4927_v10 = vadd.f32 %v4926_v25, %v4168_v21  ;;  %v4050_v43 = vmul.f32 %v6817_v51, %v9598_v57  ;;  %6838 = vpow2.f32 %v5589_v23  ;;  %10928 = vst [vmem:[#allocation42_spill] sm:$0xff] %v9736_v54  ;;  %v9739_v13 = vpop.f32.mrb[170].mxu0  ;;  %v5717_v25 = vmul.f32 -1.442695, %v9723_v3 }
 0x37d   : > { %v6821_v15 = vpop.eup %6820  ;;  %6840 = vrcp.f32 %v3219_v52  ;;  %v3101_v37 = vadd.f32 1.0, %v6819_v61  ;;  %10929 = vst [vmem:[#allocation43_spill] sm:$0xff] %v9739_v13  ;;  %v9742_v21 = vpop.f32.mrb[130].mxu1  ;;  %v5599_v51 = vmul.f32 -1.442695, %v9727_v6  ;;  %v10931_v61 = vld [vmem:[#allocation11_spill] sm:$0xff] }
 0x37e   : > { %v6823_v28 = vpop.eup %6822  ;;  %v4989_v39 = vadd.f32 %v4988_v19, %v4050_v43  ;;  %v3228_v18 = vadd.f32 1.0, %v6821_v15  ;;  %6842 = vpow2.f32 %v5708_v5  ;;  %10930 = vst [vmem:[#allocation44_spill] sm:$0xff] %v9742_v21  ;;  %v9749_v13 = vadd.f32 %v10931_v61, %v8876_v11  ;;  %v9751_v19 = vpop.f32.mrb[171].mxu0 }
 0x37f   : > { %v6825_v57 = vpop.eup %6824  ;;  %v4169_v23 = vmul.f32 %v6823_v28, %v9615_v14  ;;  %6844 = vrcp.f32 %v3101_v37  ;;  %10932 = vst [vmem:[#allocation8_spill] sm:$0xff] %v9751_v19  ;;  %v9753_v5 = vpop.f32.mrb[131].mxu1 }
 0x380   : > { %v6827_v52 = vpop.eup %6826  ;;  %v4051_v4 = vmul.f32 %v6825_v57, %v9625_v42  ;;  %6846 = vrcp.f32 %v3228_v18  ;;  %10933 = vst [vmem:[#allocation28_spill] sm:$0xff] %v9753_v5  ;;  %v10934_v42 = vld [vmem:[#allocation10_spill] sm:$0xff] }
 0x381   : > { %v6829_v43 = vpop.eup %6828  ;;  %v4964_v15 = vadd.f32 %v4963_v9, %v4169_v23  ;;  %v4178_v21 = vmul.f32 %v6827_v52, %v9631_v32  ;;  %6848 = vpow2.f32 %v5590_v60  ;;  %v9758_v18 = vadd.f32 %v10934_v42, %v9300_v33  ;;  %v10935_v32 = vld [vmem:[#allocation15_spill] sm:$0xff]  ;;  %v10936_v23 = vld [vmem:[#allocation13_spill] sm:$0xff] }
 0x382   : > { %v6831_v14 = vpop.eup %6830  ;;  %v5026_v37 = vadd.f32 %v5025_v26, %v4051_v4  ;;  %v3110_v28 = vadd.f32 1.0, %v6829_v43  ;;  %6850 = vpow2.f32 %v5717_v25  ;;  %v5718_v9 = vmul.f32 -1.442695, %v9749_v13 }
 0x383   : > { %v6833_v57 = vpop.eup %6832  ;;  %v4928_v61 = vadd.f32 %v4927_v10, %v4178_v21  ;;  %v3229_v54 = vadd.f32 1.0, %v6831_v14  ;;  %6852 = vpow2.f32 %v5599_v51  ;;  %v9763_v60 = vadd.f32 %v10935_v32, %v8864_v53  ;;  %v10937_v14 = vld [vmem:[#allocation17_spill] sm:$0xff] }
 0x384   : > { %v6835_v19 = vpop.eup %6834  ;;  %6854 = vrcp.f32 %v3110_v28  ;;  %v3111_v5 = vadd.f32 1.0, %v6833_v57  ;;  %v9767_v52 = vadd.f32 %v10936_v23, %v9264_v45  ;;  %v5600_v21 = vmul.f32 -1.442695, %v9758_v18 }
 0x385   : > { %v6837_v26 = vpop.eup %6836  ;;  %6856 = vrcp.f32 %v3229_v54  ;;  %v3238_v25 = vadd.f32 1.0, %v6835_v19  ;;  %v9773_v28 = vadd.f32 %v10937_v14, %v8876_v11  ;;  %v5727_v57 = vmul.f32 -1.442695, %v9763_v60 }
 0x386   : > { %v6839_v4 = vpop.eup %6838  ;;  %v4060_v10 = vmul.f32 %v6837_v26, %v9643_v2  ;;  %6858 = vrcp.f32 %v3111_v5  ;;  %v5609_v5 = vmul.f32 -1.442695, %v9767_v52 }
 0x387   : > { %v6841_v51 = vpop.eup %6840  ;;  %6860 = vrcp.f32 %v3238_v25  ;;  %v3120_v43 = vadd.f32 1.0, %v6839_v4  ;;  %v10938_v4 = vld [vmem:[#allocation3_spill] sm:$0xff] }
 0x388   : > { %v6843_v42 = vpop.eup %6842  ;;  %v4990_v54 = vadd.f32 %v4989_v39, %v4060_v10  ;;  %v4179_v19 = vmul.f32 %v6841_v51, %v9648_v59  ;;  %6862 = vpow2.f32 %v5718_v9  ;;  %v9781_v14 = vadd.f32 %v10938_v4, %v9300_v33  ;;  %v10939_v10 = vld [vmem:[#allocation53_spill] sm:$0xff]  ;;  %v10943_v4 = vld [vmem:[#allocation14_spill] sm:$0xff] }
 0x389   : > { %v6845_v32 = vpop.eup %6844  ;;  %6864 = vrcp.f32 %v3120_v43  ;;  %v3239_v2 = vadd.f32 1.0, %v6843_v42  ;;  %v5728_v9 = vmul.f32 -1.442695, %v9773_v28  ;;  %v9787_v51 = vadd.f32 %v10939_v10, %v8864_v53 }
 0x38a   : > { %v6847_v26 = vpop.eup %6846  ;;  %v4965_v23 = vadd.f32 %v4964_v15, %v4179_v19  ;;  %v4061_v25 = vmul.f32 %v6845_v32, %v9657_v38  ;;  %6866 = vpow2.f32 %v5600_v21  ;;  %v10940_v38 = vld [vmem:[#allocation54_spill] sm:$0xff]  ;;  %v9793_v19 = vpop.f32.mrb[172].mxu0  ;;  %v9799_v10 = vadd.f32 %v10943_v4, %v8876_v11 }
 0x38b   : > { %v6849_v39 = vpop.eup %6848  ;;  %v4188_v59 = vmul.f32 %v6847_v26, %v9663_v22  ;;  %6868 = vrcp.f32 %v3239_v2  ;;  %v9791_v21 = vadd.f32 %v10940_v38, %v9264_v45  ;;  %10941 = vst [vmem:[#allocation45_spill] sm:$0xff] %v9793_v19  ;;  %v9795_v32 = vpop.f32.mrb[132].mxu1 }
 0x38c   : > { %v6851_v43 = vpop.eup %6850  ;;  %v5027_v42 = vadd.f32 %v5026_v37, %v4061_v25  ;;  %v3121_v15 = vadd.f32 1.0, %v6849_v39  ;;  %6870 = vpow2.f32 %v5727_v57  ;;  %10942 = vst [vmem:[#allocation46_spill] sm:$0xff] %v9795_v32  ;;  %v9801_v40 = vpop.f32.mrb[173].mxu0  ;;  %v5610_v25 = vmul.f32 -1.442695, %v9781_v14  ;;  %v10945_v39 = vld [vmem:[#allocation5_spill] sm:$0xff] }
 0x38d   : > { %v6853_v22 = vpop.eup %6852  ;;  %v4929_v2 = vadd.f32 %v4928_v61, %v4188_v59  ;;  %v3248_v26 = vadd.f32 1.0, %v6851_v43  ;;  %6872 = vpow2.f32 %v5609_v5  ;;  %10944 = vst [vmem:[#allocation11_spill] sm:$0xff] %v9801_v40  ;;  %v9806_v38 = vadd.f32 %v10945_v39, %v9300_v33  ;;  %v9808_v32 = vpop.f32.mrb[133].mxu1 }
 0x38e   : > { %v6855_v37 = vpop.eup %6854  ;;  %6874 = vrcp.f32 %v3121_v15  ;;  %v3130_v57 = vadd.f32 1.0, %v6853_v22  ;;  %10946 = vst [vmem:[#allocation10_spill] sm:$0xff] %v9808_v32  ;;  %v5737_v59 = vmul.f32 -1.442695, %v9787_v51  ;;  %v5619_v15 = vmul.f32 -1.442695, %v9791_v21 }
 0x38f   : > { %v6857_v61 = vpop.eup %6856  ;;  %v4070_v5 = vmul.f32 %v6855_v37, %v9669_v44  ;;  %6876 = vrcp.f32 %v3248_v26  ;;  %v9814_v22 = vpop.f32.mrb[174].mxu0  ;;  %v5738_v44 = vmul.f32 -1.442695, %v9799_v10 }
 0x390   : > { %v6859_v43 = vpop.eup %6858  ;;  %v4189_v4 = vmul.f32 %v6857_v61, %v9679_v34  ;;  %6878 = vrcp.f32 %v3130_v57  ;;  %10947 = vst [vmem:[#allocation15_spill] sm:$0xff] %v9814_v22  ;;  %v9816_v40 = vpop.f32.mrb[134].mxu1  ;;  %v5620_v34 = vmul.f32 -1.442695, %v9806_v38 }
 0x391   : > { %10948 = vst [vmem:[#allocation13_spill] sm:$0xff] %v9816_v40  ;;  %v6861_v39 = vpop.eup %6860  ;;  %v4991_v19 = vadd.f32 %v4990_v54, %v4070_v5  ;;  %v4071_v32 = vmul.f32 %v6859_v43, %v9689_v17  ;;  %6880 = vpow2.f32 %v5728_v9  ;;  %v9822_v57 = vpop.f32.mrb[175].mxu0  ;;  %v10949_v17 = vld [vmem:[#allocation16_spill] sm:$0xff] }
 0x392   : > { %v6863_v26 = vpop.eup %6862  ;;  %v4966_v37 = vadd.f32 %v4965_v23, %v4189_v4  ;;  %v4198_v62 = vmul.f32 %v6861_v39, %v9693_v30  ;;  %6882 = vpow2.f32 %v5610_v25  ;;  %v9824_v61 = vpop.f32.mrb[135].mxu1  ;;  %v9828_v54 = vadd.f32 %v10949_v17, %v8864_v53  ;;  %v10950_v30 = vld [vmem:[#allocation31_spill] sm:$0xff] }
 0x393   : > { %v6865_v22 = vpop.eup %6864  ;;  %v5028_v40 = vadd.f32 %v5027_v42, %v4071_v32  ;;  %v3249_v46 = vadd.f32 1.0, %v6863_v26  ;;  %6884 = vpow2.f32 %v5737_v59  ;;  %v9833_v25 = vadd.f32 %v10950_v30, %v9264_v45  ;;  %v10951_v42 = vld [vmem:[#allocation30_spill] sm:$0xff] }
 0x394   : > { %v6867_v9 = vpop.eup %6866  ;;  %v4930_v5 = vadd.f32 %v4929_v2, %v4198_v62  ;;  %v4080_v23 = vmul.f32 %v6865_v22, %v9697_v49  ;;  %6886 = vpow2.f32 %v5619_v15  ;;  %v9837_v32 = vadd.f32 %v10951_v42, %v8876_v11 }
 0x395   : > { %v6869_v43 = vpop.eup %6868  ;;  %6888 = vrcp.f32 %v3249_v46  ;;  %v3131_v4 = vadd.f32 1.0, %v6867_v9  ;;  %v5747_v2 = vmul.f32 -1.442695, %v9828_v54  ;;  %v5629_v46 = vmul.f32 -1.442695, %v9833_v25  ;;  %v9842_v9 = vpop.f32.mrb[136].mxu1 }
 0x396   : > { %v6871_v59 = vpop.eup %6870  ;;  %v4992_v39 = vadd.f32 %v4991_v19, %v4080_v23  ;;  %v4199_v26 = vmul.f32 %v6869_v43, %v9702_v50  ;;  %6890 = vpow2.f32 %v5738_v44  ;;  %10952 = vst [vmem:[#allocation17_spill] sm:$0xff] %v9842_v9  ;;  %v5748_v50 = vmul.f32 -1.442695, %v9837_v32  ;;  %v9846_v19 = vpop.f32.mrb[137].mxu1 }
 0x397   : > { %v6873_v62 = vpop.eup %6872  ;;  %6892 = vrcp.f32 %v3131_v4  ;;  %v3258_v49 = vadd.f32 1.0, %v6871_v59  ;;  %10953 = vst [vmem:[#allocation3_spill] sm:$0xff] %v9846_v19 }
 0x398   : > { %v6875_v15 = vpop.eup %6874  ;;  %v4967_v22 = vadd.f32 %v4966_v37, %v4199_v26  ;;  %v3140_v17 = vadd.f32 1.0, %v6873_v62  ;;  %6894 = vpow2.f32 %v5620_v34  ;;  %v10954_v37 = vld [vmem:[#allocation55_spill] sm:$0xff]  ;;  %v9853_v34 = vpop.f32.mrb[138].mxu1 }
 0x399   : > { %v6877_v30 = vpop.eup %6876  ;;  %v4081_v42 = vmul.f32 %v6875_v15, %v9718_v48  ;;  %6896 = vrcp.f32 %v3258_v49  ;;  %v9851_v43 = vadd.f32 %v10954_v37, %v9300_v33  ;;  %10955 = vst [vmem:[#allocation53_spill] sm:$0xff] %v9853_v34  ;;  %v9856_v48 = vpop.f32.mrb[139].mxu1 }
 0x39a   : > { %v6879_v44 = vpop.eup %6878  ;;  %v4208_v23 = vmul.f32 %v6877_v30, %v9723_v3  ;;  %6898 = vrcp.f32 %v3140_v17  ;;  %10956 = vst [vmem:[#allocation54_spill] sm:$0xff] %v9856_v48  ;;  %v10957_v3 = vld [vmem:[#allocation33_spill] sm:$0xff] }
 0x39b   : > { %v6881_v4 = vpop.eup %6880  ;;  %v5029_v59 = vadd.f32 %v5028_v40, %v4081_v42  ;;  %v4090_v26 = vmul.f32 %v6879_v44, %v9727_v6  ;;  %6900 = vpow2.f32 %v5747_v2  ;;  %v9860_v17 = vadd.f32 %v10957_v3, %v8864_v53  ;;  %v10958_v2 = vld [vmem:[#allocation32_spill] sm:$0xff]  ;;  %v10959_v44 = vld [vmem:[#allocation18_spill] sm:$0xff] }
 0x39c   : > { %v6883_v62 = vpop.eup %6882  ;;  %v4931_v49 = vadd.f32 %v4930_v5, %v4208_v23  ;;  %v3259_v15 = vadd.f32 1.0, %v6881_v4  ;;  %6902 = vpow2.f32 %v5629_v46  ;;  %v5630_v6 = vmul.f32 -1.442695, %v9851_v43  ;;  %v10961_v3 = vld [vmem:[#allocation34_spill] sm:$0xff] }
 0x39d   : > { %v6885_v30 = vpop.eup %6884  ;;  %v4993_v37 = vadd.f32 %v4992_v39, %v4090_v26  ;;  %v3141_v19 = vadd.f32 1.0, %v6883_v62  ;;  %6904 = vpow2.f32 %v5748_v50  ;;  %v9865_v42 = vadd.f32 %v10958_v2, %v9264_v45  ;;  %v9873_v26 = vpop.f32.mrb[140].mxu1 }
 0x39e   : > { %v6887_v34 = vpop.eup %6886  ;;  %6906 = vrcp.f32 %v3259_v15  ;;  %v3268_v40 = vadd.f32 1.0, %v6885_v30  ;;  %v9869_v23 = vadd.f32 %v10959_v44, %v8876_v11  ;;  %v5757_v50 = vmul.f32 -1.442695, %v9860_v17  ;;  %10960 = vst [vmem:[#allocation14_spill] sm:$0xff] %v9873_v26 }
 0x39f   : > { %v6889_v5 = vpop.eup %6888  ;;  %6908 = vrcp.f32 %v3141_v19  ;;  %v3150_v46 = vadd.f32 1.0, %v6887_v34  ;;  %v9877_v30 = vadd.f32 %v10961_v3, %v9300_v33  ;;  %v5639_v44 = vmul.f32 -1.442695, %v9865_v42 }
 0x3a0   : > { %v6891_v4 = vpop.eup %6890  ;;  %v4209_v39 = vmul.f32 %v6889_v5, %v9749_v13  ;;  %6910 = vrcp.f32 %v3268_v40  ;;  %v9881_v13 = vpop.f32.mrb[141].mxu1  ;;  %v5758_v26 = vmul.f32 -1.442695, %v9869_v23 }
 0x3a1   : > { %v6893_v62 = vpop.eup %6892  ;;  %6912 = vrcp.f32 %v3150_v46  ;;  %v3269_v15 = vadd.f32 1.0, %v6891_v4  ;;  %10962 = vst [vmem:[#allocation5_spill] sm:$0xff] %v9881_v13 }
 0x3a2   : > { %v6895_v19 = vpop.eup %6894  ;;  %v4968_v34 = vadd.f32 %v4967_v22, %v4209_v39  ;;  %v4091_v2 = vmul.f32 %v6893_v62, %v9758_v18  ;;  %6914 = vpow2.f32 %v5630_v6  ;;  %v9887_v22 = vadd.f32 %v9395_v7, %v8864_v53  ;;  %v9889_v18 = vpop.f32.mrb[142].mxu1  ;;  %v10966_v7 = vld [vmem:[#allocation20_spill] sm:$0xff] }
 0x3a3   : > { %v6897_v40 = vpop.eup %6896  ;;  %6916 = vrcp.f32 %v3269_v15  ;;  %v3151_v5 = vadd.f32 1.0, %v6895_v19  ;;  %10963 = vst [vmem:[#allocation16_spill] sm:$0xff] %v9889_v18  ;;  %v5640_v62 = vmul.f32 -1.442695, %v9877_v30  ;;  %v10964_v15 = vld [vmem:[#allocation19_spill] sm:$0xff] }
 0x3a4   : > { %v6899_v46 = vpop.eup %6898  ;;  %v5030_v4 = vadd.f32 %v5029_v59, %v4091_v2  ;;  %v4218_v48 = vmul.f32 %v6897_v40, %v9763_v60  ;;  %6918 = vpow2.f32 %v5757_v50  ;;  %v9895_v3 = vadd.f32 %v10964_v15, %v9264_v45  ;;  %v9897_v59 = vpop.f32.mrb[143].mxu1 }
 0x3a5   : > { %v6901_v6 = vpop.eup %6900  ;;  %v4100_v39 = vmul.f32 %v6899_v46, %v9767_v52  ;;  %6920 = vrcp.f32 %v3151_v5  ;;  %10965 = vst [vmem:[#allocation31_spill] sm:$0xff] %v9897_v59  ;;  %v9901_v2 = vadd.f32 %v10966_v7, %v8876_v11  ;;  %v10967_v5 = vld [vmem:[#allocation22_spill] sm:$0xff]  ;;  %v5767_v59 = vmul.f32 -1.442695, %v9887_v22 }
 0x3a6   : > { %v6903_v60 = vpop.eup %6902  ;;  %v4932_v50 = vadd.f32 %v4931_v49, %v4218_v48  ;;  %v3278_v19 = vadd.f32 1.0, %v6901_v6  ;;  %6922 = vpow2.f32 %v5639_v44  ;;  %v9905_v46 = vadd.f32 %v10967_v5, %v9300_v33 }
 0x3a7   : > { %v6905_v40 = vpop.eup %6904  ;;  %v4994_v18 = vadd.f32 %v4993_v37, %v4100_v39  ;;  %v3160_v52 = vadd.f32 1.0, %v6903_v60  ;;  %6924 = vpow2.f32 %v5758_v26  ;;  %v5649_v44 = vmul.f32 -1.442695, %v9895_v3  ;;  %v10968_v39 = vld [vmem:[#allocation4_spill] sm:$0xff] }
 0x3a8   : > { %v6907_v15 = vpop.eup %6906  ;;  %6926 = vrcp.f32 %v3278_v19  ;;  %v3279_v13 = vadd.f32 1.0, %v6905_v40  ;;  %v5768_v26 = vmul.f32 -1.442695, %v9901_v2  ;;  %v9914_v60 = vadd.f32 %v10968_v39, %v8864_v53 }
 0x3a9   : > { %v6909_v48 = vpop.eup %6908  ;;  %v4219_v49 = vmul.f32 %v6907_v15, %v9773_v28  ;;  %6928 = vrcp.f32 %v3160_v52  ;;  %v5650_v28 = vmul.f32 -1.442695, %v9905_v46 }
 0x3aa   : > { %v6911_v6 = vpop.eup %6910  ;;  %v4101_v37 = vmul.f32 %v6909_v48, %v9781_v14  ;;  %6930 = vrcp.f32 %v3279_v13  ;;  %v10969_v14 = vld [vmem:[#allocation21_spill] sm:$0xff] }
 0x3ab   : > { %v6913_v19 = vpop.eup %6912  ;;  %v4969_v7 = vadd.f32 %v4968_v34, %v4219_v49  ;;  %v4228_v40 = vmul.f32 %v6911_v6, %v9787_v51  ;;  %6932 = vpow2.f32 %v5640_v62  ;;  %v9921_v13 = vadd.f32 %v10969_v14, %v9264_v45  ;;  %v10970_v34 = vld [vmem:[#allocation47_spill] sm:$0xff]  ;;  %v9927_v51 = vpop.f32.mrb[144].mxu1 }
 0x3ac   : > { %v6915_v52 = vpop.eup %6914  ;;  %v5031_v5 = vadd.f32 %v5030_v4, %v4101_v37  ;;  %v4110_v15 = vmul.f32 %v6913_v19, %v9791_v21  ;;  %6934 = vpow2.f32 %v5767_v59  ;;  %v9925_v49 = vadd.f32 %v10970_v34, %v8876_v11  ;;  %v9931_v59 = vpop.f32.mrb[145].mxu1  ;;  %v868_v11 = vld [vmem:[%s10621_s4 + $0x8] sm:$0x3] }
 0x3ad   : > { %v6917_v48 = vpop.eup %6916  ;;  %v4933_v9 = vadd.f32 %v4932_v50, %v4228_v40  ;;  %v3161_v53 = vadd.f32 1.0, %v6915_v52  ;;  %6936 = vpow2.f32 %v5649_v44  ;;  %v5777_v21 = vmul.f32 -1.442695, %v9914_v60  ;;  %10971 = vst [vmem:[#allocation30_spill] sm:$0xff] %v9931_v59  ;;  %v10972_v44 = vld [vmem:[#allocation35_spill] sm:$0xff]  ;;  %v9940_v19 = vpop.f32.mrb[146].mxu1 }
 0x3ae   : > { %v6919_v62 = vpop.eup %6918  ;;  %v4995_v6 = vadd.f32 %v4994_v18, %v4110_v15  ;;  %v4229_v4 = vmul.f32 %v6917_v48, %v9799_v10  ;;  %6938 = vpow2.f32 %v5768_v26  ;;  %v9935_v39 = vadd.f32 %v10972_v44, %v9300_v33  ;;  %10973 = vst [vmem:[#allocation55_spill] sm:$0xff] %v9940_v19  ;;  %v9943_v40 = vpop.f32.mrb[147].mxu1  ;;  %v10975_v44 = vld [vmem:[#allocation12_spill] sm:$0xff] }
 0x3af   : > { %v6921_v37 = vpop.eup %6920  ;;  %6940 = vrcp.f32 %v3161_v53  ;;  %v3288_v50 = vadd.f32 1.0, %v6919_v62  ;;  %10974 = vst [vmem:[#allocation33_spill] sm:$0xff] %v9943_v40  ;;  %v5659_v14 = vmul.f32 -1.442695, %v9921_v13  ;;  %v5778_v48 = vmul.f32 -1.442695, %v9925_v49 }
 0x3b0   : > { %v6923_v18 = vpop.eup %6922  ;;  %v4970_v10 = vadd.f32 %v4969_v7, %v4229_v4  ;;  %v4111_v26 = vmul.f32 %v6921_v37, %v9806_v38  ;;  %6942 = vpow2.f32 %v5650_v28  ;;  %v10976_v19 = vsub.s32 0, %v10975_v44 }
 0x3b1   : > { %v6925_v52 = vpop.eup %6924  ;;  %6944 = vrcp.f32 %v3288_v50  ;;  %v3170_v15 = vadd.f32 1.0, %v6923_v18  ;;  %v5660_v28 = vmul.f32 -1.442695, %v9935_v39  ;;  %v10977_v50 = vld [vmem:[#allocation23_spill] sm:$0xff] }
 0x3b2   : > { %v6927_v53 = vpop.eup %6926  ;;  %v5032_v34 = vadd.f32 %v5031_v5, %v4111_v26  ;;  %v3289_v62 = vadd.f32 1.0, %v6925_v52  ;;  %6946 = vpow2.f32 %v5777_v21  ;;  %v9949_v59 = vrot.slane %v868_v11, %v10976_v19 }
 0x3b3   : > { %v6929_v7 = vpop.eup %6928  ;;  %v4238_v38 = vmul.f32 %v6927_v53, %v9828_v54  ;;  %6948 = vrcp.f32 %v3170_v15  ;;  %v9956_v18 = vadd.f32 %v10977_v50, %v9264_v45  ;;  %v10978_v19 = vsub.s32 1, %v10975_v44  ;;  %v9963_v54 = vpop.f32.mrb[148].mxu1 }
 0x3b4   : > { %v6931_v4 = vpop.eup %6930  ;;  %v4120_v37 = vmul.f32 %v6929_v7, %v9833_v25  ;;  %6950 = vrcp.f32 %v3289_v62  ;;  %v10979_v25 = vld [vmem:[#allocation7_spill] sm:$0xff]  ;;  %v9969_v7 = vpop.f32.mrb[149].mxu1 }
 0x3b5   : > { %v6933_v5 = vpop.eup %6932  ;;  %v4934_v21 = vadd.f32 %v4933_v9, %v4238_v38  ;;  %v4239_v26 = vmul.f32 %v6931_v4, %v9837_v32  ;;  %6952 = vpow2.f32 %v5659_v14  ;;  %v9961_v52 = vrot.slane %v868_v11, %v10978_v19  ;;  %v9971_v14 = vpop.f32.mrb[150].mxu1 }
 0x3b6   : > { %v6935_v15 = vpop.eup %6934  ;;  %v4996_v53 = vadd.f32 %v4995_v6, %v4120_v37  ;;  %v3171_v40 = vadd.f32 1.0, %v6933_v5  ;;  %6954 = vpow2.f32 %v5778_v48  ;;  %v9967_v62 = vadd.f32 %v10979_v25, %v9949_v59  ;;  %v9978_v48 = vpop.f32.mrb[151].mxu1 }
 0x3b7   : > { %v6937_v9 = vpop.eup %6936  ;;  %v4971_v38 = vadd.f32 %v4970_v10, %v4239_v26  ;;  %v3298_v32 = vadd.f32 1.0, %v6935_v15  ;;  %6956 = vpow2.f32 %v5660_v28  ;;  %v5669_v4 = vmul.f32 -1.442695, %v9956_v18  ;;  %10980 = vst [vmem:[#allocation32_spill] sm:$0xff] %v9978_v48  ;;  %v10981_v10 = vld [vmem:[#allocation36_spill] sm:$0xff] }
 0x3b8   : > { %v6939_v11 = vpop.eup %6938  ;;  %6958 = vrcp.f32 %v3171_v40  ;;  %v3180_v44 = vadd.f32 1.0, %v6937_v9  ;;  %v9976_v6 = vadd.f32 %v9459_v12, %v9300_v33  ;;  %v9982_v5 = vadd.f32 %v10981_v10, %v9961_v52 }
 0x3b9   : > { %v6941_v37 = vpop.eup %6940  ;;  %6960 = vrcp.f32 %v3298_v32  ;;  %v3299_v50 = vadd.f32 1.0, %v6939_v11  ;;  %v5471_v40 = vmul.f32 -1.442695, %v9967_v62 }
 0x3ba   : > { %v6943_v28 = vpop.eup %6942  ;;  %v4121_v26 = vmul.f32 %v6941_v37, %v9851_v43  ;;  %6962 = vrcp.f32 %v3180_v44  ;;  %v5670_v32 = vmul.f32 -1.442695, %v9976_v6  ;;  %v5472_v48 = vmul.f32 -1.442695, %v9982_v5 }
 0x3bb   : > { %v6945_v19 = vpop.eup %6944  ;;  %6964 = vrcp.f32 %v3299_v50  ;;  %v3181_v15 = vadd.f32 1.0, %v6943_v28  ;;  %v9991_v43 = vadd.f32 %v9475_v31, %v9264_v45  ;;  %v10001_v28 = vadd.f32 %v9503_v16, %v9300_v33 }
 0x3bc   : > { %v6947_v12 = vpop.eup %6946  ;;  %v5033_v25 = vadd.f32 %v5032_v34, %v4121_v26  ;;  %v4248_v9 = vmul.f32 %v6945_v19, %v9860_v17  ;;  %6966 = vpow2.f32 %v5669_v4  ;;  %v9996_v17 = vadd.f32 %v9491_v56, %v9949_v59 }
 0x3bd   : > { %v6949_v11 = vpop.eup %6948  ;;  %6968 = vrcp.f32 %v3181_v15  ;;  %v3308_v10 = vadd.f32 1.0, %v6947_v12 }
 0x3be   : > { %v6951_v44 = vpop.eup %6950  ;;  %v4935_v37 = vadd.f32 %v4934_v21, %v4248_v9  ;;  %v4130_v50 = vmul.f32 %v6949_v11, %v9865_v42  ;;  %6970 = vpow2.f32 %v5471_v40  ;;  %v10005_v42 = vadd.f32 %v9505_v29, %v9961_v52  ;;  %v10007_v21 = vpop.f32.mrb[152].mxu1 }
 0x3bf   : > { %v6953_v34 = vpop.eup %6952  ;;  %v4249_v4 = vmul.f32 %v6951_v44, %v9869_v23  ;;  %6972 = vrcp.f32 %v3308_v10  ;;  %v5679_v23 = vmul.f32 -1.442695, %v9991_v43  ;;  %v10010_v12 = vpop.f32.mrb[153].mxu1 }
 0x3c0   : > { %v6955_v26 = vpop.eup %6954  ;;  %v4997_v31 = vadd.f32 %v4996_v53, %v4130_v50  ;;  %v3190_v19 = vadd.f32 1.0, %v6953_v34  ;;  %6974 = vpow2.f32 %v5670_v32  ;;  %v5481_v53 = vmul.f32 -1.442695, %v9996_v17  ;;  %v10017_v29 = vpop.f32.mrb[154].mxu1 }
 0x3c1   : > { %v6957_v56 = vpop.eup %6956  ;;  %v4972_v40 = vadd.f32 %v4971_v38, %v4249_v4  ;;  %v3309_v15 = vadd.f32 1.0, %v6955_v26  ;;  %6976 = vpow2.f32 %v5472_v48  ;;  %v10015_v32 = vadd.f32 %v9526_v0, %v9264_v45  ;;  %v10021_v10 = vpop.f32.mrb[155].mxu1 }
 0x3c2   : > { %v6959_v16 = vpop.eup %6958  ;;  %6978 = vrcp.f32 %v3190_v19  ;;  %v3191_v9 = vadd.f32 1.0, %v6957_v56  ;;  %v5680_v48 = vmul.f32 -1.442695, %v10001_v28  ;;  %10982 = vst [vmem:[#allocation18_spill] sm:$0xff] %v10021_v10  ;;  %v5482_v34 = vmul.f32 -1.442695, %v10005_v42 }
 0x3c3   : > { %v6961_v11 = vpop.eup %6960  ;;  %v4131_v38 = vmul.f32 %v6959_v16, %v9877_v30  ;;  %6980 = vrcp.f32 %v3309_v15  ;;  %v10027_v0 = vadd.f32 %v9528_v24, %v9949_v59  ;;  %v10032_v30 = vadd.f32 %v9531_v55, %v9300_v33 }
 0x3c4   : > { %v6963_v44 = vpop.eup %6962  ;;  %v4258_v50 = vmul.f32 %v6961_v11, %v9887_v22  ;;  %6982 = vrcp.f32 %v3191_v9  ;;  %v5689_v16 = vmul.f32 -1.442695, %v10015_v32 }
 0x3c5   : > { %v6965_v4 = vpop.eup %6964  ;;  %v5034_v26 = vadd.f32 %v5033_v25, %v4131_v38  ;;  %v4140_v19 = vmul.f32 %v6963_v44, %v9895_v3  ;;  %6984 = vpow2.f32 %v5679_v23  ;;  %v10038_v25 = vadd.f32 %v9534_v1, %v9961_v52  ;;  %v10042_v38 = vpop.f32.mrb[156].mxu1 }
 0x3c6   : > { %v6967_v56 = vpop.eup %6966  ;;  %v4936_v15 = vadd.f32 %v4935_v37, %v4258_v50  ;;  %v4259_v22 = vmul.f32 %v6965_v4, %v9901_v2  ;;  %6986 = vpow2.f32 %v5481_v53  ;;  %v5491_v37 = vmul.f32 -1.442695, %v10027_v0  ;;  %10983 = vst [vmem:[#allocation34_spill] sm:$0xff] %v10042_v38 }
 0x3c7   : > { %v6969_v9 = vpop.eup %6968  ;;  %v4998_v11 = vadd.f32 %v4997_v31, %v4140_v19  ;;  %v3200_v24 = vadd.f32 1.0, %v6967_v56  ;;  %6988 = vpow2.f32 %v5680_v48  ;;  %v10984_v31 = vld [vmem:[#allocation39_spill] sm:$0xff]  ;;  %v10048_v48 = vpop.f32.mrb[157].mxu1  ;;  %v5690_v19 = vmul.f32 -1.442695, %v10032_v30 }
 0x3c8   : > { %v6971_v3 = vpop.eup %6970  ;;  %v4973_v23 = vadd.f32 %v4972_v40, %v4259_v22  ;;  %v4141_v55 = vmul.f32 %v6969_v9, %v9905_v46  ;;  %6990 = vpow2.f32 %v5482_v34  ;;  %v10046_v44 = vadd.f32 %v10984_v31, %v9264_v45  ;;  %10985 = vst [vmem:[#allocation19_spill] sm:$0xff] %v10048_v48  ;;  %v10051_v46 = vpop.f32.mrb[158].mxu1 }
 0x3c9   : > { %v6973_v2 = vpop.eup %6972  ;;  %6992 = vrcp.f32 %v3200_v24  ;;  %v3002_v53 = vadd.f32 1.0, %v6971_v3  ;;  %10986 = vst [vmem:[#allocation20_spill] sm:$0xff] %v10051_v46  ;;  %v10054_v56 = vpop.f32.mrb[159].mxu1  ;;  %v5492_v3 = vmul.f32 -1.442695, %v10038_v25 }
 0x3ca   : > { %v6975_v1 = vpop.eup %6974  ;;  %v5035_v50 = vadd.f32 %v5034_v26, %v4141_v55  ;;  %v4268_v40 = vmul.f32 %v6973_v2, %v9914_v60  ;;  %6994 = vpow2.f32 %v5689_v16  ;;  %10987 = vst [vmem:[#allocation22_spill] sm:$0xff] %v10054_v56  ;;  %v5699_v60 = vmul.f32 -1.442695, %v10046_v44 }
 0x3cb   : > { %v6977_v34 = vpop.eup %6976  ;;  %6996 = vrcp.f32 %v3002_v53  ;;  %v3201_v4 = vadd.f32 1.0, %v6975_v1  ;;  %v10988_v53 = vld [vmem:[#allocation49_spill] sm:$0xff] }
 0x3cc   : > { %v6979_v22 = vpop.eup %6978  ;;  %v4937_v9 = vadd.f32 %v4936_v15, %v4268_v40  ;;  %v3003_v24 = vadd.f32 1.0, %v6977_v34  ;;  %6998 = vpow2.f32 %v5491_v37  ;;  %v10062_v1 = vadd.f32 %v10988_v53, %v9949_v59  ;;  %v10989_v34 = vld [vmem:[#allocation50_spill] sm:$0xff] }
 0x3cd   : > { %v6981_v31 = vpop.eup %6980  ;;  %v4150_v26 = vmul.f32 %v6979_v22, %v9921_v13  ;;  %7000 = vrcp.f32 %v3201_v4  ;;  %v10067_v13 = vadd.f32 %v10989_v34, %v9300_v33 }
 0x3ce   : > { %v6983_v16 = vpop.eup %6982  ;;  %v4938_v55 = vrot.slane %v4937_v9, 4  ;;  %v4269_v2 = vmul.f32 %v6981_v31, %v9925_v49  ;;  %7002 = vrcp.f32 %v3003_v24  ;;  %v10069_v49 = vpop.f32.mrb[160].mxu1 }
 0x3cf   : > { %v6985_v15 = vpop.eup %6984  ;;  %v4999_v40 = vadd.f32 %v4998_v11, %v4150_v26  ;;  %v4151_v37 = vmul.f32 %v6983_v16, %v9935_v39  ;;  %7004 = vpow2.f32 %v5690_v19  ;;  %10990 = vst [vmem:[#allocation4_spill] sm:$0xff] %v10069_v49  ;;  %v10991_v11 = vld [vmem:[#allocation25_spill] sm:$0xff]  ;;  %v10075_v39 = vpop.f32.mrb[161].mxu1 }
 0x3d0   : > { %v6987_v4 = vpop.eup %6986  ;;  %v4939_v22 = vadd.f32 %v4938_v55, %v4937_v9  ;;  %v4974_v56 = vadd.f32 %v4973_v23, %v4269_v2  ;;  %v3210_v46 = vadd.f32 1.0, %v6985_v15  ;;  %7006 = vpow2.f32 %v5492_v3  ;;  %10992 = vst [vmem:[#allocation21_spill] sm:$0xff] %v10075_v39  ;;  %v10077_v23 = vpop.f32.mrb[162].mxu1 }
 0x3d1   : > { %v6989_v24 = vpop.eup %6988  ;;  %v5036_v31 = vadd.f32 %v5035_v50, %v4151_v37  ;;  %v3012_v53 = vadd.f32 1.0, %v6987_v4  ;;  %7008 = vpow2.f32 %v5699_v60  ;;  %v10073_v26 = vadd.f32 %v10991_v11, %v9961_v52  ;;  %10993 = vst [vmem:[#allocation47_spill] sm:$0xff] %v10077_v23  ;;  %v10994_v60 = vld [vmem:[#allocation51_spill] sm:$0xff]  ;;  %v10084_v15 = vpop.f32.mrb[163].mxu1 }
 0x3d2   : > { %v6991_v19 = vpop.eup %6990  ;;  %v4940_v16 = vrot.slane %v4939_v22, 2  ;;  %v4975_v34 = vrot.slane %v4974_v56, 4  ;;  %7010 = vrcp.f32 %v3210_v46  ;;  %v3211_v9 = vadd.f32 1.0, %v6989_v24  ;;  %10995 = vst [vmem:[#allocation35_spill] sm:$0xff] %v10084_v15 }
 0x3d3   : > { %v6993_v3 = vpop.eup %6992  ;;  %7012 = vrcp.f32 %v3012_v53  ;;  %v3013_v55 = vadd.f32 1.0, %v6991_v19  ;;  %v5501_v50 = vmul.f32 -1.442695, %v10062_v1  ;;  %v10082_v2 = vadd.f32 %v10994_v60, %v9264_v45  ;;  %v10996_v19 = vld [vmem:[#allocation6_spill] sm:$0xff] }
 0x3d4   : > { %v6995_v37 = vpop.eup %6994  ;;  %v4941_v4 = vadd.f32 %v4940_v16, %v4939_v22  ;;  %v4976_v11 = vadd.f32 %v4975_v34, %v4974_v56  ;;  %v4160_v39 = vmul.f32 %v6993_v3, %v9956_v18  ;;  %7014 = vrcp.f32 %v3211_v9 }
 0x3d5   : > { %v6997_v46 = vpop.eup %6996  ;;  %7016 = vrcp.f32 %v3013_v55  ;;  %v3220_v24 = vadd.f32 1.0, %v6995_v37  ;;  %v5700_v53 = vmul.f32 -1.442695, %v10067_v13  ;;  %v10090_v23 = vadd.f32 %v10996_v19, %v9949_v59  ;;  %v10997_v55 = vld [vmem:[#allocation52_spill] sm:$0xff] }
 0x3d6   : > { %v6999_v49 = vpop.eup %6998  ;;  %v4942_v60 = vrot.slane %v4941_v4, 1  ;;  %v4977_v48 = vrot.slane %v4976_v11, 2  ;;  %v5000_v38 = vadd.f32 %v4999_v40, %v4160_v39  ;;  %v5502_v15 = vmul.f32 -1.442695, %v10073_v26  ;;  %v10103_v40 = vpop.f32.mrb[164].mxu1 }
 0x3d7   : > { %v7001_v22 = vpop.eup %7000  ;;  %7018 = vrcp.f32 %v3220_v24  ;;  %v3022_v56 = vadd.f32 1.0, %v6999_v49  ;;  %v5709_v18 = vmul.f32 -1.442695, %v10082_v2  ;;  %v10096_v16 = vadd.f32 %v9606_v41, %v9300_v33  ;;  %10998 = vst [vmem:[#allocation12_spill] sm:$0xff] %v10103_v40 }
 0x3d8   : > { %v7003_v34 = vpop.eup %7002  ;;  %v4978_v9 = vadd.f32 %v4977_v48, %v4976_v11  ;;  %v4161_v3 = vmul.f32 %v7001_v22, %v9976_v6  ;;  %7020 = vpow2.f32 %v5501_v50  ;;  %v10101_v37 = vadd.f32 %v10997_v55, %v9961_v52  ;;  %v10112_v48 = vpop.f32.mrb[165].mxu1 }
 0x3d9   : > { %v7005_v39 = vpop.eup %7004  ;;  %v10105_v24 = vadd.f32 %v4942_v60, %v4941_v4  ;;  %7022 = vrcp.f32 %v3022_v56  ;;  %v5511_v49 = vmul.f32 -1.442695, %v10090_v23  ;;  %v10110_v41 = vadd.f32 %v9617_v27, %v9264_v45  ;;  %10999 = vst [vmem:[#allocation23_spill] sm:$0xff] %v10112_v48  ;;  %v10114_v22 = vpop.f32.mrb[166].mxu1 }
 0x3da   : > { %v7007_v6 = vpop.eup %7006  ;;  %v4979_v50 = vrot.slane %v4978_v9, 1  ;;  %v5037_v11 = vadd.f32 %v5036_v31, %v4161_v3  ;;  %v3221_v19 = vadd.f32 1.0, %v7005_v39  ;;  %7024 = vpow2.f32 %v5700_v53  ;;  %11000 = vst [vmem:[#allocation7_spill] sm:$0xff] %v10114_v22  ;;  %v10121_v27 = vpop.f32.mrb[167].mxu1 }
 0x3db   : > { %v7009_v55 = vpop.eup %7008  ;;  %v3023_v40 = vadd.f32 1.0, %v7007_v6  ;;  %7026 = vpow2.f32 %v5502_v15  ;;  %v5710_v4 = vmul.f32 -1.442695, %v10096_v16  ;;  %v10119_v60 = vadd.f32 %v9619_v63, %v9949_v59  ;;  %11001 = vst [vmem:[#allocation36_spill] sm:$0xff] %v10121_v27  ;;  %v10140_v10 = vpop.f32.mrb[168].mxu1 }
 0x3dc   : > { %v7011_v56 = vpop.eup %7010  ;;  %v10123_v48 = vadd.f32 %v4979_v50, %v4978_v9  ;;  %7028 = vrcp.f32 %v3221_v19  ;;  %v3230_v31 = vadd.f32 1.0, %v7009_v55  ;;  %v5512_v53 = vmul.f32 -1.442695, %v10101_v37 }
 0x3dd   : > { %v7013_v3 = vpop.eup %7012  ;;  %v4170_v39 = vmul.f32 %v7011_v56, %v9991_v43  ;;  %7030 = vrcp.f32 %v3023_v40  ;;  %v5719_v15 = vmul.f32 -1.442695, %v10110_v41  ;;  %v10130_v6 = vadd.f32 %v9627_v36, %v9300_v33 }
 0x3de   : > { %v7015_v63 = vpop.eup %7014  ;;  %v3962_v9 = vmul.f32 %v6997_v46, %v9967_v62  ;;  %v3972_v50 = vmul.f32 %v7013_v3, %v9996_v17  ;;  %7032 = vrcp.f32 %v3230_v31  ;;  %v5521_v40 = vmul.f32 -1.442695, %v10119_v60 }
 0x3df   : > { %v7017_v19 = vpop.eup %7016  ;;  %v5001_v55 = vadd.f32 %v5000_v38, %v4170_v39  ;;  %v4171_v43 = vmul.f32 %v7015_v63, %v10001_v28  ;;  %7034 = vpow2.f32 %v5709_v18  ;;  %v3963_v56 = vmul.f32 %v7003_v34, %v9982_v5  ;;  %v10147_v28 = vpop.f32.mrb[169].mxu1 }
 0x3e0   : > { %v5055_v36 = vadd.f32 %v3972_v50, %v3962_v9  ;;  %v3973_v22 = vmul.f32 %v7017_v19, %v10005_v42  ;;  %7036 = vpow2.f32 %v5511_v49  ;;  %v5720_v17 = vmul.f32 -1.442695, %v10130_v6  ;;  %v10154_v34 = vpop.f32.mrb[170].mxu1 }
 0x3e1   : > { %v7019_v27 = vpop.eup %7018  ;;  %v5038_v62 = vadd.f32 %v5037_v11, %v4171_v43  ;;  %7038 = vpow2.f32 %v5710_v4  ;;  %v10145_v38 = vadd.f32 %v9633_v47, %v9961_v52  ;;  %v10152_v42 = vadd.f32 %v9650_v35, %v9264_v45  ;;  %v10160_v4 = vpop.f32.mrb[171].mxu1 }
 0x3e2   : > { %v7021_v46 = vpop.eup %7020  ;;  %v5092_v18 = vadd.f32 %v3973_v22, %v3963_v56  ;;  %v4180_v5 = vmul.f32 %v7019_v27, %v10015_v32  ;;  %7040 = vpow2.f32 %v5512_v53  ;;  %v10158_v47 = vadd.f32 %v9652_v8, %v9949_v59 }
 0x3e3   : > { %v7023_v49 = vpop.eup %7022  ;;  %v3032_v11 = vadd.f32 1.0, %v7021_v46  ;;  %7042 = vpow2.f32 %v5719_v15  ;;  %v5522_v53 = vmul.f32 -1.442695, %v10145_v38  ;;  %v5729_v15 = vmul.f32 -1.442695, %v10152_v42 }
 0x3e4   : > { %v7025_v31 = vpop.eup %7024  ;;  %v5002_v22 = vadd.f32 %v5001_v55, %v4180_v5  ;;  %v3982_v32 = vmul.f32 %v7023_v49, %v10027_v0  ;;  %7044 = vpow2.f32 %v5521_v40  ;;  %v5531_v50 = vmul.f32 -1.442695, %v10158_v47  ;;  %v10168_v55 = vpop.f32.mrb[172].mxu1 }
 0x3e5   : > { %v7027_v27 = vpop.eup %7026  ;;  %7046 = vrcp.f32 %v3032_v11  ;;  %v3231_v35 = vadd.f32 1.0, %v7025_v31 }
 0x3e6   : > { %v7029_v3 = vpop.eup %7028  ;;  %v5056_v39 = vadd.f32 %v5055_v36, %v3982_v32  ;;  %v3033_v63 = vadd.f32 1.0, %v7027_v27  ;;  %7048 = vpow2.f32 %v5720_v17  ;;  %v10171_v36 = vpop.f32.mrb[173].mxu1 }
 0x3e7   : > { %v7031_v8 = vpop.eup %7030  ;;  %v4181_v9 = vmul.f32 %v7029_v3, %v10032_v30  ;;  %7050 = vrcp.f32 %v3231_v35  ;;  %v10175_v30 = vadd.f32 %v9659_v20, %v9300_v33  ;;  %v10177_v49 = vpop.f32.mrb[174].mxu1  ;;  %v11003_v35 = vld [vmem:[#allocation24_spill] sm:$0xff] }
 0x3e8   : > { %v7033_v19 = vpop.eup %7032  ;;  %v3983_v0 = vmul.f32 %v7031_v8, %v10038_v25  ;;  %7052 = vrcp.f32 %v3033_v63 }
 0x3e9   : > { %v7035_v43 = vpop.eup %7034  ;;  %v5039_v40 = vadd.f32 %v5038_v62, %v4181_v9  ;;  %v4190_v56 = vmul.f32 %v7033_v19, %v10046_v44  ;;  %7054 = vpow2.f32 %v5522_v53  ;;  %v10181_v62 = vpop.f32.mrb[175].mxu1  ;;  %v10189_v53 = vadd.f32 %v11003_v35, %v9264_v45  ;;  %v11006_v35 = vld [vmem:[#allocation9_spill] sm:$0xff] }
 0x3ea   : > { %v7037_v17 = vpop.eup %7036  ;;  %v5093_v46 = vadd.f32 %v5092_v18, %v3983_v0  ;;  %v3240_v5 = vadd.f32 1.0, %v7035_v43  ;;  %7056 = vpow2.f32 %v5729_v15  ;;  %11002 = vst [vmem:[#allocation39_spill] sm:$0xff] %v10181_v62  ;;  %v10185_v18 = vadd.f32 %v9671_v58, %v9961_v52 }
 0x3eb   : > { %v7039_v25 = vpop.eup %7038  ;;  %v10179_v11 = vadd.f32 %v5002_v22, %v4190_v56  ;;  %v3042_v31 = vadd.f32 1.0, %v7037_v17  ;;  %7058 = vpow2.f32 %v5531_v50  ;;  %v11004_v22 = vld [vmem:[#allocation40_spill] sm:$0xff]  ;;  %v5730_v8 = vmul.f32 -1.442695, %v10175_v30 }
 0x3ec   : > { %v7041_v44 = vpop.eup %7040  ;;  %7060 = vrcp.f32 %v3240_v5  ;;  %v3241_v32 = vadd.f32 1.0, %v7039_v25  ;;  %v10193_v3 = vadd.f32 %v11004_v22, %v9949_v59  ;;  %v5532_v0 = vmul.f32 -1.442695, %v10185_v18 }
 0x3ed   : > { %v7043_v27 = vpop.eup %7042  ;;  %7062 = vrcp.f32 %v3042_v31  ;;  %v3043_v20 = vadd.f32 1.0, %v7041_v44  ;;  %v5739_v17 = vmul.f32 -1.442695, %v10189_v53  ;;  %v10208_v22 = vadd.f32 %v11006_v35, %v9961_v52 }
 0x3ee   : > { %v7045_v63 = vpop.eup %7044  ;;  %7064 = vrcp.f32 %v3241_v32  ;;  %v3250_v15 = vadd.f32 1.0, %v7043_v27  ;;  %v5541_v5 = vmul.f32 -1.442695, %v10193_v3  ;;  %v11005_v32 = vld [vmem:[#allocation41_spill] sm:$0xff] }
 0x3ef   : > { %v7047_v9 = vpop.eup %7046  ;;  %7066 = vrcp.f32 %v3043_v20  ;;  %v3052_v58 = vadd.f32 1.0, %v7045_v63  ;;  %v10203_v27 = vadd.f32 %v11005_v32, %v9300_v33  ;;  %v11007_v63 = vld [vmem:[#allocation27_spill] sm:$0xff] }
 0x3f0   : > { %v7049_v50 = vpop.eup %7048  ;;  %v3992_v19 = vmul.f32 %v7047_v9, %v10062_v1  ;;  %7068 = vrcp.f32 %v3250_v15  ;;  %v10212_v15 = vadd.f32 %v11007_v63, %v9264_v45  ;;  %v11010_v63 = vld [vmem:[#allocation42_spill] sm:$0xff] }
 0x3f1   : > { %v7051_v43 = vpop.eup %7050  ;;  %7070 = vrcp.f32 %v3052_v58  ;;  %v3251_v56 = vadd.f32 1.0, %v7049_v50  ;;  %v5740_v35 = vmul.f32 -1.442695, %v10203_v27 }
 0x3f2   : > { %v7053_v25 = vpop.eup %7052  ;;  %v5057_v31 = vadd.f32 %v5056_v39, %v3992_v19  ;;  %v4191_v44 = vmul.f32 %v7051_v43, %v10067_v13  ;;  %7072 = vpow2.f32 %v5730_v8  ;;  %v11008_v8 = vld [vmem:[#allocation26_spill] sm:$0xff]  ;;  %v11009_v43 = vld [vmem:[#allocation29_spill] sm:$0xff] }
 0x3f3   : > { %v7055_v1 = vpop.eup %7054  ;;  %v3993_v20 = vmul.f32 %v7053_v25, %v10073_v26  ;;  %7074 = vrcp.f32 %v3251_v56  ;;  %v10216_v58 = vadd.f32 %v11008_v8, %v9949_v59  ;;  %v10220_v56 = vadd.f32 %v11009_v43, %v9300_v33 }
 0x3f4   : > { %v7057_v39 = vpop.eup %7056  ;;  %v5040_v9 = vadd.f32 %v5039_v40, %v4191_v44  ;;  %v3053_v13 = vadd.f32 1.0, %v7055_v1  ;;  %7076 = vpow2.f32 %v5532_v0  ;;  %v5542_v44 = vmul.f32 -1.442695, %v10208_v22 }
 0x3f5   : > { %v7059_v50 = vpop.eup %7058  ;;  %v5094_v19 = vadd.f32 %v5093_v46, %v3993_v20  ;;  %v3260_v26 = vadd.f32 1.0, %v7057_v39  ;;  %7078 = vpow2.f32 %v5739_v17  ;;  %v5749_v1 = vmul.f32 -1.442695, %v10212_v15 }
 0x3f6   : > { %v7061_v25 = vpop.eup %7060  ;;  %7080 = vrcp.f32 %v3053_v13  ;;  %v3062_v32 = vadd.f32 1.0, %v7059_v50  ;;  %v5551_v20 = vmul.f32 -1.442695, %v10216_v58  ;;  %v10230_v39 = vadd.f32 %v11010_v63, %v9961_v52 }
 0x3f7   : > { %v7063_v40 = vpop.eup %7062  ;;  %v4200_v0 = vmul.f32 %v7061_v25, %v10082_v2  ;;  %7082 = vrcp.f32 %v3260_v26  ;;  %v5750_v50 = vmul.f32 -1.442695, %v10220_v56 }
 0x3f8   : > { %v7065_v46 = vpop.eup %7064  ;;  %v4002_v17 = vmul.f32 %v7063_v40, %v10090_v23  ;;  %7084 = vrcp.f32 %v3062_v32  ;;  %v11011_v23 = vld [vmem:[#allocation43_spill] sm:$0xff] }
 0x3f9   : > { %v7067_v13 = vpop.eup %7066  ;;  %v5004_v8 = vadd.f32 %v10179_v11, %v4200_v0  ;;  %v4201_v2 = vmul.f32 %v7065_v46, %v10096_v16  ;;  %7086 = vpow2.f32 %v5541_v5  ;;  %v10238_v32 = vadd.f32 %v11011_v23, %v9264_v45  ;;  %v11012_v11 = vld [vmem:[#allocation44_spill] sm:$0xff] }
 0x3fa   : > { %v7069_v26 = vpop.eup %7068  ;;  %v5058_v43 = vadd.f32 %v5057_v31, %v4002_v17  ;;  %v4003_v25 = vmul.f32 %v7067_v13, %v10101_v37  ;;  %7088 = vpow2.f32 %v5740_v35  ;;  %v10243_v16 = vadd.f32 %v11012_v11, %v9949_v59 }
 0x3fb   : > { %v7071_v40 = vpop.eup %7070  ;;  %v5041_v63 = vadd.f32 %v5040_v9, %v4201_v2  ;;  %v4210_v62 = vmul.f32 %v7069_v26, %v10110_v41  ;;  %7090 = vpow2.f32 %v5542_v44  ;;  %v5552_v37 = vmul.f32 -1.442695, %v10230_v39  ;;  %v11013_v9 = vld [vmem:[#allocation8_spill] sm:$0xff] }
 0x3fc   : > { %v7073_v5 = vpop.eup %7072  ;;  %v5095_v0 = vadd.f32 %v5094_v19, %v4003_v25  ;;  %v4012_v31 = vmul.f32 %v7071_v40, %v10119_v60  ;;  %7092 = vpow2.f32 %v5749_v1  ;;  %v10249_v13 = vadd.f32 %v11013_v9, %v9300_v33 }
 0x3fd   : > { %v7075_v35 = vpop.eup %7074  ;;  %v5005_v46 = vadd.f32 %v5004_v8, %v4210_v62  ;;  %v3261_v17 = vadd.f32 1.0, %v7073_v5  ;;  %7094 = vpow2.f32 %v5551_v20  ;;  %v5759_v60 = vmul.f32 -1.442695, %v10238_v32 }
 0x3fe   : > { %v7077_v41 = vpop.eup %7076  ;;  %v5059_v44 = vadd.f32 %v5058_v43, %v4012_v31  ;;  %v4211_v2 = vmul.f32 %v7075_v35, %v10130_v6  ;;  %7096 = vpow2.f32 %v5750_v50  ;;  %v5561_v62 = vmul.f32 -1.442695, %v10243_v16  ;;  %v11014_v35 = vld [vmem:[#allocation28_spill] sm:$0xff] }
 0x3ff   : > { %v7079_v26 = vpop.eup %7078  ;;  %7098 = vrcp.f32 %v3261_v17  ;;  %v3063_v19 = vadd.f32 1.0, %v7077_v41  ;;  %v5760_v43 = vmul.f32 -1.442695, %v10249_v13  ;;  %v10260_v17 = vadd.f32 %v11014_v35, %v9961_v52 }
 0x400   : > { %v7081_v1 = vpop.eup %7080  ;;  %v5042_v25 = vadd.f32 %v5041_v63, %v4211_v2  ;;  %v3270_v23 = vadd.f32 1.0, %v7079_v26  ;;  %7100 = vpow2.f32 %v5552_v37 }
 0x401   : > { %v7083_v20 = vpop.eup %7082  ;;  %v4013_v8 = vmul.f32 %v7081_v1, %v10145_v38  ;;  %7102 = vrcp.f32 %v3063_v19  ;;  %v11017_v1 = vld [vmem:[#allocation11_spill] sm:$0xff] }
 0x402   : > { %v7085_v40 = vpop.eup %7084  ;;  %v4220_v6 = vmul.f32 %v7083_v20, %v10152_v42  ;;  %7104 = vrcp.f32 %v3270_v23  ;;  %v11015_v42 = vld [vmem:[#allocation45_spill] sm:$0xff]  ;;  %v5562_v20 = vmul.f32 -1.442695, %v10260_v17 }
 0x403   : > { %v7087_v50 = vpop.eup %7086  ;;  %v5096_v11 = vadd.f32 %v5095_v0, %v4013_v8  ;;  %v4022_v5 = vmul.f32 %v7085_v40, %v10158_v47  ;;  %7106 = vpow2.f32 %v5759_v60  ;;  %v10266_v2 = vadd.f32 %v11015_v42, %v9264_v45 }
 0x404   : > { %v7089_v63 = vpop.eup %7088  ;;  %v5006_v31 = vadd.f32 %v5005_v46, %v4220_v6  ;;  %v3072_v37 = vadd.f32 1.0, %v7087_v50  ;;  %7108 = vpow2.f32 %v5561_v62  ;;  %v11016_v46 = vld [vmem:[#allocation46_spill] sm:$0xff] }
 0x405   : > { %v7091_v38 = vpop.eup %7090  ;;  %v10262_v9 = vadd.f32 %v5059_v44, %v4022_v5  ;;  %v3271_v41 = vadd.f32 1.0, %v7089_v63  ;;  %7110 = vpow2.f32 %v5760_v43  ;;  %v10270_v26 = vadd.f32 %v11016_v46, %v9949_v59  ;;  %v11018_v63 = vld [vmem:[#allocation10_spill] sm:$0xff] }
 0x406   : > { %v7093_v0 = vpop.eup %7092  ;;  %7112 = vrcp.f32 %v3072_v37  ;;  %v3073_v47 = vadd.f32 1.0, %v7091_v38  ;;  %v10274_v44 = vadd.f32 %v11017_v1, %v9300_v33  ;;  %v5769_v40 = vmul.f32 -1.442695, %v10266_v2  ;;  %v11022_v1 = vld [vmem:[#allocation15_spill] sm:$0xff] }
 0x407   : > { %v7095_v19 = vpop.eup %7094  ;;  %7114 = vrcp.f32 %v3271_v41  ;;  %v3280_v60 = vadd.f32 1.0, %v7093_v0  ;;  %v5571_v5 = vmul.f32 -1.442695, %v10270_v26  ;;  %v10282_v37 = vadd.f32 %v11018_v63, %v9961_v52 }
 0x408   : > { %v7097_v23 = vpop.eup %7096  ;;  %7116 = vrcp.f32 %v3073_v47  ;;  %v3082_v62 = vadd.f32 1.0, %v7095_v19  ;;  %v5770_v41 = vmul.f32 -1.442695, %v10274_v44  ;;  %v11019_v46 = vlaneseq }
 0x409   : > { %v7099_v8 = vpop.eup %7098  ;;  %7118 = vrcp.f32 %v3280_v60  ;;  %v3281_v43 = vadd.f32 1.0, %v7097_v23  ;;  %v10294_v23 = vadd.f32 %v11022_v1, %v9264_v45  ;;  %v10308_v63 = vadd.f32 %v9824_v61, %v9961_v52 }
 0x40a   : > { %v7101_v6 = vpop.eup %7100  ;;  %v4221_v50 = vmul.f32 %v7099_v8, %v10175_v30  ;;  %7120 = vrcp.f32 %v3082_v62  ;;  %vm10287_vm1 = vcmp.lt.s32.totalorder %v11019_v46, 256  ;;  %v11023_v62 = vld [vmem:[#allocation13_spill] sm:$0xff] }
 0x40b   : > { %v7103_v35 = vpop.eup %7102  ;;  %7122 = vrcp.f32 %v3281_v43  ;;  %v3083_v38 = vadd.f32 1.0, %v7101_v6  ;;  %v10298_v8 = vadd.f32 %v11023_v62, %v9949_v59  ;;  %v5582_v1 = vmul.f32 -1.442695, %v10308_v63 }
 0x40c   : > { %v7105_v42 = vpop.eup %7104  ;;  %v5043_v0 = vadd.f32 %v5042_v25, %v4221_v50  ;;  %v4023_v47 = vmul.f32 %v7103_v35, %v10185_v18  ;;  %7124 = vpow2.f32 %v5562_v20  ;;  %v7356_v25 = vmov 0.0  }
 0x40d   : > { %v7107_v19 = vpop.eup %7106  ;;  %v4230_v60 = vmul.f32 %v7105_v42, %v10189_v53  ;;  %7126 = vrcp.f32 %v3083_v38  ;;  %261 = vst.msk [vmem:[#allocation2 + $0x8] sm:$0x3] %vm10287_vm1, %v7356_v25  ;;  %v10304_v53 = vadd.f32 %v9822_v57, %v9300_v33  ;;  %v5572_v42 = vmul.f32 -1.442695, %v10282_v37  ;;  %v11024_v57 = vld [vmem:[#allocation17_spill] sm:$0xff] }
 0x40e   : > { %v7109_v18 = vpop.eup %7108  ;;  %v5097_v20 = vadd.f32 %v5096_v11, %v4023_v47  ;;  %v3290_v43 = vadd.f32 1.0, %v7107_v19  ;;  %7128 = vpow2.f32 %v5769_v40  ;;  %v5779_v33 = vmul.f32 -1.442695, %v10294_v23 }
 0x40f   : > { %v7111_v6 = vpop.eup %7110  ;;  %v5007_v50 = vadd.f32 %v5006_v31, %v4230_v60  ;;  %v3092_v45 = vadd.f32 1.0, %v7109_v18  ;;  %7130 = vpow2.f32 %v5571_v5  ;;  %v10315_v31 = vadd.f32 %v11024_v57, %v9949_v59 }
 0x410   : > { %v7113_v35 = vpop.eup %7112  ;;  %7132 = vrcp.f32 %v3290_v43  ;;  %v3291_v38 = vadd.f32 1.0, %v7111_v6  ;;  %v5581_v61 = vmul.f32 -1.442695, %v10298_v8  ;;  %v5780_v46 = vmul.f32 -1.442695, %v10304_v53 }
 0x411   : > { %v7115_v11 = vpop.eup %7114  ;;  %v4032_v40 = vmul.f32 %v7113_v35, %v10193_v3  ;;  %7134 = vrcp.f32 %v3092_v45 }
 0x412   : > { %v7117_v5 = vpop.eup %7116  ;;  %v4231_v47 = vmul.f32 %v7115_v11, %v10203_v27  ;;  %7136 = vrcp.f32 %v3291_v38  ;;  %v11025_v27 = vld [vmem:[#allocation3_spill] sm:$0xff] }
 0x413   : > { %v7119_v19 = vpop.eup %7118  ;;  %v5061_v60 = vadd.f32 %v10262_v9, %v4032_v40  ;;  %v4033_v3 = vmul.f32 %v7117_v5, %v10208_v22  ;;  %7138 = vpow2.f32 %v5770_v41  ;;  %v10326_v43 = vadd.f32 %v11025_v27, %v9961_v52 }
 0x414   : > { %v7121_v62 = vpop.eup %7120  ;;  %v5044_v25 = vadd.f32 %v5043_v0, %v4231_v47  ;;  %v4240_v18 = vmul.f32 %v7119_v19, %v10212_v15  ;;  %7140 = vpow2.f32 %v5572_v42  ;;  %v5591_v9 = vmul.f32 -1.442695, %v10315_v31  ;;  %v11026_v0 = vld [vmem:[#allocation53_spill] sm:$0xff] }
 0x415   : > { %v7123_v6 = vpop.eup %7122  ;;  %v5098_v45 = vadd.f32 %v5097_v20, %v4033_v3  ;;  %v4042_v35 = vmul.f32 %v7121_v62, %v10216_v58  ;;  %7142 = vpow2.f32 %v5779_v33  ;;  %v10333_v15 = vadd.f32 %v11026_v0, %v9949_v59  ;;  %v11027_v20 = vld [vmem:[#allocation54_spill] sm:$0xff] }
 0x416   : > { %v7125_v22 = vpop.eup %7124  ;;  %v5008_v41 = vadd.f32 %v5007_v50, %v4240_v18  ;;  %v4241_v38 = vmul.f32 %v7123_v6, %v10220_v56  ;;  %7144 = vpow2.f32 %v5581_v61  ;;  %v10337_v57 = vadd.f32 %v11027_v20, %v9961_v52 }
 0x417   : > { %v7127_v42 = vpop.eup %7126  ;;  %v5062_v11 = vadd.f32 %v5061_v60, %v4042_v35  ;;  %v3093_v40 = vadd.f32 1.0, %v7125_v22  ;;  %7146 = vpow2.f32 %v5780_v46  ;;  %v5592_v47 = vmul.f32 -1.442695, %v10326_v43  ;;  %v11028_v22 = vld [vmem:[#allocation14_spill] sm:$0xff] }
 0x418   : > { %v7129_v58 = vpop.eup %7128  ;;  %v5045_v33 = vadd.f32 %v5044_v25, %v4241_v38  ;;  %v4043_v5 = vmul.f32 %v7127_v42, %v10230_v39  ;;  %7148 = vpow2.f32 %v5582_v1  ;;  %v5601_v46 = vmul.f32 -1.442695, %v10333_v15 }
 0x419   : > { %v7131_v50 = vpop.eup %7130  ;;  %7150 = vrcp.f32 %v3093_v40  ;;  %v3300_v56 = vadd.f32 1.0, %v7129_v58  ;;  %v5602_v25 = vmul.f32 -1.442695, %v10337_v57  ;;  %v10348_v38 = vadd.f32 %v11028_v22, %v9949_v59  ;;  %v11030_v58 = vld [vmem:[#allocation16_spill] sm:$0xff] }
 0x41a   : > { %v7133_v61 = vpop.eup %7132  ;;  %v5099_v19 = vadd.f32 %v5098_v45, %v4043_v5  ;;  %v3102_v3 = vadd.f32 1.0, %v7131_v50  ;;  %7152 = vpow2.f32 %v5591_v9  ;;  %v10358_v5 = vadd.f32 %v11030_v58, %v9949_v59 }
 0x41b   : > { %v7135_v60 = vpop.eup %7134  ;;  %v4250_v62 = vmul.f32 %v7133_v61, %v10238_v32  ;;  %7154 = vrcp.f32 %v3300_v56  ;;  %v5611_v56 = vmul.f32 -1.442695, %v10348_v38 }
 0x41c   : > { %v7137_v18 = vpop.eup %7136  ;;  %v4052_v39 = vmul.f32 %v7135_v60, %v10243_v16  ;;  %7156 = vrcp.f32 %v3102_v3  ;;  %v11031_v3 = vld [vmem:[#allocation31_spill] sm:$0xff] }
 0x41d   : > { %v7139_v1 = vpop.eup %7138  ;;  %v5009_v27 = vadd.f32 %v5008_v41, %v4250_v62  ;;  %v4251_v6 = vmul.f32 %v7137_v18, %v10249_v13  ;;  %7158 = vpow2.f32 %v5592_v47  ;;  %v11029_v41 = vld [vmem:[#allocation5_spill] sm:$0xff]  ;;  %v11032_v62 = vld [vmem:[#allocation48_spill] sm:$0xff]  ;;  %v11034_v18 = vld [vmem:[#allocation38_spill] sm:$0xff] }
 0x41e   : > { %v7141_v45 = vpop.eup %7140  ;;  %v5063_v35 = vadd.f32 %v5062_v11, %v4052_v39  ;;  %v3301_v9 = vadd.f32 1.0, %v7139_v1  ;;  %7160 = vpow2.f32 %v5601_v46  ;;  %v10354_v13 = vadd.f32 %v11029_v41, %v9961_v52 }
 0x41f   : > { %v7143_v32 = vpop.eup %7142  ;;  %v10350_v0 = vadd.f32 %v5045_v33, %v4251_v6  ;;  %v3103_v42 = vadd.f32 1.0, %v7141_v45  ;;  %7162 = vpow2.f32 %v5602_v25  ;;  %v10363_v46 = vadd.f32 %v11031_v3, %v9961_v52  ;;  %v11033_v25 = vld [vmem:[#allocation37_spill] sm:$0xff] }
 0x420   : > { %v7145_v16 = vpop.eup %7144  ;;  %7164 = vrcp.f32 %v3301_v9  ;;  %v3310_v40 = vadd.f32 1.0, %v7143_v32  ;;  %v11035_v39 = vcombine.low %v11033_v25, %v11034_v18  ;;  %v5612_v45 = vmul.f32 -1.442695, %v10354_v13 }
 0x421   : > { %v7147_v20 = vpop.eup %7146  ;;  %7166 = vrcp.f32 %v3103_v42  ;;  %v3112_v11 = vadd.f32 1.0, %v7145_v16  ;;  %v5621_v32 = vmul.f32 -1.442695, %v10358_v5  ;;  %v10376_v42 = vadd.f32 %v9927_v51, %v9949_v59 }
 0x422   : > { %v7149_v50 = vpop.eup %7148  ;;  %7168 = vrcp.f32 %v3310_v40  ;;  %v3311_v33 = vadd.f32 1.0, %v7147_v20  ;;  %v10369_v1 = vrot.slane %v11035_v39, %v11032_v62  ;;  %v11036_v20 = vld [vmem:[#allocation30_spill] sm:$0xff] }
 0x423   : > { %v7151_v47 = vpop.eup %7150  ;;  %7170 = vrcp.f32 %v3112_v11  ;;  %v3113_v61 = vadd.f32 1.0, %v7149_v50  ;;  %v5622_v50 = vmul.f32 -1.442695, %v10363_v46 }
 0x424   : > { %v7153_v60 = vpop.eup %7152  ;;  %v4053_v6 = vmul.f32 %v7151_v47, %v10260_v17  ;;  %7172 = vrcp.f32 %v3311_v33  ;;  %v10381_v17 = vadd.f32 %v11036_v20, %v9961_v52  ;;  %v11037_v33 = vld [vmem:[#allocation55_spill] sm:$0xff] }
 0x425   : > { %v7155_v9 = vpop.eup %7154  ;;  %7174 = vrcp.f32 %v3113_v61  ;;  %v3122_v22 = vadd.f32 1.0, %v7153_v60  ;;  %v10387_v47 = vadd.f32 %v11037_v33, %v9949_v59 }
 0x426   : > { %v7157_v16 = vpop.eup %7156  ;;  %v5100_v40 = vadd.f32 %v5099_v19, %v4053_v6  ;;  %v4260_v41 = vmul.f32 %v7155_v9, %v10266_v2  ;;  %7176 = vpow2.f32 %v5611_v56  ;;  %v11038_v2 = vld [vmem:[#allocation33_spill] sm:$0xff]  ;;  %v5631_v6 = vmul.f32 -1.442695, %v10376_v42 }
 0x427   : > { %v7159_v11 = vpop.eup %7158  ;;  %v4062_v58 = vmul.f32 %v7157_v16, %v10270_v26  ;;  %7178 = vrcp.f32 %v3122_v22  ;;  %v10391_v56 = vadd.f32 %v11038_v2, %v9961_v52  ;;  %v10395_v26 = vadd.f32 %v9963_v54, %v9949_v59 }
 0x428   : > { %v7161_v51 = vpop.eup %7160  ;;  %v5010_v61 = vadd.f32 %v5009_v27, %v4260_v41  ;;  %v3123_v19 = vadd.f32 1.0, %v7159_v11  ;;  %7180 = vpow2.f32 %v5612_v45  ;;  %v5632_v27 = vmul.f32 -1.442695, %v10381_v17 }
 0x429   : > { %v7163_v3 = vpop.eup %7162  ;;  %v5064_v60 = vadd.f32 %v5063_v35, %v4062_v58  ;;  %v3132_v25 = vadd.f32 1.0, %v7161_v51  ;;  %7182 = vpow2.f32 %v5621_v32  ;;  %v5641_v22 = vmul.f32 -1.442695, %v10387_v47 }
 0x42a   : > { %v7165_v18 = vpop.eup %7164  ;;  %7184 = vrcp.f32 %v3123_v19  ;;  %v3133_v39 = vadd.f32 1.0, %v7163_v3  ;;  %v10403_v35 = vadd.f32 %v9969_v7, %v9961_v52  ;;  %v5642_v16 = vmul.f32 -1.442695, %v10391_v56 }
 0x42b   : > { %v7167_v45 = vpop.eup %7166  ;;  %v4261_v9 = vmul.f32 %v7165_v18, %v10274_v44  ;;  %7186 = vrcp.f32 %v3132_v25  ;;  %v10409_v41 = vadd.f32 %v9971_v14, %v9949_v59  ;;  %v5651_v58 = vmul.f32 -1.442695, %v10395_v26 }
 0x42c   : > { %v7169_v32 = vpop.eup %7168  ;;  %v4063_v54 = vmul.f32 %v7167_v45, %v10282_v37  ;;  %7188 = vrcp.f32 %v3133_v39  ;;  %v11039_v37 = vld [vmem:[#allocation32_spill] sm:$0xff] }
 0x42d   : > { %v7171_v20 = vpop.eup %7170  ;;  %v5047_v44 = vadd.f32 %v10350_v0, %v4261_v9  ;;  %v4270_v11 = vmul.f32 %v7169_v32, %v10294_v23  ;;  %7190 = vpow2.f32 %v5622_v50  ;;  %v10417_v19 = vadd.f32 %v11039_v37, %v9961_v52 }
 0x42e   : > { %v7173_v7 = vpop.eup %7172  ;;  %v5101_v33 = vadd.f32 %v5100_v40, %v4063_v54  ;;  %v4072_v51 = vmul.f32 %v7171_v20, %v10298_v8  ;;  %7192 = vpow2.f32 %v5631_v6  ;;  %v5652_v0 = vmul.f32 -1.442695, %v10403_v35 }
 0x42f   : > { %v7175_v2 = vpop.eup %7174  ;;  %v5011_v14 = vadd.f32 %v5010_v61, %v4270_v11  ;;  %v4271_v3 = vmul.f32 %v7173_v7, %v10304_v53  ;;  %7194 = vpow2.f32 %v5632_v27  ;;  %v5661_v40 = vmul.f32 -1.442695, %v10409_v41 }
 0x430   : > { %v7177_v23 = vpop.eup %7176  ;;  %v5065_v50 = vadd.f32 %v5064_v60, %v4072_v51  ;;  %v4073_v25 = vmul.f32 %v7175_v2, %v10308_v63  ;;  %7196 = vpow2.f32 %v5641_v22  ;;  %v10425_v53 = vmul.f32 -1.442695, %v10417_v19 }
 0x431   : > { %v7179_v8 = vpop.eup %7178  ;;  %v5012_v18 = vrot.slane %v5011_v14, 4  ;;  %v5048_v39 = vadd.f32 %v5047_v44, %v4271_v3  ;;  %v3142_v6 = vadd.f32 1.0, %v7177_v23  ;;  %7198 = vpow2.f32 %v5642_v16 }
 0x432   : > { %v7181_v45 = vpop.eup %7180  ;;  %v5102_v9 = vadd.f32 %v5101_v33, %v4073_v25  ;;  %v4082_v61 = vmul.f32 %v7179_v8, %v10315_v31  ;;  %7200 = vpow2.f32 %v5651_v58  ;;  %v10429_v16 = vadd.f32 %v10007_v21, %v9949_v59 }
 0x433   : > { %v7183_v27 = vpop.eup %7182  ;;  %v5013_v60 = vadd.f32 %v5012_v18, %v5011_v14  ;;  %v5049_v32 = vrot.slane %v5048_v39, 4  ;;  %7202 = vrcp.f32 %v3142_v6  ;;  %v3143_v63 = vadd.f32 1.0, %v7181_v45 }
 0x434   : > { %v7185_v22 = vpop.eup %7184  ;;  %v5066_v54 = vadd.f32 %v5065_v50, %v4082_v61  ;;  %v3152_v20 = vadd.f32 1.0, %v7183_v27  ;;  %7204 = vpow2.f32 %v5652_v0  ;;  %v10435_v51 = vadd.f32 %v10010_v12, %v9961_v52 }
 0x435   : > { %v7187_v44 = vpop.eup %7186  ;;  %v5014_v11 = vrot.slane %v5013_v60, 2  ;;  %v5050_v31 = vadd.f32 %v5049_v32, %v5048_v39  ;;  %v4083_v58 = vmul.f32 %v7185_v22, %v10326_v43  ;;  %7206 = vrcp.f32 %v3143_v63 }
 0x436   : > { %v7189_v7 = vpop.eup %7188  ;;  %v4092_v33 = vmul.f32 %v7187_v44, %v10333_v15  ;;  %7208 = vrcp.f32 %v3152_v20  ;;  %v10439_v37 = vadd.f32 %v10017_v29, %v9949_v59  ;;  %v11040_v15 = vld [vmem:[#allocation18_spill] sm:$0xff] }
 0x437   : > { %v7191_v21 = vpop.eup %7190  ;;  %v5015_v2 = vadd.f32 %v5014_v11, %v5013_v60  ;;  %v5051_v14 = vrot.slane %v5050_v31, 2  ;;  %v5103_v3 = vadd.f32 %v5102_v9, %v4083_v58  ;;  %v4093_v0 = vmul.f32 %v7189_v7, %v10337_v57  ;;  %v11041_v57 = vld [vmem:[#allocation34_spill] sm:$0xff] }
 0x438   : > { %v7193_v43 = vpop.eup %7192  ;;  %v5067_v23 = vadd.f32 %v5066_v54, %v4092_v33  ;;  %v3153_v50 = vadd.f32 1.0, %v7191_v21  ;;  %7210 = vpow2.f32 %v5661_v40  ;;  %v10444_v25 = vadd.f32 %v11040_v15, %v9961_v52 }
 0x439   : > { %v7195_v12 = vpop.eup %7194  ;;  %v5016_v8 = vrot.slane %v5015_v2, 1  ;;  %v5052_v18 = vadd.f32 %v5051_v14, %v5050_v31  ;;  %v5104_v39 = vadd.f32 %v5103_v3, %v4093_v0  ;;  %v3162_v29 = vadd.f32 1.0, %v7193_v43 }
 0x43a   : > { %v7197_v6 = vpop.eup %7196  ;;  %7212 = vrcp.f32 %v3153_v50  ;;  %v3163_v45 = vadd.f32 1.0, %v7195_v12  ;;  %v5671_v9 = vmul.f32 -1.442695, %v10429_v16  ;;  %v10449_v61 = vadd.f32 %v11041_v57, %v9949_v59  ;;  %v11043_v50 = vld [vmem:[#allocation20_spill] sm:$0xff] }
 0x43b   : > { %v7199_v27 = vpop.eup %7198  ;;  %v5017_v40 = vadd.f32 %v5016_v8, %v5015_v2  ;;  %v5053_v60 = vrot.slane %v5052_v18, 1  ;;  %7214 = vrcp.f32 %v3162_v29  ;;  %v3172_v32 = vadd.f32 1.0, %v7197_v6  ;;  %v11042_v2 = vld [vmem:[#allocation19_spill] sm:$0xff] }
 0x43c   : > { %v7201_v63 = vpop.eup %7200  ;;  %7216 = vrcp.f32 %v3163_v45  ;;  %v3173_v22 = vadd.f32 1.0, %v7199_v27  ;;  %v5672_v54 = vmul.f32 -1.442695, %v10435_v51  ;;  %v5681_v20 = vmul.f32 -1.442695, %v10439_v37 }
 0x43d   : > { %v7203_v44 = vpop.eup %7202  ;;  %v5054_v11 = vadd.f32 %v5053_v60, %v5052_v18  ;;  %7218 = vrcp.f32 %v3172_v32  ;;  %v3182_v31 = vadd.f32 1.0, %v7201_v63  ;;  %v5682_v58 = vmul.f32 -1.442695, %v10444_v25  ;;  %v11047_v60 = vld [vmem:[#allocation21_spill] sm:$0xff] }
 0x43e   : > { %v7205_v7 = vpop.eup %7204  ;;  %v4102_v33 = vmul.f32 %v7203_v44, %v10348_v38  ;;  %7220 = vrcp.f32 %v3173_v22  ;;  %v5691_v21 = vmul.f32 -1.442695, %v10449_v61  ;;  %v10458_v14 = vadd.f32 %v11042_v2, %v9961_v52  ;;  %v11044_v38 = vld [vmem:[#allocation22_spill] sm:$0xff] }
 0x43f   : > { %v7207_v3 = vpop.eup %7206  ;;  %v5142_v0 = vcombine.low %v5017_v40, %v5054_v11  ;;  %7222 = vrcp.f32 %v3182_v31  ;;  %v3183_v43 = vadd.f32 1.0, %v7205_v7  ;;  %v10462_v15 = vadd.f32 %v11043_v50, %v9949_v59 }
 0x440   : > { %v7209_v12 = vpop.eup %7208  ;;  %v5068_v8 = vadd.f32 %v5067_v23, %v4102_v33  ;;  %v4103_v18 = vmul.f32 %v7207_v3, %v10354_v13  ;;  %7224 = vpow2.f32 %v10425_v53  ;;  %v10468_v29 = vadd.f32 %v11044_v38, %v9961_v52  ;;  %v11046_v13 = vld [vmem:[#allocation4_spill] sm:$0xff] }
 0x441   : > { %v11045_v6 = vcombine.low %v10105_v24, %v10123_v48  ;;  %v5170_v57 = vrot.slane %v5142_v0, %v11032_v62  ;;  %v4112_v27 = vmul.f32 %v7209_v12, %v10358_v5  ;;  %7226 = vrcp.f32 %v3183_v43 }
 0x442   : > { %v7211_v40 = vpop.eup %7210  ;;  %v5105_v23 = vadd.f32 %v5104_v39, %v4103_v18  ;;  %7228 = vpow2.f32 %v5671_v9  ;;  %v10478_v53 = vadd.f32 %v11046_v13, %v9949_v59  ;;  %v10482_v32 = vadd.f32 %v11047_v60, %v9961_v52  ;;  %v11048_v9 = vld [vmem:[#allocation47_spill] sm:$0xff] }
 0x443   : > { %v5163_v45 = vrot.slane %v11045_v6, %v11032_v62  ;;  %v5069_v22 = vadd.f32 %v5068_v8, %v4112_v27  ;;  %v3192_v24 = vadd.f32 1.0, %v7211_v40  ;;  %7230 = vpow2.f32 %v5672_v54 }
 0x444   : > { %v7213_v48 = vpop.eup %7212  ;;  %7232 = vpow2.f32 %v5681_v20  ;;  %v5692_v5 = vmul.f32 -1.442695, %v10458_v14  ;;  %v5701_v39 = vmul.f32 -1.442695, %v10462_v15  ;;  %v10488_v44 = vadd.f32 %v11048_v9, %v9949_v59 }
 0x445   : > { %v5172_v63 = vcombine.low %v5163_v45, %v5170_v57  ;;  %v7215_v11 = vpop.eup %7214  ;;  %v4113_v7 = vmul.f32 %v7213_v48, %v10363_v46  ;;  %7234 = vrcp.f32 %v3192_v24  ;;  %v5702_v33 = vmul.f32 -1.442695, %v10468_v29 }
 0x446   : > { %v7217_v54 = vpop.eup %7216  ;;  %v4122_v2 = vmul.f32 %v7215_v11, %v10376_v42  ;;  %7236 = vpow2.f32 %v5682_v58  ;;  %v5711_v20 = vmul.f32 -1.442695, %v10478_v53  ;;  %v5712_v3 = vmul.f32 -1.442695, %v10482_v32 }
 0x447   : > { %v5186_v31 = vrot.slane %v5172_v63, %v11032_v62  ;;  %v7219_v0 = vpop.eup %7218  ;;  %v5106_v50 = vadd.f32 %v5105_v23, %v4113_v7  ;;  %v4123_v12 = vmul.f32 %v7217_v54, %v10381_v17  ;;  %7238 = vpow2.f32 %v5691_v21  ;;  %v11049_v17 = vld [vmem:[#allocation35_spill] sm:$0xff] }
 0x448   : > { %v7221_v46 = vpop.eup %7220  ;;  %v5070_v8 = vadd.f32 %v5069_v22, %v4122_v2  ;;  %v4132_v18 = vmul.f32 %v7219_v0, %v10387_v47  ;;  %7240 = vpow2.f32 %v5692_v5  ;;  %v5721_v42 = vmul.f32 -1.442695, %v10488_v44 }
 0x449   : > { %v5187_v43 = vcombine.low %v10369_v1, %v5186_v31  ;;  %v7223_v58 = vpop.eup %7222  ;;  %v5107_v38 = vadd.f32 %v5106_v50, %v4123_v12  ;;  %v4133_v6 = vmul.f32 %v7221_v46, %v10391_v56  ;;  %7242 = vpow2.f32 %v5701_v39  ;;  %v11051_v50 = vld [vmem:[#allocation23_spill] sm:$0xff] }
 0x44a   : > { %v7225_v45 = vpop.eup %7224  ;;  %v5071_v57 = vadd.f32 %v5070_v8, %v4132_v18  ;;  %v4142_v1 = vmul.f32 %v7223_v58, %v10395_v26  ;;  %7244 = vpow2.f32 %v5702_v33  ;;  %v10505_v21 = vadd.f32 %v11049_v17, %v9961_v52  ;;  %v11052_v8 = vld [vmem:[#allocation7_spill] sm:$0xff] }
 0x44b   : > { %v7227_v47 = vpop.eup %7226  ;;  %v5108_v27 = vadd.f32 %v5107_v38, %v4133_v6  ;;  %v3193_v40 = vadd.f32 1.0, %v7225_v45  ;;  %7246 = vpow2.f32 %v5711_v20  ;;  %v5218_v56 = vmul.f32 0.00390625, %v5187_v43  ;;  %v11050_v20 = vld [vmem:[#allocation12_spill] sm:$0xff] }
 0x44c   : > { %v7229_v23 = vpop.eup %7228  ;;  %v5072_v13 = vadd.f32 %v5071_v57, %v4142_v1  ;;  %v4143_v26 = vmul.f32 %v7227_v47, %v10403_v35  ;;  %7248 = vpow2.f32 %v5712_v3  ;;  %v5722_v5 = vmul.f32 -1.442695, %v10505_v21  ;;  %v11053_v38 = vld [vmem:[#allocation36_spill] sm:$0xff] }
 0x44d   : > { %v7231_v60 = vpop.eup %7230  ;;  %7250 = vrcp.f32 %v3193_v40  ;;  %v3202_v63 = vadd.f32 1.0, %v7229_v23  ;;  %5220 = vst [vmem:[%s10510_s15] sm:$0xff] %v5218_v56  ;;  %v10518_v3 = vadd.f32 %v11050_v20, %v9949_v59  ;;  %v10522_v12 = vadd.f32 %v11051_v50, %v9961_v52 }
 0x44e   : > { %v7233_v22 = vpop.eup %7232  ;;  %v5109_v24 = vadd.f32 %v5108_v27, %v4143_v26  ;;  %v3203_v48 = vadd.f32 1.0, %v7231_v60  ;;  %7252 = vpow2.f32 %v5721_v42  ;;  %v10526_v18 = vadd.f32 %v11052_v8, %v9949_v59 }
 0x44f   : > { %v7235_v39 = vpop.eup %7234  ;;  %7254 = vrcp.f32 %v3202_v63  ;;  %v3212_v9 = vadd.f32 1.0, %v7233_v22  ;;  %v10530_v6 = vadd.f32 %v11053_v38, %v9961_v52  ;;  %v10534_v45 = vadd.f32 %v10140_v10, %v9949_v59 }
 0x450   : > { %v7237_v11 = vpop.eup %7236  ;;  %v4152_v31 = vmul.f32 %v7235_v39, %v10409_v41  ;;  %7256 = vrcp.f32 %v3203_v48  ;;  %v5731_v17 = vmul.f32 -1.442695, %v10518_v3  ;;  %v10539_v47 = vadd.f32 %v10147_v28, %v9961_v52 }
 0x451   : > { %v7239_v7 = vpop.eup %7238  ;;  %7258 = vrcp.f32 %v3212_v9  ;;  %v3213_v35 = vadd.f32 1.0, %v7237_v11  ;;  %v5732_v56 = vmul.f32 -1.442695, %v10522_v12  ;;  %v5741_v10 = vmul.f32 -1.442695, %v10526_v18 }
 0x452   : > { %v7241_v33 = vpop.eup %7240  ;;  %v5073_v54 = vadd.f32 %v5072_v13, %v4152_v31  ;;  %v3222_v2 = vadd.f32 1.0, %v7239_v7  ;;  %7260 = vpow2.f32 %v5722_v5  ;;  %v10546_v26 = vadd.f32 %v10154_v34, %v9949_v59 }
 0x453   : > { %v7243_v0 = vpop.eup %7242  ;;  %7262 = vrcp.f32 %v3213_v35  ;;  %v3223_v43 = vadd.f32 1.0, %v7241_v33  ;;  %v5742_v28 = vmul.f32 -1.442695, %v10530_v6  ;;  %v5751_v22 = vmul.f32 -1.442695, %v10534_v45 }
 0x454   : > { %v7245_v41 = vpop.eup %7244  ;;  %7264 = vrcp.f32 %v3222_v2  ;;  %v3232_v46 = vadd.f32 1.0, %v7243_v0  ;;  %v10555_v34 = vadd.f32 %v10160_v4, %v9961_v52  ;;  %v10559_v31 = vadd.f32 %v10168_v55, %v9949_v59 }
 0x455   : > { %v7247_v42 = vpop.eup %7246  ;;  %7266 = vrcp.f32 %v3223_v43  ;;  %v3233_v58 = vadd.f32 1.0, %v7245_v41 }
 0x456   : > { %v7249_v57 = vpop.eup %7248  ;;  %7268 = vrcp.f32 %v3232_v46  ;;  %v3242_v1 = vadd.f32 1.0, %v7247_v42  ;;  %v5762_v50 = vmul.f32 -1.442695, %v10555_v34  ;;  %v5771_v41 = vmul.f32 -1.442695, %v10559_v31 }
 0x457   : > { %v7251_v27 = vpop.eup %7250  ;;  %7270 = vrcp.f32 %v3233_v58  ;;  %v3243_v40 = vadd.f32 1.0, %v7249_v57 }
 0x458   : > { %v7253_v23 = vpop.eup %7252  ;;  %v4153_v13 = vmul.f32 %v7251_v27, %v10417_v19  ;;  %7272 = vrcp.f32 %v3242_v1  ;;  %v5752_v19 = vmul.f32 -1.442695, %v10539_v47 }
 0x459   : > { %v7255_v60 = vpop.eup %7254  ;;  %7274 = vrcp.f32 %v3243_v40  ;;  %v3252_v63 = vadd.f32 1.0, %v7253_v23 }
 0x45a   : > { %v7257_v48 = vpop.eup %7256  ;;  %v5110_v5 = vadd.f32 %v5109_v24, %v4153_v13  ;;  %v4162_v39 = vmul.f32 %v7255_v60, %v10429_v16  ;;  %7276 = vpow2.f32 %v5731_v17  ;;  %v5761_v16 = vmul.f32 -1.442695, %v10546_v26 }
 0x45b   : > { %v7259_v9 = vpop.eup %7258  ;;  %v4163_v11 = vmul.f32 %v7257_v48, %v10435_v51  ;;  %7278 = vrcp.f32 %v3252_v63  ;;  %v10565_v51 = vadd.f32 %v10171_v36, %v9961_v52 }
 0x45c   : > { %v7261_v7 = vpop.eup %7260  ;;  %v5074_v35 = vadd.f32 %v5073_v54, %v4162_v39  ;;  %v4172_v24 = vmul.f32 %v7259_v9, %v10439_v37  ;;  %7280 = vpow2.f32 %v5732_v56  ;;  %v10570_v54 = vadd.f32 %v10177_v49, %v9949_v59 }
 0x45d   : > { %v7263_v33 = vpop.eup %7262  ;;  %v5111_v2 = vadd.f32 %v5110_v5, %v4163_v11  ;;  %v3253_v20 = vadd.f32 1.0, %v7261_v7  ;;  %7282 = vpow2.f32 %v5741_v10 }
 0x45e   : > { %v7265_v4 = vpop.eup %7264  ;;  %v5075_v0 = vadd.f32 %v5074_v35, %v4172_v24  ;;  %v4173_v55 = vmul.f32 %v7263_v33, %v10444_v25  ;;  %7284 = vpow2.f32 %v5742_v28  ;;  %v11054_v25 = vld [vmem:[#allocation39_spill] sm:$0xff]  ;;  %v5781_v17 = vmul.f32 -1.442695, %v10570_v54 }
 0x45f   : > { %v7267_v37 = vpop.eup %7266  ;;  %v4182_v43 = vmul.f32 %v7265_v4, %v10449_v61  ;;  %7286 = vrcp.f32 %v3253_v20  ;;  %v10578_v42 = vadd.f32 %v11054_v25, %v9961_v52  ;;  %v5772_v61 = vmul.f32 -1.442695, %v10565_v51 }
 0x460   : > { %v7269_v46 = vpop.eup %7268  ;;  %v5112_v36 = vadd.f32 %v5111_v2, %v4173_v55  ;;  %v4183_v8 = vmul.f32 %v7267_v37, %v10458_v14  ;;  %7288 = vpow2.f32 %v5751_v22 }
 0x461   : > { %v7271_v58 = vpop.eup %7270  ;;  %v5076_v59 = vadd.f32 %v5075_v0, %v4182_v43  ;;  %v4192_v49 = vmul.f32 %v7269_v46, %v10462_v15  ;;  %7290 = vpow2.f32 %v5752_v19  ;;  %v5782_v15 = vmul.f32 -1.442695, %v10578_v42 }
 0x462   : > { %v7273_v38 = vpop.eup %7272  ;;  %v5113_v57 = vadd.f32 %v5112_v36, %v4183_v8  ;;  %v4193_v1 = vmul.f32 %v7271_v58, %v10468_v29  ;;  %7292 = vpow2.f32 %v5761_v16 }
 0x463   : > { %v7275_v14 = vpop.eup %7274  ;;  %v5077_v27 = vadd.f32 %v5076_v59, %v4192_v49  ;;  %v4202_v40 = vmul.f32 %v7273_v38, %v10478_v53  ;;  %7294 = vpow2.f32 %v5762_v50 }
 0x464   : > { %v7277_v52 = vpop.eup %7276  ;;  %v5114_v56 = vadd.f32 %v5113_v57, %v4193_v1  ;;  %v4203_v23 = vmul.f32 %v7275_v14, %v10482_v32  ;;  %7296 = vpow2.f32 %v5771_v41 }
 0x465   : > { %v7279_v13 = vpop.eup %7278  ;;  %v5078_v10 = vadd.f32 %v5077_v27, %v4202_v40  ;;  %v3262_v60 = vadd.f32 1.0, %v7277_v52  ;;  %7298 = vpow2.f32 %v5772_v61 }
 0x466   : > { %v7281_v29 = vpop.eup %7280  ;;  %v5115_v63 = vadd.f32 %v5114_v56, %v4203_v23  ;;  %v4212_v28 = vmul.f32 %v7279_v13, %v10488_v44  ;;  %7300 = vpow2.f32 %v5781_v17 }
 0x467   : > { %v7283_v22 = vpop.eup %7282  ;;  %7302 = vrcp.f32 %v3262_v60  ;;  %v3263_v53 = vadd.f32 1.0, %v7281_v29 }
 0x468   : > { %v7285_v48 = vpop.eup %7284  ;;  %v5079_v5 = vadd.f32 %v5078_v10, %v4212_v28  ;;  %v3272_v39 = vadd.f32 1.0, %v7283_v22  ;;  %7304 = vpow2.f32 %v5782_v15 }
 0x469   : > { %v7287_v32 = vpop.eup %7286  ;;  %7306 = vrcp.f32 %v3263_v53  ;;  %v3273_v19 = vadd.f32 1.0, %v7285_v48 }
 0x46a   : > { %v7289_v9 = vpop.eup %7288  ;;  %v4213_v11 = vmul.f32 %v7287_v32, %v10505_v21  ;;  %7308 = vrcp.f32 %v3272_v39 }
 0x46b   : > { %v7291_v7 = vpop.eup %7290  ;;  %7310 = vrcp.f32 %v3273_v19  ;;  %v3282_v35 = vadd.f32 1.0, %v7289_v9 }
 0x46c   : > { %v7293_v24 = vpop.eup %7292  ;;  %v5116_v44 = vadd.f32 %v5115_v63, %v4213_v11  ;;  %v3283_v16 = vadd.f32 1.0, %v7291_v7 }
 0x46d   : > { %v7295_v33 = vpop.eup %7294  ;;  %7312 = vrcp.f32 %v3282_v35  ;;  %v3292_v2 = vadd.f32 1.0, %v7293_v24 }
 0x46e   : > { %v7297_v20 = vpop.eup %7296  ;;  %7314 = vrcp.f32 %v3283_v16  ;;  %v3293_v4 = vadd.f32 1.0, %v7295_v33  ;;  %v4758_v33 = vld [vmem:[#allocation2 + $0x8] sm:$0x3] }
 0x46f   : > { %v7299_v0 = vpop.eup %7298  ;;  %7316 = vrcp.f32 %v3292_v2  ;;  %v3302_v55 = vadd.f32 1.0, %v7297_v20 }
 0x470   : > { %v7301_v37 = vpop.eup %7300  ;;  %7318 = vrcp.f32 %v3293_v4  ;;  %v3303_v43 = vadd.f32 1.0, %v7299_v0 }
 0x471   : > { %v7303_v21 = vpop.eup %7302  ;;  %7320 = vrcp.f32 %v3302_v55  ;;  %v3312_v50 = vadd.f32 1.0, %v7301_v37 }
 0x472   : > { %v7305_v41 = vpop.eup %7304  ;;  %v4222_v46 = vmul.f32 %v7303_v21, %v10518_v3  ;;  %7322 = vrcp.f32 %v3303_v43 }
 0x473   : > { %v7307_v36 = vpop.eup %7306  ;;  %7324 = vrcp.f32 %v3312_v50  ;;  %v3313_v8 = vadd.f32 1.0, %v7305_v41 }
 0x474   : > { %v7309_v25 = vpop.eup %7308  ;;  %v5080_v58 = vadd.f32 %v5079_v5, %v4222_v46  ;;  %v4223_v59 = vmul.f32 %v7307_v36, %v10522_v12 }
 0x475   : > { %v7311_v49 = vpop.eup %7310  ;;  %v4232_v61 = vmul.f32 %v7309_v25, %v10526_v18  ;;  %7326 = vrcp.f32 %v3313_v8 }
 0x476   : > { %v5117_v38 = vadd.f32 %v5116_v44, %v4223_v59  ;;  %v4233_v57 = vmul.f32 %v7311_v49, %v10530_v6 }
 0x477   : > { %v7313_v1 = vpop.eup %7312  ;;  %v5081_v17 = vadd.f32 %v5080_v58, %v4232_v61 }
 0x478   : > { %v7315_v14 = vpop.eup %7314  ;;  %v5118_v27 = vadd.f32 %v5117_v38, %v4233_v57  ;;  %v4242_v3 = vmul.f32 %v7313_v1, %v10534_v45 }
 0x479   : > { %v7317_v40 = vpop.eup %7316  ;;  %v4243_v52 = vmul.f32 %v7315_v14, %v10539_v47 }
 0x47a   : > { %v7319_v56 = vpop.eup %7318  ;;  %v5082_v23 = vadd.f32 %v5081_v17, %v4242_v3  ;;  %v4252_v12 = vmul.f32 %v7317_v40, %v10546_v26 }
 0x47b   : > { %v7321_v15 = vpop.eup %7320  ;;  %v5119_v13 = vadd.f32 %v5118_v27, %v4243_v52  ;;  %v4253_v18 = vmul.f32 %v7319_v56, %v10555_v34 }
 0x47c   : > { %v7323_v10 = vpop.eup %7322  ;;  %v5083_v60 = vadd.f32 %v5082_v23, %v4252_v12  ;;  %v4262_v6 = vmul.f32 %v7321_v15, %v10559_v31 }
 0x47d   : > { %v7325_v29 = vpop.eup %7324  ;;  %v5120_v63 = vadd.f32 %v5119_v13, %v4253_v18  ;;  %v4263_v28 = vmul.f32 %v7323_v10, %v10565_v51 }
 0x47e   : > { %v5084_v45 = vadd.f32 %v5083_v60, %v4262_v6  ;;  %v4272_v22 = vmul.f32 %v7325_v29, %v10570_v54 }
 0x47f   : > { %v7327_v47 = vpop.eup %7326  ;;  %v5121_v53 = vadd.f32 %v5120_v63, %v4263_v28 }
 0x480   : > { %v5085_v48 = vadd.f32 %v5084_v45, %v4272_v22  ;;  %v4273_v26 = vmul.f32 %v7327_v47, %v10578_v42 }
 0x482   : > { %v5086_v5 = vrot.slane %v5085_v48, 4  ;;  %v5122_v39 = vadd.f32 %v5121_v53, %v4273_v26 }
 0x484   : > { %v5087_v32 = vadd.f32 %v5086_v5, %v5085_v48  ;;  %v5123_v34 = vrot.slane %v5122_v39, 4 }
 0x486   : > { %v5088_v19 = vrot.slane %v5087_v32, 2  ;;  %v5124_v9 = vadd.f32 %v5123_v34, %v5122_v39 }
 0x488   : > { %v5089_v31 = vadd.f32 %v5088_v19, %v5087_v32  ;;  %v5125_v11 = vrot.slane %v5124_v9, 2 }
 0x48a   : > { %v5090_v7 = vrot.slane %v5089_v31, 1  ;;  %v5126_v35 = vadd.f32 %v5125_v11, %v5124_v9 }
 0x48c   : > { %v5091_v51 = vadd.f32 %v5090_v7, %v5089_v31  ;;  %v5127_v24 = vrot.slane %v5126_v35, 1 }
 0x48e   : > { %v5128_v44 = vadd.f32 %v5127_v24, %v5126_v35 }
 0x490   : > { %v5188_v54 = vcombine.low %v5091_v51, %v5128_v44 }
 0x492   : > { %v5195_v16 = vrot.slane %v5188_v54, %v11032_v62 }
 0x494   : > { %v5202_v42 = vrot.slane %v5195_v16, %v11032_v62 }
 0x496   : > { %v5206_v2 = vadd.f32 %v5202_v42, %v4758_v33 }
 0x498   : > { %5212 = vst.msk [vmem:[#allocation2 + $0x8] sm:$0x3] %vm10287_vm1, %v5206_v2 }
 0x49f   : > { %v5217_v20 = vld [vmem:[#allocation2 + $0x8] sm:$0x3] }
 0x4a0   : > { %v5219_v4 = vmul.f32 0.00390625, %v5217_v20 }
 0x4a2   : > { %5221 = vst.msk [vmem:[%s10510_s15 + $0x8] sm:$0x3] %vm10287_vm1, %v5219_v4 }
 0x4a3 PF: > { %s15_s20 = sadd.s32 1, %s7352_s20   ;;  %s11055_s18 = smov %s7348_s19 }
 0x4a4   : > { %p12_p5 = scmp.ge.s32.totalorder %s15_s20, 4   ;;  %s11056_s19 = smov %s11058_s21 }
 0x4a6   :  { %14 = sbr.rel (!%p12_p5) target bundleno = 2 (0x2), region = 78 }

</bundles_post_ra>
